<compile_context>
chip_gen: v5e
topology: v5e:2x2
jax: 0.10.0
libtpu: 0.0.40
codegen_flags: <defaults>
</compile_context>

<pallas_src>
import functools

import jax
import jax.numpy as jnp
from jax.experimental import pallas as pl
from jax.experimental.pallas import tpu as pltpu

_VMEM_LIMIT = 32 * 1024 * 1024   # safe on v5e/v6e (128 MiB) and v7x (64 MiB/TC)
_BN_EPS = 1e-5


def _round_up(x, m):
    return (x + m - 1) // m * m


def _tile_rows(d, cap):
    """Sublane GEMM tile: full extent if small, else the largest multiple of 8
    <= cap dividing d (avoids pad / slice copies)."""
    if d <= cap:
        return d
    for c in range(cap, 7, -8):
        if d % c == 0:
            return c
    return cap


def _tile_lanes(d, cap=1024):
    """Lane GEMM tile: a multiple of 128 dividing d, or the full dim."""
    if d <= cap:
        return d
    for c in range(cap, 127, -128):
        if d % c == 0:
            return c
    return cap


# ---------------------------------------------------------------------------
# Kernel 1: bf16 tiled matmul, f32 accumulator, fused bias + residual + ReLU.
# Used for every 1x1 conv, the im2col convs, the FC heads and the split-K
# "concat-free" head convs (residual carries the other K-partition's partials).
# ---------------------------------------------------------------------------
def _mm_kernel(*refs, relu, has_res):
    if has_res:
        a_ref, b_ref, bias_ref, res_ref, o_ref, acc_ref = refs
    else:
        a_ref, b_ref, bias_ref, o_ref, acc_ref = refs
        res_ref = None

    @pl.when(pl.program_id(2) == 0)
    def _():
        acc_ref[...] = jnp.zeros_like(acc_ref)

    acc_ref[...] += jnp.dot(a_ref[...], b_ref[...],
                            preferred_element_type=jnp.float32)

    @pl.when(pl.program_id(2) == pl.num_programs(2) - 1)
    def _():
        r = acc_ref[...] + bias_ref[...]
        if res_ref is not None:
            r = r + res_ref[...].astype(jnp.float32)
        if relu:
            r = jnp.maximum(r, 0.0)
        o_ref[...] = r.astype(o_ref.dtype)


@functools.partial(jax.jit, static_argnames=("relu", "out_dtype"))
def matmul_bias_act(a, b, bias=None, residual=None, *, relu=False,
                    out_dtype=jnp.bfloat16):
    M, K = a.shape
    _, N = b.shape
    a = a.astype(jnp.bfloat16)
    b = b.astype(jnp.bfloat16)
    if bias is None:
        bias = jnp.zeros((N,), jnp.float32)
    bias = bias.astype(jnp.float32).reshape(1, N)

    # review: larger tiles (cap 1024; 2048 on M for skinny-N GEMMs)
    row_cap = 2048 if N <= 128 else 1024
    tm = _tile_rows(M, row_cap)
    tk = _tile_lanes(K)
    tn = _tile_lanes(N)
    Mp, Kp, Np = _round_up(M, tm), _round_up(K, tk), _round_up(N, tn)

    # review (v7x): guarantee >=2 parallel output blocks when possible so the
    # two TensorCores both get work (no effect on v5e/v6e correctness/perf).
    while (Mp // tm) * (Np // tn) < 2:
        if tn % 256 == 0:
            tn //= 2
        elif tm % 16 == 0:
            tm //= 2
        else:
            break

    if Mp != M:
        a = jnp.pad(a, ((0, Mp - M), (0, 0)))
    if Kp != K:
        a = jnp.pad(a, ((0, 0), (0, Kp - K)))
        b = jnp.pad(b, ((0, Kp - K), (0, 0)))
    if Np != N:
        b = jnp.pad(b, ((0, 0), (0, Np - N)))
        bias = jnp.pad(bias, ((0, 0), (0, Np - N)))

    operands = [a, b, bias]
    in_specs = [
        pl.BlockSpec((tm, tk), lambda i, j, k: (i, k)),
        pl.BlockSpec((tk, tn), lambda i, j, k: (k, j)),
        pl.BlockSpec((1, tn), lambda i, j, k: (0, j)),
    ]
    has_res = residual is not None
    if has_res:
        r = residual                      # bf16 activations or f32 partials
        if Mp != M or Np != N:
            r = jnp.pad(r, ((0, Mp - M), (0, Np - N)))
        operands.append(r)
        in_specs.append(pl.BlockSpec((tm, tn), lambda i, j, k: (i, j)))

    out = pl.pallas_call(
        functools.partial(_mm_kernel, relu=relu, has_res=has_res),
        out_shape=jax.ShapeDtypeStruct((Mp, Np), out_dtype),
        grid_spec=pltpu.PrefetchScalarGridSpec(
            num_scalar_prefetch=0,
            grid=(Mp // tm, Np // tn, Kp // tk),
            in_specs=in_specs,
            out_specs=pl.BlockSpec((tm, tn), lambda i, j, k: (i, j)),
            scratch_shapes=[pltpu.VMEM((tm, tn), jnp.float32)],
        ),
        compiler_params=pltpu.CompilerParams(
            dimension_semantics=("parallel", "parallel", "arbitrary"),
            vmem_limit_bytes=_VMEM_LIMIT),
    )(*operands)
    if Mp != M or Np != N:
        out = out[:M, :N]
    return out


# ---------------------------------------------------------------------------
# Kernel 2: direct 3x3 / stride-1 / pad-1 conv (no im2col, no output slice).
# The padded image is flattened with a sublane-aligned row pitch Wr (>= W+1,
# multiple of 16) and two zero margin rows above/below; the 9 taps are
# row-shifted windows of this buffer, accumulated on the MXU into an f32
# scratch initialised by the first tap.  Only the real H x W output window is
# written back.
# ---------------------------------------------------------------------------
def _conv3x3_kernel(x_ref, w_ref, o_ref, acc_ref, *, H, W, Wr, relu):
    M = H * Wr
    xc = x_ref[0]                               # (L, Cin) flattened padded img
    t = 0
    for di in (-1, 0, 1):
        base = (2 + di) * Wr                    # sublane-aligned row shift
        for dj in (-1, 0, 1):
            s = base + dj
            lhs = xc[s:s + M, :]
            prod = jnp.dot(lhs, w_ref[t],
                           preferred_element_type=jnp.float32)
            if t == 0:
                acc_ref[...] = prod             # review: no zero-fill pass
            else:
                acc_ref[...] += prod
            t += 1
    r = acc_ref[...]
    if relu:
        r = jnp.maximum(r, 0.0)
    # drop the right zero-pad columns in VMEM; output leaves the kernel unpadded
    o_ref[0] = r.reshape(H, Wr, -1)[:, :W, :].astype(o_ref.dtype)


@functools.partial(jax.jit, static_argnames=("relu",))
def conv3x3_s1(x, w, *, relu=True):
    N, H, W, Cin = x.shape
    Cout = w.shape[-1]
    Wr = _round_up(W + 1, 16)        # row pitch: >=1 zero col, bf16-aligned
    L = (H + 4) * Wr                 # 2 zero margin rows above and below
    # single pad in XLA (review: the old pad->pad->slice round-trips are gone)
    xq = jnp.pad(x.astype(jnp.bfloat16),
                 ((0, 0), (2, 2), (0, Wr - W), (0, 0))).reshape(N, L, Cin)
    w9 = w.astype(jnp.bfloat16).reshape(9, Cin, Cout)

    return pl.pallas_call(
        functools.partial(_conv3x3_kernel, H=H, W=W, Wr=Wr, relu=relu),
        out_shape=jax.ShapeDtypeStruct((N, H, W, Cout), jnp.bfloat16),
        grid=(N,),
        in_specs=[
            pl.BlockSpec((1, L, Cin), lambda n: (n, 0, 0)),
            pl.BlockSpec((9, Cin, Cout), lambda n: (0, 0, 0)),
        ],
        out_specs=pl.BlockSpec((1, H, W, Cout), lambda n: (n, 0, 0, 0)),
        scratch_shapes=[pltpu.VMEM((H * Wr, Cout), jnp.float32)],
        compiler_params=pltpu.CompilerParams(
            dimension_semantics=("parallel",),
            vmem_limit_bytes=_VMEM_LIMIT),
    )(xq, w9)


# ---------------------------------------------------------------------------
# Kernel 3: 3x3 / stride-2 / pad-1 max pool (even/odd column planes reduced
# per image with leading-dim reshapes only).
# ---------------------------------------------------------------------------
def _maxpool_kernel(xe_ref, xo_ref, o_ref):
    xe = xe_ref[0]
    xo = xo_ref[0]
    hp, wh, c = xe.shape
    ho = (hp - 2) // 2
    wo = wh - 1

    def hreduce(v):                       # max over rows 2h, 2h+1, 2h+2
        a = v[0:2 * ho].reshape(ho, 2, wh, c)
        b = v[2:2 * ho + 2].reshape(ho, 2, wh, c)
        return jnp.maximum(jnp.max(a, axis=1), b[:, 0])

    he = hreduce(xe)                      # even input columns
    hod = hreduce(xo)                     # odd  input columns
    out = jnp.maximum(jnp.maximum(he[:, :wo], hod[:, :wo]), he[:, 1:wo + 1])
    o_ref[0] = out.astype(o_ref.dtype)


@jax.jit
def maxpool_3x3_s2_p1(x):  # (N, H, W, C)
    N, H, W, C = x.shape
    Ho = (H + 2 - 3) // 2 + 1
    Wo = (W + 2 - 3) // 2 + 1
    xp = jnp.pad(x, ((0, 0), (1, 1), (1, 1), (0, 0)),
                 constant_values=-jnp.inf)
    xe = xp[:, :, 0::2, :]
    xo = xp[:, :, 1::2, :]
    return pl.pallas_call(
        _maxpool_kernel,
        out_shape=jax.ShapeDtypeStruct((N, Ho, Wo, C), x.dtype),
        grid=(N,),
        in_specs=[pl.BlockSpec((1,) + xe.shape[1:], lambda n: (n, 0, 0, 0)),
                  pl.BlockSpec((1,) + xo.shape[1:], lambda n: (n, 0, 0, 0))],
        out_specs=pl.BlockSpec((1, Ho, Wo, C), lambda n: (n, 0, 0, 0)),
        compiler_params=pltpu.CompilerParams(
            dimension_semantics=("parallel",),
            vmem_limit_bytes=_VMEM_LIMIT),
    )(xe, xo)


# ---------------------------------------------------------------------------
# Kernel 4: 2x bilinear upsample (align_corners=False, the modern F.upsample
# default).  Neighbours are built in-kernel; the output is written in a
# phase-interleaved (N, Hi, 2, Wi, 2*C) layout so the final reshape to
# (N, 2H, 2W, C) is a free row-major reshape (review: no 6-D XLA transpose,
# no pre-shifted xl/xr inputs).
# ---------------------------------------------------------------------------
def _up2x_kernel(x_ref, o_ref):
    x = x_ref[0].astype(jnp.float32)                      # (Hi, Wi, C)
    xu = jnp.concatenate([x[:1], x[:-1]], axis=0)         # clamped up
    xd = jnp.concatenate([x[1:], x[-1:]], axis=0)         # clamped down
    he = 0.75 * x + 0.25 * xu                             # even output rows
    ho = 0.75 * x + 0.25 * xd                             # odd  output rows

    def wblend(v):
        vl = jnp.concatenate([v[:, :1], v[:, :-1]], axis=1)   # clamped left
        vr = jnp.concatenate([v[:, 1:], v[:, -1:]], axis=1)   # clamped right
        return jnp.concatenate([0.75 * v + 0.25 * vl,         # even cols
                                0.75 * v + 0.25 * vr],         # odd  cols
                               axis=-1)                        # (Hi, Wi, 2C)

    dt = o_ref.dtype
    o_ref[0, :, 0, :, :] = wblend(he).astype(dt)
    o_ref[0, :, 1, :, :] = wblend(ho).astype(dt)


@jax.jit
def bilinear_upsample_2x(x):  # (N, Hi, Wi, C) -> (N, 2Hi, 2Wi, C)
    # TODO(synk): matches F.interpolate(mode='bilinear', align_corners=False);
    # very old PyTorch F.upsample defaulted to align_corners=True.
    N, Hi, Wi, C = x.shape
    out = pl.pallas_call(
        _up2x_kernel,
        out_shape=jax.ShapeDtypeStruct((N, Hi, 2, Wi, 2 * C), x.dtype),
        grid=(N,),
        in_specs=[pl.BlockSpec((1, Hi, Wi, C), lambda n: (n, 0, 0, 0))],
        out_specs=pl.BlockSpec((1, Hi, 2, Wi, 2 * C),
                               lambda n: (n, 0, 0, 0, 0)),
        compiler_params=pltpu.CompilerParams(
            dimension_semantics=("parallel",),
            vmem_limit_bytes=_VMEM_LIMIT),
    )(x)
    return out.reshape(N, 2 * Hi, 2 * Wi, C)   # free row-major reshape


# ---------------------------------------------------------------------------
# Kernel 5: global average pool (AvgPool2d(k) with k == spatial size).
# ---------------------------------------------------------------------------
def _gap_kernel(x_ref, o_ref):
    o_ref[...] = jnp.mean(x_ref[...].astype(jnp.float32), axis=1,
                          keepdims=True)


@jax.jit
def global_avg_pool(x):  # (N, H, W, C) -> (N, C) f32
    N, H, W, C = x.shape
    x2 = x.reshape(N, H * W, C)
    out = pl.pallas_call(
        _gap_kernel,
        out_shape=jax.ShapeDtypeStruct((N, 1, C), jnp.float32),
        grid=(N,),
        in_specs=[pl.BlockSpec((1, H * W, C), lambda i: (i, 0, 0))],
        out_specs=pl.BlockSpec((1, 1, C), lambda i: (i, 0, 0)),
        compiler_params=pltpu.CompilerParams(
            dimension_semantics=("parallel",),
            vmem_limit_bytes=_VMEM_LIMIT),
    )(x2)
    return out.reshape(N, C)


# ---------------------------------------------------------------------------
# Conv2d = (optional im2col glue) + fused-epilogue Pallas GEMM.
# Used for 1x1 convs, the 7x7 stem and the three stride-2 3x3 convs.
# ---------------------------------------------------------------------------
@functools.partial(jax.jit,
                   static_argnames=("stride", "pad", "relu", "out_dtype"))
def conv2d(x, w, bias=None, residual=None, *, stride=1, pad=0, relu=False,
           out_dtype=jnp.bfloat16):
    N, H, W, Cin = x.shape
    kh, kw, _, Cout = w.shape
    Ho = (H + 2 * pad - kh) // stride + 1
    Wo = (W + 2 * pad - kw) // stride + 1
    x = x.astype(jnp.bfloat16)
    if pad:
        x = jnp.pad(x, ((0, 0), (pad, pad), (pad, pad), (0, 0)))
    if kh == 1 and kw == 1:
        if stride != 1:
            x = x[:, ::stride, ::stride, :]
        patches = x.reshape(N * Ho * Wo, Cin)
    else:
        cols = []
        for i in range(kh):
            for j in range(kw):
                cols.append(x[:, i:i + stride * Ho:stride,
                              j:j + stride * Wo:stride, :])
        patches = jnp.stack(cols, axis=3).reshape(N * Ho * Wo, kh * kw * Cin)
    out = matmul_bias_act(patches, w.reshape(kh * kw * Cin, Cout), bias,
                          residual, relu=relu, out_dtype=out_dtype)
    return out.reshape(N, Ho, Wo, Cout)


@functools.partial(jax.jit, static_argnames=("relu",))
def conv1x1_pair(xa, xb, w, bias, *, relu=True):
    """1x1 conv on channel-concat([xa, xb]) without materializing the concat:
    two GEMMs over the two K partitions; the second accumulates the first's
    f32 partial sums through the fused residual epilogue (review item)."""
    n, h, wd, ca = xa.shape
    cb = xb.shape[-1]
    cout = w.shape[-1]
    w2 = w.reshape(ca + cb, cout)
    part = matmul_bias_act(xa.reshape(n * h * wd, ca), w2[:ca],
                           out_dtype=jnp.float32)
    out = matmul_bias_act(xb.reshape(n * h * wd, cb), w2[ca:], bias,
                          residual=part, relu=relu)
    return out.reshape(n, h, wd, cout)


# ---------------------------------------------------------------------------
# Deterministic synthetic parameters (He init; eval-mode BN folded into convs).
# ---------------------------------------------------------------------------
class ParamGen:
    def __init__(self, key):
        self.key = key
        self.i = 0

    def _next(self):
        self.i += 1
        return jax.random.fold_in(self.key, self.i)

    def conv(self, kh, kw, cin, cout, bn_fold=True):
        std = (2.0 / (kh * kw * cin)) ** 0.5
        w = std * jax.random.normal(self._next(), (kh, kw, cin, cout),
                                    jnp.float32)
        if bn_fold:  # eval-mode BN with mean=0, var=1, gamma=1, beta=0
            w = w / jnp.sqrt(1.0 + _BN_EPS)
        return w.astype(jnp.bfloat16)

    def linear(self, cin, cout):
        std = (1.0 / cin) ** 0.5
        w = std * jax.random.normal(self._next(), (cin, cout), jnp.float32)
        return w.astype(jnp.bfloat16)

    def bias(self, n):
        return 0.01 * jax.random.normal(self._next(), (n,), jnp.float32)


def make_layer(pg, in_ch, planes, blocks, stride):
    layer = []
    out_ch = planes * 4
    for b in range(blocks):
        s = stride if b == 0 else 1
        p = {
            "stride": s,
            "w1": pg.conv(1, 1, in_ch, planes),
            "w2": pg.conv(3, 3, planes, planes),
            "w3": pg.conv(1, 1, planes, out_ch),
        }
        if b == 0:
            p["wd"] = pg.conv(1, 1, in_ch, out_ch)
        layer.append(p)
        in_ch = out_ch
    return layer, out_ch


def bottleneck(x, p):
    s = p["stride"]
    out = conv2d(x, p["w1"], relu=True)                         # 1x1
    if s == 1:
        out = conv3x3_s1(out, p["w2"], relu=True)               # direct 3x3
    else:
        out = conv2d(out, p["w2"], stride=s, pad=1, relu=True)  # im2col 3x3
    if "wd" in p:
        identity = conv2d(x, p["wd"], stride=s)
    else:
        identity = x
    n, ho, wo, cout = identity.shape
    res = identity.reshape(n * ho * wo, cout)
    # residual add + ReLU fused into the GEMM epilogue of the third 1x1 conv
    return conv2d(out, p["w3"], residual=res, relu=True)


def run_layer(x, layer):
    for p in layer:
        x = bottleneck(x, p)
    return x


def init_params(num_classes, key, blocks=(3, 4, 6, 3)):
    pg = ParamGen(key)
    params = {"conv1": pg.conv(7, 7, 3, 64)}
    in_ch = 64
    params["layer1"], in_ch = make_layer(pg, in_ch, 64, blocks[0], 1)
    params["layer2"], in_ch = make_layer(pg, in_ch, 128, blocks[1], 2)
    params["layer3"], in_ch = make_layer(pg, in_ch, 256, blocks[2], 2)
    params["layer4"], in_ch = make_layer(pg, in_ch, 512, blocks[3], 2)
    params["cov4_w"] = pg.conv(1, 1, 2048, 2048, bn_fold=False)
    params["cov4_b"] = pg.bias(2048)
    params["cov3_w"] = pg.conv(1, 1, 3072, 1024, bn_fold=False)
    params["cov3_b"] = pg.bias(1024)
    params["cov2_w"] = pg.conv(1, 1, 1536, 512, bn_fold=False)
    params["cov2_b"] = pg.bias(512)
    params["cov3_1_w"] = pg.conv(1, 1, 1024, 1024, bn_fold=False)
    params["cov3_1_b"] = pg.bias(1024)
    params["cov2_1_w"] = pg.conv(1, 1, 512, 512, bn_fold=False)
    params["cov2_1_b"] = pg.bias(512)
    params["fc1_w"] = pg.linear(2048, num_classes)
    params["fc1_b"] = pg.bias(num_classes)
    params["fc2_w"] = pg.linear(1024, num_classes)
    params["fc2_b"] = pg.bias(num_classes)
    params["fc3_w"] = pg.linear(512, num_classes)
    params["fc3_b"] = pg.bias(num_classes)
    return params


# ---------------------------------------------------------------------------
# Full ResNetCHR forward.
# ---------------------------------------------------------------------------
def resnet_chr_forward(params, x_nchw):
    x = jnp.transpose(x_nchw, (0, 2, 3, 1)).astype(jnp.bfloat16)  # NCHW->NHWC

    # self.features = conv1 + bn1 + relu + maxpool
    x = conv2d(x, params["conv1"], stride=2, pad=3, relu=True)
    x = maxpool_3x3_s2_p1(x)                               # (N, 56, 56, 64)

    l1 = run_layer(x, params["layer1"])                    # (N, 56, 56, 256)
    l2 = run_layer(l1, params["layer2"])                   # (N, 28, 28, 512)
    l3 = run_layer(l2, params["layer3"])                   # (N, 14, 14, 1024)
    l4 = run_layer(l3, params["layer4"])                   # (N,  7,  7, 2048)

    # head 1: cov4 -> relu -> AvgPool(7) -> fc1
    l4_2 = conv2d(l4, params["cov4_w"], params["cov4_b"], relu=True)
    o1 = matmul_bias_act(global_avg_pool(l4_2), params["fc1_w"],
                         params["fc1_b"], out_dtype=jnp.float32)

    # head 2: cat([upsample(l4), relu(cov3_1(l3))]) -> cov3 -> relu -> fc2
    l3_2 = conv2d(l3, params["cov3_1_w"], params["cov3_1_b"], relu=True)
    up4 = bilinear_upsample_2x(l4)
    l3_5 = conv1x1_pair(up4, l3_2, params["cov3_w"], params["cov3_b"],
                        relu=True)
    o2 = matmul_bias_act(global_avg_pool(l3_5), params["fc2_w"],
                         params["fc2_b"], out_dtype=jnp.float32)

    # head 3: cat([upsample(l3_5), relu(cov2_1(l2))]) -> cov2 -> relu -> fc3
    l2_2 = conv2d(l2, params["cov2_1_w"], params["cov2_1_b"], relu=True)
    up35 = bilinear_upsample_2x(l3_5)
    l2_5 = conv1x1_pair(up35, l2_2, params["cov2_w"], params["cov2_b"],
                        relu=True)
    o3 = matmul_bias_act(global_avg_pool(l2_5), params["fc3_w"],
                         params["fc3_b"], out_dtype=jnp.float32)

    return o1, o2, o3


if __name__ == "__main__":
    num_classes = 10
    batch = 2
    # The hard-coded AvgPool2d(7/14/28) heads force a 224x224 input.  One
    # Bottleneck per stage keeps the self-test small/fast while exercising
    # every kernel (stem, maxpool, stride-1/2 3x3, fused-residual 1x1, GAP,
    # upsample, split-K head convs).  Use blocks=(3, 4, 6, 3) for ResNet-50.
    x = jax.random.normal(jax.random.PRNGKey(0), (batch, 3, 224, 224),
                          jnp.float32)
    params = init_params(num_classes, jax.random.PRNGKey(1),
                         blocks=(1, 1, 1, 1))

    o1, o2, o3 = resnet_chr_forward(params, x)
    o1, o2, o3 = jax.block_until_ready((o1, o2, o3))

    assert o1.shape == (batch, num_classes)
    assert o2.shape == (batch, num_classes)
    assert o3.shape == (batch, num_classes)
    assert bool(jnp.all(jnp.isfinite(o1)) & jnp.all(jnp.isfinite(o2))
                & jnp.all(jnp.isfinite(o3)))
    print("KERNEL_OK")
</pallas_src>

<mosaic_0001>
module attributes {stable_mosaic.version = 11 : i64} {
  func.func @_mm_kernel(%arg0: i32, %arg1: i32, %arg2: i32, %arg3: memref<1792x147xbf16, #tpu.memory_space<vmem>>, %arg4: memref<147x64xbf16, #tpu.memory_space<vmem>>, %arg5: memref<1x64xf32, #tpu.memory_space<vmem>>, %arg6: memref<1792x64xbf16, #tpu.memory_space<vmem>>, %arg7: memref<1792x64xf32, #tpu.memory_space<vmem>>) attributes {dimension_semantics = [#tpu.dimension_semantics<parallel>, #tpu.dimension_semantics<parallel>, #tpu.dimension_semantics<arbitrary>], iteration_bounds = array<i64: 14, 1, 1>, scalar_prefetch = 0 : i64, scratch_operands = 1 : i64, tpu.core_type = #tpu.core_type<tc>, window_params = [{transform_indices = @transform_0, window_bounds = array<i64: 1792, 147>}, {transform_indices = @transform_1, window_bounds = array<i64: 147, 64>}, {transform_indices = @transform_2, window_bounds = array<i64: 1, 64>}, {transform_indices = @transform_3, window_bounds = array<i64: 1792, 64>}]} {
    %c0_i32 = arith.constant 0 : i32
    %0 = arith.cmpi eq, %arg2, %c0_i32 : i32
    %1 = arith.extui %0 : i1 to i32
    %c0_i32_0 = arith.constant 0 : i32
    %2 = arith.cmpi ne, %1, %c0_i32_0 : i32
    scf.if %2 {
      %cst_10 = arith.constant 0.000000e+00 : f32
      %12 = vector.broadcast %cst_10 : f32 to vector<1792x64xf32>
      %c0_11 = arith.constant 0 : index
      %c0_12 = arith.constant 0 : index
      %13 = vector.load %arg7[%c0_11, %c0_12] : memref<1792x64xf32, #tpu.memory_space<vmem>>, vector<1792x64xf32>
      tpu.vector_store %arg7[%c0_11, %c0_12], %12 {strides = array<i32>} : memref<1792x64xf32, #tpu.memory_space<vmem>>, vector<1792x64xf32>,
    } else {
    }
    %c0 = arith.constant 0 : index
    %c0_1 = arith.constant 0 : index
    %3 = vector.load %arg7[%c0, %c0_1] : memref<1792x64xf32, #tpu.memory_space<vmem>>, vector<1792x64xf32>
    %c0_2 = arith.constant 0 : index
    %c0_3 = arith.constant 0 : index
    %4 = vector.load %arg3[%c0_2, %c0_3] : memref<1792x147xbf16, #tpu.memory_space<vmem>>, vector<1792x147xbf16>
    %c0_4 = arith.constant 0 : index
    %c0_5 = arith.constant 0 : index
    %5 = vector.load %arg4[%c0_4, %c0_5] : memref<147x64xbf16, #tpu.memory_space<vmem>>, vector<147x64xbf16>
    %cst = arith.constant dense<0.000000e+00> : vector<1792x64xf32>
    %6 = tpu.matmul %4, %5, %cst {dimension_numbers = #tpu.dot_dimension_numbers<[1], [0], [0], [1], [0, 0, 1, 1], [], []>} : vector<1792x147xbf16>, vector<147x64xbf16>, vector<1792x64xf32> -> vector<1792x64xf32>
    %7 = arith.addf %3, %6 : vector<1792x64xf32>
    %c0_6 = arith.constant 0 : index
    %c0_7 = arith.constant 0 : index
    %8 = vector.load %arg7[%c0_6, %c0_7] : memref<1792x64xf32, #tpu.memory_space<vmem>>, vector<1792x64xf32>
    tpu.vector_store %arg7[%c0_6, %c0_7], %7 {strides = array<i32>} : memref<1792x64xf32, #tpu.memory_space<vmem>>, vector<1792x64xf32>,
    %c0_i32_8 = arith.constant 0 : i32
    %9 = arith.cmpi eq, %arg2, %c0_i32_8 : i32
    %10 = arith.extui %9 : i1 to i32
    %c0_i32_9 = arith.constant 0 : i32
    %11 = arith.cmpi ne, %10, %c0_i32_9 : i32
    scf.if %11 {
      %c0_10 = arith.constant 0 : index
      %c0_11 = arith.constant 0 : index
      %12 = vector.load %arg7[%c0_10, %c0_11] : memref<1792x64xf32, #tpu.memory_space<vmem>>, vector<1792x64xf32>
      %c0_12 = arith.constant 0 : index
      %c0_13 = arith.constant 0 : index
      %13 = vector.load %arg5[%c0_12, %c0_13] : memref<1x64xf32, #tpu.memory_space<vmem>>, vector<1x64xf32>
      %14 = vector.broadcast %13 : vector<1x64xf32> to vector<1792x64xf32>
      %15 = arith.addf %12, %14 : vector<1792x64xf32>
      %cst_14 = arith.constant 0.000000e+00 : f32
      %16 = vector.broadcast %cst_14 : f32 to vector<1792x64xf32>
      %17 = arith.maximumf %15, %16 : vector<1792x64xf32>
      %18 = arith.truncf %17 : vector<1792x64xf32> to vector<1792x64xbf16>
      %c0_15 = arith.constant 0 : index
      %c0_16 = arith.constant 0 : index
      %19 = vector.load %arg6[%c0_15, %c0_16] : memref<1792x64xbf16, #tpu.memory_space<vmem>>, vector<1792x64xbf16>
      tpu.vector_store %arg6[%c0_15, %c0_16], %18 {strides = array<i32>} : memref<1792x64xbf16, #tpu.memory_space<vmem>>, vector<1792x64xbf16>,
    } else {
    }
    return
  }
  func.func @transform_0(%arg0: i32, %arg1: i32, %arg2: i32) -> (i32, i32) {
    %c0_i32 = arith.constant 0 : i32
    return %arg0, %arg2 : i32, i32
  }
  func.func @transform_1(%arg0: i32, %arg1: i32, %arg2: i32) -> (i32, i32) {
    %c0_i32 = arith.constant 0 : i32
    return %arg2, %arg1 : i32, i32
  }
  func.func @transform_2(%arg0: i32, %arg1: i32, %arg2: i32) -> (i32, i32) {
    %c0_i32 = arith.constant 0 : i32
    %c0_i32_0 = arith.constant 0 : i32
    return %c0_i32, %arg1 : i32, i32
  }
  func.func @transform_3(%arg0: i32, %arg1: i32, %arg2: i32) -> (i32, i32) {
    %c0_i32 = arith.constant 0 : i32
    return %arg0, %arg1 : i32, i32
  }
}

</mosaic_0001>

<bundles_post_ra>
// kernel: matmul_bias_act.1
= control target key start
LH: loop header
LB: loop body
LE: loop exit
PB: predicated region body
PF: predicated region fallthrough
CT: control target
= control target key end

     0   :  { %s6581_s12 = smov 0   ;;  %s6583_s13 = smov 0   ;;  %s8891_s0 = inlined_call_operand.vmem [shape: bf16[25088,147], index: 0, kind: input, shape index: {}]   ;;  %s8892_s1 = inlined_call_operand.vmem [shape: bf16[147,64], index: 1, kind: input, shape index: {}]   ;;  %s8893_s2 = inlined_call_operand.vmem [shape: f32[1,64], index: 2, kind: input, shape index: {}]   ;;  %s8894_s3 = inlined_call_operand.vmem [shape: bf16[25088,64], index: 3, kind: output, shape index: {}]  }
   0x1   :  { %s6585_s14 = smov 0  }
   0x2 LB: > { %s32_s15 = sadd.s32 1, %s6553_s13  ;;  %p5208_p0 = scmp.ge.s32.totalorder %s6557_s14, 1  ;;  %s6557_s14 = sphi %s6585_s14, %s13_s14   ;;  %s6553_s13 = sphi %s6583_s13, %s8896_s13   ;;  %s6549_s12 = sphi %s6581_s12, %s8895_s12  }
   0x3   : > { %p34_p1 = scmp.ge.s32.totalorder %s32_s15, 14  ;;  %p191_p2 = scmp.lt.s32.totalorder %s6557_s14, 15 }
   0x5   : > { %s8898_s15 = smov (%p34_p1, %s32_s15), 0  ;;  %p192_p3 = pnand %p5208_p0, %p191_p2 }
   0x6   : > { %s234_s20 = smul.u32 (!%p192_p3), 224, %s6549_s12 }
   0x7   : > { %195 = sbr.rel (%p192_p3) target bundleno = 1127 (0x467), region = 32 }
   0x8   : > { %p236_p4 = scmp.lt.s32.totalorder (!%p192_p3), %s234_s20, 3135 }
   0xc   : > { %v6490_v0 = vld [vmem:[%s8892_s1 + $0x38] sm:$0xff]  ;;  %v963_v1 = vld [vmem:[%s8892_s1 + $0x48] sm:$0x3]  ;;  %vm2366_vm0 = vcmask 1040384   ;;  %vm2367_vm1 = vcmask 1041408   ;;  %v6489_v3 = vld [vmem:[%s8892_s1 + $0x30] sm:$0xff] }
   0xd   : > { %v2009_v2 = vunpack.c.l.b16 %v963_v1  ;;  %2373 = vmatpush.bf16.msra.mxu0 %v6490_v0  ;;  %6492 = vmatpush.bf16.msra.mxu2 %v6490_v0  ;;  %v6559_v4 = vmov 65535   ;;  %s8900_s20 = smov (!%p236_p4, %s234_s20), 3135  ;;  %v6488_v9 = vld [vmem:[%s8892_s1 + $0x28] sm:$0xff]  ;;  %v6491_v10 = vld [vmem:[%s8892_s1 + $0x40] sm:$0xff]  ;;  %vm2029_vm2 = vcmask 154624   ;;  %v6486_v18 = vld [vmem:[%s8892_s1 + $0x18] sm:$0xff] }
   0xe   : > { %v2368_v5 = vsel %vm2366_vm0, 4294967295, %v6559_v4  ;;  %s6258_s27 = sshll.u32 %s8900_s20, 3  ;;  %v6487_v14 = vld [vmem:[%s8892_s1 + $0x20] sm:$0xff]  ;;  %v6485_v19 = vld [vmem:[%s8892_s1 + $0x10] sm:$0xff]  ;;  %v6484_v20 = vld [vmem:[%s8892_s1 + $0x8] sm:$0xff]  ;;  %vm272_vm3 = vcmask 523264  }
   0xf   : > { %v2019_v6 = vpack.c.b16 %v2009_v2, %v2009_v2  ;;  %v2369_v7 = vsel %vm2367_vm1, %v2368_v5, 0  ;;  %s6620_s30 = scalar_lea.vmem %s8891_s0, %s6258_s27  ;;  %v6483_v26 = vld [vmem:[%s8892_s1] sm:$0xff]  ;;  %s5211_s19 = sshll.u32 %s8900_s20, 2  ;;  %vm4863_vm4 = vcmask 519168  }
  0x10   : > { %v6259_v11 = vld [vmem:[%s6620_s30 + $0x4] sm:$0xf]  ;;  %v5216_v12 = vld [vmem:[%s6620_s30 + $0x8] sm:$0xf0]  ;;  %v6373_v15 = vld [vmem:[%s6620_s30 + $0x394] sm:$0xf]  ;;  %s6836_s23 = scalar_lea.vmem %s8894_s3, %s5211_s19 }
  0x11   : > { %v2371_v8 = vand.u32 %v2369_v7, %v2019_v6  ;;  %2374 = vmatpush.bf16.msra.mxu0 %v6489_v3  ;;  %6493 = vmatpush.bf16.msra.mxu2 %v6489_v3  ;;  %v5219_v13 = vor.u32 %v6259_v11, %v5216_v12  ;;  %v5672_v16 = vld [vmem:[%s6620_s30 + $0x398] sm:$0xf0]  ;;  %v6261_v21 = vld [vmem:[%s6620_s30 + $0x14] sm:$0xf]  ;;  %v6375_v23 = vld [vmem:[%s6620_s30 + $0x3a4] sm:$0xf] }
  0x12   : > { %v5675_v17 = vor.u32 %v6373_v15, %v5672_v16  ;;  %v5224_v22 = vld [vmem:[%s6620_s30 + $0x18] sm:$0xf0]  ;;  %v5680_v24 = vld [vmem:[%s6620_s30 + $0x3a8] sm:$0xf0]  ;;  %v5214_v27 = vld [vmem:[%s6620_s30] sm:$0xf] }
  0x13   : > { %2948 = vmatpush.bf16.msra.mxu1 %v2371_v8  ;;  %6500 = vmatpush.bf16.msra.mxu3 %v2371_v8  ;;  %v5227_v25 = vor.u32 %v6261_v21, %v5224_v22  ;;  %v6260_v28 = vld [vmem:[%s6620_s30 + $0x4] sm:$0xf0]  ;;  %v5662_v29 = vld [vmem:[%s6620_s30 + $0x380] sm:$0xf]  ;;  %v5683_v31 = vor.u32 %v6375_v23, %v5680_v24  ;;  %v6263_v34 = vld [vmem:[%s6620_s30 + $0x24] sm:$0xf] }
  0x14   : > { %v6372_v30 = vld [vmem:[%s6620_s30 + $0x384] sm:$0xf0]  ;;  %v5215_v32 = vor.u32 %v6260_v28, %v5214_v27  ;;  %v5232_v35 = vld [vmem:[%s6620_s30 + $0x28] sm:$0xf0]  ;;  %v6377_v36 = vld [vmem:[%s6620_s30 + $0x3b4] sm:$0xf] }
  0x15   : > { %2375 = vmatpush.bf16.msra.mxu0 %v6488_v9  ;;  %6494 = vmatpush.bf16.msra.mxu2 %v6488_v9  ;;  %v5663_v33 = vor.u32 %v6372_v30, %v5662_v29  ;;  %v5688_v37 = vld [vmem:[%s6620_s30 + $0x3b8] sm:$0xf0]  ;;  %v5235_v38 = vor.u32 %v6263_v34, %v5232_v35  ;;  %v5222_v39 = vld [vmem:[%s6620_s30 + $0x10] sm:$0xf]  ;;  %v6262_v40 = vld [vmem:[%s6620_s30 + $0x14] sm:$0xf0] }
  0x16   : > { %v5670_v41 = vld [vmem:[%s6620_s30 + $0x390] sm:$0xf]  ;;  %v6374_v42 = vld [vmem:[%s6620_s30 + $0x394] sm:$0xf0]  ;;  %v5691_v43 = vor.u32 %v6377_v36, %v5688_v37  ;;  %v5223_v44 = vor.u32 %v6262_v40, %v5222_v39  ;;  %v6265_v46 = vld [vmem:[%s6620_s30 + $0x34] sm:$0xf] }
  0x17   : > { %2949 = vmatpush.bf16.msra.mxu1 %v6491_v10  ;;  %6501 = vmatpush.bf16.msra.mxu3 %v6491_v10  ;;  %v5671_v45 = vor.u32 %v6374_v42, %v5670_v41  ;;  %v5240_v47 = vld [vmem:[%s6620_s30 + $0x38] sm:$0xf0]  ;;  %v6379_v48 = vld [vmem:[%s6620_s30 + $0x3c4] sm:$0xf]  ;;  %v5696_v49 = vld [vmem:[%s6620_s30 + $0x3c8] sm:$0xf0] }
  0x18   : > { %v5243_v50 = vor.u32 %v6265_v46, %v5240_v47  ;;  %v5230_v51 = vld [vmem:[%s6620_s30 + $0x20] sm:$0xf]  ;;  %v6264_v52 = vld [vmem:[%s6620_s30 + $0x24] sm:$0xf0]  ;;  %v5699_v55 = vor.u32 %v6379_v48, %v5696_v49  ;;  %v6267_v58 = vld [vmem:[%s6620_s30 + $0x44] sm:$0xf] }
  0x19   : > { %2376 = vmatpush.bf16.msra.mxu0 %v6487_v14  ;;  %6495 = vmatpush.bf16.msra.mxu2 %v6487_v14  ;;  %v5678_v53 = vld [vmem:[%s6620_s30 + $0x3a0] sm:$0xf]  ;;  %v6376_v54 = vld [vmem:[%s6620_s30 + $0x3a4] sm:$0xf0]  ;;  %v5231_v56 = vor.u32 %v6264_v52, %v5230_v51  ;;  %v5248_v59 = vld [vmem:[%s6620_s30 + $0x48] sm:$0xf0] }
  0x1a   : > { %6144 = vmatmul.msk.bf16.vlgmr.msra.gmra.mxu1 %vm2029_vm2, %v5219_v13  ;;  %6201 = vmatmul.msk.bf16.vlgmr.msra.gmra.mxu3 %vm2029_vm2, %v5675_v17  ;;  %v5679_v57 = vor.u32 %v6376_v54, %v5678_v53  ;;  %v6381_v60 = vld [vmem:[%s6620_s30 + $0x3d4] sm:$0xf]  ;;  %v5704_v61 = vld [vmem:[%s6620_s30 + $0x3d8] sm:$0xf0]  ;;  %v5251_v62 = vor.u32 %v6267_v58, %v5248_v59  ;;  %v5238_v63 = vld [vmem:[%s6620_s30 + $0x30] sm:$0xf] }
  0x1b   : > { %v6266_v0 = vld [vmem:[%s6620_s30 + $0x34] sm:$0xf0]  ;;  %v5686_v1 = vld [vmem:[%s6620_s30 + $0x3b0] sm:$0xf]  ;;  %v5707_v3 = vor.u32 %v6381_v60, %v5704_v61  ;;  %v6269_v6 = vld [vmem:[%s6620_s30 + $0x54] sm:$0xf] }
  0x1c   : > { %v6378_v2 = vld [vmem:[%s6620_s30 + $0x3b4] sm:$0xf0]  ;;  %v5239_v4 = vor.u32 %v6266_v0, %v5238_v63  ;;  %v5256_v7 = vld [vmem:[%s6620_s30 + $0x58] sm:$0xf0]  ;;  %v6383_v8 = vld [vmem:[%s6620_s30 + $0x3e4] sm:$0xf] }
  0x1d   : > { %2377 = vmatpush.bf16.msra.mxu0 %v6486_v18  ;;  %6496 = vmatpush.bf16.msra.mxu2 %v6486_v18  ;;  %v5687_v5 = vor.u32 %v6378_v2, %v5686_v1  ;;  %v5712_v9 = vld [vmem:[%s6620_s30 + $0x3e8] sm:$0xf0]  ;;  %v5259_v10 = vor.u32 %v6269_v6, %v5256_v7  ;;  %v5246_v11 = vld [vmem:[%s6620_s30 + $0x40] sm:$0xf]  ;;  %v6268_v12 = vld [vmem:[%s6620_s30 + $0x44] sm:$0xf0] }
  0x1e   : > { %v5694_v13 = vld [vmem:[%s6620_s30 + $0x3c0] sm:$0xf]  ;;  %v6380_v14 = vld [vmem:[%s6620_s30 + $0x3c4] sm:$0xf0]  ;;  %v5715_v15 = vor.u32 %v6383_v8, %v5712_v9  ;;  %v5247_v16 = vor.u32 %v6268_v12, %v5246_v11  ;;  %v6271_v18 = vld [vmem:[%s6620_s30 + $0x64] sm:$0xf] }
  0x1f   : > { %v5695_v17 = vor.u32 %v6380_v14, %v5694_v13  ;;  %v5720_v21 = vld [vmem:[%s6620_s30 + $0x3f8] sm:$0xf0]  ;;  %v5254_v23 = vld [vmem:[%s6620_s30 + $0x50] sm:$0xf]  ;;  %v6270_v24 = vld [vmem:[%s6620_s30 + $0x54] sm:$0xf0] }
  0x20   : > { %v5255_v28 = vor.u32 %v6270_v24, %v5254_v23  ;;  %v6273_v30 = vld [vmem:[%s6620_s30 + $0x74] sm:$0xf]  ;;  %v5262_v35 = vld [vmem:[%s6620_s30 + $0x60] sm:$0xf]  ;;  %v6272_v36 = vld [vmem:[%s6620_s30 + $0x64] sm:$0xf0] }
  0x21   : > { %2378 = vmatpush.bf16.msra.mxu0 %v6485_v19  ;;  %6497 = vmatpush.bf16.msra.mxu2 %v6485_v19  ;;  %v5264_v19 = vld [vmem:[%s6620_s30 + $0x68] sm:$0xf0]  ;;  %v6560_v37 = vmov 0.0   ;;  %v6384_v39 = vld [vmem:[%s6620_s30 + $0x3e4] sm:$0xf0]  ;;  %v5263_v41 = vor.u32 %v6272_v36, %v5262_v35 }
  0x22   : > { %v5267_v22 = vor.u32 %v6271_v18, %v5264_v19  ;;  %273 = vst.msk [vmem:[#allocation2] sm:$0xff] %vm272_vm3, %v6560_v37  ;;  %v5270_v46 = vld [vmem:[%s6620_s30 + $0x70] sm:$0xf]  ;;  %v6274_v47 = vld [vmem:[%s6620_s30 + $0x74] sm:$0xf0] }
  0x23   : > { %274 = vst.msk [vmem:[#allocation2 + $0x8] sm:$0xff] %vm272_vm3, %v6560_v37  ;;  %v5718_v48 = vld [vmem:[%s6620_s30 + $0x3f0] sm:$0xf]  ;;  %v6386_v49 = vld [vmem:[%s6620_s30 + $0x3f4] sm:$0xf0] }
  0x24   : > { %275 = vst.msk [vmem:[#allocation2 + $0x10] sm:$0xff] %vm272_vm3, %v6560_v37  ;;  %v5719_v51 = vor.u32 %v6386_v49, %v5718_v48  ;;  %v6277_v52 = vld [vmem:[%s6620_s30 + $0x94] sm:$0xf]  ;;  %v5288_v53 = vld [vmem:[%s6620_s30 + $0x98] sm:$0xf0] }
  0x25   : > { %2379 = vmatpush.bf16.msra.mxu0 %v6484_v20  ;;  %6498 = vmatpush.bf16.msra.mxu2 %v6484_v20  ;;  %v6385_v20 = vld [vmem:[%s6620_s30 + $0x3f4] sm:$0xf]  ;;  %276 = vst.msk [vmem:[#allocation2 + $0x18] sm:$0xff] %vm272_vm3, %v6560_v37  ;;  %v5291_v54 = vor.u32 %v6277_v52, %v5288_v53  ;;  %v6815_v60 = vld [vmem:[%s8893_s2] ss:$0 sm:$0xff] }
  0x26   : > { %v5723_v27 = vor.u32 %v6385_v20, %v5720_v21  ;;  %277 = vst.msk [vmem:[#allocation2 + $0x20] sm:$0xff] %vm272_vm3, %v6560_v37  ;;  %v5278_v1 = vld [vmem:[%s6620_s30 + $0x80] sm:$0xf]  ;;  %v6276_v2 = vld [vmem:[%s6620_s30 + $0x84] sm:$0xf0] }
  0x27   : > { %278 = vst.msk [vmem:[#allocation2 + $0x28] sm:$0xff] %vm272_vm3, %v6560_v37  ;;  %v6389_v12 = vld [vmem:[%s6620_s30 + $0x414] sm:$0xf]  ;;  %v5736_v13 = vld [vmem:[%s6620_s30 + $0x418] sm:$0xf0] }
  0x28   : > { %279 = vst.msk [vmem:[#allocation2 + $0x30] sm:$0xff] %vm272_vm3, %v6560_v37  ;;  %v5739_v14 = vor.u32 %v6389_v12, %v5736_v13  ;;  %v6278_v23 = vld [vmem:[%s6620_s30 + $0x94] sm:$0xf0]  ;;  %v6281_v36 = vld [vmem:[%s6620_s30 + $0xb4] sm:$0xf] }
  0x29   : > { %2380 = vmatpush.bf16.msra.mxu0 %v6483_v26  ;;  %6499 = vmatpush.bf16.msra.mxu2 %v6483_v26  ;;  %v6382_v26 = vld [vmem:[%s6620_s30 + $0x3d4] sm:$0xf0]  ;;  %280 = vst.msk [vmem:[#allocation2 + $0x38] sm:$0xff] %vm272_vm3, %v6560_v37  ;;  %v6393_v49 = vld [vmem:[%s6620_s30 + $0x434] sm:$0xf] }
  0x2a   : > { %6145 = vmatmul.msk.bf16.gmra.mxu1 %vm2029_vm2, %v5227_v25  ;;  %6202 = vmatmul.msk.bf16.gmra.mxu3 %vm2029_vm2, %v5683_v31  ;;  %v5702_v25 = vld [vmem:[%s6620_s30 + $0x3d0] sm:$0xf]  ;;  %v5272_v31 = vld [vmem:[%s6620_s30 + $0x78] sm:$0xf0]  ;;  %281 = vst.msk [vmem:[#allocation2 + $0x40] sm:$0xff] %vm272_vm3, %v6560_v37  ;;  %v498_v53 = vld [vmem:[#allocation2 + $0x8] sm:$0xff] }
  0x2b   : > { %v5703_v29 = vor.u32 %v6382_v26, %v5702_v25  ;;  %v5275_v34 = vor.u32 %v6273_v30, %v5272_v31  ;;  %282 = vst.msk [vmem:[#allocation2 + $0x48] sm:$0xff] %vm272_vm3, %v6560_v37  ;;  %v5734_v25 = vld [vmem:[%s6620_s30 + $0x410] sm:$0xf]  ;;  %v6390_v26 = vld [vmem:[%s6620_s30 + $0x414] sm:$0xf0] }
  0x2c   : > { %2381 = vmatmul.bf16.vlgmr.msra.gmra.mxu0 %v5215_v32  ;;  %2661 = vmatmul.bf16.vlgmr.msra.gmra.mxu2 %v5663_v33  ;;  %v6387_v32 = vld [vmem:[%s6620_s30 + $0x404] sm:$0xf]  ;;  %v5728_v33 = vld [vmem:[%s6620_s30 + $0x408] sm:$0xf0]  ;;  %283 = vst.msk [vmem:[#allocation2 + $0x50] sm:$0xff] %vm272_vm3, %v6560_v37 }
  0x2d   : > { %v5731_v40 = vor.u32 %v6387_v32, %v5728_v33  ;;  %284 = vst.msk [vmem:[#allocation2 + $0x58] sm:$0xff] %vm272_vm3, %v6560_v37  ;;  %v6391_v32 = vld [vmem:[%s6620_s30 + $0x424] sm:$0xf]  ;;  %v5744_v33 = vld [vmem:[%s6620_s30 + $0x428] sm:$0xf0] }
  0x2e   : > { %285 = vst.msk [vmem:[#allocation2 + $0x60] sm:$0xff] %vm272_vm3, %v6560_v37 }
  0x2f   : > { %286 = vst.msk [vmem:[#allocation2 + $0x68] sm:$0xff] %vm272_vm3, %v6560_v37 }
  0x30   : > { %287 = vst.msk [vmem:[#allocation2 + $0x70] sm:$0xff] %vm272_vm3, %v6560_v37 }
  0x31   : > { %288 = vst.msk [vmem:[#allocation2 + $0x78] sm:$0xff] %vm272_vm3, %v6560_v37 }
  0x32   : > { %289 = vst.msk [vmem:[#allocation2 + $0x80] sm:$0xff] %vm272_vm3, %v6560_v37 }
  0x33   : > { %290 = vst.msk [vmem:[#allocation2 + $0x88] sm:$0xff] %vm272_vm3, %v6560_v37 }
  0x34   : > { %291 = vst.msk [vmem:[#allocation2 + $0x90] sm:$0xff] %vm272_vm3, %v6560_v37 }
  0x35   : > { %292 = vst.msk [vmem:[#allocation2 + $0x98] sm:$0xff] %vm272_vm3, %v6560_v37 }
  0x36   : > { %293 = vst.msk [vmem:[#allocation2 + $0xa0] sm:$0xff] %vm272_vm3, %v6560_v37 }
  0x37   : > { %294 = vst.msk [vmem:[#allocation2 + $0xa8] sm:$0xff] %vm272_vm3, %v6560_v37 }
  0x38   : > { %295 = vst.msk [vmem:[#allocation2 + $0xb0] sm:$0xff] %vm272_vm3, %v6560_v37 }
  0x39   : > { %296 = vst.msk [vmem:[#allocation2 + $0xb8] sm:$0xff] %vm272_vm3, %v6560_v37 }
  0x3a   : > { %6146 = vmatmul.msk.bf16.gmra.mxu1 %vm2029_vm2, %v5235_v38  ;;  %6203 = vmatmul.msk.bf16.gmra.mxu3 %vm2029_vm2, %v5691_v43  ;;  %v5710_v38 = vld [vmem:[%s6620_s30 + $0x3e0] sm:$0xf]  ;;  %v6275_v43 = vld [vmem:[%s6620_s30 + $0x84] sm:$0xf]  ;;  %297 = vst.msk [vmem:[#allocation2 + $0xc0] sm:$0xff] %vm272_vm3, %v6560_v37 }
  0x3b   : > { %v5711_v42 = vor.u32 %v6384_v39, %v5710_v38  ;;  %298 = vst.msk [vmem:[#allocation2 + $0xc8] sm:$0xff] %vm272_vm3, %v6560_v37  ;;  %v5304_v38 = vld [vmem:[%s6620_s30 + $0xb8] sm:$0xf0] }
  0x3c   : > { %2386 = vmatmul.bf16.gmra.mxu0 %v5223_v44  ;;  %2666 = vmatmul.bf16.gmra.mxu2 %v5671_v45  ;;  %v5280_v44 = vld [vmem:[%s6620_s30 + $0x88] sm:$0xf0]  ;;  %299 = vst.msk [vmem:[#allocation2 + $0xd0] sm:$0xff] %vm272_vm3, %v6560_v37 }
  0x3d   : > { %v5283_v45 = vor.u32 %v6275_v43, %v5280_v44  ;;  %300 = vst.msk [vmem:[#allocation2 + $0xd8] sm:$0xff] %vm272_vm3, %v6560_v37  ;;  %v5294_v43 = vld [vmem:[%s6620_s30 + $0xa0] sm:$0xf]  ;;  %v6280_v44 = vld [vmem:[%s6620_s30 + $0xa4] sm:$0xf0] }
  0x3e   : > { %301 = vst.msk [vmem:[#allocation2 + $0xe0] sm:$0xff] %vm272_vm3, %v6560_v37 }
  0x3f   : > { %302 = vst.msk [vmem:[#allocation2 + $0xe8] sm:$0xff] %vm272_vm3, %v6560_v37 }
  0x40   : > { %303 = vst.msk [vmem:[#allocation2 + $0xf0] sm:$0xff] %vm272_vm3, %v6560_v37 }
  0x41   : > { %304 = vst.msk [vmem:[#allocation2 + $0xf8] sm:$0xff] %vm272_vm3, %v6560_v37 }
  0x42   : > { %305 = vst.msk [vmem:[#allocation2 + $0x100] sm:$0xff] %vm272_vm3, %v6560_v37 }
  0x43   : > { %306 = vst.msk [vmem:[#allocation2 + $0x108] sm:$0xff] %vm272_vm3, %v6560_v37 }
  0x44   : > { %307 = vst.msk [vmem:[#allocation2 + $0x110] sm:$0xff] %vm272_vm3, %v6560_v37 }
  0x45   : > { %308 = vst.msk [vmem:[#allocation2 + $0x118] sm:$0xff] %vm272_vm3, %v6560_v37 }
  0x46   : > { %309 = vst.msk [vmem:[#allocation2 + $0x120] sm:$0xff] %vm272_vm3, %v6560_v37 }
  0x47   : > { %310 = vst.msk [vmem:[#allocation2 + $0x128] sm:$0xff] %vm272_vm3, %v6560_v37 }
  0x48   : > { %311 = vst.msk [vmem:[#allocation2 + $0x130] sm:$0xff] %vm272_vm3, %v6560_v37 }
  0x49   : > { %312 = vst.msk [vmem:[#allocation2 + $0x138] sm:$0xff] %vm272_vm3, %v6560_v37 }
  0x4a   : > { %6147 = vmatmul.msk.bf16.gmra.mxu1 %vm2029_vm2, %v5243_v50  ;;  %6204 = vmatmul.msk.bf16.gmra.mxu3 %vm2029_vm2, %v5699_v55  ;;  %v5271_v50 = vor.u32 %v6274_v47, %v5270_v46  ;;  %313 = vst.msk [vmem:[#allocation2 + $0x140] sm:$0xff] %vm272_vm3, %v6560_v37  ;;  %v5742_v46 = vld [vmem:[%s6620_s30 + $0x420] sm:$0xf]  ;;  %v6392_v47 = vld [vmem:[%s6620_s30 + $0x424] sm:$0xf0] }
  0x4b   : > { %314 = vst.msk [vmem:[#allocation2 + $0x148] sm:$0xff] %vm272_vm3, %v6560_v37  ;;  %v5743_v48 = vor.u32 %v6392_v47, %v5742_v46 }
  0x4c   : > { %2391 = vmatmul.bf16.gmra.mxu0 %v5231_v56  ;;  %2671 = vmatmul.bf16.gmra.mxu2 %v5679_v57  ;;  %v497_v56 = vld [vmem:[#allocation2] sm:$0xff]  ;;  %315 = vst.msk [vmem:[#allocation2 + $0x150] sm:$0xff] %vm272_vm3, %v6560_v37 }
  0x4d   : > { %316 = vst.msk [vmem:[#allocation2 + $0x158] sm:$0xff] %vm272_vm3, %v6560_v37 }
  0x4e   : > { %317 = vst.msk [vmem:[#allocation2 + $0x160] sm:$0xff] %vm272_vm3, %v6560_v37 }
  0x4f   : > { %318 = vst.msk [vmem:[#allocation2 + $0x168] sm:$0xff] %vm272_vm3, %v6560_v37 }
  0x50   : > { %319 = vst.msk [vmem:[#allocation2 + $0x170] sm:$0xff] %vm272_vm3, %v6560_v37 }
  0x51   : > { %320 = vst.msk [vmem:[#allocation2 + $0x178] sm:$0xff] %vm272_vm3, %v6560_v37 }
  0x52   : > { %321 = vst.msk [vmem:[#allocation2 + $0x180] sm:$0xff] %vm272_vm3, %v6560_v37 }
  0x53   : > { %322 = vst.msk [vmem:[#allocation2 + $0x188] sm:$0xff] %vm272_vm3, %v6560_v37 }
  0x54   : > { %323 = vst.msk [vmem:[#allocation2 + $0x190] sm:$0xff] %vm272_vm3, %v6560_v37 }
  0x55   : > { %324 = vst.msk [vmem:[#allocation2 + $0x198] sm:$0xff] %vm272_vm3, %v6560_v37 }
  0x56   : > { %325 = vst.msk [vmem:[#allocation2 + $0x1a0] sm:$0xff] %vm272_vm3, %v6560_v37 }
  0x57   : > { %326 = vst.msk [vmem:[#allocation2 + $0x1a8] sm:$0xff] %vm272_vm3, %v6560_v37 }
  0x58   : > { %327 = vst.msk [vmem:[#allocation2 + $0x1b0] sm:$0xff] %vm272_vm3, %v6560_v37 }
  0x59   : > { %328 = vst.msk [vmem:[#allocation2 + $0x1b8] sm:$0xff] %vm272_vm3, %v6560_v37 }
  0x5a   : > { %6148 = vmatmul.msk.bf16.gmra.mxu1 %vm2029_vm2, %v5251_v62  ;;  %6205 = vmatmul.msk.bf16.gmra.mxu3 %vm2029_vm2, %v5707_v3  ;;  %329 = vst.msk [vmem:[#allocation2 + $0x1c0] sm:$0xff] %vm272_vm3, %v6560_v37  ;;  %v5279_v3 = vor.u32 %v6276_v2, %v5278_v1  ;;  %v500_v1 = vld [vmem:[#allocation2 + $0x18] sm:$0xff] }
  0x5b   : > { %330 = vst.msk [vmem:[#allocation2 + $0x1c8] sm:$0xff] %vm272_vm3, %v6560_v37 }
  0x5c   : > { %2396 = vmatmul.bf16.gmra.mxu0 %v5239_v4  ;;  %2676 = vmatmul.bf16.gmra.mxu2 %v5687_v5  ;;  %331 = vst.msk [vmem:[#allocation2 + $0x1d0] sm:$0xff] %vm272_vm3, %v6560_v37  ;;  %v5726_v4 = vld [vmem:[%s6620_s30 + $0x400] sm:$0xf]  ;;  %v6388_v5 = vld [vmem:[%s6620_s30 + $0x404] sm:$0xf0] }
  0x5d   : > { %332 = vst.msk [vmem:[#allocation2 + $0x1d8] sm:$0xff] %vm272_vm3, %v6560_v37  ;;  %v5727_v6 = vor.u32 %v6388_v5, %v5726_v4  ;;  %v5312_v4 = vld [vmem:[%s6620_s30 + $0xc8] sm:$0xf0] }
  0x5e   : > { %333 = vst.msk [vmem:[#allocation2 + $0x1e0] sm:$0xff] %vm272_vm3, %v6560_v37 }
  0x5f   : > { %334 = vst.msk [vmem:[#allocation2 + $0x1e8] sm:$0xff] %vm272_vm3, %v6560_v37 }
  0x60   : > { %335 = vst.msk [vmem:[#allocation2 + $0x1f0] sm:$0xff] %vm272_vm3, %v6560_v37 }
  0x61   : > { %336 = vst.msk [vmem:[#allocation2 + $0x1f8] sm:$0xff] %vm272_vm3, %v6560_v37 }
  0x62   : > { %337 = vst.msk [vmem:[#allocation2 + $0x200] sm:$0xff] %vm272_vm3, %v6560_v37 }
  0x63   : > { %338 = vst.msk [vmem:[#allocation2 + $0x208] sm:$0xff] %vm272_vm3, %v6560_v37 }
  0x64   : > { %339 = vst.msk [vmem:[#allocation2 + $0x210] sm:$0xff] %vm272_vm3, %v6560_v37 }
  0x65   : > { %340 = vst.msk [vmem:[#allocation2 + $0x218] sm:$0xff] %vm272_vm3, %v6560_v37 }
  0x66   : > { %341 = vst.msk [vmem:[#allocation2 + $0x220] sm:$0xff] %vm272_vm3, %v6560_v37 }
  0x67   : > { %342 = vst.msk [vmem:[#allocation2 + $0x228] sm:$0xff] %vm272_vm3, %v6560_v37 }
  0x68   : > { %343 = vst.msk [vmem:[#allocation2 + $0x230] sm:$0xff] %vm272_vm3, %v6560_v37 }
  0x69   : > { %344 = vst.msk [vmem:[#allocation2 + $0x238] sm:$0xff] %vm272_vm3, %v6560_v37 }
  0x6a   : > { %6149 = vmatmul.msk.bf16.gmra.mxu1 %vm2029_vm2, %v5259_v10  ;;  %6206 = vmatmul.msk.bf16.gmra.mxu3 %vm2029_vm2, %v5715_v15  ;;  %345 = vst.msk [vmem:[#allocation2 + $0x240] sm:$0xff] %vm272_vm3, %v6560_v37 }
  0x6b   : > { %346 = vst.msk [vmem:[#allocation2 + $0x248] sm:$0xff] %vm272_vm3, %v6560_v37 }
  0x6c   : > { %2401 = vmatmul.bf16.gmra.mxu0 %v5247_v16  ;;  %2681 = vmatmul.bf16.gmra.mxu2 %v5695_v17  ;;  %347 = vst.msk [vmem:[#allocation2 + $0x250] sm:$0xff] %vm272_vm3, %v6560_v37  ;;  %v6279_v16 = vld [vmem:[%s6620_s30 + $0xa4] sm:$0xf]  ;;  %v5296_v17 = vld [vmem:[%s6620_s30 + $0xa8] sm:$0xf0] }
  0x6d   : > { %348 = vst.msk [vmem:[#allocation2 + $0x258] sm:$0xff] %vm272_vm3, %v6560_v37  ;;  %v5299_v20 = vor.u32 %v6279_v16, %v5296_v17  ;;  %v5302_v17 = vld [vmem:[%s6620_s30 + $0xb0] sm:$0xf] }
  0x6e   : > { %349 = vst.msk [vmem:[#allocation2 + $0x260] sm:$0xff] %vm272_vm3, %v6560_v37 }
  0x6f   : > { %350 = vst.msk [vmem:[#allocation2 + $0x268] sm:$0xff] %vm272_vm3, %v6560_v37 }
  0x70   : > { %351 = vst.msk [vmem:[#allocation2 + $0x270] sm:$0xff] %vm272_vm3, %v6560_v37 }
  0x71   : > { %352 = vst.msk [vmem:[#allocation2 + $0x278] sm:$0xff] %vm272_vm3, %v6560_v37 }
  0x72   : > { %353 = vst.msk [vmem:[#allocation2 + $0x280] sm:$0xff] %vm272_vm3, %v6560_v37 }
  0x73   : > { %354 = vst.msk [vmem:[#allocation2 + $0x288] sm:$0xff] %vm272_vm3, %v6560_v37 }
  0x74   : > { %355 = vst.msk [vmem:[#allocation2 + $0x290] sm:$0xff] %vm272_vm3, %v6560_v37 }
  0x75   : > { %356 = vst.msk [vmem:[#allocation2 + $0x298] sm:$0xff] %vm272_vm3, %v6560_v37 }
  0x76   : > { %357 = vst.msk [vmem:[#allocation2 + $0x2a0] sm:$0xff] %vm272_vm3, %v6560_v37 }
  0x77   : > { %358 = vst.msk [vmem:[#allocation2 + $0x2a8] sm:$0xff] %vm272_vm3, %v6560_v37 }
  0x78   : > { %359 = vst.msk [vmem:[#allocation2 + $0x2b0] sm:$0xff] %vm272_vm3, %v6560_v37 }
  0x79   : > { %360 = vst.msk [vmem:[#allocation2 + $0x2b8] sm:$0xff] %vm272_vm3, %v6560_v37 }
  0x7a   : > { %6150 = vmatmul.msk.bf16.gmra.mxu1 %vm2029_vm2, %v5267_v22  ;;  %6207 = vmatmul.msk.bf16.gmra.mxu3 %vm2029_vm2, %v5723_v27  ;;  %361 = vst.msk [vmem:[#allocation2 + $0x2c0] sm:$0xff] %vm272_vm3, %v6560_v37  ;;  %v5286_v22 = vld [vmem:[%s6620_s30 + $0x90] sm:$0xf]  ;;  %v5735_v27 = vor.u32 %v6390_v26, %v5734_v25 }
  0x7b   : > { %362 = vst.msk [vmem:[#allocation2 + $0x2c8] sm:$0xff] %vm272_vm3, %v6560_v37  ;;  %v5287_v24 = vor.u32 %v6278_v23, %v5286_v22  ;;  %v5750_v22 = vld [vmem:[%s6620_s30 + $0x430] sm:$0xf]  ;;  %v6394_v23 = vld [vmem:[%s6620_s30 + $0x434] sm:$0xf0] }
  0x7c   : > { %2406 = vmatmul.bf16.gmra.mxu0 %v5255_v28  ;;  %2686 = vmatmul.bf16.gmra.mxu2 %v5703_v29  ;;  %363 = vst.msk [vmem:[#allocation2 + $0x2d0] sm:$0xff] %vm272_vm3, %v6560_v37 }
  0x7d   : > { %364 = vst.msk [vmem:[#allocation2 + $0x2d8] sm:$0xff] %vm272_vm3, %v6560_v37 }
  0x7e   : > { %365 = vst.msk [vmem:[#allocation2 + $0x2e0] sm:$0xff] %vm272_vm3, %v6560_v37 }
  0x7f   : > { %366 = vst.msk [vmem:[#allocation2 + $0x2e8] sm:$0xff] %vm272_vm3, %v6560_v37 }
  0x80   : > { %367 = vst.msk [vmem:[#allocation2 + $0x2f0] sm:$0xff] %vm272_vm3, %v6560_v37 }
  0x81   : > { %368 = vst.msk [vmem:[#allocation2 + $0x2f8] sm:$0xff] %vm272_vm3, %v6560_v37 }
  0x82   : > { %369 = vst.msk [vmem:[#allocation2 + $0x300] sm:$0xff] %vm272_vm3, %v6560_v37 }
  0x83   : > { %370 = vst.msk [vmem:[#allocation2 + $0x308] sm:$0xff] %vm272_vm3, %v6560_v37 }
  0x84   : > { %371 = vst.msk [vmem:[#allocation2 + $0x310] sm:$0xff] %vm272_vm3, %v6560_v37 }
  0x85   : > { %372 = vst.msk [vmem:[#allocation2 + $0x318] sm:$0xff] %vm272_vm3, %v6560_v37 }
  0x86   : > { %373 = vst.msk [vmem:[#allocation2 + $0x320] sm:$0xff] %vm272_vm3, %v6560_v37 }
  0x87   : > { %374 = vst.msk [vmem:[#allocation2 + $0x328] sm:$0xff] %vm272_vm3, %v6560_v37 }
  0x88   : > { %375 = vst.msk [vmem:[#allocation2 + $0x330] sm:$0xff] %vm272_vm3, %v6560_v37 }
  0x89   : > { %376 = vst.msk [vmem:[#allocation2 + $0x338] sm:$0xff] %vm272_vm3, %v6560_v37 }
  0x8a   : > { %6151 = vmatmul.msk.bf16.gmra.mxu1 %vm2029_vm2, %v5275_v34  ;;  %6208 = vmatmul.msk.bf16.gmra.mxu3 %vm2029_vm2, %v5731_v40  ;;  %377 = vst.msk [vmem:[#allocation2 + $0x340] sm:$0xff] %vm272_vm3, %v6560_v37  ;;  %v5747_v34 = vor.u32 %v6391_v32, %v5744_v33  ;;  %v5751_v33 = vor.u32 %v6394_v23, %v5750_v22 }
  0x8b   : > { %378 = vst.msk [vmem:[#allocation2 + $0x348] sm:$0xff] %vm272_vm3, %v6560_v37 }
  0x8c   : > { %2411 = vmatmul.bf16.gmra.mxu0 %v5263_v41  ;;  %2691 = vmatmul.bf16.gmra.mxu2 %v5711_v42  ;;  %379 = vst.msk [vmem:[#allocation2 + $0x350] sm:$0xff] %vm272_vm3, %v6560_v37  ;;  %v5307_v41 = vor.u32 %v6281_v36, %v5304_v38 }
  0x8d   : > { %380 = vst.msk [vmem:[#allocation2 + $0x358] sm:$0xff] %vm272_vm3, %v6560_v37 }
  0x8e   : > { %381 = vst.msk [vmem:[#allocation2 + $0x360] sm:$0xff] %vm272_vm3, %v6560_v37 }
  0x8f   : > { %382 = vst.msk [vmem:[#allocation2 + $0x368] sm:$0xff] %vm272_vm3, %v6560_v37 }
  0x90   : > { %383 = vst.msk [vmem:[#allocation2 + $0x370] sm:$0xff] %vm272_vm3, %v6560_v37 }
  0x91   : > { %384 = vst.msk [vmem:[#allocation2 + $0x378] sm:$0xff] %vm272_vm3, %v6560_v37 }
  0x92   : > { %385 = vst.msk [vmem:[#allocation2 + $0x380] sm:$0xff] %vm272_vm3, %v6560_v37 }
  0x93   : > { %386 = vst.msk [vmem:[#allocation2 + $0x388] sm:$0xff] %vm272_vm3, %v6560_v37 }
  0x94   : > { %387 = vst.msk [vmem:[#allocation2 + $0x390] sm:$0xff] %vm272_vm3, %v6560_v37 }
  0x95   : > { %388 = vst.msk [vmem:[#allocation2 + $0x398] sm:$0xff] %vm272_vm3, %v6560_v37 }
  0x96   : > { %389 = vst.msk [vmem:[#allocation2 + $0x3a0] sm:$0xff] %vm272_vm3, %v6560_v37 }
  0x97   : > { %v2951_v55 = vpop.f32.mrf.mxu1  ;;  %390 = vst.msk [vmem:[#allocation2 + $0x3a8] sm:$0xff] %vm272_vm3, %v6560_v37 }
  0x98   : > { %391 = vst.msk [vmem:[#allocation2 + $0x3b0] sm:$0xff] %vm272_vm3, %v6560_v37 }
  0x99   : > { %392 = vst.msk [vmem:[#allocation2 + $0x3b8] sm:$0xff] %vm272_vm3, %v6560_v37 }
  0x9a   : > { %6152 = vmatmul.msk.bf16.gmra.mxu1 %vm2029_vm2, %v5283_v45  ;;  %393 = vst.msk [vmem:[#allocation2 + $0x3c0] sm:$0xff] %vm272_vm3, %v6560_v37  ;;  %6209 = vmatmul.msk.bf16.gmra.mxu3 %vm2029_vm2, %v5739_v14  ;;  %v5295_v45 = vor.u32 %v6280_v44, %v5294_v43 }
  0x9b   : > { %394 = vst.msk [vmem:[#allocation2 + $0x3c8] sm:$0xff] %vm272_vm3, %v6560_v37 }
  0x9c   : > { %2416 = vmatmul.bf16.gmra.mxu0 %v5271_v50  ;;  %2696 = vmatmul.bf16.gmra.mxu2 %v5719_v51  ;;  %395 = vst.msk [vmem:[#allocation2 + $0x3d0] sm:$0xff] %vm272_vm3, %v6560_v37  ;;  %v5752_v50 = vld [vmem:[%s6620_s30 + $0x438] sm:$0xf0] }
  0x9d   : > { %396 = vst.msk [vmem:[#allocation2 + $0x3d8] sm:$0xff] %vm272_vm3, %v6560_v37  ;;  %v7149_v19 = vpop.f32.mrf.mxu3  ;;  %v613_v13 = vld [vmem:[#allocation2 + $0x3a0] sm:$0xff] }
  0x9e   : > { %397 = vst.msk [vmem:[#allocation2 + $0x3e0] sm:$0xff] %vm272_vm3, %v6560_v37  ;;  %v614_v25 = vld [vmem:[#allocation2 + $0x3a8] sm:$0xff] }
  0x9f   : > { %398 = vst.msk [vmem:[#allocation2 + $0x3e8] sm:$0xff] %vm272_vm3, %v6560_v37  ;;  %v7066_v7 = vpop.f32.mrf.mxu1 }
  0xa0   : > { %399 = vst.msk [vmem:[#allocation2 + $0x3f0] sm:$0xff] %vm272_vm3, %v6560_v37 }
  0xa1   : > { %400 = vst.msk [vmem:[#allocation2 + $0x3f8] sm:$0xff] %vm272_vm3, %v6560_v37 }
  0xa2   : > { %401 = vst.msk [vmem:[#allocation2 + $0x400] sm:$0xff] %vm272_vm3, %v6560_v37 }
  0xa3   : > { %402 = vst.msk [vmem:[#allocation2 + $0x408] sm:$0xff] %vm272_vm3, %v6560_v37 }
  0xa4   : > { %403 = vst.msk [vmem:[#allocation2 + $0x410] sm:$0xff] %vm272_vm3, %v6560_v37 }
  0xa5   : > { %404 = vst.msk [vmem:[#allocation2 + $0x418] sm:$0xff] %vm272_vm3, %v6560_v37  ;;  %v3238_v30 = vpop.f32.mrf.mxu3 }
  0xa6   : > { %405 = vst.msk [vmem:[#allocation2 + $0x420] sm:$0xff] %vm272_vm3, %v6560_v37 }
  0xa7   : > { %406 = vst.msk [vmem:[#allocation2 + $0x428] sm:$0xff] %vm272_vm3, %v6560_v37  ;;  %v7088_v8 = vpop.f32.mrf.mxu1 }
  0xa8   : > { %407 = vst.msk [vmem:[#allocation2 + $0x430] sm:$0xff] %vm272_vm3, %v6560_v37 }
  0xa9   : > { %v2382_v57 = vpop.f32.mrf.mxu0  ;;  %408 = vst.msk [vmem:[#allocation2 + $0x438] sm:$0xff] %vm272_vm3, %v6560_v37 }
  0xaa   : > { %6153 = vmatmul.msk.bf16.gmra.mxu1 %vm2029_vm2, %v5291_v54  ;;  %v2952_v58 = vadd.f32 %v2951_v55, %v2382_v57  ;;  %409 = vst.msk [vmem:[#allocation2 + $0x440] sm:$0xff] %vm272_vm3, %v6560_v37  ;;  %6210 = vmatmul.msk.bf16.gmra.mxu3 %vm2029_vm2, %v5747_v34  ;;  %v499_v57 = vld [vmem:[#allocation2 + $0x10] sm:$0xff] }
  0xab   : > { %410 = vst.msk [vmem:[#allocation2 + $0x448] sm:$0xff] %vm272_vm3, %v6560_v37 }
  0xac   : > { %v3511_v59 = vadd.f32 %v2952_v58, %v497_v56  ;;  %2421 = vmatmul.bf16.gmra.mxu0 %v5279_v3  ;;  %2701 = vmatmul.bf16.gmra.mxu2 %v5727_v6  ;;  %411 = vst.msk [vmem:[#allocation2 + $0x450] sm:$0xff] %vm272_vm3, %v6560_v37  ;;  %v6283_v3 = vld [vmem:[%s6620_s30 + $0xc4] sm:$0xf]  ;;  %v612_v6 = vld [vmem:[#allocation2 + $0x398] sm:$0xff] }
  0xad   : > { %412 = vst.msk [vmem:[#allocation2 + $0x458] sm:$0xff] %vm272_vm3, %v6560_v37  ;;  %v3241_v40 = vpop.f32.mrf.mxu3  ;;  %v5315_v16 = vor.u32 %v6283_v3, %v5312_v4  ;;  %v5310_v4 = vld [vmem:[%s6620_s30 + $0xc0] sm:$0xf] }
  0xae   : > { %3736 = vst.msk [vmem:[#allocation2] sm:$0xff] %vm272_vm3, %v3511_v59  ;;  %v5755_v59 = vor.u32 %v6393_v49, %v5752_v50 }
  0xaf   : > { %413 = vst.msk [vmem:[#allocation2 + $0x460] sm:$0xff] %vm272_vm3, %v6560_v37  ;;  %v7112_v9 = vpop.f32.mrf.mxu1  ;;  %v7116_v10 = vpop.f32.mrf.mxu2 }
  0xb0   : > { %414 = vst.msk [vmem:[#allocation2 + $0x468] sm:$0xff] %vm272_vm3, %v6560_v37 }
  0xb1   : > { %415 = vst.msk [vmem:[#allocation2 + $0x470] sm:$0xff] %vm272_vm3, %v6560_v37  ;;  %v7122_v11 = vpop.f32.mrf.mxu0 }
  0xb2   : > { %416 = vst.msk [vmem:[#allocation2 + $0x478] sm:$0xff] %vm272_vm3, %v6560_v37  ;;  %v2954_v51 = vadd.f32 %v7066_v7, %v7122_v11 }
  0xb3   : > { %417 = vst.msk [vmem:[#allocation2 + $0x480] sm:$0xff] %vm272_vm3, %v6560_v37 }
  0xb4   : > { %418 = vst.msk [vmem:[#allocation2 + $0x488] sm:$0xff] %vm272_vm3, %v6560_v37 }
  0xb5   : > { %v3963_v61 = vld [vmem:[#allocation2] sm:$0xff]  ;;  %419 = vst.msk [vmem:[#allocation2 + $0x490] sm:$0xff] %vm272_vm3, %v6560_v37  ;;  %v3243_v56 = vpop.f32.mrf.mxu3 }
  0xb6   : > { %v4191_v62 = vadd.f32 %v6815_v60, %v3963_v61  ;;  %420 = vst.msk [vmem:[#allocation2 + $0x498] sm:$0xff] %vm272_vm3, %v6560_v37  ;;  %v611_v61 = vld [vmem:[#allocation2 + $0x390] sm:$0xff] }
  0xb7   : > { %421 = vst.msk [vmem:[#allocation2 + $0x4a0] sm:$0xff] %vm272_vm3, %v6560_v37  ;;  %v7141_v15 = vpop.f32.mrf.mxu1  ;;  %v7147_v18 = vpop.f32.mrf.mxu2 }
  0xb8   : > { %v4415_v63 = vmax.f32 %v4191_v62, 0.0  ;;  %422 = vst.msk [vmem:[#allocation2 + $0x4a8] sm:$0xff] %vm272_vm3, %v6560_v37 }
  0xb9   : > { %423 = vst.msk [vmem:[#allocation2 + $0x4b0] sm:$0xff] %vm272_vm3, %v6560_v37  ;;  %v2387_v21 = vpop.f32.mrf.mxu0 }
  0xba   : > { %v4639_v0 = vpack.c.bf16 %v4415_v63, %v4415_v63  ;;  %424 = vst.msk [vmem:[#allocation2 + $0x4b8] sm:$0xff] %vm272_vm3, %v6560_v37  ;;  %6154 = vmatmul.msk.bf16.gmra.mxu1 %vm2029_vm2, %v5299_v20  ;;  %v2957_v54 = vadd.f32 %v7088_v8, %v2387_v21  ;;  %6211 = vmatmul.msk.bf16.gmra.mxu3 %vm2029_vm2, %v5755_v59  ;;  %v502_v20 = vld [vmem:[#allocation2 + $0x28] sm:$0xff] }
  0xbb   : > { %425 = vst.msk [vmem:[#allocation2 + $0x4c0] sm:$0xff] %vm272_vm3, %v6560_v37 }
  0xbc   : > { %4864 = vst.msk [vmem:[%s6836_s23] sm:$0xf] %vm4863_vm4, %v4639_v0  ;;  %2426 = vmatmul.bf16.gmra.mxu0 %v5287_v24  ;;  %2706 = vmatmul.bf16.gmra.mxu2 %v5735_v27  ;;  %v3512_v0 = vadd.f32 %v2954_v51, %v498_v53  ;;  %v3513_v5 = vadd.f32 %v2957_v54, %v499_v57 }
  0xbd   : > { %426 = vst.msk [vmem:[#allocation2 + $0x4c8] sm:$0xff] %vm272_vm3, %v6560_v37  ;;  %v7252_v26 = vpop.f32.mrf.mxu3 }
  0xbe   : > { %427 = vst.msk [vmem:[#allocation2 + $0x4d0] sm:$0xff] %vm272_vm3, %v6560_v37 }
  0xbf   : > { %428 = vst.msk [vmem:[#allocation2 + $0x4d8] sm:$0xff] %vm272_vm3, %v6560_v37  ;;  %v7170_v28 = vpop.f32.mrf.mxu1  ;;  %v2667_v29 = vpop.f32.mrf.mxu2 }
  0xc0   : > { %429 = vst.msk [vmem:[#allocation2 + $0x4e0] sm:$0xff] %vm272_vm3, %v6560_v37  ;;  %v3237_v58 = vadd.f32 %v7149_v19, %v2667_v29 }
  0xc1   : > { %430 = vst.msk [vmem:[#allocation2 + $0x4e8] sm:$0xff] %vm272_vm3, %v6560_v37  ;;  %v2389_v31 = vpop.f32.mrf.mxu0 }
  0xc2   : > { %431 = vst.msk [vmem:[#allocation2 + $0x4f0] sm:$0xff] %vm272_vm3, %v6560_v37  ;;  %v2959_v62 = vadd.f32 %v7112_v9, %v2389_v31  ;;  %v3625_v8 = vadd.f32 %v3237_v58, %v611_v61  ;;  %v501_v9 = vld [vmem:[#allocation2 + $0x20] sm:$0xff]  ;;  %v503_v31 = vld [vmem:[#allocation2 + $0x30] sm:$0xff] }
  0xc3   : > { %432 = vst.msk [vmem:[#allocation2 + $0x4f8] sm:$0xff] %vm272_vm3, %v6560_v37 }
  0xc4   : > { %433 = vst.msk [vmem:[#allocation2 + $0x500] sm:$0xff] %vm272_vm3, %v6560_v37  ;;  %v3514_v12 = vadd.f32 %v2959_v62, %v500_v1  ;;  %v6285_v62 = vld [vmem:[%s6620_s30 + $0xd4] sm:$0xf] }
  0xc5   : > { %434 = vst.msk [vmem:[#allocation2 + $0x508] sm:$0xff] %vm272_vm3, %v6560_v37  ;;  %v3248_v47 = vpop.f32.mrf.mxu3 }
  0xc6   : > { %435 = vst.msk [vmem:[#allocation2 + $0x510] sm:$0xff] %vm272_vm3, %v6560_v37 }
  0xc7   : > { %436 = vst.msk [vmem:[#allocation2 + $0x518] sm:$0xff] %vm272_vm3, %v6560_v37  ;;  %v7191_v35 = vpop.f32.mrf.mxu1  ;;  %v2669_v39 = vpop.f32.mrf.mxu2 }
  0xc8   : > { %437 = vst.msk [vmem:[#allocation2 + $0x520] sm:$0xff] %vm272_vm3, %v6560_v37  ;;  %v3239_v2 = vadd.f32 %v3238_v30, %v2669_v39 }
  0xc9   : > { %438 = vst.msk [vmem:[#allocation2 + $0x528] sm:$0xff] %vm272_vm3, %v6560_v37  ;;  %v2392_v42 = vpop.f32.mrf.mxu0 }
  0xca   : > { %439 = vst.msk [vmem:[#allocation2 + $0x530] sm:$0xff] %vm272_vm3, %v6560_v37  ;;  %6155 = vmatmul.msk.bf16.gmra.mxu1 %vm2029_vm2, %v5307_v41  ;;  %v2962_v7 = vadd.f32 %v7141_v15, %v2392_v42  ;;  %v6282_v15 = vld [vmem:[%s6620_s30 + $0xb4] sm:$0xf0]  ;;  %v3626_v19 = vadd.f32 %v3239_v2, %v612_v6  ;;  %v5760_v41 = vld [vmem:[%s6620_s30 + $0x448] sm:$0xf0] }
  0xcb   : > { %440 = vst.msk [vmem:[#allocation2 + $0x538] sm:$0xff] %vm272_vm3, %v6560_v37  ;;  %v5303_v29 = vor.u32 %v6282_v15, %v5302_v17  ;;  %v5758_v17 = vld [vmem:[%s6620_s30 + $0x440] sm:$0xf] }
  0xcc   : > { %441 = vst.msk [vmem:[#allocation2 + $0x540] sm:$0xff] %vm272_vm3, %v6560_v37  ;;  %2431 = vmatmul.bf16.gmra.mxu0 %v5295_v45  ;;  %2711 = vmatmul.bf16.gmra.mxu2 %v5743_v48  ;;  %v3515_v24 = vadd.f32 %v2962_v7, %v501_v9  ;;  %v6284_v9 = vld [vmem:[%s6620_s30 + $0xc4] sm:$0xf0] }
  0xcd   : > { %442 = vst.msk [vmem:[#allocation2 + $0x548] sm:$0xff] %vm272_vm3, %v6560_v37 }
  0xce   : > { %443 = vst.msk [vmem:[#allocation2 + $0x550] sm:$0xff] %vm272_vm3, %v6560_v37 }
  0xcf   : > { %444 = vst.msk [vmem:[#allocation2 + $0x558] sm:$0xff] %vm272_vm3, %v6560_v37  ;;  %v7220_v52 = vpop.f32.mrf.mxu1  ;;  %v2672_v55 = vpop.f32.mrf.mxu2 }
  0xd0   : > { %445 = vst.msk [vmem:[#allocation2 + $0x560] sm:$0xff] %vm272_vm3, %v6560_v37  ;;  %v3242_v11 = vadd.f32 %v3241_v40, %v2672_v55  ;;  %v6395_v40 = vld [vmem:[%s6620_s30 + $0x444] sm:$0xf] }
  0xd1   : > { %446 = vst.msk [vmem:[#allocation2 + $0x568] sm:$0xff] %vm272_vm3, %v6560_v37  ;;  %v2394_v63 = vpop.f32.mrf.mxu0  ;;  %v5763_v51 = vor.u32 %v6395_v40, %v5760_v41  ;;  %v616_v41 = vld [vmem:[#allocation2 + $0x3b8] sm:$0xff] }
  0xd2   : > { %447 = vst.msk [vmem:[#allocation2 + $0x570] sm:$0xff] %vm272_vm3, %v6560_v37  ;;  %v2964_v14 = vadd.f32 %v7170_v28, %v2394_v63  ;;  %v3627_v27 = vadd.f32 %v3242_v11, %v613_v13  ;;  %v5320_v63 = vld [vmem:[%s6620_s30 + $0xd8] sm:$0xf0] }
  0xd3   : > { %448 = vst.msk [vmem:[#allocation2 + $0x578] sm:$0xff] %vm272_vm3, %v6560_v37  ;;  %6212 = vmatmul.msk.bf16.gmra.mxu3 %vm2029_vm2, %v5763_v51  ;;  %v6397_v51 = vld [vmem:[%s6620_s30 + $0x454] sm:$0xf] }
  0xd4   : > { %449 = vst.msk [vmem:[#allocation2 + $0x580] sm:$0xff] %vm272_vm3, %v6560_v37  ;;  %v3516_v30 = vadd.f32 %v2964_v14, %v502_v20 }
  0xd5   : > { %450 = vst.msk [vmem:[#allocation2 + $0x588] sm:$0xff] %vm272_vm3, %v6560_v37 }
  0xd6   : > { %451 = vst.msk [vmem:[#allocation2 + $0x590] sm:$0xff] %vm272_vm3, %v6560_v37 }
  0xd7   : > { %452 = vst.msk [vmem:[#allocation2 + $0x598] sm:$0xff] %vm272_vm3, %v6560_v37  ;;  %v7247_v21 = vpop.f32.mrf.mxu1 }
  0xd8   : > { %453 = vst.msk [vmem:[#allocation2 + $0x5a0] sm:$0xff] %vm272_vm3, %v6560_v37 }
  0xd9   : > { %454 = vst.msk [vmem:[#allocation2 + $0x5a8] sm:$0xff] %vm272_vm3, %v6560_v37  ;;  %v2397_v32 = vpop.f32.mrf.mxu0 }
  0xda   : > { %455 = vst.msk [vmem:[#allocation2 + $0x5b0] sm:$0xff] %vm272_vm3, %v6560_v37  ;;  %6156 = vmatmul.msk.bf16.gmra.mxu1 %vm2029_vm2, %v5315_v16  ;;  %v2967_v36 = vadd.f32 %v7191_v35, %v2397_v32  ;;  %v5323_v16 = vor.u32 %v6285_v62, %v5320_v63  ;;  %v3251_v32 = vpop.f32.mrf.mxu3 }
  0xdb   : > { %456 = vst.msk [vmem:[#allocation2 + $0x5b8] sm:$0xff] %vm272_vm3, %v6560_v37 }
  0xdc   : > { %457 = vst.msk [vmem:[#allocation2 + $0x5c0] sm:$0xff] %vm272_vm3, %v6560_v37  ;;  %v3517_v38 = vadd.f32 %v2967_v36, %v503_v31  ;;  %2436 = vmatmul.bf16.gmra.mxu0 %v5303_v29  ;;  %2716 = vmatmul.bf16.gmra.mxu2 %v5751_v33  ;;  %v615_v29 = vld [vmem:[#allocation2 + $0x3b0] sm:$0xff] }
  0xdd   : > { %458 = vst.msk [vmem:[#allocation2 + $0x5c8] sm:$0xff] %vm272_vm3, %v6560_v37 }
  0xde   : > { %459 = vst.msk [vmem:[#allocation2 + $0x5d0] sm:$0xff] %vm272_vm3, %v6560_v37 }
  0xdf   : > { %460 = vst.msk [vmem:[#allocation2 + $0x5d8] sm:$0xff] %vm272_vm3, %v6560_v37  ;;  %v7266_v44 = vpop.f32.mrf.mxu1 }
  0xe0   : > { %461 = vst.msk [vmem:[#allocation2 + $0x5e0] sm:$0xff] %vm272_vm3, %v6560_v37 }
  0xe1   : > { %462 = vst.msk [vmem:[#allocation2 + $0x5e8] sm:$0xff] %vm272_vm3, %v6560_v37 }
  0xe2   : > { %463 = vst.msk [vmem:[#allocation2 + $0x5f0] sm:$0xff] %vm272_vm3, %v6560_v37 }
  0xe3   : > { %464 = vst.msk [vmem:[#allocation2 + $0x5f8] sm:$0xff] %vm272_vm3, %v6560_v37 }
  0xe4   : > { %465 = vst.msk [vmem:[#allocation2 + $0x600] sm:$0xff] %vm272_vm3, %v6560_v37 }
  0xe5   : > { %466 = vst.msk [vmem:[#allocation2 + $0x608] sm:$0xff] %vm272_vm3, %v6560_v37 }
  0xe6   : > { %467 = vst.msk [vmem:[#allocation2 + $0x610] sm:$0xff] %vm272_vm3, %v6560_v37 }
  0xe7   : > { %468 = vst.msk [vmem:[#allocation2 + $0x618] sm:$0xff] %vm272_vm3, %v6560_v37 }
  0xe8   : > { %469 = vst.msk [vmem:[#allocation2 + $0x620] sm:$0xff] %vm272_vm3, %v6560_v37 }
  0xe9   : > { %470 = vst.msk [vmem:[#allocation2 + $0x628] sm:$0xff] %vm272_vm3, %v6560_v37 }
  0xea   : > { %471 = vst.msk [vmem:[#allocation2 + $0x630] sm:$0xff] %vm272_vm3, %v6560_v37  ;;  %6157 = vmatmul.msk.bf16.gmra.mxu1 %vm2029_vm2, %v5323_v16 }
  0xeb   : > { %472 = vst.msk [vmem:[#allocation2 + $0x638] sm:$0xff] %vm272_vm3, %v6560_v37 }
  0xec   : > { %473 = vst.msk [vmem:[#allocation2 + $0x640] sm:$0xff] %vm272_vm3, %v6560_v37 }
  0xed   : > { %474 = vst.msk [vmem:[#allocation2 + $0x648] sm:$0xff] %vm272_vm3, %v6560_v37 }
  0xee   : > { %475 = vst.msk [vmem:[#allocation2 + $0x650] sm:$0xff] %vm272_vm3, %v6560_v37 }
  0xef   : > { %476 = vst.msk [vmem:[#allocation2 + $0x658] sm:$0xff] %vm272_vm3, %v6560_v37 }
  0xf0   : > { %477 = vst.msk [vmem:[#allocation2 + $0x660] sm:$0xff] %vm272_vm3, %v6560_v37 }
  0xf1   : > { %478 = vst.msk [vmem:[#allocation2 + $0x668] sm:$0xff] %vm272_vm3, %v6560_v37 }
  0xf2   : > { %479 = vst.msk [vmem:[#allocation2 + $0x670] sm:$0xff] %vm272_vm3, %v6560_v37 }
  0xf3   : > { %480 = vst.msk [vmem:[#allocation2 + $0x678] sm:$0xff] %vm272_vm3, %v6560_v37 }
  0xf4   : > { %481 = vst.msk [vmem:[#allocation2 + $0x680] sm:$0xff] %vm272_vm3, %v6560_v37 }
  0xf5   : > { %482 = vst.msk [vmem:[#allocation2 + $0x688] sm:$0xff] %vm272_vm3, %v6560_v37 }
  0xf6   : > { %483 = vst.msk [vmem:[#allocation2 + $0x690] sm:$0xff] %vm272_vm3, %v6560_v37 }
  0xf7   : > { %484 = vst.msk [vmem:[#allocation2 + $0x698] sm:$0xff] %vm272_vm3, %v6560_v37 }
  0xf8   : > { %485 = vst.msk [vmem:[#allocation2 + $0x6a0] sm:$0xff] %vm272_vm3, %v6560_v37 }
  0xf9   : > { %486 = vst.msk [vmem:[#allocation2 + $0x6a8] sm:$0xff] %vm272_vm3, %v6560_v37 }
  0xfa   : > { %487 = vst.msk [vmem:[#allocation2 + $0x6b0] sm:$0xff] %vm272_vm3, %v6560_v37 }
  0xfb   : > { %488 = vst.msk [vmem:[#allocation2 + $0x6b8] sm:$0xff] %vm272_vm3, %v6560_v37 }
  0xfc   : > { %489 = vst.msk [vmem:[#allocation2 + $0x6c0] sm:$0xff] %vm272_vm3, %v6560_v37 }
  0xfd   : > { %490 = vst.msk [vmem:[#allocation2 + $0x6c8] sm:$0xff] %vm272_vm3, %v6560_v37 }
  0xfe   : > { %491 = vst.msk [vmem:[#allocation2 + $0x6d0] sm:$0xff] %vm272_vm3, %v6560_v37 }
  0xff   : > { %492 = vst.msk [vmem:[#allocation2 + $0x6d8] sm:$0xff] %vm272_vm3, %v6560_v37 }
 0x100   : > { %493 = vst.msk [vmem:[#allocation2 + $0x6e0] sm:$0xff] %vm272_vm3, %v6560_v37 }
 0x101   : > { %494 = vst.msk [vmem:[#allocation2 + $0x6e8] sm:$0xff] %vm272_vm3, %v6560_v37 }
 0x102   : > { %495 = vst.msk [vmem:[#allocation2 + $0x6f0] sm:$0xff] %vm272_vm3, %v6560_v37 }
 0x103   : > { %496 = vst.msk [vmem:[#allocation2 + $0x6f8] sm:$0xff] %vm272_vm3, %v6560_v37  ;;  %v2674_v37 = vpop.f32.mrf.mxu2 }
 0x104   : > { %3737 = vst.msk [vmem:[#allocation2 + $0x8] sm:$0xff] %vm272_vm3, %v3512_v0  ;;  %v3244_v28 = vadd.f32 %v3243_v56, %v2674_v37  ;;  %v2399_v56 = vpop.f32.mrf.mxu0 }
 0x105   : > { %3738 = vst.msk [vmem:[#allocation2 + $0x10] sm:$0xff] %vm272_vm3, %v3513_v5 }
 0x106   : > { %3850 = vst.msk [vmem:[#allocation2 + $0x390] sm:$0xff] %vm272_vm3, %v3625_v8  ;;  %v3628_v34 = vadd.f32 %v3244_v28, %v614_v25  ;;  %v6396_v25 = vld [vmem:[%s6620_s30 + $0x444] sm:$0xf0] }
 0x107   : > { %3739 = vst.msk [vmem:[#allocation2 + $0x18] sm:$0xff] %vm272_vm3, %v3514_v12 }
 0x108   : > { %3851 = vst.msk [vmem:[#allocation2 + $0x398] sm:$0xff] %vm272_vm3, %v3626_v19 }
 0x109   : > { %3740 = vst.msk [vmem:[#allocation2 + $0x20] sm:$0xff] %vm272_vm3, %v3515_v24  ;;  %v7290_v24 = vpop.f32.mrf.mxu1 }
 0x10a   : > { %3852 = vst.msk [vmem:[#allocation2 + $0x3a0] sm:$0xff] %vm272_vm3, %v3627_v27 }
 0x10b   : > { %v3964_v39 = vld [vmem:[#allocation2 + $0x8] sm:$0xff]  ;;  %3741 = vst.msk [vmem:[#allocation2 + $0x28] sm:$0xff] %vm272_vm3, %v3516_v30  ;;  %v2677_v46 = vpop.f32.mrf.mxu2  ;;  %v2969_v30 = vadd.f32 %v7220_v52, %v2399_v56  ;;  %v3253_v56 = vpop.f32.mrf.mxu3 }
 0x10c   : > { %v4192_v42 = vadd.f32 %v6815_v60, %v3964_v39  ;;  %v3965_v43 = vld [vmem:[#allocation2 + $0x10] sm:$0xff]  ;;  %3853 = vst.msk [vmem:[#allocation2 + $0x3a8] sm:$0xff] %vm272_vm3, %v3628_v34  ;;  %v3247_v23 = vadd.f32 %v7252_v26, %v2677_v46  ;;  %v504_v34 = vld [vmem:[#allocation2 + $0x38] sm:$0xff]  ;;  %v2402_v52 = vpop.f32.mrf.mxu0 }
 0x10d   : > { %v4193_v35 = vadd.f32 %v6815_v60, %v3965_v43  ;;  %v4077_v45 = vld [vmem:[#allocation2 + $0x390] sm:$0xff]  ;;  %3742 = vst.msk [vmem:[#allocation2 + $0x30] sm:$0xff] %vm272_vm3, %v3517_v38  ;;  %v5311_v38 = vor.u32 %v6284_v9, %v5310_v4  ;;  %v2972_v46 = vadd.f32 %v7247_v21, %v2402_v52  ;;  %v617_v21 = vld [vmem:[#allocation2 + $0x3c0] sm:$0xff] }
 0x10e   : > { %v4416_v48 = vmax.f32 %v4192_v42, 0.0  ;;  %v4305_v49 = vadd.f32 %v6815_v60, %v4077_v45  ;;  %v3966_v50 = vld [vmem:[#allocation2 + $0x18] sm:$0xff]  ;;  %v5759_v42 = vor.u32 %v6396_v25, %v5758_v17  ;;  %v505_v45 = vld [vmem:[#allocation2 + $0x40] sm:$0xff] }
 0x10f   : > { %v4417_v53 = vmax.f32 %v4193_v35, 0.0  ;;  %v4194_v54 = vadd.f32 %v6815_v60, %v3966_v50  ;;  %v4078_v55 = vld [vmem:[#allocation2 + $0x398] sm:$0xff]  ;;  %v3629_v35 = vadd.f32 %v3247_v23, %v615_v29  ;;  %2441 = vmatmul.bf16.gmra.mxu0 %v5311_v38  ;;  %v3519_v50 = vadd.f32 %v2972_v46, %v505_v45  ;;  %v619_v46 = vld [vmem:[#allocation2 + $0x3d0] sm:$0xff] }
 0x110   : > { %v4640_v57 = vpack.c.bf16 %v4416_v48, %v4416_v48  ;;  %v4529_v58 = vmax.f32 %v4305_v49, 0.0  ;;  %v4306_v59 = vadd.f32 %v6815_v60, %v4078_v55  ;;  %v3967_v61 = vld [vmem:[#allocation2 + $0x20] sm:$0xff]  ;;  %v3518_v48 = vadd.f32 %v2969_v30, %v504_v34  ;;  %2721 = vmatmul.bf16.gmra.mxu2 %v5759_v42 }
 0x111   : > { %v4641_v0 = vpack.c.bf16 %v4417_v53, %v4417_v53  ;;  %v4418_v1 = vmax.f32 %v4194_v54, 0.0  ;;  %v4195_v2 = vadd.f32 %v6815_v60, %v3967_v61  ;;  %v4079_v3 = vld [vmem:[#allocation2 + $0x3a0] sm:$0xff]  ;;  %v5768_v53 = vld [vmem:[%s6620_s30 + $0x458] sm:$0xf0]  ;;  %3854 = vst.msk [vmem:[#allocation2 + $0x3b0] sm:$0xff] %vm272_vm3, %v3629_v35  ;;  %v7314_v54 = vpop.f32.mrf.mxu1 }
 0x112   : > { %4865 = vst.msk [vmem:[%s6836_s23 + $0x4] sm:$0xf] %vm4863_vm4, %v4640_v57  ;;  %v4753_v5 = vpack.c.bf16 %v4529_v58, %v4529_v58  ;;  %v4530_v6 = vmax.f32 %v4306_v59, 0.0  ;;  %v4307_v7 = vadd.f32 %v6815_v60, %v4079_v3  ;;  %v3968_v8 = vld [vmem:[#allocation2 + $0x28] sm:$0xff]  ;;  %v5771_v58 = vor.u32 %v6397_v51, %v5768_v53 }
 0x113   : > { %4866 = vst.msk [vmem:[%s6836_s23 + $0x8] sm:$0xf] %vm4863_vm4, %v4641_v0  ;;  %v4642_v11 = vpack.c.bf16 %v4418_v1, %v4418_v1  ;;  %v4419_v12 = vmax.f32 %v4195_v2, 0.0  ;;  %v4196_v13 = vadd.f32 %v6815_v60, %v3968_v8  ;;  %v4080_v14 = vld [vmem:[#allocation2 + $0x3a8] sm:$0xff]  ;;  %v2679_v31 = vpop.f32.mrf.mxu2  ;;  %v6287_v0 = vld [vmem:[%s6620_s30 + $0xe4] sm:$0xf]  ;;  %v3256_v16 = vpop.f32.mrf.mxu3 }
 0x114   : > { %4978 = vst.msk [vmem:[%s6836_s23 + $0x1c8] sm:$0xf] %vm4863_vm4, %v4753_v5  ;;  %v4754_v15 = vpack.c.bf16 %v4530_v6, %v4530_v6  ;;  %v4531_v19 = vmax.f32 %v4307_v7, 0.0  ;;  %v4308_v20 = vadd.f32 %v6815_v60, %v4080_v14  ;;  %v3969_v22 = vld [vmem:[#allocation2 + $0x30] sm:$0xff]  ;;  %v3249_v36 = vadd.f32 %v3248_v47, %v2679_v31  ;;  %v506_v59 = vld [vmem:[#allocation2 + $0x48] sm:$0xff]  ;;  %v2404_v61 = vpop.f32.mrf.mxu0  ;;  %6213 = vmatmul.msk.bf16.gmra.mxu3 %vm2029_vm2, %v5771_v58 }
 0x115   : > { %4867 = vst.msk [vmem:[%s6836_s23 + $0xc] sm:$0xf] %vm4863_vm4, %v4642_v11  ;;  %v4643_v37 = vpack.c.bf16 %v4419_v12, %v4419_v12  ;;  %v4420_v27 = vmax.f32 %v4196_v13, 0.0  ;;  %v4197_v28 = vadd.f32 %v6815_v60, %v3969_v22  ;;  %v2974_v63 = vadd.f32 %v7266_v44, %v2404_v61  ;;  %v5328_v1 = vld [vmem:[%s6620_s30 + $0xe8] sm:$0xf0]  ;;  %v507_v31 = vld [vmem:[#allocation2 + $0x50] sm:$0xff] }
 0x116   : > { %4979 = vst.msk [vmem:[%s6836_s23 + $0x1cc] sm:$0xf] %vm4863_vm4, %v4754_v15  ;;  %v4755_v33 = vpack.c.bf16 %v4531_v19, %v4531_v19  ;;  %v4532_v26 = vmax.f32 %v4308_v20, 0.0  ;;  %v3630_v49 = vadd.f32 %v3249_v36, %v616_v41  ;;  %v5331_v4 = vor.u32 %v6287_v0, %v5328_v1  ;;  %v5318_v5 = vld [vmem:[%s6620_s30 + $0xd0] sm:$0xf] }
 0x117   : > { %4868 = vst.msk [vmem:[%s6836_s23 + $0x10] sm:$0xf] %vm4863_vm4, %v4643_v37  ;;  %v4644_v39 = vpack.c.bf16 %v4420_v27, %v4420_v27  ;;  %v4421_v40 = vmax.f32 %v4197_v28, 0.0  ;;  %v3520_v2 = vadd.f32 %v2974_v63, %v506_v59  ;;  %v6286_v6 = vld [vmem:[%s6620_s30 + $0xd4] sm:$0xf0]  ;;  %v618_v37 = vld [vmem:[#allocation2 + $0x3c8] sm:$0xff] }
 0x118   : > { %4980 = vst.msk [vmem:[%s6836_s23 + $0x1d0] sm:$0xf] %vm4863_vm4, %v4755_v33  ;;  %v4756_v43 = vpack.c.bf16 %v4532_v26, %v4532_v26  ;;  %v4081_v3 = vld [vmem:[#allocation2 + $0x3b0] sm:$0xff]  ;;  %v6398_v44 = vld [vmem:[%s6620_s30 + $0x454] sm:$0xf0]  ;;  %v5319_v22 = vor.u32 %v6286_v6, %v5318_v5  ;;  %6158 = vmatmul.msk.bf16.gmra.mxu1 %vm2029_vm2, %v5331_v4 }
 0x119   : > { %4869 = vst.msk [vmem:[%s6836_s23 + $0x14] sm:$0xf] %vm4863_vm4, %v4644_v39  ;;  %v4645_v47 = vpack.c.bf16 %v4421_v40, %v4421_v40  ;;  %v4309_v7 = vadd.f32 %v6815_v60, %v4081_v3  ;;  %v7328_v9 = vpop.f32.mrf.mxu1  ;;  %v5766_v11 = vld [vmem:[%s6620_s30 + $0x450] sm:$0xf]  ;;  %v6399_v40 = vld [vmem:[%s6620_s30 + $0x464] sm:$0xf] }
 0x11a   : > { %4981 = vst.msk [vmem:[%s6836_s23 + $0x1d4] sm:$0xf] %vm4863_vm4, %v4756_v43  ;;  %v5767_v28 = vor.u32 %v6398_v44, %v5766_v11  ;;  %v6289_v59 = vld [vmem:[%s6620_s30 + $0xf4] sm:$0xf]  ;;  %v5336_v61 = vld [vmem:[%s6620_s30 + $0xf8] sm:$0xf0] }
 0x11b   : > { %4870 = vst.msk [vmem:[%s6836_s23 + $0x18] sm:$0xf] %vm4863_vm4, %v4645_v47  ;;  %v2682_v55 = vpop.f32.mrf.mxu2  ;;  %v4533_v17 = vmax.f32 %v4309_v7, 0.0  ;;  %v5339_v63 = vor.u32 %v6289_v59, %v5336_v61  ;;  %v5326_v0 = vld [vmem:[%s6620_s30 + $0xe0] sm:$0xf]  ;;  %v622_v59 = vld [vmem:[#allocation2 + $0x3e8] sm:$0xff] }
 0x11c   : > { %3743 = vst.msk [vmem:[#allocation2 + $0x38] sm:$0xff] %vm272_vm3, %v3518_v48  ;;  %v3252_v57 = vadd.f32 %v3251_v32, %v2682_v55  ;;  %v2407_v27 = vpop.f32.mrf.mxu0  ;;  %v3258_v48 = vpop.f32.mrf.mxu3  ;;  %v6288_v1 = vld [vmem:[%s6620_s30 + $0xe4] sm:$0xf0]  ;;  %v5774_v3 = vld [vmem:[%s6620_s30 + $0x460] sm:$0xf] }
 0x11d   : > { %3855 = vst.msk [vmem:[#allocation2 + $0x3b8] sm:$0xff] %vm272_vm3, %v3630_v49  ;;  %v4757_v29 = vpack.c.bf16 %v4533_v17, %v4533_v17  ;;  %v2977_v32 = vadd.f32 %v7290_v24, %v2407_v27  ;;  %v5776_v24 = vld [vmem:[%s6620_s30 + $0x468] sm:$0xf0]  ;;  %v6400_v4 = vld [vmem:[%s6620_s30 + $0x464] sm:$0xf0] }
 0x11e   : > { %3744 = vst.msk [vmem:[#allocation2 + $0x40] sm:$0xff] %vm272_vm3, %v3519_v50  ;;  %v3631_v62 = vadd.f32 %v3252_v57, %v617_v21  ;;  %v5779_v53 = vor.u32 %v6399_v40, %v5776_v24  ;;  %v508_v21 = vld [vmem:[#allocation2 + $0x58] sm:$0xff]  ;;  %v5775_v17 = vor.u32 %v6400_v4, %v5774_v3  ;;  %v7377_v27 = vld [vmem:[%s8893_s2] ss:$0 sm:$0xff]  ;;  %v511_v4 = vld [vmem:[#allocation2 + $0x70] sm:$0xff] }
 0x11f   : > { %3745 = vst.msk [vmem:[#allocation2 + $0x48] sm:$0xff] %vm272_vm3, %v3520_v2  ;;  %2446 = vmatmul.bf16.gmra.mxu0 %v5319_v22  ;;  %v3521_v42 = vadd.f32 %v2977_v32, %v507_v31 }
 0x120   : > { %3856 = vst.msk [vmem:[#allocation2 + $0x3c0] sm:$0xff] %vm272_vm3, %v3631_v62  ;;  %2726 = vmatmul.bf16.gmra.mxu2 %v5767_v28 }
 0x121   : > { %4982 = vst.msk [vmem:[%s6836_s23 + $0x1d8] sm:$0xf] %vm4863_vm4, %v4757_v29  ;;  %v7347_v45 = vpop.f32.mrf.mxu1 }
 0x122   : > { %3746 = vst.msk [vmem:[#allocation2 + $0x50] sm:$0xff] %vm272_vm3, %v3521_v42 }
 0x123   : > { %v3970_v8 = vld [vmem:[#allocation2 + $0x38] sm:$0xff]  ;;  %v2684_v14 = vpop.f32.mrf.mxu2 }
 0x124   : > { %v4198_v12 = vadd.f32 %v6815_v60, %v3970_v8  ;;  %v4082_v13 = vld [vmem:[#allocation2 + $0x3b8] sm:$0xff]  ;;  %v3254_v20 = vadd.f32 %v3253_v56, %v2684_v14  ;;  %v2409_v55 = vpop.f32.mrf.mxu0  ;;  %6214 = vmatmul.msk.bf16.gmra.mxu3 %vm2029_vm2, %v5779_v53  ;;  %v3261_v7 = vpop.f32.mrf.mxu3  ;;  %v509_v14 = vld [vmem:[#allocation2 + $0x60] sm:$0xff]  ;;  %v5334_v53 = vld [vmem:[%s6620_s30 + $0xf0] sm:$0xf] }
 0x125   : > { %v4310_v15 = vadd.f32 %v6815_v60, %v4082_v13  ;;  %v3971_v19 = vld [vmem:[#allocation2 + $0x40] sm:$0xff]  ;;  %v2979_v58 = vadd.f32 %v7314_v54, %v2409_v55  ;;  %v620_v54 = vld [vmem:[#allocation2 + $0x3d8] sm:$0xff] }
 0x126   : > { %v4422_v23 = vmax.f32 %v4198_v12, 0.0  ;;  %v4199_v25 = vadd.f32 %v6815_v60, %v3971_v19  ;;  %v3632_v39 = vadd.f32 %v3254_v20, %v618_v37  ;;  %v3972_v52 = vld [vmem:[#allocation2 + $0x48] sm:$0xff]  ;;  %v5327_v12 = vor.u32 %v6288_v1, %v5326_v0 }
 0x127   : > { %v4534_v30 = vmax.f32 %v4310_v15, 0.0  ;;  %v4083_v34 = vld [vmem:[#allocation2 + $0x3c0] sm:$0xff]  ;;  %v4200_v35 = vadd.f32 %v6815_v60, %v3972_v52  ;;  %v3522_v62 = vadd.f32 %v2979_v58, %v508_v21  ;;  %v510_v52 = vld [vmem:[#allocation2 + $0x68] sm:$0xff]  ;;  %v6290_v21 = vld [vmem:[%s6620_s30 + $0xf4] sm:$0xf0] }
 0x128   : > { %v4646_v33 = vpack.c.bf16 %v4422_v23, %v4422_v23  ;;  %v4423_v26 = vmax.f32 %v4199_v25, 0.0  ;;  %v4311_v38 = vadd.f32 %v6815_v60, %v4083_v34  ;;  %3857 = vst.msk [vmem:[#allocation2 + $0x3c8] sm:$0xff] %vm272_vm3, %v3632_v39  ;;  %6159 = vmatmul.msk.bf16.gmra.mxu1 %vm2029_vm2, %v5339_v63  ;;  %v5335_v3 = vor.u32 %v6290_v21, %v5334_v53 }
 0x129   : > { %v4758_v36 = vpack.c.bf16 %v4534_v30, %v4534_v30  ;;  %v4424_v50 = vmax.f32 %v4200_v35, 0.0  ;;  %3747 = vst.msk [vmem:[#allocation2 + $0x58] sm:$0xff] %vm272_vm3, %v3522_v62  ;;  %v7365_v2 = vpop.f32.mrf.mxu1  ;;  %v3973_v11 = vld [vmem:[#allocation2 + $0x50] sm:$0xff] }
 0x12a   : > { %4871 = vst.msk [vmem:[%s6836_s23 + $0x1c] sm:$0xf] %vm4863_vm4, %v4646_v33  ;;  %v4647_v41 = vpack.c.bf16 %v4423_v26, %v4423_v26  ;;  %v4535_v43 = vmax.f32 %v4311_v38, 0.0  ;;  %v4201_v13 = vadd.f32 %v6815_v60, %v3973_v11  ;;  %v6401_v30 = vld [vmem:[%s6620_s30 + $0x474] sm:$0xf]  ;;  %v621_v26 = vld [vmem:[#allocation2 + $0x3e0] sm:$0xff] }
 0x12b   : > { %4983 = vst.msk [vmem:[%s6836_s23 + $0x1dc] sm:$0xf] %vm4863_vm4, %v4758_v36  ;;  %v2687_v47 = vpop.f32.mrf.mxu2  ;;  %v4648_v56 = vpack.c.bf16 %v4424_v50, %v4424_v50 }
 0x12c   : > { %4872 = vst.msk [vmem:[%s6836_s23 + $0x20] sm:$0xf] %vm4863_vm4, %v4647_v41  ;;  %v4759_v49 = vpack.c.bf16 %v4535_v43, %v4535_v43  ;;  %v3257_v51 = vadd.f32 %v3256_v16, %v2687_v47  ;;  %v2412_v16 = vpop.f32.mrf.mxu0  ;;  %v4425_v22 = vmax.f32 %v4201_v13, 0.0  ;;  %v3263_v36 = vpop.f32.mrf.mxu3  ;;  %v5344_v47 = vld [vmem:[%s6620_s30 + $0x108] sm:$0xf0] }
 0x12d   : > { %4873 = vst.msk [vmem:[%s6836_s23 + $0x24] sm:$0xf] %vm4863_vm4, %v4648_v56  ;;  %v2982_v20 = vadd.f32 %v7328_v9, %v2412_v16  ;;  %v5784_v9 = vld [vmem:[%s6620_s30 + $0x478] sm:$0xf0]  ;;  %v5782_v56 = vld [vmem:[%s6620_s30 + $0x470] sm:$0xf] }
 0x12e   : > { %4984 = vst.msk [vmem:[%s6836_s23 + $0x1e0] sm:$0xf] %vm4863_vm4, %v4759_v49  ;;  %v3633_v57 = vadd.f32 %v3257_v51, %v619_v46  ;;  %v5787_v40 = vor.u32 %v6401_v30, %v5784_v9  ;;  %v6291_v46 = vld [vmem:[%s6620_s30 + $0x104] sm:$0xf] }
 0x12f   : > { %v4084_v5 = vld [vmem:[#allocation2 + $0x3c8] sm:$0xff]  ;;  %v3523_v37 = vadd.f32 %v2982_v20, %v509_v14  ;;  %2451 = vmatmul.bf16.gmra.mxu0 %v5327_v12  ;;  %v5347_v51 = vor.u32 %v6291_v46, %v5344_v47  ;;  %v6403_v16 = vld [vmem:[%s6620_s30 + $0x484] sm:$0xf]  ;;  %v623_v20 = vld [vmem:[#allocation2 + $0x3f0] sm:$0xff] }
 0x130   : > { %3858 = vst.msk [vmem:[#allocation2 + $0x3d0] sm:$0xff] %vm272_vm3, %v3633_v57  ;;  %v4312_v8 = vadd.f32 %v6815_v60, %v4084_v5  ;;  %v4649_v60 = vpack.c.bf16 %v4425_v22, %v4425_v22  ;;  %v3974_v29 = vld [vmem:[#allocation2 + $0x58] sm:$0xff]  ;;  %2731 = vmatmul.bf16.gmra.mxu2 %v5775_v17  ;;  %v5792_v17 = vld [vmem:[%s6620_s30 + $0x488] sm:$0xf0] }
 0x131   : > { %v4202_v31 = vadd.f32 %v7377_v27, %v3974_v29  ;;  %v7385_v32 = vpop.f32.mrf.mxu1  ;;  %3748 = vst.msk [vmem:[#allocation2 + $0x60] sm:$0xff] %vm272_vm3, %v3523_v37  ;;  %v6402_v57 = vld [vmem:[%s6620_s30 + $0x474] sm:$0xf0] }
 0x132   : > { %v4536_v15 = vmax.f32 %v4312_v8, 0.0  ;;  %4874 = vst.msk [vmem:[%s6836_s23 + $0x28] sm:$0xf] %vm4863_vm4, %v4649_v60  ;;  %v5795_v60 = vor.u32 %v6403_v16, %v5792_v17  ;;  %v512_v29 = vld [vmem:[#allocation2 + $0x78] sm:$0xff] }
 0x133   : > { %v2689_v6 = vpop.f32.mrf.mxu2  ;;  %v4426_v38 = vmax.f32 %v4202_v31, 0.0  ;;  %v624_v47 = vld [vmem:[#allocation2 + $0x3f8] sm:$0xff] }
 0x134   : > { %v3259_v44 = vadd.f32 %v3258_v48, %v2689_v6  ;;  %v4760_v23 = vpack.c.bf16 %v4536_v15, %v4536_v15  ;;  %v2414_v42 = vpop.f32.mrf.mxu0  ;;  %6215 = vmatmul.msk.bf16.gmra.mxu3 %vm2029_vm2, %v5787_v40  ;;  %v3266_v62 = vpop.f32.mrf.mxu3  ;;  %v5342_v40 = vld [vmem:[%s6620_s30 + $0x100] sm:$0xf] }
 0x135   : > { %v4650_v24 = vpack.c.bf16 %v4426_v38, %v4426_v38  ;;  %v2984_v35 = vadd.f32 %v7347_v45, %v2414_v42  ;;  %v5790_v42 = vld [vmem:[%s6620_s30 + $0x480] sm:$0xf] }
 0x136   : > { %v3634_v19 = vadd.f32 %v3259_v44, %v620_v54  ;;  %4985 = vst.msk [vmem:[%s6836_s23 + $0x1e4] sm:$0xf] %vm4863_vm4, %v4760_v23  ;;  %v5783_v54 = vor.u32 %v6402_v57, %v5782_v56 }
 0x137   : > { %v4085_v25 = vld [vmem:[#allocation2 + $0x3d0] sm:$0xff]  ;;  %4875 = vst.msk [vmem:[%s6836_s23 + $0x2c] sm:$0xf] %vm4863_vm4, %v4650_v24  ;;  %v3524_v50 = vadd.f32 %v2984_v35, %v510_v52  ;;  %v6292_v52 = vld [vmem:[%s6620_s30 + $0x104] sm:$0xf0] }
 0x138   : > { %3859 = vst.msk [vmem:[#allocation2 + $0x3d8] sm:$0xff] %vm272_vm3, %v3634_v19  ;;  %v4313_v28 = vadd.f32 %v7377_v27, %v4085_v25  ;;  %v3975_v58 = vld [vmem:[#allocation2 + $0x60] sm:$0xff]  ;;  %6160 = vmatmul.msk.bf16.gmra.mxu1 %vm2029_vm2, %v5347_v51  ;;  %v6404_v35 = vld [vmem:[%s6620_s30 + $0x484] sm:$0xf0]  ;;  %v5343_v53 = vor.u32 %v6292_v52, %v5342_v40 }
 0x139   : > { %3749 = vst.msk [vmem:[#allocation2 + $0x68] sm:$0xff] %vm272_vm3, %v3524_v50  ;;  %v7403_v55 = vpop.f32.mrf.mxu1  ;;  %v4203_v0 = vadd.f32 %v7377_v27, %v3975_v58  ;;  %v5791_v57 = vor.u32 %v6404_v35, %v5790_v42  ;;  %v515_v42 = vld [vmem:[#allocation2 + $0x90] sm:$0xff] }
 0x13a   : > { %v4537_v33 = vmax.f32 %v4313_v28, 0.0 }
 0x13b   : > { %v2692_v34 = vpop.f32.mrf.mxu2  ;;  %v4427_v6 = vmax.f32 %v4203_v0, 0.0  ;;  %v6405_v0 = vld [vmem:[%s6620_s30 + $0x494] sm:$0xf] }
 0x13c   : > { %v3262_v39 = vadd.f32 %v3261_v7, %v2692_v34  ;;  %v4761_v41 = vpack.c.bf16 %v4537_v33, %v4537_v33  ;;  %v2417_v5 = vpop.f32.mrf.mxu0  ;;  %v3268_v23 = vpop.f32.mrf.mxu3  ;;  %v5352_v34 = vld [vmem:[%s6620_s30 + $0x118] sm:$0xf0] }
 0x13d   : > { %v2987_v8 = vadd.f32 %v7365_v2, %v2417_v5  ;;  %v4651_v11 = vpack.c.bf16 %v4427_v6, %v4427_v6  ;;  %v625_v6 = vld [vmem:[#allocation2 + $0x400] sm:$0xff] }
 0x13e   : > { %v3635_v43 = vadd.f32 %v3262_v39, %v621_v26  ;;  %4986 = vst.msk [vmem:[%s6836_s23 + $0x1e8] sm:$0xf] %vm4863_vm4, %v4761_v41  ;;  %v6293_v26 = vld [vmem:[%s6620_s30 + $0x114] sm:$0xf] }
 0x13f   : > { %v4086_v48 = vld [vmem:[#allocation2 + $0x3d8] sm:$0xff]  ;;  %v3525_v12 = vadd.f32 %v2987_v8, %v511_v4  ;;  %2456 = vmatmul.bf16.gmra.mxu0 %v5335_v3  ;;  %4876 = vst.msk [vmem:[%s6836_s23 + $0x30] sm:$0xf] %vm4863_vm4, %v4651_v11  ;;  %v5355_v41 = vor.u32 %v6293_v26, %v5352_v34  ;;  %v626_v34 = vld [vmem:[#allocation2 + $0x408] sm:$0xff] }
 0x140   : > { %v4314_v49 = vadd.f32 %v7377_v27, %v4086_v48  ;;  %3860 = vst.msk [vmem:[#allocation2 + $0x3e0] sm:$0xff] %vm272_vm3, %v3635_v43  ;;  %v3976_v14 = vld [vmem:[#allocation2 + $0x68] sm:$0xff]  ;;  %2736 = vmatmul.bf16.gmra.mxu2 %v5783_v54  ;;  %v5800_v4 = vld [vmem:[%s6620_s30 + $0x498] sm:$0xf0]  ;;  %v6406_v26 = vld [vmem:[%s6620_s30 + $0x494] sm:$0xf0] }
 0x141   : > { %v4204_v15 = vadd.f32 %v7377_v27, %v3976_v14  ;;  %v7419_v19 = vpop.f32.mrf.mxu1  ;;  %3750 = vst.msk [vmem:[#allocation2 + $0x70] sm:$0xff] %vm272_vm3, %v3525_v12  ;;  %v5803_v12 = vor.u32 %v6405_v0, %v5800_v4  ;;  %v514_v14 = vld [vmem:[#allocation2 + $0x88] sm:$0xff] }
 0x142   : > { %v4538_v45 = vmax.f32 %v4314_v49, 0.0 }
 0x143   : > { %v2694_v61 = vpop.f32.mrf.mxu2  ;;  %v4428_v25 = vmax.f32 %v4204_v15, 0.0 }
 0x144   : > { %v4762_v63 = vpack.c.bf16 %v4538_v45, %v4538_v45  ;;  %v3264_v1 = vadd.f32 %v3263_v36, %v2694_v61  ;;  %v2419_v30 = vpop.f32.mrf.mxu0  ;;  %6216 = vmatmul.msk.bf16.gmra.mxu3 %vm2029_vm2, %v5795_v60  ;;  %v3271_v49 = vpop.f32.mrf.mxu3  ;;  %v513_v45 = vld [vmem:[#allocation2 + $0x80] sm:$0xff] }
 0x145   : > { %v4652_v9 = vpack.c.bf16 %v4428_v25, %v4428_v25  ;;  %v2989_v33 = vadd.f32 %v7385_v32, %v2419_v30 }
 0x146   : > { %4987 = vst.msk [vmem:[%s6836_s23 + $0x1ec] sm:$0xf] %vm4863_vm4, %v4762_v63  ;;  %v3636_v7 = vadd.f32 %v3264_v1, %v622_v59 }
 0x147   : > { %v4087_v44 = vld [vmem:[#allocation2 + $0x3e0] sm:$0xff]  ;;  %4877 = vst.msk [vmem:[%s6836_s23 + $0x34] sm:$0xf] %vm4863_vm4, %v4652_v9  ;;  %v3526_v39 = vadd.f32 %v2989_v33, %v512_v29  ;;  %v5350_v29 = vld [vmem:[%s6620_s30 + $0x110] sm:$0xf] }
 0x148   : > { %3861 = vst.msk [vmem:[#allocation2 + $0x3e8] sm:$0xff] %vm272_vm3, %v3636_v7  ;;  %v4315_v13 = vadd.f32 %v7377_v27, %v4087_v44  ;;  %v3977_v24 = vld [vmem:[#allocation2 + $0x70] sm:$0xff]  ;;  %6161 = vmatmul.msk.bf16.gmra.mxu1 %vm2029_vm2, %v5355_v41 }
 0x149   : > { %3751 = vst.msk [vmem:[#allocation2 + $0x78] sm:$0xff] %vm272_vm3, %v3526_v39  ;;  %v7436_v43 = vpop.f32.mrf.mxu1  ;;  %v4205_v46 = vadd.f32 %v7377_v27, %v3977_v24  ;;  %v5798_v33 = vld [vmem:[%s6620_s30 + $0x490] sm:$0xf] }
 0x14a   : > { %v4539_v2 = vmax.f32 %v4315_v13, 0.0  ;;  %v5799_v24 = vor.u32 %v6406_v26, %v5798_v33 }
 0x14b   : > { %v2697_v22 = vpop.f32.mrf.mxu2  ;;  %v4429_v21 = vmax.f32 %v4205_v46, 0.0 }
 0x14c   : > { %v3267_v37 = vadd.f32 %v3266_v62, %v2697_v22  ;;  %v4763_v28 = vpack.c.bf16 %v4539_v2, %v4539_v2  ;;  %v2422_v56 = vpop.f32.mrf.mxu0  ;;  %v3273_v8 = vpop.f32.mrf.mxu3  ;;  %v5360_v22 = vld [vmem:[%s6620_s30 + $0x128] sm:$0xf0] }
 0x14d   : > { %v2992_v59 = vadd.f32 %v7403_v55, %v2422_v56  ;;  %v4653_v61 = vpack.c.bf16 %v4429_v21, %v4429_v21  ;;  %v5808_v21 = vld [vmem:[%s6620_s30 + $0x4a8] sm:$0xf0] }
 0x14e   : > { %v3637_v31 = vadd.f32 %v3267_v37, %v623_v20  ;;  %4988 = vst.msk [vmem:[%s6836_s23 + $0x1f0] sm:$0xf] %vm4863_vm4, %v4763_v28  ;;  %v6295_v20 = vld [vmem:[%s6620_s30 + $0x124] sm:$0xf] }
 0x14f   : > { %v4088_v36 = vld [vmem:[#allocation2 + $0x3e8] sm:$0xff]  ;;  %v3527_v63 = vadd.f32 %v2992_v59, %v513_v45  ;;  %2461 = vmatmul.bf16.gmra.mxu0 %v5343_v53  ;;  %4878 = vst.msk [vmem:[%s6836_s23 + $0x38] sm:$0xf] %vm4863_vm4, %v4653_v61  ;;  %v5363_v28 = vor.u32 %v6295_v20, %v5360_v22  ;;  %v6407_v53 = vld [vmem:[%s6620_s30 + $0x4a4] sm:$0xf]  ;;  %v627_v59 = vld [vmem:[#allocation2 + $0x410] sm:$0xff] }
 0x150   : > { %v4316_v38 = vadd.f32 %v7377_v27, %v4088_v36  ;;  %3862 = vst.msk [vmem:[#allocation2 + $0x3f0] sm:$0xff] %vm272_vm3, %v3637_v31  ;;  %v3978_v3 = vld [vmem:[#allocation2 + $0x78] sm:$0xff]  ;;  %2741 = vmatmul.bf16.gmra.mxu2 %v5791_v57 }
 0x151   : > { %v4206_v5 = vadd.f32 %v7377_v27, %v3978_v3  ;;  %3752 = vst.msk [vmem:[#allocation2 + $0x80] sm:$0xff] %vm272_vm3, %v3527_v63  ;;  %v7452_v55 = vpop.f32.mrf.mxu1 }
 0x152   : > { %v4540_v32 = vmax.f32 %v4316_v38, 0.0 }
 0x153   : > { %v2699_v48 = vpop.f32.mrf.mxu2  ;;  %v4430_v11 = vmax.f32 %v4206_v5, 0.0 }
 0x154   : > { %v4764_v50 = vpack.c.bf16 %v4540_v32, %v4540_v32  ;;  %v3269_v51 = vadd.f32 %v3268_v23, %v2699_v48  ;;  %v2424_v16 = vpop.f32.mrf.mxu0  ;;  %6217 = vmatmul.msk.bf16.gmra.mxu3 %vm2029_vm2, %v5803_v12  ;;  %v3276_v38 = vpop.f32.mrf.mxu3 }
 0x155   : > { %v4654_v17 = vpack.c.bf16 %v4430_v11, %v4430_v11  ;;  %v2994_v2 = vadd.f32 %v7419_v19, %v2424_v16  ;;  %v6294_v19 = vld [vmem:[%s6620_s30 + $0x114] sm:$0xf0] }
 0x156   : > { %4989 = vst.msk [vmem:[%s6836_s23 + $0x1f4] sm:$0xf] %vm4863_vm4, %v4764_v50  ;;  %v3638_v58 = vadd.f32 %v3269_v51, %v624_v47  ;;  %v5351_v52 = vor.u32 %v6294_v19, %v5350_v29  ;;  %v517_v19 = vld [vmem:[#allocation2 + $0xa0] sm:$0xff] }
 0x157   : > { %v4089_v62 = vld [vmem:[#allocation2 + $0x3f0] sm:$0xff]  ;;  %4879 = vst.msk [vmem:[%s6836_s23 + $0x3c] sm:$0xf] %vm4863_vm4, %v4654_v17  ;;  %v3528_v37 = vadd.f32 %v2994_v2, %v514_v14  ;;  %v6296_v14 = vld [vmem:[%s6620_s30 + $0x124] sm:$0xf0] }
 0x158   : > { %3863 = vst.msk [vmem:[#allocation2 + $0x3f8] sm:$0xff] %vm272_vm3, %v3638_v58  ;;  %v4317_v1 = vadd.f32 %v7377_v27, %v4089_v62  ;;  %v3979_v60 = vld [vmem:[#allocation2 + $0x80] sm:$0xff]  ;;  %6162 = vmatmul.msk.bf16.gmra.mxu1 %vm2029_vm2, %v5363_v28  ;;  %v5811_v62 = vor.u32 %v6407_v53, %v5808_v21  ;;  %v6408_v2 = vld [vmem:[%s6620_s30 + $0x4a4] sm:$0xf0] }
 0x159   : > { %v4207_v9 = vadd.f32 %v7377_v27, %v3979_v60  ;;  %3753 = vst.msk [vmem:[#allocation2 + $0x88] sm:$0xff] %vm272_vm3, %v3528_v37  ;;  %v7468_v31 = vpop.f32.mrf.mxu1 }
 0x15a   : > { %v4541_v54 = vmax.f32 %v4317_v1, 0.0  ;;  %v516_v1 = vld [vmem:[#allocation2 + $0x98] sm:$0xff] }
 0x15b   : > { %v2702_v7 = vpop.f32.mrf.mxu2  ;;  %v4431_v40 = vmax.f32 %v4207_v9, 0.0 }
 0x15c   : > { %v3272_v44 = vadd.f32 %v3271_v49, %v2702_v7  ;;  %v4765_v13 = vpack.c.bf16 %v4541_v54, %v4541_v54  ;;  %v2427_v32 = vpop.f32.mrf.mxu0  ;;  %v3278_v57 = vpop.f32.mrf.mxu3  ;;  %v6297_v54 = vld [vmem:[%s6620_s30 + $0x134] sm:$0xf] }
 0x15d   : > { %v4655_v35 = vpack.c.bf16 %v4431_v40, %v4431_v40  ;;  %v2997_v47 = vadd.f32 %v7436_v43, %v2427_v32 }
 0x15e   : > { %v3639_v15 = vadd.f32 %v3272_v44, %v625_v6  ;;  %4990 = vst.msk [vmem:[%s6836_s23 + $0x1f8] sm:$0xf] %vm4863_vm4, %v4765_v13  ;;  %v5368_v6 = vld [vmem:[%s6620_s30 + $0x138] sm:$0xf0] }
 0x15f   : > { %v4090_v23 = vld [vmem:[#allocation2 + $0x3f8] sm:$0xff]  ;;  %4880 = vst.msk [vmem:[%s6836_s23 + $0x40] sm:$0xf] %vm4863_vm4, %v4655_v35  ;;  %v3529_v49 = vadd.f32 %v2997_v47, %v515_v42  ;;  %2466 = vmatmul.bf16.gmra.mxu0 %v5351_v52  ;;  %v5371_v13 = vor.u32 %v6297_v54, %v5368_v6 }
 0x160   : > { %v4318_v25 = vadd.f32 %v7377_v27, %v4090_v23  ;;  %3864 = vst.msk [vmem:[#allocation2 + $0x400] sm:$0xff] %vm272_vm3, %v3639_v15  ;;  %v3980_v51 = vld [vmem:[#allocation2 + $0x88] sm:$0xff]  ;;  %2746 = vmatmul.bf16.gmra.mxu2 %v5799_v24  ;;  %v5806_v15 = vld [vmem:[%s6620_s30 + $0x4a0] sm:$0xf]  ;;  %v5816_v52 = vld [vmem:[%s6620_s30 + $0x4b8] sm:$0xf0] }
 0x161   : > { %v4208_v45 = vadd.f32 %v7377_v27, %v3980_v51  ;;  %3754 = vst.msk [vmem:[#allocation2 + $0x90] sm:$0xff] %vm272_vm3, %v3529_v49  ;;  %v7484_v43 = vpop.f32.mrf.mxu1  ;;  %v5807_v9 = vor.u32 %v6408_v2, %v5806_v15  ;;  %v518_v51 = vld [vmem:[#allocation2 + $0xa8] sm:$0xff]  ;;  %v6410_v54 = vld [vmem:[%s6620_s30 + $0x4b4] sm:$0xf0] }
 0x162   : > { %v4542_v30 = vmax.f32 %v4318_v25, 0.0  ;;  %v628_v25 = vld [vmem:[#allocation2 + $0x418] sm:$0xff] }
 0x163   : > { %v2704_v36 = vpop.f32.mrf.mxu2  ;;  %v4432_v58 = vmax.f32 %v4208_v45, 0.0 }
 0x164   : > { %v4766_v39 = vpack.c.bf16 %v4542_v30, %v4542_v30  ;;  %v3274_v41 = vadd.f32 %v3273_v8, %v2704_v36  ;;  %v2429_v3 = vpop.f32.mrf.mxu0  ;;  %6218 = vmatmul.msk.bf16.gmra.mxu3 %vm2029_vm2, %v5811_v62  ;;  %v3281_v22 = vpop.f32.mrf.mxu3 }
 0x165   : > { %v4656_v4 = vpack.c.bf16 %v4432_v58, %v4432_v58  ;;  %v2999_v5 = vadd.f32 %v7452_v55, %v2429_v3  ;;  %v5358_v55 = vld [vmem:[%s6620_s30 + $0x120] sm:$0xf] }
 0x166   : > { %4991 = vst.msk [vmem:[%s6836_s23 + $0x1fc] sm:$0xf] %vm4863_vm4, %v4766_v39  ;;  %v3640_v46 = vadd.f32 %v3274_v41, %v626_v34  ;;  %v5359_v60 = vor.u32 %v6296_v14, %v5358_v55  ;;  %v6409_v41 = vld [vmem:[%s6620_s30 + $0x4b4] sm:$0xf] }
 0x167   : > { %v4091_v48 = vld [vmem:[#allocation2 + $0x400] sm:$0xff]  ;;  %4881 = vst.msk [vmem:[%s6836_s23 + $0x44] sm:$0xf] %vm4863_vm4, %v4656_v4  ;;  %v3530_v11 = vadd.f32 %v2999_v5, %v516_v1  ;;  %v6298_v1 = vld [vmem:[%s6620_s30 + $0x134] sm:$0xf0]  ;;  %v519_v14 = vld [vmem:[#allocation2 + $0xb0] sm:$0xff] }
 0x168   : > { %v4319_v50 = vadd.f32 %v7377_v27, %v4091_v48  ;;  %3865 = vst.msk [vmem:[#allocation2 + $0x408] sm:$0xff] %vm272_vm3, %v3640_v46  ;;  %v3981_v12 = vld [vmem:[#allocation2 + $0x90] sm:$0xff]  ;;  %6163 = vmatmul.msk.bf16.gmra.mxu1 %vm2029_vm2, %v5371_v13  ;;  %v629_v46 = vld [vmem:[#allocation2 + $0x420] sm:$0xff]  ;;  %v5819_v48 = vor.u32 %v6409_v41, %v5816_v52 }
 0x169   : > { %v4209_v16 = vadd.f32 %v7377_v27, %v3981_v12  ;;  %3755 = vst.msk [vmem:[#allocation2 + $0x98] sm:$0xff] %vm272_vm3, %v3530_v11  ;;  %v7500_v17 = vpop.f32.mrf.mxu1  ;;  %v5814_v5 = vld [vmem:[%s6620_s30 + $0x4b0] sm:$0xf]  ;;  %v630_v11 = vld [vmem:[#allocation2 + $0x428] sm:$0xff] }
 0x16a   : > { %v4543_v56 = vmax.f32 %v4319_v50, 0.0  ;;  %v5815_v15 = vor.u32 %v6410_v54, %v5814_v5 }
 0x16b   : > { %v2707_v61 = vpop.f32.mrf.mxu2  ;;  %v4433_v23 = vmax.f32 %v4209_v16, 0.0 }
 0x16c   : > { %v4767_v63 = vpack.c.bf16 %v4543_v56, %v4543_v56  ;;  %v3277_v0 = vadd.f32 %v3276_v38, %v2707_v61  ;;  %v2432_v30 = vpop.f32.mrf.mxu0  ;;  %v3283_v24 = vpop.f32.mrf.mxu3  ;;  %v6299_v56 = vld [vmem:[%s6620_s30 + $0x144] sm:$0xf] }
 0x16d   : > { %v4657_v33 = vpack.c.bf16 %v4433_v23, %v4433_v23  ;;  %v3002_v26 = vadd.f32 %v7468_v31, %v2432_v30 }
 0x16e   : > { %4992 = vst.msk [vmem:[%s6836_s23 + $0x200] sm:$0xf] %vm4863_vm4, %v4767_v63  ;;  %v3641_v7 = vadd.f32 %v3277_v0, %v627_v59 }
 0x16f   : > { %v4092_v8 = vld [vmem:[#allocation2 + $0x408] sm:$0xff]  ;;  %4882 = vst.msk [vmem:[%s6836_s23 + $0x48] sm:$0xf] %vm4863_vm4, %v4657_v33  ;;  %v3531_v38 = vadd.f32 %v3002_v26, %v517_v19  ;;  %2471 = vmatmul.bf16.gmra.mxu0 %v5359_v60  ;;  %v631_v26 = vld [vmem:[#allocation2 + $0x430] sm:$0xff] }
 0x170   : > { %v4320_v44 = vadd.f32 %v7377_v27, %v4092_v8  ;;  %3866 = vst.msk [vmem:[#allocation2 + $0x410] sm:$0xff] %vm272_vm3, %v3641_v7  ;;  %v3982_v40 = vld [vmem:[#allocation2 + $0x98] sm:$0xff]  ;;  %2751 = vmatmul.bf16.gmra.mxu2 %v5807_v9 }
 0x171   : > { %v4210_v42 = vadd.f32 %v7377_v27, %v3982_v40  ;;  %3756 = vst.msk [vmem:[#allocation2 + $0xa0] sm:$0xff] %vm272_vm3, %v3531_v38  ;;  %v7516_v31 = vpop.f32.mrf.mxu1  ;;  %v520_v40 = vld [vmem:[#allocation2 + $0xb8] sm:$0xff] }
 0x172   : > { %v4544_v20 = vmax.f32 %v4320_v44, 0.0 }
 0x173   : > { %v2709_v37 = vpop.f32.mrf.mxu2  ;;  %v4434_v35 = vmax.f32 %v4210_v42, 0.0 }
 0x174   : > { %v4768_v28 = vpack.c.bf16 %v4544_v20, %v4544_v20  ;;  %v3279_v29 = vadd.f32 %v3278_v57, %v2709_v37  ;;  %v2434_v53 = vpop.f32.mrf.mxu0  ;;  %v5376_v57 = vld [vmem:[%s6620_s30 + $0x148] sm:$0xf0]  ;;  %6219 = vmatmul.msk.bf16.gmra.mxu3 %vm2029_vm2, %v5819_v48  ;;  %v3286_v7 = vpop.f32.mrf.mxu3 }
 0x175   : > { %v4658_v21 = vpack.c.bf16 %v4434_v35, %v4434_v35  ;;  %v3004_v45 = vadd.f32 %v7484_v43, %v2434_v53  ;;  %v5379_v0 = vor.u32 %v6299_v56, %v5376_v57  ;;  %v5366_v43 = vld [vmem:[%s6620_s30 + $0x130] sm:$0xf]  ;;  %v6412_v56 = vld [vmem:[%s6620_s30 + $0x4c4] sm:$0xf0] }
 0x176   : > { %4993 = vst.msk [vmem:[%s6836_s23 + $0x204] sm:$0xf] %vm4863_vm4, %v4768_v28  ;;  %v3642_v34 = vadd.f32 %v3279_v29, %v628_v25  ;;  %v5367_v12 = vor.u32 %v6298_v1, %v5366_v43  ;;  %v6411_v28 = vld [vmem:[%s6620_s30 + $0x4c4] sm:$0xf]  ;;  %v5824_v29 = vld [vmem:[%s6620_s30 + $0x4c8] sm:$0xf0] }
 0x177   : > { %v4093_v36 = vld [vmem:[#allocation2 + $0x410] sm:$0xff]  ;;  %4883 = vst.msk [vmem:[%s6836_s23 + $0x4c] sm:$0xf] %vm4863_vm4, %v4658_v21  ;;  %v3532_v61 = vadd.f32 %v3004_v45, %v518_v51  ;;  %v6300_v51 = vld [vmem:[%s6620_s30 + $0x144] sm:$0xf0]  ;;  %v521_v1 = vld [vmem:[#allocation2 + $0xc0] sm:$0xff] }
 0x178   : > { %v4321_v39 = vadd.f32 %v7377_v27, %v4093_v36  ;;  %3867 = vst.msk [vmem:[#allocation2 + $0x418] sm:$0xff] %vm272_vm3, %v3642_v34  ;;  %v3983_v63 = vld [vmem:[#allocation2 + $0xa0] sm:$0xff]  ;;  %6164 = vmatmul.msk.bf16.gmra.mxu1 %vm2029_vm2, %v5379_v0  ;;  %v5827_v36 = vor.u32 %v6411_v28, %v5824_v29 }
 0x179   : > { %v4211_v3 = vadd.f32 %v7377_v27, %v3983_v63  ;;  %3757 = vst.msk [vmem:[#allocation2 + $0xa8] sm:$0xff] %vm272_vm3, %v3532_v61  ;;  %v7532_v4 = vpop.f32.mrf.mxu1  ;;  %v5822_v45 = vld [vmem:[%s6620_s30 + $0x4c0] sm:$0xf]  ;;  %v632_v61 = vld [vmem:[#allocation2 + $0x438] sm:$0xff] }
 0x17a   : > { %v4545_v32 = vmax.f32 %v4321_v39, 0.0  ;;  %v5823_v5 = vor.u32 %v6412_v56, %v5822_v45 }
 0x17b   : > { %v2712_v47 = vpop.f32.mrf.mxu2  ;;  %v4435_v8 = vmax.f32 %v4211_v3, 0.0 }
 0x17c   : > { %v4769_v49 = vpack.c.bf16 %v4545_v32, %v4545_v32  ;;  %v3282_v50 = vadd.f32 %v3281_v22, %v2712_v47  ;;  %v2437_v16 = vpop.f32.mrf.mxu0  ;;  %v3288_v9 = vpop.f32.mrf.mxu3  ;;  %v6301_v32 = vld [vmem:[%s6620_s30 + $0x154] sm:$0xf] }
 0x17d   : > { %v4659_v2 = vpack.c.bf16 %v4435_v8, %v4435_v8  ;;  %v3007_v20 = vadd.f32 %v7500_v17, %v2437_v16 }
 0x17e   : > { %4994 = vst.msk [vmem:[%s6836_s23 + $0x208] sm:$0xf] %vm4863_vm4, %v4769_v49  ;;  %v3643_v58 = vadd.f32 %v3282_v50, %v629_v46 }
 0x17f   : > { %v4094_v59 = vld [vmem:[#allocation2 + $0x418] sm:$0xff]  ;;  %4884 = vst.msk [vmem:[%s6836_s23 + $0x50] sm:$0xf] %vm4863_vm4, %v4659_v2  ;;  %v3533_v25 = vadd.f32 %v3007_v20, %v519_v14  ;;  %2476 = vmatmul.bf16.gmra.mxu0 %v5367_v12  ;;  %v633_v20 = vld [vmem:[#allocation2 + $0x440] sm:$0xff] }
 0x180   : > { %v4322_v62 = vadd.f32 %v7377_v27, %v4094_v59  ;;  %3868 = vst.msk [vmem:[#allocation2 + $0x420] sm:$0xff] %vm272_vm3, %v3643_v58  ;;  %v3984_v60 = vld [vmem:[#allocation2 + $0xa8] sm:$0xff]  ;;  %2756 = vmatmul.bf16.gmra.mxu2 %v5815_v15 }
 0x181   : > { %v4212_v19 = vadd.f32 %v7377_v27, %v3984_v60  ;;  %3758 = vst.msk [vmem:[#allocation2 + $0xb0] sm:$0xff] %vm272_vm3, %v3533_v25  ;;  %v7548_v17 = vpop.f32.mrf.mxu1  ;;  %v522_v60 = vld [vmem:[#allocation2 + $0xc8] sm:$0xff] }
 0x182   : > { %v4546_v6 = vmax.f32 %v4322_v62, 0.0 }
 0x183   : > { %v2714_v44 = vpop.f32.mrf.mxu2  ;;  %v4436_v33 = vmax.f32 %v4212_v19, 0.0 }
 0x184   : > { %v4770_v13 = vpack.c.bf16 %v4546_v6, %v4546_v6  ;;  %v3284_v55 = vadd.f32 %v3283_v24, %v2714_v44  ;;  %v2439_v41 = vpop.f32.mrf.mxu0  ;;  %v5384_v24 = vld [vmem:[%s6620_s30 + $0x158] sm:$0xf0]  ;;  %6220 = vmatmul.msk.bf16.gmra.mxu3 %vm2029_vm2, %v5827_v36  ;;  %v3291_v58 = vpop.f32.mrf.mxu3 }
 0x185   : > { %v4660_v52 = vpack.c.bf16 %v4436_v33, %v4436_v33  ;;  %v3009_v42 = vadd.f32 %v7516_v31, %v2439_v41  ;;  %v5387_v50 = vor.u32 %v6301_v32, %v5384_v24  ;;  %v5374_v31 = vld [vmem:[%s6620_s30 + $0x140] sm:$0xf]  ;;  %v6414_v32 = vld [vmem:[%s6620_s30 + $0x4d4] sm:$0xf0] }
 0x186   : > { %4995 = vst.msk [vmem:[%s6836_s23 + $0x20c] sm:$0xf] %vm4863_vm4, %v4770_v13  ;;  %v3644_v22 = vadd.f32 %v3284_v55, %v630_v11  ;;  %v5375_v63 = vor.u32 %v6300_v51, %v5374_v31  ;;  %v6413_v13 = vld [vmem:[%s6620_s30 + $0x4d4] sm:$0xf]  ;;  %v5832_v55 = vld [vmem:[%s6620_s30 + $0x4d8] sm:$0xf0] }
 0x187   : > { %v4095_v23 = vld [vmem:[#allocation2 + $0x420] sm:$0xff]  ;;  %4885 = vst.msk [vmem:[%s6836_s23 + $0x54] sm:$0xf] %vm4863_vm4, %v4660_v52  ;;  %v3534_v47 = vadd.f32 %v3009_v42, %v520_v40  ;;  %v6302_v40 = vld [vmem:[%s6620_s30 + $0x154] sm:$0xf0]  ;;  %v523_v51 = vld [vmem:[#allocation2 + $0xd0] sm:$0xff] }
 0x188   : > { %v4323_v37 = vadd.f32 %v7377_v27, %v4095_v23  ;;  %3869 = vst.msk [vmem:[#allocation2 + $0x428] sm:$0xff] %vm272_vm3, %v3644_v22  ;;  %v3985_v49 = vld [vmem:[#allocation2 + $0xb0] sm:$0xff]  ;;  %6165 = vmatmul.msk.bf16.gmra.mxu1 %vm2029_vm2, %v5387_v50  ;;  %v5835_v23 = vor.u32 %v6413_v13, %v5832_v55 }
 0x189   : > { %v4213_v53 = vadd.f32 %v7377_v27, %v3985_v49  ;;  %3759 = vst.msk [vmem:[#allocation2 + $0xb8] sm:$0xff] %vm272_vm3, %v3534_v47  ;;  %v7564_v21 = vpop.f32.mrf.mxu1  ;;  %v5830_v42 = vld [vmem:[%s6620_s30 + $0x4d0] sm:$0xf]  ;;  %v634_v47 = vld [vmem:[#allocation2 + $0x448] sm:$0xff] }
 0x18a   : > { %v4547_v30 = vmax.f32 %v4323_v37, 0.0  ;;  %v5831_v45 = vor.u32 %v6414_v32, %v5830_v42 }
 0x18b   : > { %v2717_v34 = vpop.f32.mrf.mxu2  ;;  %v4437_v59 = vmax.f32 %v4213_v53, 0.0 }
 0x18c   : > { %v4771_v38 = vpack.c.bf16 %v4547_v30, %v4547_v30  ;;  %v3287_v39 = vadd.f32 %v3286_v7, %v2717_v34  ;;  %v2442_v3 = vpop.f32.mrf.mxu0  ;;  %v3293_v15 = vpop.f32.mrf.mxu3  ;;  %v6303_v30 = vld [vmem:[%s6620_s30 + $0x164] sm:$0xf] }
 0x18d   : > { %v4661_v54 = vpack.c.bf16 %v4437_v59, %v4437_v59  ;;  %v3012_v6 = vadd.f32 %v7532_v4, %v2442_v3 }
 0x18e   : > { %4996 = vst.msk [vmem:[%s6836_s23 + $0x210] sm:$0xf] %vm4863_vm4, %v4771_v38  ;;  %v3645_v35 = vadd.f32 %v3287_v39, %v631_v26 }
 0x18f   : > { %v4096_v46 = vld [vmem:[#allocation2 + $0x428] sm:$0xff]  ;;  %4886 = vst.msk [vmem:[%s6836_s23 + $0x58] sm:$0xf] %vm4863_vm4, %v4661_v54  ;;  %v3535_v11 = vadd.f32 %v3012_v6, %v521_v1  ;;  %2481 = vmatmul.bf16.gmra.mxu0 %v5375_v63  ;;  %v635_v6 = vld [vmem:[#allocation2 + $0x450] sm:$0xff] }
 0x190   : > { %v4324_v48 = vadd.f32 %v7377_v27, %v4096_v46  ;;  %3870 = vst.msk [vmem:[#allocation2 + $0x430] sm:$0xff] %vm272_vm3, %v3645_v35  ;;  %v3986_v12 = vld [vmem:[#allocation2 + $0xb8] sm:$0xff]  ;;  %2761 = vmatmul.bf16.gmra.mxu2 %v5823_v5 }
 0x191   : > { %v4214_v14 = vadd.f32 %v7377_v27, %v3986_v12  ;;  %3760 = vst.msk [vmem:[#allocation2 + $0xc0] sm:$0xff] %vm272_vm3, %v3535_v11  ;;  %v7580_v4 = vpop.f32.mrf.mxu1  ;;  %v524_v12 = vld [vmem:[#allocation2 + $0xd8] sm:$0xff] }
 0x192   : > { %v4548_v57 = vmax.f32 %v4324_v48, 0.0 }
 0x193   : > { %v2719_v62 = vpop.f32.mrf.mxu2  ;;  %v4438_v2 = vmax.f32 %v4214_v14, 0.0 }
 0x194   : > { %v4772_v0 = vpack.c.bf16 %v4548_v57, %v4548_v57  ;;  %v3289_v43 = vadd.f32 %v3288_v9, %v2719_v62  ;;  %v2444_v28 = vpop.f32.mrf.mxu0  ;;  %v5392_v9 = vld [vmem:[%s6620_s30 + $0x168] sm:$0xf0]  ;;  %6221 = vmatmul.msk.bf16.gmra.mxu3 %vm2029_vm2, %v5835_v23 }
 0x195   : > { %v4662_v29 = vpack.c.bf16 %v4438_v2, %v4438_v2  ;;  %v3014_v19 = vadd.f32 %v7548_v17, %v2444_v28  ;;  %v5395_v39 = vor.u32 %v6303_v30, %v5392_v9  ;;  %v5382_v17 = vld [vmem:[%s6620_s30 + $0x150] sm:$0xf]  ;;  %v6416_v30 = vld [vmem:[%s6620_s30 + $0x4e4] sm:$0xf0] }
 0x196   : > { %4997 = vst.msk [vmem:[%s6836_s23 + $0x214] sm:$0xf] %vm4863_vm4, %v4772_v0  ;;  %v3646_v7 = vadd.f32 %v3289_v43, %v632_v61  ;;  %v5383_v49 = vor.u32 %v6302_v40, %v5382_v17  ;;  %v6415_v0 = vld [vmem:[%s6620_s30 + $0x4e4] sm:$0xf]  ;;  %v5840_v43 = vld [vmem:[%s6620_s30 + $0x4e8] sm:$0xf0] }
 0x197   : > { %v4097_v8 = vld [vmem:[#allocation2 + $0x430] sm:$0xff]  ;;  %4887 = vst.msk [vmem:[%s6836_s23 + $0x5c] sm:$0xf] %vm4863_vm4, %v4662_v29  ;;  %v3536_v34 = vadd.f32 %v3014_v19, %v522_v60  ;;  %v3296_v35 = vpop.f32.mrf.mxu3  ;;  %v6304_v60 = vld [vmem:[%s6620_s30 + $0x164] sm:$0xf0]  ;;  %v525_v40 = vld [vmem:[#allocation2 + $0xe0] sm:$0xff] }
 0x198   : > { %v4325_v44 = vadd.f32 %v7377_v27, %v4097_v8  ;;  %3871 = vst.msk [vmem:[#allocation2 + $0x438] sm:$0xff] %vm272_vm3, %v3646_v7  ;;  %v3987_v38 = vld [vmem:[#allocation2 + $0xc0] sm:$0xff]  ;;  %6166 = vmatmul.msk.bf16.gmra.mxu1 %vm2029_vm2, %v5395_v39  ;;  %v5843_v8 = vor.u32 %v6415_v0, %v5840_v43 }
 0x199   : > { %v4215_v41 = vadd.f32 %v7377_v27, %v3987_v38  ;;  %3761 = vst.msk [vmem:[#allocation2 + $0xc8] sm:$0xff] %vm272_vm3, %v3536_v34  ;;  %v7596_v52 = vpop.f32.mrf.mxu1  ;;  %v5838_v19 = vld [vmem:[%s6620_s30 + $0x4e0] sm:$0xf]  ;;  %v636_v34 = vld [vmem:[#allocation2 + $0x458] sm:$0xff] }
 0x19a   : > { %v4549_v16 = vmax.f32 %v4325_v44, 0.0  ;;  %v5839_v42 = vor.u32 %v6416_v30, %v5838_v19 }
 0x19b   : > { %v2722_v22 = vpop.f32.mrf.mxu2  ;;  %v4439_v46 = vmax.f32 %v4215_v41, 0.0 }
 0x19c   : > { %v4773_v25 = vpack.c.bf16 %v4549_v16, %v4549_v16  ;;  %v3292_v37 = vadd.f32 %v3291_v58, %v2722_v22  ;;  %v2447_v53 = vpop.f32.mrf.mxu0  ;;  %v6305_v16 = vld [vmem:[%s6620_s30 + $0x174] sm:$0xf] }
 0x19d   : > { %v4663_v56 = vpack.c.bf16 %v4439_v46, %v4439_v46  ;;  %v3017_v57 = vadd.f32 %v7564_v21, %v2447_v53 }
 0x19e   : > { %4998 = vst.msk [vmem:[%s6836_s23 + $0x218] sm:$0xf] %vm4863_vm4, %v4773_v25  ;;  %v3647_v33 = vadd.f32 %v3292_v37, %v633_v20 }
 0x19f   : > { %v4098_v26 = vld [vmem:[#allocation2 + $0x438] sm:$0xff]  ;;  %4888 = vst.msk [vmem:[%s6836_s23 + $0x60] sm:$0xf] %vm4863_vm4, %v4663_v56  ;;  %v3537_v61 = vadd.f32 %v3017_v57, %v523_v51  ;;  %2486 = vmatmul.bf16.gmra.mxu0 %v5383_v49  ;;  %v3298_v5 = vpop.f32.mrf.mxu3  ;;  %v637_v57 = vld [vmem:[#allocation2 + $0x460] sm:$0xff] }
 0x1a0   : > { %v4326_v36 = vadd.f32 %v7377_v27, %v4098_v26  ;;  %3872 = vst.msk [vmem:[#allocation2 + $0x440] sm:$0xff] %vm272_vm3, %v3647_v33  ;;  %v3988_v63 = vld [vmem:[#allocation2 + $0xc8] sm:$0xff]  ;;  %2766 = vmatmul.bf16.gmra.mxu2 %v5831_v45 }
 0x1a1   : > { %v4216_v1 = vadd.f32 %v7377_v27, %v3988_v63  ;;  %3762 = vst.msk [vmem:[#allocation2 + $0xd0] sm:$0xff] %vm272_vm3, %v3537_v61  ;;  %v7612_v21 = vpop.f32.mrf.mxu1  ;;  %v526_v63 = vld [vmem:[#allocation2 + $0xe8] sm:$0xff] }
 0x1a2   : > { %v4550_v24 = vmax.f32 %v4326_v36, 0.0 }
 0x1a3   : > { %v2724_v48 = vpop.f32.mrf.mxu2  ;;  %v4440_v54 = vmax.f32 %v4216_v1, 0.0 }
 0x1a4   : > { %v4774_v50 = vpack.c.bf16 %v4550_v24, %v4550_v24  ;;  %v3294_v31 = vadd.f32 %v3293_v15, %v2724_v48  ;;  %v2449_v13 = vpop.f32.mrf.mxu0  ;;  %v5400_v15 = vld [vmem:[%s6620_s30 + $0x178] sm:$0xf0]  ;;  %6222 = vmatmul.msk.bf16.gmra.mxu3 %vm2029_vm2, %v5843_v8 }
 0x1a5   : > { %v4664_v55 = vpack.c.bf16 %v4440_v54, %v4440_v54  ;;  %v3019_v14 = vadd.f32 %v7580_v4, %v2449_v13  ;;  %v5403_v37 = vor.u32 %v6305_v16, %v5400_v15  ;;  %v5390_v4 = vld [vmem:[%s6620_s30 + $0x160] sm:$0xf]  ;;  %v5846_v16 = vld [vmem:[%s6620_s30 + $0x4f0] sm:$0xf] }
 0x1a6   : > { %4999 = vst.msk [vmem:[%s6836_s23 + $0x21c] sm:$0xf] %vm4863_vm4, %v4774_v50  ;;  %v3648_v58 = vadd.f32 %v3294_v31, %v634_v47  ;;  %v5391_v38 = vor.u32 %v6304_v60, %v5390_v4  ;;  %v6417_v50 = vld [vmem:[%s6620_s30 + $0x4f4] sm:$0xf]  ;;  %v5848_v31 = vld [vmem:[%s6620_s30 + $0x4f8] sm:$0xf0] }
 0x1a7   : > { %v4099_v59 = vld [vmem:[#allocation2 + $0x440] sm:$0xff]  ;;  %4889 = vst.msk [vmem:[%s6836_s23 + $0x64] sm:$0xf] %vm4863_vm4, %v4664_v55  ;;  %v3538_v22 = vadd.f32 %v3019_v14, %v524_v12  ;;  %v3301_v33 = vpop.f32.mrf.mxu3  ;;  %v6306_v12 = vld [vmem:[%s6620_s30 + $0x174] sm:$0xf0]  ;;  %v527_v60 = vld [vmem:[#allocation2 + $0xf0] sm:$0xff] }
 0x1a8   : > { %v4327_v62 = vadd.f32 %v7377_v27, %v4099_v59  ;;  %3873 = vst.msk [vmem:[#allocation2 + $0x448] sm:$0xff] %vm272_vm3, %v3648_v58  ;;  %v3989_v25 = vld [vmem:[#allocation2 + $0xd0] sm:$0xff]  ;;  %6167 = vmatmul.msk.bf16.gmra.mxu1 %vm2029_vm2, %v5403_v37  ;;  %v5851_v59 = vor.u32 %v6417_v50, %v5848_v31  ;;  %v7661_v13 = vld [vmem:[%s8893_s2] ss:$0 sm:$0xff] }
 0x1a9   : > { %v4217_v28 = vadd.f32 %v7377_v27, %v3989_v25  ;;  %3763 = vst.msk [vmem:[#allocation2 + $0xd8] sm:$0xff] %vm272_vm3, %v3538_v22  ;;  %v7628_v29 = vpop.f32.mrf.mxu1  ;;  %v638_v22 = vld [vmem:[#allocation2 + $0x468] sm:$0xff] }
 0x1aa   : > { %v4551_v3 = vmax.f32 %v4327_v62, 0.0 }
 0x1ab   : > { %v2727_v7 = vpop.f32.mrf.mxu2  ;;  %v4441_v26 = vmax.f32 %v4217_v28, 0.0 }
 0x1ac   : > { %v4775_v11 = vpack.c.bf16 %v4551_v3, %v4551_v3  ;;  %v3297_v44 = vadd.f32 %v3296_v35, %v2727_v7  ;;  %v2452_v41 = vpop.f32.mrf.mxu0  ;;  %v6307_v3 = vld [vmem:[%s6620_s30 + $0x184] sm:$0xf] }
 0x1ad   : > { %v4665_v32 = vpack.c.bf16 %v4441_v26, %v4441_v26  ;;  %v3022_v24 = vadd.f32 %v7596_v52, %v2452_v41 }
 0x1ae   : > { %5000 = vst.msk [vmem:[%s6836_s23 + $0x220] sm:$0xf] %vm4863_vm4, %v4775_v11  ;;  %v3649_v2 = vadd.f32 %v3297_v44, %v635_v6 }
 0x1af   : > { %v4100_v20 = vld [vmem:[#allocation2 + $0x448] sm:$0xff]  ;;  %4890 = vst.msk [vmem:[%s6836_s23 + $0x68] sm:$0xf] %vm4863_vm4, %v4665_v32  ;;  %v3539_v47 = vadd.f32 %v3022_v24, %v525_v40  ;;  %2491 = vmatmul.bf16.gmra.mxu0 %v5391_v38  ;;  %v3303_v45 = vpop.f32.mrf.mxu3  ;;  %v639_v24 = vld [vmem:[#allocation2 + $0x470] sm:$0xff] }
 0x1b0   : > { %v4328_v23 = vadd.f32 %v7377_v27, %v4100_v20  ;;  %3874 = vst.msk [vmem:[#allocation2 + $0x450] sm:$0xff] %vm272_vm3, %v3649_v2  ;;  %v3990_v49 = vld [vmem:[#allocation2 + $0xd8] sm:$0xff]  ;;  %2771 = vmatmul.bf16.gmra.mxu2 %v5839_v42 }
 0x1b1   : > { %v4218_v51 = vadd.f32 %v7377_v27, %v3990_v49  ;;  %3764 = vst.msk [vmem:[#allocation2 + $0xe0] sm:$0xff] %vm272_vm3, %v3539_v47  ;;  %v7644_v52 = vpop.f32.mrf.mxu1  ;;  %v528_v49 = vld [vmem:[#allocation2 + $0xf8] sm:$0xff] }
 0x1b2   : > { %v4552_v9 = vmax.f32 %v4328_v23, 0.0 }
 0x1b3   : > { %v2729_v36 = vpop.f32.mrf.mxu2  ;;  %v4442_v56 = vmax.f32 %v4218_v51, 0.0 }
 0x1b4   : > { %v4776_v39 = vpack.c.bf16 %v4552_v9, %v4552_v9  ;;  %v3299_v17 = vadd.f32 %v3298_v5, %v2729_v36  ;;  %v2454_v0 = vpop.f32.mrf.mxu0  ;;  %v5408_v5 = vld [vmem:[%s6620_s30 + $0x188] sm:$0xf0]  ;;  %6223 = vmatmul.msk.bf16.gmra.mxu3 %vm2029_vm2, %v5851_v59 }
 0x1b5   : > { %v4666_v43 = vpack.c.bf16 %v4442_v56, %v4442_v56  ;;  %v3024_v1 = vadd.f32 %v7612_v21, %v2454_v0  ;;  %v5411_v44 = vor.u32 %v6307_v3, %v5408_v5  ;;  %v5398_v21 = vld [vmem:[%s6620_s30 + $0x170] sm:$0xf]  ;;  %v6420_v3 = vld [vmem:[%s6620_s30 + $0x504] sm:$0xf0] }
 0x1b6   : > { %5001 = vst.msk [vmem:[%s6836_s23 + $0x224] sm:$0xf] %vm4863_vm4, %v4776_v39  ;;  %v3650_v35 = vadd.f32 %v3299_v17, %v636_v34  ;;  %v5399_v25 = vor.u32 %v6306_v12, %v5398_v21  ;;  %v6419_v39 = vld [vmem:[%s6620_s30 + $0x504] sm:$0xf]  ;;  %v5856_v17 = vld [vmem:[%s6620_s30 + $0x508] sm:$0xf0] }
 0x1b7   : > { %v4101_v46 = vld [vmem:[#allocation2 + $0x450] sm:$0xff]  ;;  %4891 = vst.msk [vmem:[%s6836_s23 + $0x6c] sm:$0xf] %vm4863_vm4, %v4666_v43  ;;  %v3540_v7 = vadd.f32 %v3024_v1, %v526_v63  ;;  %v3306_v2 = vpop.f32.mrf.mxu3  ;;  %v6308_v63 = vld [vmem:[%s6620_s30 + $0x184] sm:$0xf0]  ;;  %v529_v12 = vld [vmem:[#allocation2 + $0x100] sm:$0xff] }
 0x1b8   : > { %v4329_v48 = vadd.f32 %v7377_v27, %v4101_v46  ;;  %3875 = vst.msk [vmem:[#allocation2 + $0x458] sm:$0xff] %vm272_vm3, %v3650_v35  ;;  %v3991_v11 = vld [vmem:[#allocation2 + $0xe0] sm:$0xff]  ;;  %6168 = vmatmul.msk.bf16.gmra.mxu1 %vm2029_vm2, %v5411_v44  ;;  %v5859_v46 = vor.u32 %v6419_v39, %v5856_v17 }
 0x1b9   : > { %v4219_v55 = vadd.f32 %v7661_v13, %v3991_v11  ;;  %3765 = vst.msk [vmem:[#allocation2 + $0xe8] sm:$0xff] %vm272_vm3, %v3540_v7  ;;  %v7665_v14 = vpop.f32.mrf.mxu1  ;;  %v5854_v1 = vld [vmem:[%s6620_s30 + $0x500] sm:$0xf]  ;;  %v640_v7 = vld [vmem:[#allocation2 + $0x478] sm:$0xff] }
 0x1ba   : > { %v4553_v53 = vmax.f32 %v4329_v48, 0.0 }
 0x1bb   : > { %v2732_v58 = vpop.f32.mrf.mxu2  ;;  %v4443_v20 = vmax.f32 %v4219_v55, 0.0 }
 0x1bc   : > { %v4777_v61 = vpack.c.bf16 %v4553_v53, %v4553_v53  ;;  %v3302_v62 = vadd.f32 %v3301_v33, %v2732_v58  ;;  %v2457_v28 = vpop.f32.mrf.mxu0  ;;  %v6309_v53 = vld [vmem:[%s6620_s30 + $0x194] sm:$0xf] }
 0x1bd   : > { %v4667_v30 = vpack.c.bf16 %v4443_v20, %v4443_v20  ;;  %v3027_v9 = vadd.f32 %v7628_v29, %v2457_v28 }
 0x1be   : > { %5002 = vst.msk [vmem:[%s6836_s23 + $0x228] sm:$0xf] %vm4863_vm4, %v4777_v61  ;;  %v3651_v54 = vadd.f32 %v3302_v62, %v637_v57 }
 0x1bf   : > { %v4102_v6 = vld [vmem:[#allocation2 + $0x458] sm:$0xff]  ;;  %4892 = vst.msk [vmem:[%s6836_s23 + $0x70] sm:$0xf] %vm4863_vm4, %v4667_v30  ;;  %v3541_v34 = vadd.f32 %v3027_v9, %v527_v60  ;;  %2496 = vmatmul.bf16.gmra.mxu0 %v5399_v25  ;;  %v3308_v42 = vpop.f32.mrf.mxu3  ;;  %v641_v9 = vld [vmem:[#allocation2 + $0x480] sm:$0xff] }
 0x1c0   : > { %v4330_v8 = vadd.f32 %v7377_v27, %v4102_v6  ;;  %3876 = vst.msk [vmem:[#allocation2 + $0x460] sm:$0xff] %vm272_vm3, %v3651_v54  ;;  %v6418_v27 = vld [vmem:[%s6620_s30 + $0x4f4] sm:$0xf0]  ;;  %v3992_v38 = vld [vmem:[#allocation2 + $0xe8] sm:$0xff] }
 0x1c1   : > { %v5847_v19 = vor.u32 %v6418_v27, %v5846_v16  ;;  %v4220_v40 = vadd.f32 %v7661_v13, %v3992_v38  ;;  %3766 = vst.msk [vmem:[#allocation2 + $0xf0] sm:$0xff] %vm272_vm3, %v3541_v34  ;;  %v7681_v29 = vpop.f32.mrf.mxu1  ;;  %v5855_v16 = vor.u32 %v6420_v3, %v5854_v1  ;;  %v530_v38 = vld [vmem:[#allocation2 + $0x108] sm:$0xff] }
 0x1c2   : > { %v4554_v15 = vmax.f32 %v4330_v8, 0.0 }
 0x1c3   : > { %v2734_v23 = vpop.f32.mrf.mxu2  ;;  %2776 = vmatmul.bf16.gmra.mxu2 %v5847_v19  ;;  %v4444_v32 = vmax.f32 %v4220_v40, 0.0 }
 0x1c4   : > { %v4778_v37 = vpack.c.bf16 %v4554_v15, %v4554_v15  ;;  %v3304_v4 = vadd.f32 %v3303_v45, %v2734_v23  ;;  %v2459_v50 = vpop.f32.mrf.mxu0  ;;  %v5416_v45 = vld [vmem:[%s6620_s30 + $0x198] sm:$0xf0]  ;;  %6224 = vmatmul.msk.bf16.gmra.mxu3 %vm2029_vm2, %v5859_v46 }
 0x1c5   : > { %v4668_v31 = vpack.c.bf16 %v4444_v32, %v4444_v32  ;;  %v3029_v51 = vadd.f32 %v7644_v52, %v2459_v50  ;;  %v5419_v62 = vor.u32 %v6309_v53, %v5416_v45  ;;  %v5406_v52 = vld [vmem:[%s6620_s30 + $0x180] sm:$0xf]  ;;  %v6422_v53 = vld [vmem:[%s6620_s30 + $0x514] sm:$0xf0] }
 0x1c6   : > { %5003 = vst.msk [vmem:[%s6836_s23 + $0x22c] sm:$0xf] %vm4863_vm4, %v4778_v37  ;;  %v3652_v33 = vadd.f32 %v3304_v4, %v638_v22  ;;  %v5407_v11 = vor.u32 %v6308_v63, %v5406_v52  ;;  %v6421_v37 = vld [vmem:[%s6620_s30 + $0x514] sm:$0xf]  ;;  %v5864_v4 = vld [vmem:[%s6620_s30 + $0x518] sm:$0xf0] }
 0x1c7   : > { %v4103_v26 = vld [vmem:[#allocation2 + $0x460] sm:$0xff]  ;;  %4893 = vst.msk [vmem:[%s6836_s23 + $0x74] sm:$0xf] %vm4863_vm4, %v4668_v31  ;;  %v3542_v58 = vadd.f32 %v3029_v51, %v528_v49  ;;  %v3311_v54 = vpop.f32.mrf.mxu3  ;;  %v6310_v49 = vld [vmem:[%s6620_s30 + $0x194] sm:$0xf0]  ;;  %v531_v63 = vld [vmem:[#allocation2 + $0x110] sm:$0xff] }
 0x1c8   : > { %v4331_v36 = vadd.f32 %v7661_v13, %v4103_v26  ;;  %3877 = vst.msk [vmem:[#allocation2 + $0x468] sm:$0xff] %vm272_vm3, %v3652_v33  ;;  %v3993_v61 = vld [vmem:[#allocation2 + $0xf0] sm:$0xff]  ;;  %6169 = vmatmul.msk.bf16.gmra.mxu1 %vm2029_vm2, %v5419_v62  ;;  %v5867_v26 = vor.u32 %v6421_v37, %v5864_v4 }
 0x1c9   : > { %v4221_v0 = vadd.f32 %v7661_v13, %v3993_v61  ;;  %3767 = vst.msk [vmem:[#allocation2 + $0xf8] sm:$0xff] %vm272_vm3, %v3542_v58  ;;  %v7697_v43 = vpop.f32.mrf.mxu1  ;;  %v5862_v51 = vld [vmem:[%s6620_s30 + $0x510] sm:$0xf]  ;;  %v642_v58 = vld [vmem:[#allocation2 + $0x488] sm:$0xff] }
 0x1ca   : > { %v4555_v41 = vmax.f32 %v4331_v36, 0.0  ;;  %v5863_v1 = vor.u32 %v6422_v53, %v5862_v51 }
 0x1cb   : > { %v2737_v35 = vpop.f32.mrf.mxu2  ;;  %v4445_v6 = vmax.f32 %v4221_v0, 0.0 }
 0x1cc   : > { %v4779_v47 = vpack.c.bf16 %v4555_v41, %v4555_v41  ;;  %v3307_v48 = vadd.f32 %v3306_v2, %v2737_v35  ;;  %v2462_v55 = vpop.f32.mrf.mxu0  ;;  %v6311_v41 = vld [vmem:[%s6620_s30 + $0x1a4] sm:$0xf] }
 0x1cd   : > { %v4669_v27 = vpack.c.bf16 %v4445_v6, %v4445_v6  ;;  %v3032_v15 = vadd.f32 %v7665_v14, %v2462_v55 }
 0x1ce   : > { %5004 = vst.msk [vmem:[%s6836_s23 + $0x230] sm:$0xf] %vm4863_vm4, %v4779_v47  ;;  %v3653_v56 = vadd.f32 %v3307_v48, %v639_v24 }
 0x1cf   : > { %v4104_v57 = vld [vmem:[#allocation2 + $0x468] sm:$0xff]  ;;  %4894 = vst.msk [vmem:[%s6836_s23 + $0x78] sm:$0xf] %vm4863_vm4, %v4669_v27  ;;  %v3543_v22 = vadd.f32 %v3032_v15, %v529_v12  ;;  %2501 = vmatmul.bf16.gmra.mxu0 %v5407_v11  ;;  %v3313_v19 = vpop.f32.mrf.mxu3  ;;  %v643_v15 = vld [vmem:[#allocation2 + $0x490] sm:$0xff] }
 0x1d0   : > { %v4332_v59 = vadd.f32 %v7661_v13, %v4104_v57  ;;  %3878 = vst.msk [vmem:[#allocation2 + $0x470] sm:$0xff] %vm272_vm3, %v3653_v56  ;;  %v3994_v25 = vld [vmem:[#allocation2 + $0xf8] sm:$0xff] }
 0x1d1   : > { %v4222_v60 = vadd.f32 %v7661_v13, %v3994_v25  ;;  %3768 = vst.msk [vmem:[#allocation2 + $0x100] sm:$0xff] %vm272_vm3, %v3543_v22  ;;  %v7713_v14 = vpop.f32.mrf.mxu1  ;;  %v532_v25 = vld [vmem:[#allocation2 + $0x118] sm:$0xff] }
 0x1d2   : > { %v4556_v5 = vmax.f32 %v4332_v59, 0.0 }
 0x1d3   : > { %v2739_v8 = vpop.f32.mrf.mxu2  ;;  %2781 = vmatmul.bf16.gmra.mxu2 %v5855_v16  ;;  %v4446_v30 = vmax.f32 %v4222_v60, 0.0 }
 0x1d4   : > { %v4780_v44 = vpack.c.bf16 %v4556_v5, %v4556_v5  ;;  %v3309_v21 = vadd.f32 %v3308_v42, %v2739_v8  ;;  %v2464_v39 = vpop.f32.mrf.mxu0  ;;  %v5424_v42 = vld [vmem:[%s6620_s30 + $0x1a8] sm:$0xf0]  ;;  %6225 = vmatmul.msk.bf16.gmra.mxu3 %vm2029_vm2, %v5867_v26 }
 0x1d5   : > { %v4670_v17 = vpack.c.bf16 %v4446_v30, %v4446_v30  ;;  %v3034_v40 = vadd.f32 %v7681_v29, %v2464_v39  ;;  %v5427_v48 = vor.u32 %v6311_v41, %v5424_v42  ;;  %v5414_v29 = vld [vmem:[%s6620_s30 + $0x190] sm:$0xf]  ;;  %v6424_v41 = vld [vmem:[%s6620_s30 + $0x524] sm:$0xf0] }
 0x1d6   : > { %5005 = vst.msk [vmem:[%s6836_s23 + $0x234] sm:$0xf] %vm4863_vm4, %v4780_v44  ;;  %v3654_v2 = vadd.f32 %v3309_v21, %v640_v7  ;;  %v5415_v61 = vor.u32 %v6310_v49, %v5414_v29  ;;  %v6423_v44 = vld [vmem:[%s6620_s30 + $0x524] sm:$0xf]  ;;  %v5872_v21 = vld [vmem:[%s6620_s30 + $0x528] sm:$0xf0] }
 0x1d7   : > { %v4105_v20 = vld [vmem:[#allocation2 + $0x470] sm:$0xff]  ;;  %4895 = vst.msk [vmem:[%s6836_s23 + $0x7c] sm:$0xf] %vm4863_vm4, %v4670_v17  ;;  %v3544_v35 = vadd.f32 %v3034_v40, %v530_v38  ;;  %v3316_v56 = vpop.f32.mrf.mxu3  ;;  %v6312_v38 = vld [vmem:[%s6620_s30 + $0x1a4] sm:$0xf0]  ;;  %v533_v49 = vld [vmem:[#allocation2 + $0x120] sm:$0xff] }
 0x1d8   : > { %v4333_v23 = vadd.f32 %v7661_v13, %v4105_v20  ;;  %3879 = vst.msk [vmem:[#allocation2 + $0x478] sm:$0xff] %vm272_vm3, %v3654_v2  ;;  %v3995_v47 = vld [vmem:[#allocation2 + $0x100] sm:$0xff]  ;;  %6170 = vmatmul.msk.bf16.gmra.mxu1 %vm2029_vm2, %v5427_v48  ;;  %v5875_v20 = vor.u32 %v6423_v44, %v5872_v21 }
 0x1d9   : > { %v4223_v50 = vadd.f32 %v7661_v13, %v3995_v47  ;;  %3769 = vst.msk [vmem:[#allocation2 + $0x108] sm:$0xff] %vm272_vm3, %v3544_v35  ;;  %v7729_v31 = vpop.f32.mrf.mxu1  ;;  %v5870_v40 = vld [vmem:[%s6620_s30 + $0x520] sm:$0xf]  ;;  %v644_v35 = vld [vmem:[#allocation2 + $0x498] sm:$0xff] }
 0x1da   : > { %v4557_v28 = vmax.f32 %v4333_v23, 0.0  ;;  %v5871_v51 = vor.u32 %v6424_v41, %v5870_v40 }
 0x1db   : > { %v2742_v33 = vpop.f32.mrf.mxu2  ;;  %v4447_v57 = vmax.f32 %v4223_v50, 0.0 }
 0x1dc   : > { %v4781_v34 = vpack.c.bf16 %v4557_v28, %v4557_v28  ;;  %v3312_v36 = vadd.f32 %v3311_v54, %v2742_v33  ;;  %v2467_v0 = vpop.f32.mrf.mxu0  ;;  %v6313_v28 = vld [vmem:[%s6620_s30 + $0x1b4] sm:$0xf] }
 0x1dd   : > { %v4671_v3 = vpack.c.bf16 %v4447_v57, %v4447_v57  ;;  %v3037_v5 = vadd.f32 %v7697_v43, %v2467_v0 }
 0x1de   : > { %5006 = vst.msk [vmem:[%s6836_s23 + $0x238] sm:$0xf] %vm4863_vm4, %v4781_v34  ;;  %v3655_v32 = vadd.f32 %v3312_v36, %v641_v9 }
 0x1df   : > { %v4106_v24 = vld [vmem:[#allocation2 + $0x478] sm:$0xff]  ;;  %4896 = vst.msk [vmem:[%s6836_s23 + $0x80] sm:$0xf] %vm4863_vm4, %v4671_v3  ;;  %v3545_v7 = vadd.f32 %v3037_v5, %v531_v63  ;;  %2506 = vmatmul.bf16.gmra.mxu0 %v5415_v61  ;;  %v3318_v16 = vpop.f32.mrf.mxu3  ;;  %v645_v5 = vld [vmem:[#allocation2 + $0x4a0] sm:$0xff] }
 0x1e0   : > { %v4334_v46 = vadd.f32 %v7661_v13, %v4106_v24  ;;  %3880 = vst.msk [vmem:[#allocation2 + $0x480] sm:$0xff] %vm272_vm3, %v3655_v32  ;;  %v3996_v11 = vld [vmem:[#allocation2 + $0x108] sm:$0xff] }
 0x1e1   : > { %v4224_v12 = vadd.f32 %v7661_v13, %v3996_v11  ;;  %3770 = vst.msk [vmem:[#allocation2 + $0x110] sm:$0xff] %vm272_vm3, %v3545_v7  ;;  %v7745_v43 = vpop.f32.mrf.mxu1  ;;  %v534_v11 = vld [vmem:[#allocation2 + $0x128] sm:$0xff] }
 0x1e2   : > { %v4558_v45 = vmax.f32 %v4334_v46, 0.0 }
 0x1e3   : > { %v2744_v59 = vpop.f32.mrf.mxu2  ;;  %2786 = vmatmul.bf16.gmra.mxu2 %v5863_v1  ;;  %v4448_v27 = vmax.f32 %v4224_v12, 0.0 }
 0x1e4   : > { %v4782_v62 = vpack.c.bf16 %v4558_v45, %v4558_v45  ;;  %v3314_v52 = vadd.f32 %v3313_v19, %v2744_v59  ;;  %v2469_v37 = vpop.f32.mrf.mxu0  ;;  %v5432_v19 = vld [vmem:[%s6620_s30 + $0x1b8] sm:$0xf0]  ;;  %6226 = vmatmul.msk.bf16.gmra.mxu3 %vm2029_vm2, %v5875_v20 }
 0x1e5   : > { %v4672_v4 = vpack.c.bf16 %v4448_v27, %v4448_v27  ;;  %v3039_v60 = vadd.f32 %v7713_v14, %v2469_v37  ;;  %v5435_v36 = vor.u32 %v6313_v28, %v5432_v19  ;;  %v5422_v14 = vld [vmem:[%s6620_s30 + $0x1a0] sm:$0xf]  ;;  %v6426_v28 = vld [vmem:[%s6620_s30 + $0x534] sm:$0xf0] }
 0x1e6   : > { %5007 = vst.msk [vmem:[%s6836_s23 + $0x23c] sm:$0xf] %vm4863_vm4, %v4782_v62  ;;  %v3656_v54 = vadd.f32 %v3314_v52, %v642_v58  ;;  %v5423_v47 = vor.u32 %v6312_v38, %v5422_v14  ;;  %v6425_v62 = vld [vmem:[%s6620_s30 + $0x534] sm:$0xf]  ;;  %v5880_v52 = vld [vmem:[%s6620_s30 + $0x538] sm:$0xf0] }
 0x1e7   : > { %v4107_v6 = vld [vmem:[#allocation2 + $0x480] sm:$0xff]  ;;  %4897 = vst.msk [vmem:[%s6836_s23 + $0x84] sm:$0xf] %vm4863_vm4, %v4672_v4  ;;  %v3546_v33 = vadd.f32 %v3039_v60, %v532_v25  ;;  %v3321_v32 = vpop.f32.mrf.mxu3  ;;  %v6314_v25 = vld [vmem:[%s6620_s30 + $0x1b4] sm:$0xf0]  ;;  %v535_v38 = vld [vmem:[#allocation2 + $0x130] sm:$0xff] }
 0x1e8   : > { %v4335_v8 = vadd.f32 %v7661_v13, %v4107_v6  ;;  %3881 = vst.msk [vmem:[#allocation2 + $0x488] sm:$0xff] %vm272_vm3, %v3656_v54  ;;  %v3997_v34 = vld [vmem:[#allocation2 + $0x110] sm:$0xff]  ;;  %6171 = vmatmul.msk.bf16.gmra.mxu1 %vm2029_vm2, %v5435_v36  ;;  %v5883_v6 = vor.u32 %v6425_v62, %v5880_v52 }
 0x1e9   : > { %v4225_v39 = vadd.f32 %v7661_v13, %v3997_v34  ;;  %3771 = vst.msk [vmem:[#allocation2 + $0x118] sm:$0xff] %vm272_vm3, %v3546_v33  ;;  %v7761_v17 = vpop.f32.mrf.mxu1  ;;  %v5878_v60 = vld [vmem:[%s6620_s30 + $0x530] sm:$0xf]  ;;  %v646_v33 = vld [vmem:[#allocation2 + $0x4a8] sm:$0xff] }
 0x1ea   : > { %v4559_v55 = vmax.f32 %v4335_v8, 0.0  ;;  %v5879_v40 = vor.u32 %v6426_v28, %v5878_v60 }
 0x1eb   : > { %v2747_v2 = vpop.f32.mrf.mxu2  ;;  %v4449_v24 = vmax.f32 %v4225_v39, 0.0 }
 0x1ec   : > { %v4783_v22 = vpack.c.bf16 %v4559_v55, %v4559_v55  ;;  %v3317_v23 = vadd.f32 %v3316_v56, %v2747_v2  ;;  %v2472_v50 = vpop.f32.mrf.mxu0  ;;  %v6315_v55 = vld [vmem:[%s6620_s30 + $0x1c4] sm:$0xf] }
 0x1ed   : > { %v4673_v53 = vpack.c.bf16 %v4449_v24, %v4449_v24  ;;  %v3042_v45 = vadd.f32 %v7729_v31, %v2472_v50 }
 0x1ee   : > { %5008 = vst.msk [vmem:[%s6836_s23 + $0x240] sm:$0xf] %vm4863_vm4, %v4783_v22  ;;  %v3657_v30 = vadd.f32 %v3317_v23, %v643_v15 }
 0x1ef   : > { %v4108_v9 = vld [vmem:[#allocation2 + $0x488] sm:$0xff]  ;;  %4898 = vst.msk [vmem:[%s6836_s23 + $0x88] sm:$0xf] %vm4863_vm4, %v4673_v53  ;;  %v3547_v58 = vadd.f32 %v3042_v45, %v533_v49  ;;  %2511 = vmatmul.bf16.gmra.mxu0 %v5423_v47  ;;  %v3323_v1 = vpop.f32.mrf.mxu3  ;;  %v647_v45 = vld [vmem:[#allocation2 + $0x4b0] sm:$0xff] }
 0x1f0   : > { %v4336_v26 = vadd.f32 %v7661_v13, %v4108_v9  ;;  %3882 = vst.msk [vmem:[#allocation2 + $0x490] sm:$0xff] %vm272_vm3, %v3657_v30  ;;  %v3998_v61 = vld [vmem:[#allocation2 + $0x118] sm:$0xff] }
 0x1f1   : > { %v4226_v63 = vadd.f32 %v7661_v13, %v3998_v61  ;;  %3772 = vst.msk [vmem:[#allocation2 + $0x120] sm:$0xff] %vm272_vm3, %v3547_v58  ;;  %v7777_v31 = vpop.f32.mrf.mxu1  ;;  %v536_v61 = vld [vmem:[#allocation2 + $0x138] sm:$0xff] }
 0x1f2   : > { %v4560_v42 = vmax.f32 %v4336_v26, 0.0 }
 0x1f3   : > { %v2749_v46 = vpop.f32.mrf.mxu2  ;;  %2791 = vmatmul.bf16.gmra.mxu2 %v5871_v51  ;;  %v4450_v3 = vmax.f32 %v4226_v63, 0.0 }
 0x1f4   : > { %v4784_v48 = vpack.c.bf16 %v4560_v42, %v4560_v42  ;;  %v3319_v29 = vadd.f32 %v3318_v16, %v2749_v46  ;;  %v2474_v44 = vpop.f32.mrf.mxu0  ;;  %v5440_v16 = vld [vmem:[%s6620_s30 + $0x1c8] sm:$0xf0]  ;;  %6227 = vmatmul.msk.bf16.gmra.mxu3 %vm2029_vm2, %v5883_v6 }
 0x1f5   : > { %v4674_v21 = vpack.c.bf16 %v4450_v3, %v4450_v3  ;;  %v3044_v12 = vadd.f32 %v7745_v43, %v2474_v44  ;;  %v5443_v23 = vor.u32 %v6315_v55, %v5440_v16  ;;  %v5430_v43 = vld [vmem:[%s6620_s30 + $0x1b0] sm:$0xf]  ;;  %v6428_v55 = vld [vmem:[%s6620_s30 + $0x544] sm:$0xf0] }
 0x1f6   : > { %5009 = vst.msk [vmem:[%s6836_s23 + $0x244] sm:$0xf] %vm4863_vm4, %v4784_v48  ;;  %v3658_v56 = vadd.f32 %v3319_v29, %v644_v35  ;;  %v5431_v34 = vor.u32 %v6314_v25, %v5430_v43  ;;  %v6427_v48 = vld [vmem:[%s6620_s30 + $0x544] sm:$0xf]  ;;  %v5888_v29 = vld [vmem:[%s6620_s30 + $0x548] sm:$0xf0] }
 0x1f7   : > { %v4109_v57 = vld [vmem:[#allocation2 + $0x490] sm:$0xff]  ;;  %4899 = vst.msk [vmem:[%s6836_s23 + $0x8c] sm:$0xf] %vm4863_vm4, %v4674_v21  ;;  %v3548_v2 = vadd.f32 %v3044_v12, %v534_v11  ;;  %v3326_v30 = vpop.f32.mrf.mxu3  ;;  %v6316_v11 = vld [vmem:[%s6620_s30 + $0x1c4] sm:$0xf0]  ;;  %v537_v25 = vld [vmem:[#allocation2 + $0x140] sm:$0xff] }
 0x1f8   : > { %v4337_v59 = vadd.f32 %v7661_v13, %v4109_v57  ;;  %3883 = vst.msk [vmem:[#allocation2 + $0x498] sm:$0xff] %vm272_vm3, %v3658_v56  ;;  %v3999_v22 = vld [vmem:[#allocation2 + $0x120] sm:$0xff]  ;;  %6172 = vmatmul.msk.bf16.gmra.mxu1 %vm2029_vm2, %v5443_v23  ;;  %v5891_v57 = vor.u32 %v6427_v48, %v5888_v29 }
 0x1f9   : > { %v4227_v37 = vadd.f32 %v7661_v13, %v3999_v22  ;;  %3773 = vst.msk [vmem:[#allocation2 + $0x128] sm:$0xff] %vm272_vm3, %v3548_v2  ;;  %v7793_v4 = vpop.f32.mrf.mxu1  ;;  %v5886_v12 = vld [vmem:[%s6620_s30 + $0x540] sm:$0xf]  ;;  %v648_v2 = vld [vmem:[#allocation2 + $0x4b8] sm:$0xff] }
 0x1fa   : > { %v4561_v0 = vmax.f32 %v4337_v59, 0.0  ;;  %v5887_v60 = vor.u32 %v6428_v55, %v5886_v12 }
 0x1fb   : > { %v2752_v54 = vpop.f32.mrf.mxu2  ;;  %v4451_v9 = vmax.f32 %v4227_v37, 0.0 }
 0x1fc   : > { %v4785_v7 = vpack.c.bf16 %v4561_v0, %v4561_v0  ;;  %v3322_v8 = vadd.f32 %v3321_v32, %v2752_v54  ;;  %v2477_v39 = vpop.f32.mrf.mxu0  ;;  %v6317_v0 = vld [vmem:[%s6620_s30 + $0x1d4] sm:$0xf] }
 0x1fd   : > { %v4675_v41 = vpack.c.bf16 %v4451_v9, %v4451_v9  ;;  %v3047_v42 = vadd.f32 %v7761_v17, %v2477_v39 }
 0x1fe   : > { %5010 = vst.msk [vmem:[%s6836_s23 + $0x248] sm:$0xf] %vm4863_vm4, %v4785_v7  ;;  %v3659_v27 = vadd.f32 %v3322_v8, %v645_v5 }
 0x1ff   : > { %v4110_v15 = vld [vmem:[#allocation2 + $0x498] sm:$0xff]  ;;  %4900 = vst.msk [vmem:[%s6836_s23 + $0x90] sm:$0xf] %vm4863_vm4, %v4675_v41  ;;  %v3549_v35 = vadd.f32 %v3047_v42, %v535_v38  ;;  %2516 = vmatmul.bf16.gmra.mxu0 %v5431_v34  ;;  %v3328_v51 = vpop.f32.mrf.mxu3  ;;  %v649_v42 = vld [vmem:[#allocation2 + $0x4c0] sm:$0xff] }
 0x200   : > { %v4338_v20 = vadd.f32 %v7661_v13, %v4110_v15  ;;  %3884 = vst.msk [vmem:[#allocation2 + $0x4a0] sm:$0xff] %vm272_vm3, %v3659_v27  ;;  %v4000_v47 = vld [vmem:[#allocation2 + $0x128] sm:$0xff] }
 0x201   : > { %v4228_v49 = vadd.f32 %v7661_v13, %v4000_v47  ;;  %3774 = vst.msk [vmem:[#allocation2 + $0x130] sm:$0xff] %vm272_vm3, %v3549_v35  ;;  %v7809_v17 = vpop.f32.mrf.mxu1  ;;  %v538_v47 = vld [vmem:[#allocation2 + $0x148] sm:$0xff] }
 0x202   : > { %v4562_v19 = vmax.f32 %v4338_v20, 0.0 }
 0x203   : > { %v2754_v26 = vpop.f32.mrf.mxu2  ;;  %2796 = vmatmul.bf16.gmra.mxu2 %v5879_v40  ;;  %v4452_v53 = vmax.f32 %v4228_v49, 0.0 }
 0x204   : > { %v4786_v36 = vpack.c.bf16 %v4562_v19, %v4562_v19  ;;  %v3324_v14 = vadd.f32 %v3323_v1, %v2754_v26  ;;  %v2479_v62 = vpop.f32.mrf.mxu0  ;;  %v5448_v1 = vld [vmem:[%s6620_s30 + $0x1d8] sm:$0xf0]  ;;  %6228 = vmatmul.msk.bf16.gmra.mxu3 %vm2029_vm2, %v5891_v57 }
 0x205   : > { %v4676_v52 = vpack.c.bf16 %v4452_v53, %v4452_v53  ;;  %v3049_v63 = vadd.f32 %v7777_v31, %v2479_v62  ;;  %v5451_v8 = vor.u32 %v6317_v0, %v5448_v1  ;;  %v5438_v31 = vld [vmem:[%s6620_s30 + $0x1c0] sm:$0xf]  ;;  %v6430_v0 = vld [vmem:[%s6620_s30 + $0x554] sm:$0xf0] }
 0x206   : > { %5011 = vst.msk [vmem:[%s6836_s23 + $0x24c] sm:$0xf] %vm4863_vm4, %v4786_v36  ;;  %v3660_v32 = vadd.f32 %v3324_v14, %v646_v33  ;;  %v5439_v22 = vor.u32 %v6316_v11, %v5438_v31  ;;  %v6429_v36 = vld [vmem:[%s6620_s30 + $0x554] sm:$0xf]  ;;  %v5896_v14 = vld [vmem:[%s6620_s30 + $0x558] sm:$0xf0] }
 0x207   : > { %v4111_v24 = vld [vmem:[#allocation2 + $0x4a0] sm:$0xff]  ;;  %4901 = vst.msk [vmem:[%s6836_s23 + $0x94] sm:$0xf] %vm4863_vm4, %v4676_v52  ;;  %v3550_v54 = vadd.f32 %v3049_v63, %v536_v61  ;;  %v3331_v27 = vpop.f32.mrf.mxu3  ;;  %v6318_v61 = vld [vmem:[%s6620_s30 + $0x1d4] sm:$0xf0]  ;;  %v539_v11 = vld [vmem:[#allocation2 + $0x150] sm:$0xff] }
 0x208   : > { %v4339_v46 = vadd.f32 %v7661_v13, %v4111_v24  ;;  %3885 = vst.msk [vmem:[#allocation2 + $0x4a8] sm:$0xff] %vm272_vm3, %v3660_v32  ;;  %v4001_v7 = vld [vmem:[#allocation2 + $0x130] sm:$0xff]  ;;  %6173 = vmatmul.msk.bf16.gmra.mxu1 %vm2029_vm2, %v5451_v8  ;;  %v5899_v24 = vor.u32 %v6429_v36, %v5896_v14 }
 0x209   : > { %v4229_v44 = vadd.f32 %v7661_v13, %v4001_v7  ;;  %3775 = vst.msk [vmem:[#allocation2 + $0x138] sm:$0xff] %vm272_vm3, %v3550_v54  ;;  %v7825_v21 = vpop.f32.mrf.mxu1  ;;  %v5894_v63 = vld [vmem:[%s6620_s30 + $0x550] sm:$0xf]  ;;  %v650_v54 = vld [vmem:[#allocation2 + $0x4c8] sm:$0xff] }
 0x20a   : > { %v4563_v50 = vmax.f32 %v4339_v46, 0.0  ;;  %v5895_v12 = vor.u32 %v6430_v0, %v5894_v63 }
 0x20b   : > { %v2757_v56 = vpop.f32.mrf.mxu2  ;;  %v4453_v15 = vmax.f32 %v4229_v44, 0.0 }
 0x20c   : > { %v4787_v58 = vpack.c.bf16 %v4563_v50, %v4563_v50  ;;  %v3327_v59 = vadd.f32 %v3326_v30, %v2757_v56  ;;  %v2482_v37 = vpop.f32.mrf.mxu0  ;;  %v6319_v50 = vld [vmem:[%s6620_s30 + $0x1e4] sm:$0xf] }
 0x20d   : > { %v4677_v28 = vpack.c.bf16 %v4453_v15, %v4453_v15  ;;  %v3052_v19 = vadd.f32 %v7793_v4, %v2482_v37 }
 0x20e   : > { %5012 = vst.msk [vmem:[%s6836_s23 + $0x250] sm:$0xf] %vm4863_vm4, %v4787_v58  ;;  %v3661_v3 = vadd.f32 %v3327_v59, %v647_v45 }
 0x20f   : > { %v4112_v5 = vld [vmem:[#allocation2 + $0x4a8] sm:$0xff]  ;;  %4902 = vst.msk [vmem:[%s6836_s23 + $0x98] sm:$0xf] %vm4863_vm4, %v4677_v28  ;;  %v3551_v33 = vadd.f32 %v3052_v19, %v537_v25  ;;  %2521 = vmatmul.bf16.gmra.mxu0 %v5439_v22  ;;  %v3333_v40 = vpop.f32.mrf.mxu3  ;;  %v651_v19 = vld [vmem:[#allocation2 + $0x4d0] sm:$0xff] }
 0x210   : > { %v4340_v6 = vadd.f32 %v7661_v13, %v4112_v5  ;;  %3886 = vst.msk [vmem:[#allocation2 + $0x4b0] sm:$0xff] %vm272_vm3, %v3661_v3  ;;  %v4002_v34 = vld [vmem:[#allocation2 + $0x138] sm:$0xff] }
 0x211   : > { %v4230_v38 = vadd.f32 %v7661_v13, %v4002_v34  ;;  %3776 = vst.msk [vmem:[#allocation2 + $0x140] sm:$0xff] %vm272_vm3, %v3551_v33  ;;  %v7841_v4 = vpop.f32.mrf.mxu1  ;;  %v540_v34 = vld [vmem:[#allocation2 + $0x158] sm:$0xff] }
 0x212   : > { %v4564_v16 = vmax.f32 %v4340_v6, 0.0 }
 0x213   : > { %v2759_v20 = vpop.f32.mrf.mxu2  ;;  %2801 = vmatmul.bf16.gmra.mxu2 %v5887_v60  ;;  %v4454_v41 = vmax.f32 %v4230_v38, 0.0 }
 0x214   : > { %v4788_v23 = vpack.c.bf16 %v4564_v16, %v4564_v16  ;;  %v3329_v43 = vadd.f32 %v3328_v51, %v2759_v20  ;;  %v2484_v48 = vpop.f32.mrf.mxu0  ;;  %v5456_v51 = vld [vmem:[%s6620_s30 + $0x1e8] sm:$0xf0]  ;;  %6229 = vmatmul.msk.bf16.gmra.mxu3 %vm2029_vm2, %v5899_v24 }
 0x215   : > { %v4678_v29 = vpack.c.bf16 %v4454_v41, %v4454_v41  ;;  %v3054_v49 = vadd.f32 %v7809_v17, %v2484_v48  ;;  %v5459_v59 = vor.u32 %v6319_v50, %v5456_v51  ;;  %v5446_v17 = vld [vmem:[%s6620_s30 + $0x1d0] sm:$0xf]  ;;  %v6432_v50 = vld [vmem:[%s6620_s30 + $0x564] sm:$0xf0] }
 0x216   : > { %5013 = vst.msk [vmem:[%s6836_s23 + $0x254] sm:$0xf] %vm4863_vm4, %v4788_v23  ;;  %v3662_v30 = vadd.f32 %v3329_v43, %v648_v2  ;;  %v5447_v7 = vor.u32 %v6318_v61, %v5446_v17  ;;  %v6431_v23 = vld [vmem:[%s6620_s30 + $0x564] sm:$0xf]  ;;  %v5904_v43 = vld [vmem:[%s6620_s30 + $0x568] sm:$0xf0] }
 0x217   : > { %v4113_v9 = vld [vmem:[#allocation2 + $0x4b0] sm:$0xff]  ;;  %4903 = vst.msk [vmem:[%s6836_s23 + $0x9c] sm:$0xf] %vm4863_vm4, %v4678_v29  ;;  %v3552_v56 = vadd.f32 %v3054_v49, %v538_v47  ;;  %v3336_v3 = vpop.f32.mrf.mxu3  ;;  %v6320_v47 = vld [vmem:[%s6620_s30 + $0x1e4] sm:$0xf0]  ;;  %v541_v61 = vld [vmem:[#allocation2 + $0x160] sm:$0xff] }
 0x218   : > { %v4341_v26 = vadd.f32 %v7661_v13, %v4113_v9  ;;  %3887 = vst.msk [vmem:[#allocation2 + $0x4b8] sm:$0xff] %vm272_vm3, %v3662_v30  ;;  %v4003_v58 = vld [vmem:[#allocation2 + $0x140] sm:$0xff]  ;;  %6174 = vmatmul.msk.bf16.gmra.mxu1 %vm2029_vm2, %v5459_v59  ;;  %v5907_v9 = vor.u32 %v6431_v23, %v5904_v43 }
 0x219   : > { %v4231_v62 = vadd.f32 %v7661_v13, %v4003_v58  ;;  %3777 = vst.msk [vmem:[#allocation2 + $0x148] sm:$0xff] %vm272_vm3, %v3552_v56  ;;  %v7857_v52 = vpop.f32.mrf.mxu1  ;;  %v5902_v49 = vld [vmem:[%s6620_s30 + $0x560] sm:$0xf]  ;;  %v652_v56 = vld [vmem:[#allocation2 + $0x4d8] sm:$0xff] }
 0x21a   : > { %v4565_v39 = vmax.f32 %v4341_v26, 0.0  ;;  %v5903_v63 = vor.u32 %v6432_v50, %v5902_v49 }
 0x21b   : > { %v2762_v32 = vpop.f32.mrf.mxu2  ;;  %v4455_v5 = vmax.f32 %v4231_v62, 0.0 }
 0x21c   : > { %v4789_v35 = vpack.c.bf16 %v4565_v39, %v4565_v39  ;;  %v3332_v46 = vadd.f32 %v3331_v27, %v2762_v32  ;;  %v2487_v44 = vpop.f32.mrf.mxu0  ;;  %v6321_v39 = vld [vmem:[%s6620_s30 + $0x1f4] sm:$0xf] }
 0x21d   : > { %v4679_v55 = vpack.c.bf16 %v4455_v5, %v4455_v5  ;;  %v3057_v16 = vadd.f32 %v7825_v21, %v2487_v44 }
 0x21e   : > { %5014 = vst.msk [vmem:[%s6836_s23 + $0x258] sm:$0xf] %vm4863_vm4, %v4789_v35  ;;  %v3663_v53 = vadd.f32 %v3332_v46, %v649_v42 }
 0x21f   : > { %v4114_v45 = vld [vmem:[#allocation2 + $0x4b8] sm:$0xff]  ;;  %4904 = vst.msk [vmem:[%s6836_s23 + $0xa0] sm:$0xf] %vm4863_vm4, %v4679_v55  ;;  %v3553_v2 = vadd.f32 %v3057_v16, %v539_v11  ;;  %2526 = vmatmul.bf16.gmra.mxu0 %v5447_v7  ;;  %v3338_v60 = vpop.f32.mrf.mxu3  ;;  %v653_v16 = vld [vmem:[#allocation2 + $0x4e0] sm:$0xff] }
 0x220   : > { %v4342_v57 = vadd.f32 %v7661_v13, %v4114_v45  ;;  %3888 = vst.msk [vmem:[#allocation2 + $0x4c0] sm:$0xff] %vm272_vm3, %v3663_v53  ;;  %v4004_v22 = vld [vmem:[#allocation2 + $0x148] sm:$0xff] }
 0x221   : > { %v4232_v25 = vadd.f32 %v7661_v13, %v4004_v22  ;;  %3778 = vst.msk [vmem:[#allocation2 + $0x150] sm:$0xff] %vm272_vm3, %v3553_v2  ;;  %v7873_v21 = vpop.f32.mrf.mxu1  ;;  %v542_v22 = vld [vmem:[#allocation2 + $0x168] sm:$0xff] }
 0x222   : > { %v4566_v1 = vmax.f32 %v4342_v57, 0.0 }
 0x223   : > { %v2764_v6 = vpop.f32.mrf.mxu2  ;;  %2806 = vmatmul.bf16.gmra.mxu2 %v5895_v12  ;;  %v4456_v28 = vmax.f32 %v4232_v25, 0.0 }
 0x224   : > { %v4790_v8 = vpack.c.bf16 %v4566_v1, %v4566_v1  ;;  %v3334_v31 = vadd.f32 %v3333_v40, %v2764_v6  ;;  %v2489_v36 = vpop.f32.mrf.mxu0  ;;  %v5464_v40 = vld [vmem:[%s6620_s30 + $0x1f8] sm:$0xf0]  ;;  %6230 = vmatmul.msk.bf16.gmra.mxu3 %vm2029_vm2, %v5907_v9 }
 0x225   : > { %v4680_v14 = vpack.c.bf16 %v4456_v28, %v4456_v28  ;;  %v3059_v38 = vadd.f32 %v7841_v4, %v2489_v36  ;;  %v5467_v46 = vor.u32 %v6321_v39, %v5464_v40  ;;  %v5454_v4 = vld [vmem:[%s6620_s30 + $0x1e0] sm:$0xf]  ;;  %v6434_v39 = vld [vmem:[%s6620_s30 + $0x574] sm:$0xf0] }
 0x226   : > { %5015 = vst.msk [vmem:[%s6836_s23 + $0x25c] sm:$0xf] %vm4863_vm4, %v4790_v8  ;;  %v3664_v27 = vadd.f32 %v3334_v31, %v650_v54  ;;  %v5455_v58 = vor.u32 %v6320_v47, %v5454_v4  ;;  %v6433_v8 = vld [vmem:[%s6620_s30 + $0x574] sm:$0xf]  ;;  %v5912_v31 = vld [vmem:[%s6620_s30 + $0x578] sm:$0xf0] }
 0x227   : > { %v4115_v15 = vld [vmem:[#allocation2 + $0x4c0] sm:$0xff]  ;;  %4905 = vst.msk [vmem:[%s6836_s23 + $0xa4] sm:$0xf] %vm4863_vm4, %v4680_v14  ;;  %v3554_v32 = vadd.f32 %v3059_v38, %v540_v34  ;;  %v3341_v53 = vpop.f32.mrf.mxu3  ;;  %v6322_v34 = vld [vmem:[%s6620_s30 + $0x1f4] sm:$0xf0]  ;;  %v543_v47 = vld [vmem:[#allocation2 + $0x170] sm:$0xff] }
 0x228   : > { %v4343_v20 = vadd.f32 %v7661_v13, %v4115_v15  ;;  %3889 = vst.msk [vmem:[#allocation2 + $0x4c8] sm:$0xff] %vm272_vm3, %v3664_v27  ;;  %v4005_v35 = vld [vmem:[#allocation2 + $0x150] sm:$0xff]  ;;  %6175 = vmatmul.msk.bf16.gmra.mxu1 %vm2029_vm2, %v5467_v46  ;;  %v5915_v15 = vor.u32 %v6433_v8, %v5912_v31 }
 0x229   : > { %v4233_v48 = vadd.f32 %v7661_v13, %v4005_v35  ;;  %3779 = vst.msk [vmem:[#allocation2 + $0x158] sm:$0xff] %vm272_vm3, %v3554_v32  ;;  %v7889_v29 = vpop.f32.mrf.mxu1  ;;  %v5910_v38 = vld [vmem:[%s6620_s30 + $0x570] sm:$0xf]  ;;  %v654_v32 = vld [vmem:[#allocation2 + $0x4e8] sm:$0xff] }
 0x22a   : > { %v4567_v37 = vmax.f32 %v4343_v20, 0.0  ;;  %v5911_v49 = vor.u32 %v6434_v39, %v5910_v38 }
 0x22b   : > { %v2767_v30 = vpop.f32.mrf.mxu2  ;;  %v4457_v45 = vmax.f32 %v4233_v48, 0.0 }
 0x22c   : > { %v4791_v33 = vpack.c.bf16 %v4567_v37, %v4567_v37  ;;  %v3337_v26 = vadd.f32 %v3336_v3, %v2767_v30  ;;  %v2492_v62 = vpop.f32.mrf.mxu0  ;;  %v6323_v37 = vld [vmem:[%s6620_s30 + $0x204] sm:$0xf] }
 0x22d   : > { %v4681_v0 = vpack.c.bf16 %v4457_v45, %v4457_v45  ;;  %v3062_v1 = vadd.f32 %v7857_v52, %v2492_v62 }
 0x22e   : > { %5016 = vst.msk [vmem:[%s6836_s23 + $0x260] sm:$0xf] %vm4863_vm4, %v4791_v33  ;;  %v3665_v41 = vadd.f32 %v3337_v26, %v651_v19 }
 0x22f   : > { %v4116_v42 = vld [vmem:[#allocation2 + $0x4c8] sm:$0xff]  ;;  %4906 = vst.msk [vmem:[%s6836_s23 + $0xa8] sm:$0xf] %vm4863_vm4, %v4681_v0  ;;  %v3555_v54 = vadd.f32 %v3062_v1, %v541_v61  ;;  %2531 = vmatmul.bf16.gmra.mxu0 %v5455_v58  ;;  %v3343_v12 = vpop.f32.mrf.mxu3  ;;  %v655_v1 = vld [vmem:[#allocation2 + $0x4f0] sm:$0xff] }
 0x230   : > { %v4344_v24 = vadd.f32 %v7661_v13, %v4116_v42  ;;  %3890 = vst.msk [vmem:[#allocation2 + $0x4d0] sm:$0xff] %vm272_vm3, %v3665_v41  ;;  %v4006_v7 = vld [vmem:[#allocation2 + $0x158] sm:$0xff] }
 0x231   : > { %v4234_v11 = vadd.f32 %v7661_v13, %v4006_v7  ;;  %3780 = vst.msk [vmem:[#allocation2 + $0x160] sm:$0xff] %vm272_vm3, %v3555_v54  ;;  %v7905_v52 = vpop.f32.mrf.mxu1  ;;  %v544_v7 = vld [vmem:[#allocation2 + $0x178] sm:$0xff] }
 0x232   : > { %v4568_v51 = vmax.f32 %v4344_v24, 0.0 }
 0x233   : > { %v2769_v57 = vpop.f32.mrf.mxu2  ;;  %2811 = vmatmul.bf16.gmra.mxu2 %v5903_v63  ;;  %v4458_v55 = vmax.f32 %v4234_v11, 0.0  ;;  %v6325_v11 = vld [vmem:[%s6620_s30 + $0x214] sm:$0xf] }
 0x234   : > { %v4792_v59 = vpack.c.bf16 %v4568_v51, %v4568_v51  ;;  %v3339_v17 = vadd.f32 %v3338_v60, %v2769_v57  ;;  %v2494_v23 = vpop.f32.mrf.mxu0  ;;  %v5472_v60 = vld [vmem:[%s6620_s30 + $0x208] sm:$0xf0]  ;;  %6231 = vmatmul.msk.bf16.gmra.mxu3 %vm2029_vm2, %v5915_v15 }
 0x235   : > { %v4682_v43 = vpack.c.bf16 %v4458_v55, %v4458_v55  ;;  %v3064_v25 = vadd.f32 %v7873_v21, %v2494_v23  ;;  %v5475_v26 = vor.u32 %v6323_v37, %v5472_v60  ;;  %v5462_v21 = vld [vmem:[%s6620_s30 + $0x1f0] sm:$0xf]  ;;  %v6436_v37 = vld [vmem:[%s6620_s30 + $0x584] sm:$0xf0] }
 0x236   : > { %5017 = vst.msk [vmem:[%s6836_s23 + $0x264] sm:$0xf] %vm4863_vm4, %v4792_v59  ;;  %v3666_v3 = vadd.f32 %v3339_v17, %v652_v56  ;;  %v5463_v35 = vor.u32 %v6322_v34, %v5462_v21  ;;  %v6435_v59 = vld [vmem:[%s6620_s30 + $0x584] sm:$0xf]  ;;  %v5920_v17 = vld [vmem:[%s6620_s30 + $0x588] sm:$0xf0] }
 0x237   : > { %v4117_v5 = vld [vmem:[#allocation2 + $0x4d0] sm:$0xff]  ;;  %4907 = vst.msk [vmem:[%s6836_s23 + $0xac] sm:$0xf] %vm4863_vm4, %v4682_v43  ;;  %v3556_v30 = vadd.f32 %v3064_v25, %v542_v22  ;;  %v3346_v41 = vpop.f32.mrf.mxu3  ;;  %v6324_v22 = vld [vmem:[%s6620_s30 + $0x204] sm:$0xf0]  ;;  %v545_v34 = vld [vmem:[#allocation2 + $0x180] sm:$0xff] }
 0x238   : > { %v4345_v6 = vadd.f32 %v7661_v13, %v4117_v5  ;;  %3891 = vst.msk [vmem:[#allocation2 + $0x4d8] sm:$0xff] %vm272_vm3, %v3666_v3  ;;  %v4007_v33 = vld [vmem:[#allocation2 + $0x160] sm:$0xff]  ;;  %6176 = vmatmul.msk.bf16.gmra.mxu1 %vm2029_vm2, %v5475_v26  ;;  %v5923_v5 = vor.u32 %v6435_v59, %v5920_v17 }
 0x239   : > { %v4235_v36 = vadd.f32 %v7661_v13, %v4007_v33  ;;  %3781 = vst.msk [vmem:[#allocation2 + $0x168] sm:$0xff] %vm272_vm3, %v3556_v30  ;;  %v7921_v14 = vpop.f32.mrf.mxu1  ;;  %v5918_v25 = vld [vmem:[%s6620_s30 + $0x580] sm:$0xf]  ;;  %v656_v30 = vld [vmem:[#allocation2 + $0x4f8] sm:$0xff] }
 0x23a   : > { %v4569_v44 = vmax.f32 %v4345_v6, 0.0  ;;  %v5919_v38 = vor.u32 %v6436_v37, %v5918_v25 }
 0x23b   : > { %v2772_v27 = vpop.f32.mrf.mxu2  ;;  %v4459_v42 = vmax.f32 %v4235_v36, 0.0 }
 0x23c   : > { %v4793_v2 = vpack.c.bf16 %v4569_v44, %v4569_v44  ;;  %v3342_v20 = vadd.f32 %v3341_v53, %v2772_v27  ;;  %v2497_v48 = vpop.f32.mrf.mxu0  ;;  %v5480_v44 = vld [vmem:[%s6620_s30 + $0x218] sm:$0xf0]  ;;  %v7950_v27 = vld [vmem:[%s8893_s2] ss:$0 sm:$0xff] }
 0x23d   : > { %v4683_v50 = vpack.c.bf16 %v4459_v42, %v4459_v42  ;;  %v3067_v51 = vadd.f32 %v7889_v29, %v2497_v48 }
 0x23e   : > { %5018 = vst.msk [vmem:[%s6836_s23 + $0x268] sm:$0xf] %vm4863_vm4, %v4793_v2  ;;  %v3667_v28 = vadd.f32 %v3342_v20, %v653_v16  ;;  %v5483_v2 = vor.u32 %v6325_v11, %v5480_v44  ;;  %v5470_v20 = vld [vmem:[%s6620_s30 + $0x200] sm:$0xf]  ;;  %v6438_v11 = vld [vmem:[%s6620_s30 + $0x594] sm:$0xf0] }
 0x23f   : > { %v4118_v19 = vld [vmem:[#allocation2 + $0x4d8] sm:$0xff]  ;;  %4908 = vst.msk [vmem:[%s6836_s23 + $0xb0] sm:$0xf] %vm4863_vm4, %v4683_v50  ;;  %v3557_v56 = vadd.f32 %v3067_v51, %v543_v47  ;;  %2536 = vmatmul.bf16.gmra.mxu0 %v5463_v35  ;;  %v3348_v63 = vpop.f32.mrf.mxu3  ;;  %v5471_v33 = vor.u32 %v6324_v22, %v5470_v20  ;;  %v657_v51 = vld [vmem:[#allocation2 + $0x500] sm:$0xff]  ;;  %v547_v22 = vld [vmem:[#allocation2 + $0x190] sm:$0xff] }
 0x240   : > { %v4346_v9 = vadd.f32 %v7661_v13, %v4118_v19  ;;  %3892 = vst.msk [vmem:[#allocation2 + $0x4e0] sm:$0xff] %vm272_vm3, %v3667_v28  ;;  %v4008_v58 = vld [vmem:[#allocation2 + $0x168] sm:$0xff] }
 0x241   : > { %v4236_v61 = vadd.f32 %v7661_v13, %v4008_v58  ;;  %3782 = vst.msk [vmem:[#allocation2 + $0x170] sm:$0xff] %vm272_vm3, %v3557_v56  ;;  %v7937_v29 = vpop.f32.mrf.mxu1  ;;  %v546_v58 = vld [vmem:[#allocation2 + $0x188] sm:$0xff] }
 0x242   : > { %v4570_v40 = vmax.f32 %v4346_v9, 0.0 }
 0x243   : > { %v2774_v24 = vpop.f32.mrf.mxu2  ;;  %2816 = vmatmul.bf16.gmra.mxu2 %v5911_v49  ;;  %v4460_v0 = vmax.f32 %v4236_v61, 0.0 }
 0x244   : > { %v4794_v46 = vpack.c.bf16 %v4570_v40, %v4570_v40  ;;  %v3344_v4 = vadd.f32 %v3343_v12, %v2774_v24  ;;  %v2499_v8 = vpop.f32.mrf.mxu0  ;;  %6232 = vmatmul.msk.bf16.gmra.mxu3 %vm2029_vm2, %v5923_v5 }
 0x245   : > { %v4684_v31 = vpack.c.bf16 %v4460_v0, %v4460_v0 }
 0x246   : > { %5019 = vst.msk [vmem:[%s6836_s23 + $0x26c] sm:$0xf] %vm4863_vm4, %v4794_v46  ;;  %v3668_v53 = vadd.f32 %v3344_v4, %v654_v32  ;;  %v6437_v46 = vld [vmem:[%s6620_s30 + $0x594] sm:$0xf]  ;;  %v5928_v4 = vld [vmem:[%s6620_s30 + $0x598] sm:$0xf0] }
 0x247   : > { %v4119_v45 = vld [vmem:[#allocation2 + $0x4e0] sm:$0xff]  ;;  %4909 = vst.msk [vmem:[%s6836_s23 + $0xb4] sm:$0xf] %vm4863_vm4, %v4684_v31  ;;  %v3351_v28 = vpop.f32.mrf.mxu3 }
 0x248   : > { %v4347_v57 = vadd.f32 %v7661_v13, %v4119_v45  ;;  %3893 = vst.msk [vmem:[#allocation2 + $0x4e8] sm:$0xff] %vm272_vm3, %v3668_v53  ;;  %v3069_v13 = vadd.f32 %v7905_v52, %v2499_v8  ;;  %v4009_v15 = vld [vmem:[#allocation2 + $0x170] sm:$0xff]  ;;  %6177 = vmatmul.msk.bf16.gmra.mxu1 %vm2029_vm2, %v5483_v2  ;;  %v5931_v45 = vor.u32 %v6437_v46, %v5928_v4 }
 0x249   : > { %v4237_v23 = vadd.f32 %v7950_v27, %v4009_v15  ;;  %v7958_v43 = vpop.f32.mrf.mxu1 }
 0x24a   : > { %v4571_v62 = vmax.f32 %v4347_v57, 0.0  ;;  %v3558_v16 = vadd.f32 %v3069_v13, %v544_v7  ;;  %v6326_v7 = vld [vmem:[%s6620_s30 + $0x214] sm:$0xf0]  ;;  %v5926_v13 = vld [vmem:[%s6620_s30 + $0x590] sm:$0xf] }
 0x24b   : > { %v2777_v3 = vpop.f32.mrf.mxu2  ;;  %v4461_v19 = vmax.f32 %v4237_v23, 0.0  ;;  %v5927_v25 = vor.u32 %v6438_v11, %v5926_v13 }
 0x24c   : > { %v4795_v54 = vpack.c.bf16 %v4571_v62, %v4571_v62  ;;  %v3347_v6 = vadd.f32 %v3346_v41, %v2777_v3  ;;  %3783 = vst.msk [vmem:[#allocation2 + $0x178] sm:$0xff] %vm272_vm3, %v3558_v16  ;;  %v2502_v36 = vpop.f32.mrf.mxu0  ;;  %v6327_v62 = vld [vmem:[%s6620_s30 + $0x224] sm:$0xf]  ;;  %v658_v16 = vld [vmem:[#allocation2 + $0x508] sm:$0xff] }
 0x24d   : > { %v4685_v39 = vpack.c.bf16 %v4461_v19, %v4461_v19  ;;  %v3072_v40 = vadd.f32 %v7921_v14, %v2502_v36 }
 0x24e   : > { %5020 = vst.msk [vmem:[%s6836_s23 + $0x270] sm:$0xf] %vm4863_vm4, %v4795_v54  ;;  %v3669_v12 = vadd.f32 %v3347_v6, %v655_v1 }
 0x24f   : > { %v4120_v55 = vld [vmem:[#allocation2 + $0x4e8] sm:$0xff]  ;;  %4910 = vst.msk [vmem:[%s6836_s23 + $0xb8] sm:$0xf] %vm4863_vm4, %v4685_v39  ;;  %v3559_v32 = vadd.f32 %v3072_v40, %v545_v34  ;;  %2541 = vmatmul.bf16.gmra.mxu0 %v5471_v33  ;;  %v3353_v49 = vpop.f32.mrf.mxu3  ;;  %v659_v40 = vld [vmem:[#allocation2 + $0x510] sm:$0xff] }
 0x250   : > { %v4348_v52 = vadd.f32 %v7950_v27, %v4120_v55  ;;  %3894 = vst.msk [vmem:[#allocation2 + $0x4f0] sm:$0xff] %vm272_vm3, %v3669_v12 }
 0x251   : > { %3784 = vst.msk [vmem:[#allocation2 + $0x180] sm:$0xff] %vm272_vm3, %v3559_v32  ;;  %v7974_v14 = vpop.f32.mrf.mxu1 }
 0x252   : > { %v4572_v60 = vmax.f32 %v4348_v52, 0.0 }
 0x253   : > { %v2779_v9 = vpop.f32.mrf.mxu2  ;;  %v4010_v35 = vld [vmem:[#allocation2 + $0x178] sm:$0xff]  ;;  %2821 = vmatmul.bf16.gmra.mxu2 %v5919_v38 }
 0x254   : > { %v4796_v26 = vpack.c.bf16 %v4572_v60, %v4572_v60  ;;  %v3349_v21 = vadd.f32 %v3348_v63, %v2779_v9  ;;  %v4238_v47 = vadd.f32 %v7950_v27, %v4010_v35  ;;  %v2504_v59 = vpop.f32.mrf.mxu0  ;;  %v5488_v63 = vld [vmem:[%s6620_s30 + $0x228] sm:$0xf0]  ;;  %6233 = vmatmul.msk.bf16.gmra.mxu3 %vm2029_vm2, %v5931_v45  ;;  %v548_v35 = vld [vmem:[#allocation2 + $0x198] sm:$0xff] }
 0x255   : > { %v3074_v61 = vadd.f32 %v7937_v29, %v2504_v59  ;;  %v5491_v6 = vor.u32 %v6327_v62, %v5488_v63  ;;  %v5478_v29 = vld [vmem:[%s6620_s30 + $0x210] sm:$0xf]  ;;  %v6440_v62 = vld [vmem:[%s6620_s30 + $0x5a4] sm:$0xf0] }
 0x256   : > { %5021 = vst.msk [vmem:[%s6836_s23 + $0x274] sm:$0xf] %vm4863_vm4, %v4796_v26  ;;  %v3670_v41 = vadd.f32 %v3349_v21, %v656_v30  ;;  %v4462_v50 = vmax.f32 %v4238_v47, 0.0  ;;  %v5479_v15 = vor.u32 %v6326_v7, %v5478_v29  ;;  %v6439_v26 = vld [vmem:[%s6620_s30 + $0x5a4] sm:$0xf] }
 0x257   : > { %v4121_v42 = vld [vmem:[#allocation2 + $0x4f0] sm:$0xff]  ;;  %v3560_v3 = vadd.f32 %v3074_v61, %v546_v58  ;;  %v3356_v12 = vpop.f32.mrf.mxu3  ;;  %v5936_v21 = vld [vmem:[%s6620_s30 + $0x5a8] sm:$0xf0]  ;;  %v6328_v58 = vld [vmem:[%s6620_s30 + $0x224] sm:$0xf0] }
 0x258   : > { %v4349_v24 = vadd.f32 %v7950_v27, %v4121_v42  ;;  %3895 = vst.msk [vmem:[#allocation2 + $0x4f8] sm:$0xff] %vm272_vm3, %v3670_v41  ;;  %v4686_v17 = vpack.c.bf16 %v4462_v50, %v4462_v50  ;;  %v4011_v54 = vld [vmem:[#allocation2 + $0x180] sm:$0xff]  ;;  %6178 = vmatmul.msk.bf16.gmra.mxu1 %vm2029_vm2, %v5491_v6  ;;  %v5939_v42 = vor.u32 %v6439_v26, %v5936_v21 }
 0x259   : > { %v4239_v8 = vadd.f32 %v7950_v27, %v4011_v54  ;;  %3785 = vst.msk [vmem:[#allocation2 + $0x188] sm:$0xff] %vm272_vm3, %v3560_v3  ;;  %v7990_v31 = vpop.f32.mrf.mxu1  ;;  %v5934_v61 = vld [vmem:[%s6620_s30 + $0x5a0] sm:$0xf]  ;;  %v660_v3 = vld [vmem:[#allocation2 + $0x518] sm:$0xff] }
 0x25a   : > { %v4573_v48 = vmax.f32 %v4349_v24, 0.0  ;;  %4911 = vst.msk [vmem:[%s6836_s23 + $0xbc] sm:$0xf] %vm4863_vm4, %v4686_v17  ;;  %v549_v7 = vld [vmem:[#allocation2 + $0x1a0] sm:$0xff]  ;;  %v5935_v13 = vor.u32 %v6440_v62, %v5934_v61 }
 0x25b   : > { %v2782_v53 = vpop.f32.mrf.mxu2  ;;  %v4463_v55 = vmax.f32 %v4239_v8, 0.0 }
 0x25c   : > { %v4797_v56 = vpack.c.bf16 %v4573_v48, %v4573_v48  ;;  %v3352_v57 = vadd.f32 %v3351_v28, %v2782_v53  ;;  %v2507_v23 = vpop.f32.mrf.mxu0  ;;  %v6329_v48 = vld [vmem:[%s6620_s30 + $0x234] sm:$0xf] }
 0x25d   : > { %v4687_v37 = vpack.c.bf16 %v4463_v55, %v4463_v55  ;;  %v3077_v60 = vadd.f32 %v7958_v43, %v2507_v23 }
 0x25e   : > { %5022 = vst.msk [vmem:[%s6836_s23 + $0x278] sm:$0xf] %vm4863_vm4, %v4797_v56  ;;  %v3671_v0 = vadd.f32 %v3352_v57, %v657_v51 }
 0x25f   : > { %v4122_v1 = vld [vmem:[#allocation2 + $0x4f8] sm:$0xff]  ;;  %4912 = vst.msk [vmem:[%s6836_s23 + $0xc0] sm:$0xf] %vm4863_vm4, %v4687_v37  ;;  %v3561_v30 = vadd.f32 %v3077_v60, %v547_v22  ;;  %2546 = vmatmul.bf16.gmra.mxu0 %v5479_v15  ;;  %v3358_v38 = vpop.f32.mrf.mxu3  ;;  %v661_v60 = vld [vmem:[#allocation2 + $0x520] sm:$0xff] }
 0x260   : > { %v4350_v5 = vadd.f32 %v7950_v27, %v4122_v1  ;;  %3896 = vst.msk [vmem:[#allocation2 + $0x500] sm:$0xff] %vm272_vm3, %v3671_v0  ;;  %v4012_v33 = vld [vmem:[#allocation2 + $0x188] sm:$0xff] }
 0x261   : > { %v4240_v34 = vadd.f32 %v7950_v27, %v4012_v33  ;;  %3786 = vst.msk [vmem:[#allocation2 + $0x190] sm:$0xff] %vm272_vm3, %v3561_v30  ;;  %v8006_v43 = vpop.f32.mrf.mxu1  ;;  %v550_v33 = vld [vmem:[#allocation2 + $0x1a8] sm:$0xff] }
 0x262   : > { %v4574_v44 = vmax.f32 %v4350_v5, 0.0 }
 0x263   : > { %v2784_v52 = vpop.f32.mrf.mxu2  ;;  %2826 = vmatmul.bf16.gmra.mxu2 %v5927_v25  ;;  %v4464_v39 = vmax.f32 %v4240_v34, 0.0 }
 0x264   : > { %v4798_v2 = vpack.c.bf16 %v4574_v44, %v4574_v44  ;;  %v3354_v20 = vadd.f32 %v3353_v49, %v2784_v52  ;;  %v2509_v46 = vpop.f32.mrf.mxu0  ;;  %v5496_v49 = vld [vmem:[%s6620_s30 + $0x238] sm:$0xf0]  ;;  %6234 = vmatmul.msk.bf16.gmra.mxu3 %vm2029_vm2, %v5939_v42 }
 0x265   : > { %v4688_v4 = vpack.c.bf16 %v4464_v39, %v4464_v39  ;;  %v3079_v47 = vadd.f32 %v7974_v14, %v2509_v46  ;;  %v5499_v57 = vor.u32 %v6329_v48, %v5496_v49  ;;  %v5486_v14 = vld [vmem:[%s6620_s30 + $0x220] sm:$0xf]  ;;  %v6442_v48 = vld [vmem:[%s6620_s30 + $0x5b4] sm:$0xf0] }
 0x266   : > { %5023 = vst.msk [vmem:[%s6836_s23 + $0x27c] sm:$0xf] %vm4863_vm4, %v4798_v2  ;;  %v3672_v28 = vadd.f32 %v3354_v20, %v658_v16  ;;  %v5487_v54 = vor.u32 %v6328_v58, %v5486_v14  ;;  %v6441_v2 = vld [vmem:[%s6620_s30 + $0x5b4] sm:$0xf]  ;;  %v5944_v20 = vld [vmem:[%s6620_s30 + $0x5b8] sm:$0xf0] }
 0x267   : > { %v4123_v19 = vld [vmem:[#allocation2 + $0x500] sm:$0xff]  ;;  %4913 = vst.msk [vmem:[%s6836_s23 + $0xc4] sm:$0xf] %vm4863_vm4, %v4688_v4  ;;  %v3562_v53 = vadd.f32 %v3079_v47, %v548_v35  ;;  %v3361_v0 = vpop.f32.mrf.mxu3  ;;  %v6330_v35 = vld [vmem:[%s6620_s30 + $0x234] sm:$0xf0]  ;;  %v551_v58 = vld [vmem:[#allocation2 + $0x1b0] sm:$0xff] }
 0x268   : > { %v4351_v9 = vadd.f32 %v7950_v27, %v4123_v19  ;;  %3897 = vst.msk [vmem:[#allocation2 + $0x508] sm:$0xff] %vm272_vm3, %v3672_v28  ;;  %v4013_v56 = vld [vmem:[#allocation2 + $0x190] sm:$0xff]  ;;  %6179 = vmatmul.msk.bf16.gmra.mxu1 %vm2029_vm2, %v5499_v57  ;;  %v5947_v19 = vor.u32 %v6441_v2, %v5944_v20 }
 0x269   : > { %v4241_v59 = vadd.f32 %v7950_v27, %v4013_v56  ;;  %3787 = vst.msk [vmem:[#allocation2 + $0x198] sm:$0xff] %vm272_vm3, %v3562_v53  ;;  %v8022_v17 = vpop.f32.mrf.mxu1  ;;  %v5942_v47 = vld [vmem:[%s6620_s30 + $0x5b0] sm:$0xf]  ;;  %v662_v53 = vld [vmem:[#allocation2 + $0x528] sm:$0xff] }
 0x26a   : > { %v4575_v36 = vmax.f32 %v4351_v9, 0.0  ;;  %v5943_v61 = vor.u32 %v6442_v48, %v5942_v47 }
 0x26b   : > { %v2787_v41 = vpop.f32.mrf.mxu2  ;;  %v4465_v1 = vmax.f32 %v4241_v59, 0.0 }
 0x26c   : > { %v4799_v32 = vpack.c.bf16 %v4575_v36, %v4575_v36  ;;  %v3357_v24 = vadd.f32 %v3356_v12, %v2787_v41  ;;  %v2512_v8 = vpop.f32.mrf.mxu0  ;;  %v6331_v36 = vld [vmem:[%s6620_s30 + $0x244] sm:$0xf] }
 0x26d   : > { %v4689_v11 = vpack.c.bf16 %v4465_v1, %v4465_v1  ;;  %v3082_v44 = vadd.f32 %v7990_v31, %v2512_v8 }
 0x26e   : > { %5024 = vst.msk [vmem:[%s6836_s23 + $0x280] sm:$0xf] %vm4863_vm4, %v4799_v32  ;;  %v3673_v50 = vadd.f32 %v3357_v24, %v659_v40 }
 0x26f   : > { %v4124_v51 = vld [vmem:[#allocation2 + $0x508] sm:$0xff]  ;;  %4914 = vst.msk [vmem:[%s6836_s23 + $0xc8] sm:$0xf] %vm4863_vm4, %v4689_v11  ;;  %v3563_v16 = vadd.f32 %v3082_v44, %v549_v7  ;;  %2551 = vmatmul.bf16.gmra.mxu0 %v5487_v54  ;;  %v3363_v25 = vpop.f32.mrf.mxu3  ;;  %v663_v44 = vld [vmem:[#allocation2 + $0x530] sm:$0xff] }
 0x270   : > { %v4352_v45 = vadd.f32 %v7950_v27, %v4124_v51  ;;  %3898 = vst.msk [vmem:[#allocation2 + $0x510] sm:$0xff] %vm272_vm3, %v3673_v50  ;;  %v4014_v15 = vld [vmem:[#allocation2 + $0x198] sm:$0xff] }
 0x271   : > { %v4242_v22 = vadd.f32 %v7950_v27, %v4014_v15  ;;  %3788 = vst.msk [vmem:[#allocation2 + $0x1a0] sm:$0xff] %vm272_vm3, %v3563_v16  ;;  %v8038_v31 = vpop.f32.mrf.mxu1  ;;  %v552_v15 = vld [vmem:[#allocation2 + $0x1b8] sm:$0xff] }
 0x272   : > { %v4576_v63 = vmax.f32 %v4352_v45, 0.0 }
 0x273   : > { %v2789_v5 = vpop.f32.mrf.mxu2  ;;  %2831 = vmatmul.bf16.gmra.mxu2 %v5935_v13  ;;  %v4466_v37 = vmax.f32 %v4242_v22, 0.0 }
 0x274   : > { %v4800_v6 = vpack.c.bf16 %v4576_v63, %v4576_v63  ;;  %v3359_v29 = vadd.f32 %v3358_v38, %v2789_v5  ;;  %v2514_v26 = vpop.f32.mrf.mxu0  ;;  %v5504_v38 = vld [vmem:[%s6620_s30 + $0x248] sm:$0xf0]  ;;  %6235 = vmatmul.msk.bf16.gmra.mxu3 %vm2029_vm2, %v5947_v19 }
 0x275   : > { %v4690_v21 = vpack.c.bf16 %v4466_v37, %v4466_v37  ;;  %v3084_v34 = vadd.f32 %v8006_v43, %v2514_v26  ;;  %v5507_v24 = vor.u32 %v6331_v36, %v5504_v38  ;;  %v5494_v43 = vld [vmem:[%s6620_s30 + $0x230] sm:$0xf]  ;;  %v6444_v36 = vld [vmem:[%s6620_s30 + $0x5c4] sm:$0xf0] }
 0x276   : > { %5025 = vst.msk [vmem:[%s6836_s23 + $0x284] sm:$0xf] %vm4863_vm4, %v4800_v6  ;;  %v3674_v12 = vadd.f32 %v3359_v29, %v660_v3  ;;  %v5495_v56 = vor.u32 %v6330_v35, %v5494_v43  ;;  %v6443_v6 = vld [vmem:[%s6620_s30 + $0x5c4] sm:$0xf]  ;;  %v5952_v29 = vld [vmem:[%s6620_s30 + $0x5c8] sm:$0xf0] }
 0x277   : > { %v4125_v55 = vld [vmem:[#allocation2 + $0x510] sm:$0xff]  ;;  %4915 = vst.msk [vmem:[%s6836_s23 + $0xcc] sm:$0xf] %vm4863_vm4, %v4690_v21  ;;  %v3564_v41 = vadd.f32 %v3084_v34, %v550_v33  ;;  %v3366_v50 = vpop.f32.mrf.mxu3  ;;  %v6332_v33 = vld [vmem:[%s6620_s30 + $0x244] sm:$0xf0]  ;;  %v553_v35 = vld [vmem:[#allocation2 + $0x1c0] sm:$0xff] }
 0x278   : > { %v4353_v52 = vadd.f32 %v7950_v27, %v4125_v55  ;;  %3899 = vst.msk [vmem:[#allocation2 + $0x518] sm:$0xff] %vm272_vm3, %v3674_v12  ;;  %v4015_v32 = vld [vmem:[#allocation2 + $0x1a0] sm:$0xff]  ;;  %6180 = vmatmul.msk.bf16.gmra.mxu1 %vm2029_vm2, %v5507_v24  ;;  %v5955_v55 = vor.u32 %v6443_v6, %v5952_v29 }
 0x279   : > { %v4243_v46 = vadd.f32 %v7950_v27, %v4015_v32  ;;  %3789 = vst.msk [vmem:[#allocation2 + $0x1a8] sm:$0xff] %vm272_vm3, %v3564_v41  ;;  %v8054_v4 = vpop.f32.mrf.mxu1  ;;  %v5950_v34 = vld [vmem:[%s6620_s30 + $0x5c0] sm:$0xf]  ;;  %v664_v41 = vld [vmem:[#allocation2 + $0x538] sm:$0xff] }
 0x27a   : > { %v4577_v23 = vmax.f32 %v4353_v52, 0.0  ;;  %v5951_v47 = vor.u32 %v6444_v36, %v5950_v34 }
 0x27b   : > { %v2792_v28 = vpop.f32.mrf.mxu2  ;;  %v4467_v51 = vmax.f32 %v4243_v46, 0.0 }
 0x27c   : > { %v4801_v30 = vpack.c.bf16 %v4577_v23, %v4577_v23  ;;  %v3362_v9 = vadd.f32 %v3361_v0, %v2792_v28  ;;  %v2517_v59 = vpop.f32.mrf.mxu0  ;;  %v6333_v23 = vld [vmem:[%s6620_s30 + $0x254] sm:$0xf] }
 0x27d   : > { %v4691_v62 = vpack.c.bf16 %v4467_v51, %v4467_v51  ;;  %v3087_v63 = vadd.f32 %v8022_v17, %v2517_v59 }
 0x27e   : > { %5026 = vst.msk [vmem:[%s6836_s23 + $0x288] sm:$0xf] %vm4863_vm4, %v4801_v30  ;;  %v3675_v39 = vadd.f32 %v3362_v9, %v661_v60 }
 0x27f   : > { %v4126_v40 = vld [vmem:[#allocation2 + $0x518] sm:$0xff]  ;;  %4916 = vst.msk [vmem:[%s6836_s23 + $0xd0] sm:$0xf] %vm4863_vm4, %v4691_v62  ;;  %v3565_v3 = vadd.f32 %v3087_v63, %v551_v58  ;;  %2556 = vmatmul.bf16.gmra.mxu0 %v5495_v56  ;;  %v3368_v13 = vpop.f32.mrf.mxu3  ;;  %v665_v63 = vld [vmem:[#allocation2 + $0x540] sm:$0xff] }
 0x280   : > { %v4354_v42 = vadd.f32 %v7950_v27, %v4126_v40  ;;  %3900 = vst.msk [vmem:[#allocation2 + $0x520] sm:$0xff] %vm272_vm3, %v3675_v39  ;;  %v4016_v54 = vld [vmem:[#allocation2 + $0x1a8] sm:$0xff] }
 0x281   : > { %v4244_v7 = vadd.f32 %v7950_v27, %v4016_v54  ;;  %3790 = vst.msk [vmem:[#allocation2 + $0x1b0] sm:$0xff] %vm272_vm3, %v3565_v3  ;;  %v8070_v17 = vpop.f32.mrf.mxu1  ;;  %v554_v54 = vld [vmem:[#allocation2 + $0x1c8] sm:$0xff] }
 0x282   : > { %v4578_v49 = vmax.f32 %v4354_v42, 0.0 }
 0x283   : > { %v2794_v45 = vpop.f32.mrf.mxu2  ;;  %2836 = vmatmul.bf16.gmra.mxu2 %v5943_v61  ;;  %v4468_v11 = vmax.f32 %v4244_v7, 0.0 }
 0x284   : > { %v4802_v57 = vpack.c.bf16 %v4578_v49, %v4578_v49  ;;  %v3364_v14 = vadd.f32 %v3363_v25, %v2794_v45  ;;  %v2519_v2 = vpop.f32.mrf.mxu0  ;;  %v5512_v25 = vld [vmem:[%s6620_s30 + $0x258] sm:$0xf0]  ;;  %6236 = vmatmul.msk.bf16.gmra.mxu3 %vm2029_vm2, %v5955_v55 }
 0x285   : > { %v4692_v20 = vpack.c.bf16 %v4468_v11, %v4468_v11  ;;  %v3089_v22 = vadd.f32 %v8038_v31, %v2519_v2  ;;  %v5515_v9 = vor.u32 %v6333_v23, %v5512_v25  ;;  %v5502_v31 = vld [vmem:[%s6620_s30 + $0x240] sm:$0xf]  ;;  %v6446_v23 = vld [vmem:[%s6620_s30 + $0x5d4] sm:$0xf0] }
 0x286   : > { %5027 = vst.msk [vmem:[%s6836_s23 + $0x28c] sm:$0xf] %vm4863_vm4, %v4802_v57  ;;  %v3676_v0 = vadd.f32 %v3364_v14, %v662_v53  ;;  %v5503_v32 = vor.u32 %v6332_v33, %v5502_v31  ;;  %v6445_v57 = vld [vmem:[%s6620_s30 + $0x5d4] sm:$0xf]  ;;  %v5960_v14 = vld [vmem:[%s6620_s30 + $0x5d8] sm:$0xf0] }
 0x287   : > { %v4127_v1 = vld [vmem:[#allocation2 + $0x520] sm:$0xff]  ;;  %4917 = vst.msk [vmem:[%s6836_s23 + $0xd4] sm:$0xf] %vm4863_vm4, %v4692_v20  ;;  %v3566_v28 = vadd.f32 %v3089_v22, %v552_v15  ;;  %v3371_v39 = vpop.f32.mrf.mxu3  ;;  %v6334_v15 = vld [vmem:[%s6620_s30 + $0x254] sm:$0xf0]  ;;  %v555_v33 = vld [vmem:[#allocation2 + $0x1d0] sm:$0xff] }
 0x288   : > { %v4355_v5 = vadd.f32 %v7950_v27, %v4127_v1  ;;  %3901 = vst.msk [vmem:[#allocation2 + $0x528] sm:$0xff] %vm272_vm3, %v3676_v0  ;;  %v4017_v30 = vld [vmem:[#allocation2 + $0x1b0] sm:$0xff]  ;;  %6181 = vmatmul.msk.bf16.gmra.mxu1 %vm2029_vm2, %v5515_v9  ;;  %v5963_v1 = vor.u32 %v6445_v57, %v5960_v14 }
 0x289   : > { %v4245_v26 = vadd.f32 %v7950_v27, %v4017_v30  ;;  %3791 = vst.msk [vmem:[#allocation2 + $0x1b8] sm:$0xff] %vm272_vm3, %v3566_v28  ;;  %v8086_v21 = vpop.f32.mrf.mxu1  ;;  %v5958_v22 = vld [vmem:[%s6620_s30 + $0x5d0] sm:$0xf]  ;;  %v666_v28 = vld [vmem:[#allocation2 + $0x548] sm:$0xff] }
 0x28a   : > { %v4579_v8 = vmax.f32 %v4355_v5, 0.0  ;;  %v5959_v34 = vor.u32 %v6446_v23, %v5958_v22 }
 0x28b   : > { %v2797_v12 = vpop.f32.mrf.mxu2  ;;  %v4469_v40 = vmax.f32 %v4245_v26, 0.0 }
 0x28c   : > { %v4803_v16 = vpack.c.bf16 %v4579_v8, %v4579_v8  ;;  %v3367_v52 = vadd.f32 %v3366_v50, %v2797_v12  ;;  %v2522_v46 = vpop.f32.mrf.mxu0  ;;  %v6335_v8 = vld [vmem:[%s6620_s30 + $0x264] sm:$0xf] }
 0x28d   : > { %v4693_v48 = vpack.c.bf16 %v4469_v40, %v4469_v40  ;;  %v3092_v49 = vadd.f32 %v8054_v4, %v2522_v46 }
 0x28e   : > { %5028 = vst.msk [vmem:[%s6836_s23 + $0x290] sm:$0xf] %vm4863_vm4, %v4803_v16  ;;  %v3677_v37 = vadd.f32 %v3367_v52, %v663_v44 }
 0x28f   : > { %v4128_v60 = vld [vmem:[#allocation2 + $0x528] sm:$0xff]  ;;  %4918 = vst.msk [vmem:[%s6836_s23 + $0xd8] sm:$0xf] %vm4863_vm4, %v4693_v48  ;;  %v3567_v53 = vadd.f32 %v3092_v49, %v553_v35  ;;  %2561 = vmatmul.bf16.gmra.mxu0 %v5503_v32  ;;  %v3373_v61 = vpop.f32.mrf.mxu3  ;;  %v667_v49 = vld [vmem:[#allocation2 + $0x550] sm:$0xff] }
 0x290   : > { %v4356_v19 = vadd.f32 %v7950_v27, %v4128_v60  ;;  %3902 = vst.msk [vmem:[#allocation2 + $0x530] sm:$0xff] %vm272_vm3, %v3677_v37  ;;  %v4018_v56 = vld [vmem:[#allocation2 + $0x1b8] sm:$0xff] }
 0x291   : > { %v4246_v58 = vadd.f32 %v7950_v27, %v4018_v56  ;;  %3792 = vst.msk [vmem:[#allocation2 + $0x1c0] sm:$0xff] %vm272_vm3, %v3567_v53  ;;  %v8102_v4 = vpop.f32.mrf.mxu1  ;;  %v556_v56 = vld [vmem:[#allocation2 + $0x1d8] sm:$0xff] }
 0x292   : > { %v4580_v38 = vmax.f32 %v4356_v19, 0.0 }
 0x293   : > { %v2799_v42 = vpop.f32.mrf.mxu2  ;;  %2841 = vmatmul.bf16.gmra.mxu2 %v5951_v47  ;;  %v4470_v62 = vmax.f32 %v4246_v58, 0.0 }
 0x294   : > { %v4804_v24 = vpack.c.bf16 %v4580_v38, %v4580_v38  ;;  %v3369_v43 = vadd.f32 %v3368_v13, %v2799_v42  ;;  %v2524_v6 = vpop.f32.mrf.mxu0  ;;  %v5520_v13 = vld [vmem:[%s6620_s30 + $0x268] sm:$0xf0]  ;;  %6237 = vmatmul.msk.bf16.gmra.mxu3 %vm2029_vm2, %v5963_v1 }
 0x295   : > { %v4694_v29 = vpack.c.bf16 %v4470_v62, %v4470_v62  ;;  %v3094_v7 = vadd.f32 %v8070_v17, %v2524_v6  ;;  %v5523_v52 = vor.u32 %v6335_v8, %v5520_v13  ;;  %v5510_v17 = vld [vmem:[%s6620_s30 + $0x250] sm:$0xf]  ;;  %v6448_v8 = vld [vmem:[%s6620_s30 + $0x5e4] sm:$0xf0] }
 0x296   : > { %5029 = vst.msk [vmem:[%s6836_s23 + $0x294] sm:$0xf] %vm4863_vm4, %v4804_v24  ;;  %v3678_v50 = vadd.f32 %v3369_v43, %v664_v41  ;;  %v5511_v30 = vor.u32 %v6334_v15, %v5510_v17  ;;  %v6447_v24 = vld [vmem:[%s6620_s30 + $0x5e4] sm:$0xf]  ;;  %v5968_v43 = vld [vmem:[%s6620_s30 + $0x5e8] sm:$0xf0] }
 0x297   : > { %v4129_v51 = vld [vmem:[#allocation2 + $0x530] sm:$0xff]  ;;  %4919 = vst.msk [vmem:[%s6836_s23 + $0xdc] sm:$0xf] %vm4863_vm4, %v4694_v29  ;;  %v3568_v12 = vadd.f32 %v3094_v7, %v554_v54  ;;  %v3376_v37 = vpop.f32.mrf.mxu3  ;;  %v6336_v54 = vld [vmem:[%s6620_s30 + $0x264] sm:$0xf0]  ;;  %v557_v15 = vld [vmem:[#allocation2 + $0x1e0] sm:$0xff] }
 0x298   : > { %v4357_v45 = vadd.f32 %v7950_v27, %v4129_v51  ;;  %3903 = vst.msk [vmem:[#allocation2 + $0x538] sm:$0xff] %vm272_vm3, %v3678_v50  ;;  %v4019_v16 = vld [vmem:[#allocation2 + $0x1c0] sm:$0xff]  ;;  %6182 = vmatmul.msk.bf16.gmra.mxu1 %vm2029_vm2, %v5523_v52  ;;  %v5971_v51 = vor.u32 %v6447_v24, %v5968_v43 }
 0x299   : > { %v4247_v2 = vadd.f32 %v7950_v27, %v4019_v16  ;;  %3793 = vst.msk [vmem:[#allocation2 + $0x1c8] sm:$0xff] %vm272_vm3, %v3568_v12  ;;  %v8118_v20 = vpop.f32.mrf.mxu1  ;;  %v5966_v7 = vld [vmem:[%s6620_s30 + $0x5e0] sm:$0xf]  ;;  %v668_v12 = vld [vmem:[#allocation2 + $0x558] sm:$0xff] }
 0x29a   : > { %v4581_v59 = vmax.f32 %v4357_v45, 0.0  ;;  %v5967_v22 = vor.u32 %v6448_v8, %v5966_v7 }
 0x29b   : > { %v2802_v0 = vpop.f32.mrf.mxu2  ;;  %v4471_v60 = vmax.f32 %v4247_v2, 0.0 }
 0x29c   : > { %v4805_v3 = vpack.c.bf16 %v4581_v59, %v4581_v59  ;;  %v3372_v5 = vadd.f32 %v3371_v39, %v2802_v0  ;;  %v2527_v26 = vpop.f32.mrf.mxu0  ;;  %v6337_v59 = vld [vmem:[%s6620_s30 + $0x274] sm:$0xf] }
 0x29d   : > { %v4695_v36 = vpack.c.bf16 %v4471_v60, %v4471_v60  ;;  %v3097_v38 = vadd.f32 %v8086_v21, %v2527_v26 }
 0x29e   : > { %5030 = vst.msk [vmem:[%s6836_s23 + $0x298] sm:$0xf] %vm4863_vm4, %v4805_v3  ;;  %v3679_v11 = vadd.f32 %v3372_v5, %v665_v63 }
 0x29f   : > { %v4130_v44 = vld [vmem:[#allocation2 + $0x538] sm:$0xff]  ;;  %4920 = vst.msk [vmem:[%s6836_s23 + $0xe0] sm:$0xf] %vm4863_vm4, %v4695_v36  ;;  %v3569_v41 = vadd.f32 %v3097_v38, %v555_v33  ;;  %2566 = vmatmul.bf16.gmra.mxu0 %v5511_v30  ;;  %v3378_v47 = vpop.f32.mrf.mxu3  ;;  %v669_v38 = vld [vmem:[#allocation2 + $0x560] sm:$0xff] }
 0x2a0   : > { %v4358_v55 = vadd.f32 %v7950_v27, %v4130_v44  ;;  %3904 = vst.msk [vmem:[#allocation2 + $0x540] sm:$0xff] %vm272_vm3, %v3679_v11  ;;  %v4020_v32 = vld [vmem:[#allocation2 + $0x1c8] sm:$0xff] }
 0x2a1   : > { %v4248_v35 = vadd.f32 %v7950_v27, %v4020_v32  ;;  %3794 = vst.msk [vmem:[#allocation2 + $0x1d0] sm:$0xff] %vm272_vm3, %v3569_v41  ;;  %v8134_v21 = vpop.f32.mrf.mxu1  ;;  %v558_v32 = vld [vmem:[#allocation2 + $0x1e8] sm:$0xff] }
 0x2a2   : > { %v4582_v25 = vmax.f32 %v4358_v55, 0.0 }
 0x2a3   : > { %v2804_v19 = vpop.f32.mrf.mxu2  ;;  %2846 = vmatmul.bf16.gmra.mxu2 %v5959_v34  ;;  %v4472_v48 = vmax.f32 %v4248_v35, 0.0 }
 0x2a4   : > { %v4806_v9 = vpack.c.bf16 %v4582_v25, %v4582_v25  ;;  %v3374_v31 = vadd.f32 %v3373_v61, %v2804_v19  ;;  %v2529_v57 = vpop.f32.mrf.mxu0  ;;  %v5528_v61 = vld [vmem:[%s6620_s30 + $0x278] sm:$0xf0]  ;;  %6238 = vmatmul.msk.bf16.gmra.mxu3 %vm2029_vm2, %v5971_v51 }
 0x2a5   : > { %v4696_v14 = vpack.c.bf16 %v4472_v48, %v4472_v48  ;;  %v3099_v58 = vadd.f32 %v8102_v4, %v2529_v57  ;;  %v5531_v5 = vor.u32 %v6337_v59, %v5528_v61  ;;  %v5518_v4 = vld [vmem:[%s6620_s30 + $0x260] sm:$0xf]  ;;  %v6450_v59 = vld [vmem:[%s6620_s30 + $0x5f4] sm:$0xf0] }
 0x2a6   : > { %5031 = vst.msk [vmem:[%s6836_s23 + $0x29c] sm:$0xf] %vm4863_vm4, %v4806_v9  ;;  %v3680_v39 = vadd.f32 %v3374_v31, %v666_v28  ;;  %v5519_v16 = vor.u32 %v6336_v54, %v5518_v4  ;;  %v6449_v9 = vld [vmem:[%s6620_s30 + $0x5f4] sm:$0xf]  ;;  %v5976_v31 = vld [vmem:[%s6620_s30 + $0x5f8] sm:$0xf0] }
 0x2a7   : > { %v4131_v40 = vld [vmem:[#allocation2 + $0x540] sm:$0xff]  ;;  %4921 = vst.msk [vmem:[%s6836_s23 + $0xe4] sm:$0xf] %vm4863_vm4, %v4696_v14  ;;  %v3570_v0 = vadd.f32 %v3099_v58, %v556_v56  ;;  %v3381_v11 = vpop.f32.mrf.mxu3  ;;  %v6338_v56 = vld [vmem:[%s6620_s30 + $0x274] sm:$0xf0]  ;;  %v559_v54 = vld [vmem:[#allocation2 + $0x1f0] sm:$0xff] }
 0x2a8   : > { %v4359_v42 = vadd.f32 %v7950_v27, %v4131_v40  ;;  %3905 = vst.msk [vmem:[#allocation2 + $0x548] sm:$0xff] %vm272_vm3, %v3680_v39  ;;  %v4021_v3 = vld [vmem:[#allocation2 + $0x1d0] sm:$0xff]  ;;  %6183 = vmatmul.msk.bf16.gmra.mxu1 %vm2029_vm2, %v5531_v5  ;;  %v5979_v40 = vor.u32 %v6449_v9, %v5976_v31 }
 0x2a9   : > { %v4249_v6 = vadd.f32 %v7950_v27, %v4021_v3  ;;  %3795 = vst.msk [vmem:[#allocation2 + $0x1d8] sm:$0xff] %vm272_vm3, %v3570_v0  ;;  %v8150_v29 = vpop.f32.mrf.mxu1  ;;  %v5974_v58 = vld [vmem:[%s6620_s30 + $0x5f0] sm:$0xf]  ;;  %v670_v0 = vld [vmem:[#allocation2 + $0x568] sm:$0xff] }
 0x2aa   : > { %v4583_v46 = vmax.f32 %v4359_v42, 0.0  ;;  %v5975_v7 = vor.u32 %v6450_v59, %v5974_v58 }
 0x2ab   : > { %v2807_v50 = vpop.f32.mrf.mxu2  ;;  %v4473_v44 = vmax.f32 %v4249_v6, 0.0 }
 0x2ac   : > { %v4807_v53 = vpack.c.bf16 %v4583_v46, %v4583_v46  ;;  %v3377_v45 = vadd.f32 %v3376_v37, %v2807_v50  ;;  %v2532_v2 = vpop.f32.mrf.mxu0  ;;  %v6339_v46 = vld [vmem:[%s6620_s30 + $0x284] sm:$0xf] }
 0x2ad   : > { %v4697_v23 = vpack.c.bf16 %v4473_v44, %v4473_v44  ;;  %v3102_v25 = vadd.f32 %v8118_v20, %v2532_v2 }
 0x2ae   : > { %5032 = vst.msk [vmem:[%s6836_s23 + $0x2a0] sm:$0xf] %vm4863_vm4, %v4807_v53  ;;  %v3681_v62 = vadd.f32 %v3377_v45, %v667_v49 }
 0x2af   : > { %v4132_v63 = vld [vmem:[#allocation2 + $0x548] sm:$0xff]  ;;  %4922 = vst.msk [vmem:[%s6836_s23 + $0xe8] sm:$0xf] %vm4863_vm4, %v4697_v23  ;;  %v3571_v28 = vadd.f32 %v3102_v25, %v557_v15  ;;  %2571 = vmatmul.bf16.gmra.mxu0 %v5519_v16  ;;  %v3383_v34 = vpop.f32.mrf.mxu3  ;;  %v671_v25 = vld [vmem:[#allocation2 + $0x570] sm:$0xff] }
 0x2b0   : > { %v4360_v1 = vadd.f32 %v7950_v27, %v4132_v63  ;;  %3906 = vst.msk [vmem:[#allocation2 + $0x550] sm:$0xff] %vm272_vm3, %v3681_v62  ;;  %v4022_v30 = vld [vmem:[#allocation2 + $0x1d8] sm:$0xff] }
 0x2b1   : > { %v4250_v33 = vadd.f32 %v7950_v27, %v4022_v30  ;;  %3796 = vst.msk [vmem:[#allocation2 + $0x1e0] sm:$0xff] %vm272_vm3, %v3571_v28  ;;  %v8166_v20 = vpop.f32.mrf.mxu1  ;;  %v560_v30 = vld [vmem:[#allocation2 + $0x1f8] sm:$0xff] }
 0x2b2   : > { %v4584_v13 = vmax.f32 %v4360_v1, 0.0 }
 0x2b3   : > { %v2809_v55 = vpop.f32.mrf.mxu2  ;;  %2851 = vmatmul.bf16.gmra.mxu2 %v5967_v22  ;;  %v4474_v36 = vmax.f32 %v4250_v33, 0.0 }
 0x2b4   : > { %v4808_v52 = vpack.c.bf16 %v4584_v13, %v4584_v13  ;;  %v3379_v17 = vadd.f32 %v3378_v47, %v2809_v55  ;;  %v2534_v24 = vpop.f32.mrf.mxu0  ;;  %v5536_v47 = vld [vmem:[%s6620_s30 + $0x288] sm:$0xf0]  ;;  %6239 = vmatmul.msk.bf16.gmra.mxu3 %vm2029_vm2, %v5979_v40 }
 0x2b5   : > { %v4698_v43 = vpack.c.bf16 %v4474_v36, %v4474_v36  ;;  %v3104_v35 = vadd.f32 %v8134_v21, %v2534_v24  ;;  %v5539_v45 = vor.u32 %v6339_v46, %v5536_v47  ;;  %v5526_v21 = vld [vmem:[%s6620_s30 + $0x270] sm:$0xf]  ;;  %v6452_v46 = vld [vmem:[%s6620_s30 + $0x604] sm:$0xf0] }
 0x2b6   : > { %5033 = vst.msk [vmem:[%s6836_s23 + $0x2a4] sm:$0xf] %vm4863_vm4, %v4808_v52  ;;  %v3682_v37 = vadd.f32 %v3379_v17, %v668_v12  ;;  %v5527_v3 = vor.u32 %v6338_v56, %v5526_v21  ;;  %v6451_v52 = vld [vmem:[%s6620_s30 + $0x604] sm:$0xf]  ;;  %v5984_v17 = vld [vmem:[%s6620_s30 + $0x608] sm:$0xf0] }
 0x2b7   : > { %v4133_v60 = vld [vmem:[#allocation2 + $0x550] sm:$0xff]  ;;  %4923 = vst.msk [vmem:[%s6836_s23 + $0xec] sm:$0xf] %vm4863_vm4, %v4698_v43  ;;  %v3572_v50 = vadd.f32 %v3104_v35, %v558_v32  ;;  %v3386_v62 = vpop.f32.mrf.mxu3  ;;  %v6340_v32 = vld [vmem:[%s6620_s30 + $0x284] sm:$0xf0]  ;;  %v561_v56 = vld [vmem:[#allocation2 + $0x200] sm:$0xff] }
 0x2b8   : > { %v4361_v19 = vadd.f32 %v7950_v27, %v4133_v60  ;;  %3907 = vst.msk [vmem:[#allocation2 + $0x558] sm:$0xff] %vm272_vm3, %v3682_v37  ;;  %v4023_v53 = vld [vmem:[#allocation2 + $0x1e0] sm:$0xff]  ;;  %6184 = vmatmul.msk.bf16.gmra.mxu1 %vm2029_vm2, %v5539_v45  ;;  %v5987_v60 = vor.u32 %v6451_v52, %v5984_v17 }
 0x2b9   : > { %v4251_v57 = vadd.f32 %v7950_v27, %v4023_v53  ;;  %3797 = vst.msk [vmem:[#allocation2 + $0x1e8] sm:$0xff] %vm272_vm3, %v3572_v50  ;;  %v8182_v14 = vpop.f32.mrf.mxu1  ;;  %v5982_v35 = vld [vmem:[%s6620_s30 + $0x600] sm:$0xf]  ;;  %v672_v50 = vld [vmem:[#allocation2 + $0x578] sm:$0xff] }
 0x2ba   : > { %v4585_v26 = vmax.f32 %v4361_v19, 0.0  ;;  %v5983_v58 = vor.u32 %v6452_v46, %v5982_v35 }
 0x2bb   : > { %v2812_v39 = vpop.f32.mrf.mxu2  ;;  %v4475_v63 = vmax.f32 %v4251_v57, 0.0 }
 0x2bc   : > { %v4809_v41 = vpack.c.bf16 %v4585_v26, %v4585_v26  ;;  %v3382_v42 = vadd.f32 %v3381_v11, %v2812_v39  ;;  %v2537_v6 = vpop.f32.mrf.mxu0  ;;  %v6341_v26 = vld [vmem:[%s6620_s30 + $0x294] sm:$0xf] }
 0x2bd   : > { %v4699_v8 = vpack.c.bf16 %v4475_v63, %v4475_v63  ;;  %v3107_v13 = vadd.f32 %v8150_v29, %v2537_v6 }
 0x2be   : > { %5034 = vst.msk [vmem:[%s6836_s23 + $0x2a8] sm:$0xf] %vm4863_vm4, %v4809_v41  ;;  %v3683_v48 = vadd.f32 %v3382_v42, %v669_v38 }
 0x2bf   : > { %v4134_v49 = vld [vmem:[#allocation2 + $0x558] sm:$0xff]  ;;  %4924 = vst.msk [vmem:[%s6836_s23 + $0xf0] sm:$0xf] %vm4863_vm4, %v4699_v8  ;;  %v3573_v12 = vadd.f32 %v3107_v13, %v559_v54  ;;  %2576 = vmatmul.bf16.gmra.mxu0 %v5527_v3  ;;  %v3388_v22 = vpop.f32.mrf.mxu3  ;;  %v673_v13 = vld [vmem:[#allocation2 + $0x580] sm:$0xff] }
 0x2c0   : > { %v4362_v51 = vadd.f32 %v7950_v27, %v4134_v49  ;;  %3908 = vst.msk [vmem:[#allocation2 + $0x560] sm:$0xff] %vm272_vm3, %v3683_v48  ;;  %v4024_v16 = vld [vmem:[#allocation2 + $0x1e8] sm:$0xff] }
 0x2c1   : > { %v4252_v15 = vadd.f32 %v7950_v27, %v4024_v16  ;;  %3798 = vst.msk [vmem:[#allocation2 + $0x1f0] sm:$0xff] %vm272_vm3, %v3573_v12  ;;  %v8198_v29 = vpop.f32.mrf.mxu1  ;;  %v562_v16 = vld [vmem:[#allocation2 + $0x208] sm:$0xff] }
 0x2c2   : > { %v4586_v61 = vmax.f32 %v4362_v51, 0.0 }
 0x2c3   : > { %v2814_v1 = vpop.f32.mrf.mxu2  ;;  %2856 = vmatmul.bf16.gmra.mxu2 %v5975_v7  ;;  %v4476_v23 = vmax.f32 %v4252_v15, 0.0 }
 0x2c4   : > { %v4810_v5 = vpack.c.bf16 %v4586_v61, %v4586_v61  ;;  %v3384_v4 = vadd.f32 %v3383_v34, %v2814_v1  ;;  %v2539_v9 = vpop.f32.mrf.mxu0  ;;  %v5544_v34 = vld [vmem:[%s6620_s30 + $0x298] sm:$0xf0]  ;;  %6240 = vmatmul.msk.bf16.gmra.mxu3 %vm2029_vm2, %v5987_v60 }
 0x2c5   : > { %v4700_v31 = vpack.c.bf16 %v4476_v23, %v4476_v23  ;;  %v3109_v33 = vadd.f32 %v8166_v20, %v2539_v9  ;;  %v5547_v42 = vor.u32 %v6341_v26, %v5544_v34  ;;  %v5534_v20 = vld [vmem:[%s6620_s30 + $0x280] sm:$0xf]  ;;  %v6454_v26 = vld [vmem:[%s6620_s30 + $0x614] sm:$0xf0] }
 0x2c6   : > { %5035 = vst.msk [vmem:[%s6836_s23 + $0x2ac] sm:$0xf] %vm4863_vm4, %v4810_v5  ;;  %v3684_v11 = vadd.f32 %v3384_v4, %v670_v0  ;;  %v5535_v53 = vor.u32 %v6340_v32, %v5534_v20  ;;  %v6453_v5 = vld [vmem:[%s6620_s30 + $0x614] sm:$0xf]  ;;  %v5992_v4 = vld [vmem:[%s6620_s30 + $0x618] sm:$0xf0] }
 0x2c7   : > { %v4135_v44 = vld [vmem:[#allocation2 + $0x560] sm:$0xff]  ;;  %4925 = vst.msk [vmem:[%s6836_s23 + $0xf4] sm:$0xf] %vm4863_vm4, %v4700_v31  ;;  %v3574_v39 = vadd.f32 %v3109_v33, %v560_v30  ;;  %v3391_v48 = vpop.f32.mrf.mxu3  ;;  %v6342_v30 = vld [vmem:[%s6620_s30 + $0x294] sm:$0xf0]  ;;  %v563_v32 = vld [vmem:[#allocation2 + $0x210] sm:$0xff] }
 0x2c8   : > { %v4363_v55 = vadd.f32 %v7950_v27, %v4135_v44  ;;  %3909 = vst.msk [vmem:[#allocation2 + $0x568] sm:$0xff] %vm272_vm3, %v3684_v11  ;;  %v4025_v41 = vld [vmem:[#allocation2 + $0x1f0] sm:$0xff]  ;;  %6185 = vmatmul.msk.bf16.gmra.mxu1 %vm2029_vm2, %v5547_v42  ;;  %v5995_v44 = vor.u32 %v6453_v5, %v5992_v4 }
 0x2c9   : > { %v4253_v24 = vadd.f32 %v7950_v27, %v4025_v41  ;;  %3799 = vst.msk [vmem:[#allocation2 + $0x1f8] sm:$0xff] %vm272_vm3, %v3574_v39  ;;  %v8214_v43 = vpop.f32.mrf.mxu1  ;;  %v5990_v33 = vld [vmem:[%s6620_s30 + $0x610] sm:$0xf]  ;;  %v674_v39 = vld [vmem:[#allocation2 + $0x588] sm:$0xff] }
 0x2ca   : > { %v4587_v2 = vmax.f32 %v4363_v55, 0.0  ;;  %v5991_v35 = vor.u32 %v6454_v26, %v5990_v33 }
 0x2cb   : > { %v2817_v37 = vpop.f32.mrf.mxu2  ;;  %v4477_v49 = vmax.f32 %v4253_v24, 0.0 }
 0x2cc   : > { %v4811_v28 = vpack.c.bf16 %v4587_v2, %v4587_v2  ;;  %v3387_v19 = vadd.f32 %v3386_v62, %v2817_v37  ;;  %v2542_v57 = vpop.f32.mrf.mxu0  ;;  %v6343_v2 = vld [vmem:[%s6620_s30 + $0x2a4] sm:$0xf] }
 0x2cd   : > { %v4701_v59 = vpack.c.bf16 %v4477_v49, %v4477_v49  ;;  %v3112_v61 = vadd.f32 %v8182_v14, %v2542_v57  ;;  %v8231_v14 = vld [vmem:[%s8893_s2] ss:$0 sm:$0xff] }
 0x2ce   : > { %5036 = vst.msk [vmem:[%s6836_s23 + $0x2b0] sm:$0xf] %vm4863_vm4, %v4811_v28  ;;  %v3685_v36 = vadd.f32 %v3387_v19, %v671_v25 }
 0x2cf   : > { %v4136_v38 = vld [vmem:[#allocation2 + $0x568] sm:$0xff]  ;;  %4926 = vst.msk [vmem:[%s6836_s23 + $0xf8] sm:$0xf] %vm4863_vm4, %v4701_v59  ;;  %v3575_v0 = vadd.f32 %v3112_v61, %v561_v56  ;;  %2581 = vmatmul.bf16.gmra.mxu0 %v5535_v53  ;;  %v3393_v7 = vpop.f32.mrf.mxu3  ;;  %v675_v61 = vld [vmem:[#allocation2 + $0x590] sm:$0xff] }
 0x2d0   : > { %v4364_v40 = vadd.f32 %v7950_v27, %v4136_v38  ;;  %3910 = vst.msk [vmem:[#allocation2 + $0x570] sm:$0xff] %vm272_vm3, %v3685_v36  ;;  %v4026_v3 = vld [vmem:[#allocation2 + $0x1f8] sm:$0xff] }
 0x2d1   : > { %v4254_v54 = vadd.f32 %v8231_v14, %v4026_v3  ;;  %3800 = vst.msk [vmem:[#allocation2 + $0x200] sm:$0xff] %vm272_vm3, %v3575_v0  ;;  %v8235_v6 = vpop.f32.mrf.mxu1  ;;  %v564_v3 = vld [vmem:[#allocation2 + $0x218] sm:$0xff] }
 0x2d2   : > { %v4588_v47 = vmax.f32 %v4364_v40, 0.0 }
 0x2d3   : > { %v2819_v51 = vpop.f32.mrf.mxu2  ;;  %2861 = vmatmul.bf16.gmra.mxu2 %v5983_v58  ;;  %v4478_v8 = vmax.f32 %v4254_v54, 0.0 }
 0x2d4   : > { %v4812_v45 = vpack.c.bf16 %v4588_v47, %v4588_v47  ;;  %v3389_v21 = vadd.f32 %v3388_v22, %v2819_v51  ;;  %v2544_v52 = vpop.f32.mrf.mxu0  ;;  %v5552_v22 = vld [vmem:[%s6620_s30 + $0x2a8] sm:$0xf0]  ;;  %6241 = vmatmul.msk.bf16.gmra.mxu3 %vm2029_vm2, %v5995_v44 }
 0x2d5   : > { %v4702_v17 = vpack.c.bf16 %v4478_v8, %v4478_v8  ;;  %v3114_v15 = vadd.f32 %v8198_v29, %v2544_v52  ;;  %v5555_v19 = vor.u32 %v6343_v2, %v5552_v22  ;;  %v5542_v29 = vld [vmem:[%s6620_s30 + $0x290] sm:$0xf]  ;;  %v6456_v2 = vld [vmem:[%s6620_s30 + $0x624] sm:$0xf0] }
 0x2d6   : > { %5037 = vst.msk [vmem:[%s6836_s23 + $0x2b4] sm:$0xf] %vm4863_vm4, %v4812_v45  ;;  %v3686_v62 = vadd.f32 %v3389_v21, %v672_v50  ;;  %v5543_v41 = vor.u32 %v6342_v30, %v5542_v29  ;;  %v6455_v45 = vld [vmem:[%s6620_s30 + $0x624] sm:$0xf]  ;;  %v6000_v21 = vld [vmem:[%s6620_s30 + $0x628] sm:$0xf0] }
 0x2d7   : > { %v4137_v63 = vld [vmem:[#allocation2 + $0x570] sm:$0xff]  ;;  %4927 = vst.msk [vmem:[%s6836_s23 + $0xfc] sm:$0xf] %vm4863_vm4, %v4702_v17  ;;  %v3576_v37 = vadd.f32 %v3114_v15, %v562_v16  ;;  %v3396_v36 = vpop.f32.mrf.mxu3  ;;  %v6344_v16 = vld [vmem:[%s6620_s30 + $0x2a4] sm:$0xf0]  ;;  %v565_v30 = vld [vmem:[#allocation2 + $0x220] sm:$0xff] }
 0x2d8   : > { %v4365_v1 = vadd.f32 %v7950_v27, %v4137_v63  ;;  %3911 = vst.msk [vmem:[#allocation2 + $0x578] sm:$0xff] %vm272_vm3, %v3686_v62  ;;  %v4027_v28 = vld [vmem:[#allocation2 + $0x200] sm:$0xff]  ;;  %6186 = vmatmul.msk.bf16.gmra.mxu1 %vm2029_vm2, %v5555_v19  ;;  %v6003_v63 = vor.u32 %v6455_v45, %v6000_v21 }
 0x2d9   : > { %v4255_v9 = vadd.f32 %v8231_v14, %v4027_v28  ;;  %3801 = vst.msk [vmem:[#allocation2 + $0x208] sm:$0xff] %vm272_vm3, %v3576_v37  ;;  %v8251_v31 = vpop.f32.mrf.mxu1  ;;  %v5998_v15 = vld [vmem:[%s6620_s30 + $0x620] sm:$0xf]  ;;  %v676_v37 = vld [vmem:[#allocation2 + $0x598] sm:$0xff] }
 0x2da   : > { %v4589_v27 = vmax.f32 %v4365_v1, 0.0  ;;  %v5999_v33 = vor.u32 %v6456_v2, %v5998_v15 }
 0x2db   : > { %v2822_v11 = vpop.f32.mrf.mxu2  ;;  %v4479_v38 = vmax.f32 %v4255_v9, 0.0 }
 0x2dc   : > { %v4813_v12 = vpack.c.bf16 %v4589_v27, %v4589_v27  ;;  %v3392_v55 = vadd.f32 %v3391_v48, %v2822_v11  ;;  %v2547_v24 = vpop.f32.mrf.mxu0  ;;  %v6345_v27 = vld [vmem:[%s6620_s30 + $0x2b4] sm:$0xf] }
 0x2dd   : > { %v4703_v46 = vpack.c.bf16 %v4479_v38, %v4479_v38  ;;  %v3117_v47 = vadd.f32 %v8214_v43, %v2547_v24 }
 0x2de   : > { %5038 = vst.msk [vmem:[%s6836_s23 + $0x2b8] sm:$0xf] %vm4863_vm4, %v4813_v12  ;;  %v3687_v23 = vadd.f32 %v3392_v55, %v673_v13 }
 0x2df   : > { %v4138_v25 = vld [vmem:[#allocation2 + $0x578] sm:$0xff]  ;;  %4928 = vst.msk [vmem:[%s6836_s23 + $0x100] sm:$0xf] %vm4863_vm4, %v4703_v46  ;;  %v3577_v50 = vadd.f32 %v3117_v47, %v563_v32  ;;  %2586 = vmatmul.bf16.gmra.mxu0 %v5543_v41  ;;  %v3398_v58 = vpop.f32.mrf.mxu3  ;;  %v677_v47 = vld [vmem:[#allocation2 + $0x5a0] sm:$0xff] }
 0x2e0   : > { %v4366_v60 = vadd.f32 %v8231_v14, %v4138_v25  ;;  %3912 = vst.msk [vmem:[#allocation2 + $0x580] sm:$0xff] %vm272_vm3, %v3687_v23  ;;  %v4028_v53 = vld [vmem:[#allocation2 + $0x208] sm:$0xff] }
 0x2e1   : > { %v4256_v56 = vadd.f32 %v8231_v14, %v4028_v53  ;;  %3802 = vst.msk [vmem:[#allocation2 + $0x210] sm:$0xff] %vm272_vm3, %v3577_v50  ;;  %v8267_v43 = vpop.f32.mrf.mxu1  ;;  %v566_v53 = vld [vmem:[#allocation2 + $0x228] sm:$0xff] }
 0x2e2   : > { %v4590_v34 = vmax.f32 %v4366_v60, 0.0 }
 0x2e3   : > { %v2824_v40 = vpop.f32.mrf.mxu2  ;;  %2866 = vmatmul.bf16.gmra.mxu2 %v5991_v35  ;;  %v4480_v59 = vmax.f32 %v4256_v56, 0.0 }
 0x2e4   : > { %v4814_v42 = vpack.c.bf16 %v4590_v34, %v4590_v34  ;;  %v3394_v20 = vadd.f32 %v3393_v7, %v2824_v40  ;;  %v2549_v5 = vpop.f32.mrf.mxu0  ;;  %v5560_v7 = vld [vmem:[%s6620_s30 + $0x2b8] sm:$0xf0]  ;;  %6242 = vmatmul.msk.bf16.gmra.mxu3 %vm2029_vm2, %v6003_v63 }
 0x2e5   : > { %v4704_v4 = vpack.c.bf16 %v4480_v59, %v4480_v59  ;;  %v3119_v54 = vadd.f32 %v8235_v6, %v2549_v5  ;;  %v5563_v55 = vor.u32 %v6345_v27, %v5560_v7  ;;  %v5550_v6 = vld [vmem:[%s6620_s30 + $0x2a0] sm:$0xf]  ;;  %v6458_v27 = vld [vmem:[%s6620_s30 + $0x634] sm:$0xf0] }
 0x2e6   : > { %5039 = vst.msk [vmem:[%s6836_s23 + $0x2bc] sm:$0xf] %vm4863_vm4, %v4814_v42  ;;  %v3688_v48 = vadd.f32 %v3394_v20, %v674_v39  ;;  %v5551_v28 = vor.u32 %v6344_v16, %v5550_v6  ;;  %v6457_v42 = vld [vmem:[%s6620_s30 + $0x634] sm:$0xf]  ;;  %v6008_v20 = vld [vmem:[%s6620_s30 + $0x638] sm:$0xf0] }
 0x2e7   : > { %v4139_v49 = vld [vmem:[#allocation2 + $0x580] sm:$0xff]  ;;  %4929 = vst.msk [vmem:[%s6836_s23 + $0x104] sm:$0xf] %vm4863_vm4, %v4704_v4  ;;  %v3578_v11 = vadd.f32 %v3119_v54, %v564_v3  ;;  %v3401_v23 = vpop.f32.mrf.mxu3  ;;  %v6346_v3 = vld [vmem:[%s6620_s30 + $0x2b4] sm:$0xf0]  ;;  %v567_v16 = vld [vmem:[#allocation2 + $0x230] sm:$0xff] }
 0x2e8   : > { %v4367_v51 = vadd.f32 %v8231_v14, %v4139_v49  ;;  %3913 = vst.msk [vmem:[#allocation2 + $0x588] sm:$0xff] %vm272_vm3, %v3688_v48  ;;  %v4029_v12 = vld [vmem:[#allocation2 + $0x210] sm:$0xff]  ;;  %6187 = vmatmul.msk.bf16.gmra.mxu1 %vm2029_vm2, %v5563_v55  ;;  %v6011_v49 = vor.u32 %v6457_v42, %v6008_v20 }
 0x2e9   : > { %v4257_v52 = vadd.f32 %v8231_v14, %v4029_v12  ;;  %3803 = vst.msk [vmem:[#allocation2 + $0x218] sm:$0xff] %vm272_vm3, %v3578_v11  ;;  %v8283_v17 = vpop.f32.mrf.mxu1  ;;  %v6006_v54 = vld [vmem:[%s6620_s30 + $0x630] sm:$0xf]  ;;  %v678_v11 = vld [vmem:[#allocation2 + $0x5a8] sm:$0xff] }
 0x2ea   : > { %v4591_v57 = vmax.f32 %v4367_v51, 0.0  ;;  %v6007_v15 = vor.u32 %v6458_v27, %v6006_v54 }
 0x2eb   : > { %v2827_v62 = vpop.f32.mrf.mxu2  ;;  %v4481_v25 = vmax.f32 %v4257_v52, 0.0 }
 0x2ec   : > { %v4815_v0 = vpack.c.bf16 %v4591_v57, %v4591_v57  ;;  %v3397_v1 = vadd.f32 %v3396_v36, %v2827_v62  ;;  %v2552_v9 = vpop.f32.mrf.mxu0  ;;  %v6347_v57 = vld [vmem:[%s6620_s30 + $0x2c4] sm:$0xf] }
 0x2ed   : > { %v4705_v26 = vpack.c.bf16 %v4481_v25, %v4481_v25  ;;  %v3122_v34 = vadd.f32 %v8251_v31, %v2552_v9 }
 0x2ee   : > { %5040 = vst.msk [vmem:[%s6836_s23 + $0x2c0] sm:$0xf] %vm4863_vm4, %v4815_v0  ;;  %v3689_v8 = vadd.f32 %v3397_v1, %v675_v61 }
 0x2ef   : > { %v4140_v13 = vld [vmem:[#allocation2 + $0x588] sm:$0xff]  ;;  %4930 = vst.msk [vmem:[%s6836_s23 + $0x108] sm:$0xf] %vm4863_vm4, %v4705_v26  ;;  %v3579_v39 = vadd.f32 %v3122_v34, %v565_v30  ;;  %2591 = vmatmul.bf16.gmra.mxu0 %v5551_v28  ;;  %v3403_v35 = vpop.f32.mrf.mxu3  ;;  %v679_v34 = vld [vmem:[#allocation2 + $0x5b0] sm:$0xff] }
 0x2f0   : > { %v4368_v44 = vadd.f32 %v8231_v14, %v4140_v13  ;;  %3914 = vst.msk [vmem:[#allocation2 + $0x590] sm:$0xff] %vm272_vm3, %v3689_v8  ;;  %v4030_v41 = vld [vmem:[#allocation2 + $0x218] sm:$0xff] }
 0x2f1   : > { %v4258_v32 = vadd.f32 %v8231_v14, %v4030_v41  ;;  %3804 = vst.msk [vmem:[#allocation2 + $0x220] sm:$0xff] %vm272_vm3, %v3579_v39  ;;  %v8299_v31 = vpop.f32.mrf.mxu1  ;;  %v568_v41 = vld [vmem:[#allocation2 + $0x238] sm:$0xff] }
 0x2f2   : > { %v4592_v22 = vmax.f32 %v4368_v44, 0.0 }
 0x2f3   : > { %v2829_v60 = vpop.f32.mrf.mxu2  ;;  %2871 = vmatmul.bf16.gmra.mxu2 %v5999_v33  ;;  %v4482_v46 = vmax.f32 %v4258_v32, 0.0 }
 0x2f4   : > { %v4816_v19 = vpack.c.bf16 %v4592_v22, %v4592_v22  ;;  %v3399_v29 = vadd.f32 %v3398_v58, %v2829_v60  ;;  %v2554_v45 = vpop.f32.mrf.mxu0  ;;  %v5568_v58 = vld [vmem:[%s6620_s30 + $0x2c8] sm:$0xf0]  ;;  %6243 = vmatmul.msk.bf16.gmra.mxu3 %vm2029_vm2, %v6011_v49 }
 0x2f5   : > { %v4706_v21 = vpack.c.bf16 %v4482_v46, %v4482_v46  ;;  %v3124_v56 = vadd.f32 %v8267_v43, %v2554_v45  ;;  %v5571_v1 = vor.u32 %v6347_v57, %v5568_v58  ;;  %v5558_v43 = vld [vmem:[%s6620_s30 + $0x2b0] sm:$0xf]  ;;  %v6460_v57 = vld [vmem:[%s6620_s30 + $0x644] sm:$0xf0] }
 0x2f6   : > { %5041 = vst.msk [vmem:[%s6836_s23 + $0x2c4] sm:$0xf] %vm4863_vm4, %v4816_v19  ;;  %v3690_v36 = vadd.f32 %v3399_v29, %v676_v37  ;;  %v5559_v12 = vor.u32 %v6346_v3, %v5558_v43  ;;  %v6459_v19 = vld [vmem:[%s6620_s30 + $0x644] sm:$0xf]  ;;  %v6016_v29 = vld [vmem:[%s6620_s30 + $0x648] sm:$0xf0] }
 0x2f7   : > { %v4141_v38 = vld [vmem:[#allocation2 + $0x590] sm:$0xff]  ;;  %4931 = vst.msk [vmem:[%s6836_s23 + $0x10c] sm:$0xf] %vm4863_vm4, %v4706_v21  ;;  %v3580_v62 = vadd.f32 %v3124_v56, %v566_v53  ;;  %v3406_v8 = vpop.f32.mrf.mxu3  ;;  %v6348_v53 = vld [vmem:[%s6620_s30 + $0x2c4] sm:$0xf0]  ;;  %v569_v3 = vld [vmem:[#allocation2 + $0x240] sm:$0xff] }
 0x2f8   : > { %v4369_v40 = vadd.f32 %v8231_v14, %v4141_v38  ;;  %3915 = vst.msk [vmem:[#allocation2 + $0x598] sm:$0xff] %vm272_vm3, %v3690_v36  ;;  %v4031_v0 = vld [vmem:[#allocation2 + $0x220] sm:$0xff]  ;;  %6188 = vmatmul.msk.bf16.gmra.mxu1 %vm2029_vm2, %v5571_v1  ;;  %v6019_v38 = vor.u32 %v6459_v19, %v6016_v29 }
 0x2f9   : > { %v4259_v5 = vadd.f32 %v8231_v14, %v4031_v0  ;;  %3805 = vst.msk [vmem:[#allocation2 + $0x228] sm:$0xff] %vm272_vm3, %v3580_v62  ;;  %v8315_v4 = vpop.f32.mrf.mxu1  ;;  %v6014_v56 = vld [vmem:[%s6620_s30 + $0x640] sm:$0xf]  ;;  %v680_v62 = vld [vmem:[#allocation2 + $0x5b8] sm:$0xff] }
 0x2fa   : > { %v4593_v24 = vmax.f32 %v4369_v40, 0.0  ;;  %v6015_v54 = vor.u32 %v6460_v57, %v6014_v56 }
 0x2fb   : > { %v2832_v48 = vpop.f32.mrf.mxu2  ;;  %v4483_v13 = vmax.f32 %v4259_v5, 0.0 }
 0x2fc   : > { %v4817_v50 = vpack.c.bf16 %v4593_v24, %v4593_v24  ;;  %v3402_v51 = vadd.f32 %v3401_v23, %v2832_v48  ;;  %v2557_v52 = vpop.f32.mrf.mxu0  ;;  %v6349_v24 = vld [vmem:[%s6620_s30 + $0x2d4] sm:$0xf] }
 0x2fd   : > { %v4707_v2 = vpack.c.bf16 %v4483_v13, %v4483_v13  ;;  %v3127_v22 = vadd.f32 %v8283_v17, %v2557_v52 }
 0x2fe   : > { %5042 = vst.msk [vmem:[%s6836_s23 + $0x2c8] sm:$0xf] %vm4863_vm4, %v4817_v50  ;;  %v3691_v59 = vadd.f32 %v3402_v51, %v677_v47 }
 0x2ff   : > { %v4142_v61 = vld [vmem:[#allocation2 + $0x598] sm:$0xff]  ;;  %4932 = vst.msk [vmem:[%s6836_s23 + $0x110] sm:$0xf] %vm4863_vm4, %v4707_v2  ;;  %v3581_v37 = vadd.f32 %v3127_v22, %v567_v16  ;;  %2596 = vmatmul.bf16.gmra.mxu0 %v5559_v12  ;;  %v3408_v33 = vpop.f32.mrf.mxu3  ;;  %v681_v22 = vld [vmem:[#allocation2 + $0x5c0] sm:$0xff] }
 0x300   : > { %v4370_v63 = vadd.f32 %v8231_v14, %v4142_v61  ;;  %3916 = vst.msk [vmem:[#allocation2 + $0x5a0] sm:$0xff] %vm272_vm3, %v3691_v59  ;;  %v4032_v28 = vld [vmem:[#allocation2 + $0x228] sm:$0xff] }
 0x301   : > { %v4260_v30 = vadd.f32 %v8231_v14, %v4032_v28  ;;  %3806 = vst.msk [vmem:[#allocation2 + $0x230] sm:$0xff] %vm272_vm3, %v3581_v37  ;;  %v8331_v17 = vpop.f32.mrf.mxu1  ;;  %v570_v28 = vld [vmem:[#allocation2 + $0x248] sm:$0xff] }
 0x302   : > { %v4594_v7 = vmax.f32 %v4370_v63, 0.0 }
 0x303   : > { %v2834_v44 = vpop.f32.mrf.mxu2  ;;  %2876 = vmatmul.bf16.gmra.mxu2 %v6007_v15  ;;  %v4484_v26 = vmax.f32 %v4260_v30, 0.0 }
 0x304   : > { %v4818_v55 = vpack.c.bf16 %v4594_v7, %v4594_v7  ;;  %v3404_v6 = vadd.f32 %v3403_v35, %v2834_v44  ;;  %v2559_v42 = vpop.f32.mrf.mxu0  ;;  %v5576_v35 = vld [vmem:[%s6620_s30 + $0x2d8] sm:$0xf0]  ;;  %6244 = vmatmul.msk.bf16.gmra.mxu3 %vm2029_vm2, %v6019_v38 }
 0x305   : > { %v4708_v20 = vpack.c.bf16 %v4484_v26, %v4484_v26  ;;  %v3129_v32 = vadd.f32 %v8299_v31, %v2559_v42  ;;  %v5579_v51 = vor.u32 %v6349_v24, %v5576_v35  ;;  %v5566_v31 = vld [vmem:[%s6620_s30 + $0x2c0] sm:$0xf]  ;;  %v6462_v24 = vld [vmem:[%s6620_s30 + $0x654] sm:$0xf0] }
 0x306   : > { %5043 = vst.msk [vmem:[%s6836_s23 + $0x2cc] sm:$0xf] %vm4863_vm4, %v4818_v55  ;;  %v3692_v23 = vadd.f32 %v3404_v6, %v678_v11  ;;  %v5567_v0 = vor.u32 %v6348_v53, %v5566_v31  ;;  %v6461_v55 = vld [vmem:[%s6620_s30 + $0x654] sm:$0xf]  ;;  %v6024_v6 = vld [vmem:[%s6620_s30 + $0x658] sm:$0xf0] }
 0x307   : > { %v4143_v25 = vld [vmem:[#allocation2 + $0x5a0] sm:$0xff]  ;;  %4933 = vst.msk [vmem:[%s6836_s23 + $0x114] sm:$0xf] %vm4863_vm4, %v4708_v20  ;;  %v3582_v48 = vadd.f32 %v3129_v32, %v568_v41  ;;  %v3411_v59 = vpop.f32.mrf.mxu3  ;;  %v6350_v41 = vld [vmem:[%s6620_s30 + $0x2d4] sm:$0xf0]  ;;  %v571_v53 = vld [vmem:[#allocation2 + $0x250] sm:$0xff] }
 0x308   : > { %v4371_v60 = vadd.f32 %v8231_v14, %v4143_v25  ;;  %3917 = vst.msk [vmem:[#allocation2 + $0x5a8] sm:$0xff] %vm272_vm3, %v3692_v23  ;;  %v4033_v50 = vld [vmem:[#allocation2 + $0x230] sm:$0xff]  ;;  %6189 = vmatmul.msk.bf16.gmra.mxu1 %vm2029_vm2, %v5579_v51  ;;  %v6027_v25 = vor.u32 %v6461_v55, %v6024_v6 }
 0x309   : > { %v4261_v45 = vadd.f32 %v8231_v14, %v4033_v50  ;;  %3807 = vst.msk [vmem:[#allocation2 + $0x238] sm:$0xff] %vm272_vm3, %v3582_v48  ;;  %v8347_v21 = vpop.f32.mrf.mxu1  ;;  %v6022_v32 = vld [vmem:[%s6620_s30 + $0x650] sm:$0xf]  ;;  %v682_v48 = vld [vmem:[#allocation2 + $0x5c8] sm:$0xff] }
 0x30a   : > { %v4595_v9 = vmax.f32 %v4371_v60, 0.0  ;;  %v6023_v56 = vor.u32 %v6462_v24, %v6022_v32 }
 0x30b   : > { %v2837_v36 = vpop.f32.mrf.mxu2  ;;  %v4485_v61 = vmax.f32 %v4261_v45, 0.0 }
 0x30c   : > { %v4819_v39 = vpack.c.bf16 %v4595_v9, %v4595_v9  ;;  %v3407_v40 = vadd.f32 %v3406_v8, %v2837_v36  ;;  %v2562_v5 = vpop.f32.mrf.mxu0  ;;  %v6351_v9 = vld [vmem:[%s6620_s30 + $0x2e4] sm:$0xf] }
 0x30d   : > { %v4709_v27 = vpack.c.bf16 %v4485_v61, %v4485_v61  ;;  %v3132_v7 = vadd.f32 %v8315_v4, %v2562_v5 }
 0x30e   : > { %5044 = vst.msk [vmem:[%s6836_s23 + $0x2d0] sm:$0xf] %vm4863_vm4, %v4819_v39  ;;  %v3693_v46 = vadd.f32 %v3407_v40, %v679_v34 }
 0x30f   : > { %v4144_v47 = vld [vmem:[#allocation2 + $0x5a8] sm:$0xff]  ;;  %4934 = vst.msk [vmem:[%s6836_s23 + $0x118] sm:$0xf] %vm4863_vm4, %v4709_v27  ;;  %v3583_v11 = vadd.f32 %v3132_v7, %v569_v3  ;;  %2601 = vmatmul.bf16.gmra.mxu0 %v5567_v0  ;;  %v3413_v15 = vpop.f32.mrf.mxu3  ;;  %v683_v7 = vld [vmem:[#allocation2 + $0x5d0] sm:$0xff] }
 0x310   : > { %v4372_v49 = vadd.f32 %v8231_v14, %v4144_v47  ;;  %3918 = vst.msk [vmem:[#allocation2 + $0x5b0] sm:$0xff] %vm272_vm3, %v3693_v46  ;;  %v4034_v12 = vld [vmem:[#allocation2 + $0x238] sm:$0xff] }
 0x311   : > { %v4262_v16 = vadd.f32 %v8231_v14, %v4034_v12  ;;  %3808 = vst.msk [vmem:[#allocation2 + $0x240] sm:$0xff] %vm272_vm3, %v3583_v11  ;;  %v8363_v4 = vpop.f32.mrf.mxu1  ;;  %v572_v12 = vld [vmem:[#allocation2 + $0x258] sm:$0xff] }
 0x312   : > { %v4596_v58 = vmax.f32 %v4372_v49, 0.0 }
 0x313   : > { %v2839_v63 = vpop.f32.mrf.mxu2  ;;  %2881 = vmatmul.bf16.gmra.mxu2 %v6015_v54  ;;  %v4486_v2 = vmax.f32 %v4262_v16, 0.0 }
 0x314   : > { %v4820_v1 = vpack.c.bf16 %v4596_v58, %v4596_v58  ;;  %v3409_v43 = vadd.f32 %v3408_v33, %v2839_v63  ;;  %v2564_v19 = vpop.f32.mrf.mxu0  ;;  %v5584_v33 = vld [vmem:[%s6620_s30 + $0x2e8] sm:$0xf0]  ;;  %6245 = vmatmul.msk.bf16.gmra.mxu3 %vm2029_vm2, %v6027_v25 }
 0x315   : > { %v4710_v29 = vpack.c.bf16 %v4486_v2, %v4486_v2  ;;  %v3134_v30 = vadd.f32 %v8331_v17, %v2564_v19  ;;  %v5587_v40 = vor.u32 %v6351_v9, %v5584_v33  ;;  %v5574_v17 = vld [vmem:[%s6620_s30 + $0x2d0] sm:$0xf]  ;;  %v6464_v9 = vld [vmem:[%s6620_s30 + $0x664] sm:$0xf0] }
 0x316   : > { %5045 = vst.msk [vmem:[%s6836_s23 + $0x2d4] sm:$0xf] %vm4863_vm4, %v4820_v1  ;;  %v3694_v8 = vadd.f32 %v3409_v43, %v680_v62  ;;  %v5575_v50 = vor.u32 %v6350_v41, %v5574_v17  ;;  %v6463_v1 = vld [vmem:[%s6620_s30 + $0x664] sm:$0xf]  ;;  %v6032_v43 = vld [vmem:[%s6620_s30 + $0x668] sm:$0xf0] }
 0x317   : > { %v4145_v13 = vld [vmem:[#allocation2 + $0x5b0] sm:$0xff]  ;;  %4935 = vst.msk [vmem:[%s6836_s23 + $0x11c] sm:$0xf] %vm4863_vm4, %v4710_v29  ;;  %v3584_v36 = vadd.f32 %v3134_v30, %v570_v28  ;;  %v3416_v46 = vpop.f32.mrf.mxu3  ;;  %v6352_v28 = vld [vmem:[%s6620_s30 + $0x2e4] sm:$0xf0]  ;;  %v573_v41 = vld [vmem:[#allocation2 + $0x260] sm:$0xff] }
 0x318   : > { %v4373_v44 = vadd.f32 %v8231_v14, %v4145_v13  ;;  %3919 = vst.msk [vmem:[#allocation2 + $0x5b8] sm:$0xff] %vm272_vm3, %v3694_v8  ;;  %v4035_v39 = vld [vmem:[#allocation2 + $0x240] sm:$0xff]  ;;  %6190 = vmatmul.msk.bf16.gmra.mxu1 %vm2029_vm2, %v5587_v40  ;;  %v6035_v13 = vor.u32 %v6463_v1, %v6032_v43 }
 0x319   : > { %v4263_v42 = vadd.f32 %v8231_v14, %v4035_v39  ;;  %3809 = vst.msk [vmem:[#allocation2 + $0x248] sm:$0xff] %vm272_vm3, %v3584_v36  ;;  %v8379_v20 = vpop.f32.mrf.mxu1  ;;  %v6030_v30 = vld [vmem:[%s6620_s30 + $0x660] sm:$0xf]  ;;  %v684_v36 = vld [vmem:[#allocation2 + $0x5d8] sm:$0xff] }
 0x31a   : > { %v4597_v52 = vmax.f32 %v4373_v44, 0.0  ;;  %v6031_v32 = vor.u32 %v6464_v9, %v6030_v30 }
 0x31b   : > { %v2842_v23 = vpop.f32.mrf.mxu2  ;;  %v4487_v47 = vmax.f32 %v4263_v42, 0.0 }
 0x31c   : > { %v4821_v37 = vpack.c.bf16 %v4597_v52, %v4597_v52  ;;  %v3412_v60 = vadd.f32 %v3411_v59, %v2842_v23  ;;  %v2567_v45 = vpop.f32.mrf.mxu0  ;;  %v6353_v52 = vld [vmem:[%s6620_s30 + $0x2f4] sm:$0xf] }
 0x31d   : > { %v4711_v57 = vpack.c.bf16 %v4487_v47, %v4487_v47  ;;  %v3137_v58 = vadd.f32 %v8347_v21, %v2567_v45 }
 0x31e   : > { %5046 = vst.msk [vmem:[%s6836_s23 + $0x2d8] sm:$0xf] %vm4863_vm4, %v4821_v37  ;;  %v3695_v26 = vadd.f32 %v3412_v60, %v681_v22 }
 0x31f   : > { %v4146_v34 = vld [vmem:[#allocation2 + $0x5b8] sm:$0xff]  ;;  %4936 = vst.msk [vmem:[%s6836_s23 + $0x120] sm:$0xf] %vm4863_vm4, %v4711_v57  ;;  %v3585_v62 = vadd.f32 %v3137_v58, %v571_v53  ;;  %2606 = vmatmul.bf16.gmra.mxu0 %v5575_v50  ;;  %v3418_v54 = vpop.f32.mrf.mxu3  ;;  %v685_v58 = vld [vmem:[#allocation2 + $0x5e0] sm:$0xff] }
 0x320   : > { %v4374_v38 = vadd.f32 %v8231_v14, %v4146_v34  ;;  %3920 = vst.msk [vmem:[#allocation2 + $0x5c0] sm:$0xff] %vm272_vm3, %v3695_v26  ;;  %v4036_v0 = vld [vmem:[#allocation2 + $0x248] sm:$0xff] }
 0x321   : > { %v4264_v3 = vadd.f32 %v8231_v14, %v4036_v0  ;;  %3810 = vst.msk [vmem:[#allocation2 + $0x250] sm:$0xff] %vm272_vm3, %v3585_v62  ;;  %v8395_v21 = vpop.f32.mrf.mxu1  ;;  %v574_v0 = vld [vmem:[#allocation2 + $0x268] sm:$0xff] }
 0x322   : > { %v4598_v35 = vmax.f32 %v4374_v38, 0.0 }
 0x323   : > { %v2844_v49 = vpop.f32.mrf.mxu2  ;;  %2886 = vmatmul.bf16.gmra.mxu2 %v6023_v56  ;;  %v4488_v27 = vmax.f32 %v4264_v3, 0.0 }
 0x324   : > { %v4822_v51 = vpack.c.bf16 %v4598_v35, %v4598_v35  ;;  %v3414_v31 = vadd.f32 %v3413_v15, %v2844_v49  ;;  %v2569_v55 = vpop.f32.mrf.mxu0  ;;  %v5592_v15 = vld [vmem:[%s6620_s30 + $0x2f8] sm:$0xf0]  ;;  %6246 = vmatmul.msk.bf16.gmra.mxu3 %vm2029_vm2, %v6035_v13 }
 0x325   : > { %v4712_v6 = vpack.c.bf16 %v4488_v27, %v4488_v27  ;;  %v3139_v16 = vadd.f32 %v8363_v4, %v2569_v55  ;;  %v5595_v60 = vor.u32 %v6353_v52, %v5592_v15  ;;  %v5582_v4 = vld [vmem:[%s6620_s30 + $0x2e0] sm:$0xf]  ;;  %v6466_v52 = vld [vmem:[%s6620_s30 + $0x674] sm:$0xf0] }
 0x326   : > { %5047 = vst.msk [vmem:[%s6836_s23 + $0x2dc] sm:$0xf] %vm4863_vm4, %v4822_v51  ;;  %v3696_v59 = vadd.f32 %v3414_v31, %v682_v48  ;;  %v5583_v39 = vor.u32 %v6352_v28, %v5582_v4  ;;  %v6465_v51 = vld [vmem:[%s6620_s30 + $0x674] sm:$0xf]  ;;  %v6040_v31 = vld [vmem:[%s6620_s30 + $0x678] sm:$0xf0] }
 0x327   : > { %v4147_v61 = vld [vmem:[#allocation2 + $0x5c0] sm:$0xff]  ;;  %4937 = vst.msk [vmem:[%s6836_s23 + $0x124] sm:$0xf] %vm4863_vm4, %v4712_v6  ;;  %v3586_v23 = vadd.f32 %v3139_v16, %v572_v12  ;;  %v3421_v26 = vpop.f32.mrf.mxu3  ;;  %v6354_v12 = vld [vmem:[%s6620_s30 + $0x2f4] sm:$0xf0]  ;;  %v575_v28 = vld [vmem:[#allocation2 + $0x270] sm:$0xff] }
 0x328   : > { %v4375_v63 = vadd.f32 %v8231_v14, %v4147_v61  ;;  %3921 = vst.msk [vmem:[#allocation2 + $0x5c8] sm:$0xff] %vm272_vm3, %v3696_v59  ;;  %v4037_v37 = vld [vmem:[#allocation2 + $0x250] sm:$0xff]  ;;  %6191 = vmatmul.msk.bf16.gmra.mxu1 %vm2029_vm2, %v5595_v60  ;;  %v6043_v61 = vor.u32 %v6465_v51, %v6040_v31 }
 0x329   : > { %v4265_v19 = vadd.f32 %v8231_v14, %v4037_v37  ;;  %3811 = vst.msk [vmem:[#allocation2 + $0x258] sm:$0xff] %vm272_vm3, %v3586_v23  ;;  %v8411_v29 = vpop.f32.mrf.mxu1  ;;  %v6038_v16 = vld [vmem:[%s6620_s30 + $0x670] sm:$0xf]  ;;  %v686_v23 = vld [vmem:[#allocation2 + $0x5e8] sm:$0xff] }
 0x32a   : > { %v4599_v5 = vmax.f32 %v4375_v63, 0.0  ;;  %v6039_v30 = vor.u32 %v6466_v52, %v6038_v16 }
 0x32b   : > { %v2847_v8 = vpop.f32.mrf.mxu2  ;;  %v4489_v34 = vmax.f32 %v4265_v19, 0.0 }
 0x32c   : > { %v4823_v11 = vpack.c.bf16 %v4599_v5, %v4599_v5  ;;  %v3417_v44 = vadd.f32 %v3416_v46, %v2847_v8  ;;  %v2572_v42 = vpop.f32.mrf.mxu0  ;;  %v6355_v5 = vld [vmem:[%s6620_s30 + $0x304] sm:$0xf] }
 0x32d   : > { %v4713_v24 = vpack.c.bf16 %v4489_v34, %v4489_v34  ;;  %v3142_v35 = vadd.f32 %v8379_v20, %v2572_v42 }
 0x32e   : > { %5048 = vst.msk [vmem:[%s6836_s23 + $0x2e0] sm:$0xf] %vm4863_vm4, %v4823_v11  ;;  %v3697_v2 = vadd.f32 %v3417_v44, %v683_v7 }
 0x32f   : > { %v4148_v22 = vld [vmem:[#allocation2 + $0x5c8] sm:$0xff]  ;;  %4938 = vst.msk [vmem:[%s6836_s23 + $0x128] sm:$0xf] %vm4863_vm4, %v4713_v24  ;;  %v3587_v48 = vadd.f32 %v3142_v35, %v573_v41  ;;  %2611 = vmatmul.bf16.gmra.mxu0 %v5583_v39  ;;  %v3423_v56 = vpop.f32.mrf.mxu3  ;;  %v687_v35 = vld [vmem:[#allocation2 + $0x5f0] sm:$0xff] }
 0x330   : > { %v4376_v25 = vadd.f32 %v8231_v14, %v4148_v22  ;;  %3922 = vst.msk [vmem:[#allocation2 + $0x5d0] sm:$0xff] %vm272_vm3, %v3697_v2  ;;  %v4038_v50 = vld [vmem:[#allocation2 + $0x258] sm:$0xff] }
 0x331   : > { %v4266_v53 = vadd.f32 %v8231_v14, %v4038_v50  ;;  %3812 = vst.msk [vmem:[#allocation2 + $0x260] sm:$0xff] %vm272_vm3, %v3587_v48  ;;  %v8427_v20 = vpop.f32.mrf.mxu1  ;;  %v576_v50 = vld [vmem:[#allocation2 + $0x278] sm:$0xff] }
 0x332   : > { %v4600_v33 = vmax.f32 %v4376_v25, 0.0 }
 0x333   : > { %v2849_v38 = vpop.f32.mrf.mxu2  ;;  %2891 = vmatmul.bf16.gmra.mxu2 %v6031_v32  ;;  %v4490_v57 = vmax.f32 %v4266_v53, 0.0 }
 0x334   : > { %v4824_v40 = vpack.c.bf16 %v4600_v33, %v4600_v33  ;;  %v3419_v17 = vadd.f32 %v3418_v54, %v2849_v38  ;;  %v2574_v1 = vpop.f32.mrf.mxu0  ;;  %v5600_v54 = vld [vmem:[%s6620_s30 + $0x308] sm:$0xf0]  ;;  %6247 = vmatmul.msk.bf16.gmra.mxu3 %vm2029_vm2, %v6043_v61 }
 0x335   : > { %v4714_v43 = vpack.c.bf16 %v4490_v57, %v4490_v57  ;;  %v3144_v3 = vadd.f32 %v8395_v21, %v2574_v1  ;;  %v5603_v44 = vor.u32 %v6355_v5, %v5600_v54  ;;  %v5590_v21 = vld [vmem:[%s6620_s30 + $0x2f0] sm:$0xf]  ;;  %v6468_v5 = vld [vmem:[%s6620_s30 + $0x684] sm:$0xf0] }
 0x336   : > { %5049 = vst.msk [vmem:[%s6836_s23 + $0x2e4] sm:$0xf] %vm4863_vm4, %v4824_v40  ;;  %v3698_v46 = vadd.f32 %v3419_v17, %v684_v36  ;;  %v5591_v37 = vor.u32 %v6354_v12, %v5590_v21  ;;  %v6467_v40 = vld [vmem:[%s6620_s30 + $0x684] sm:$0xf]  ;;  %v6048_v17 = vld [vmem:[%s6620_s30 + $0x688] sm:$0xf0] }
 0x337   : > { %v4149_v47 = vld [vmem:[#allocation2 + $0x5d0] sm:$0xff]  ;;  %4939 = vst.msk [vmem:[%s6836_s23 + $0x12c] sm:$0xf] %vm4863_vm4, %v4714_v43  ;;  %v3588_v8 = vadd.f32 %v3144_v3, %v574_v0  ;;  %v3426_v2 = vpop.f32.mrf.mxu3  ;;  %v6356_v0 = vld [vmem:[%s6620_s30 + $0x304] sm:$0xf0]  ;;  %v577_v12 = vld [vmem:[#allocation2 + $0x280] sm:$0xff] }
 0x338   : > { %v4377_v49 = vadd.f32 %v8231_v14, %v4149_v47  ;;  %3923 = vst.msk [vmem:[#allocation2 + $0x5d8] sm:$0xff] %vm272_vm3, %v3698_v46  ;;  %v4039_v11 = vld [vmem:[#allocation2 + $0x260] sm:$0xff]  ;;  %6192 = vmatmul.msk.bf16.gmra.mxu1 %vm2029_vm2, %v5603_v44  ;;  %v6051_v47 = vor.u32 %v6467_v40, %v6048_v17 }
 0x339   : > { %v4267_v55 = vadd.f32 %v8231_v14, %v4039_v11  ;;  %3813 = vst.msk [vmem:[#allocation2 + $0x268] sm:$0xff] %vm272_vm3, %v3588_v8  ;;  %v8443_v6 = vpop.f32.mrf.mxu1  ;;  %v6046_v3 = vld [vmem:[%s6620_s30 + $0x680] sm:$0xf]  ;;  %v688_v8 = vld [vmem:[#allocation2 + $0x5f8] sm:$0xff] }
 0x33a   : > { %v4601_v45 = vmax.f32 %v4377_v49, 0.0  ;;  %v6047_v16 = vor.u32 %v6468_v5, %v6046_v3 }
 0x33b   : > { %v2852_v59 = vpop.f32.mrf.mxu2  ;;  %v4491_v22 = vmax.f32 %v4267_v55, 0.0 }
 0x33c   : > { %v4825_v62 = vpack.c.bf16 %v4601_v45, %v4601_v45  ;;  %v3422_v63 = vadd.f32 %v3421_v26, %v2852_v59  ;;  %v2577_v19 = vpop.f32.mrf.mxu0  ;;  %v6357_v45 = vld [vmem:[%s6620_s30 + $0x314] sm:$0xf] }
 0x33d   : > { %v4715_v9 = vpack.c.bf16 %v4491_v22, %v4491_v22  ;;  %v3147_v33 = vadd.f32 %v8411_v29, %v2577_v19 }
 0x33e   : > { %5050 = vst.msk [vmem:[%s6836_s23 + $0x2e8] sm:$0xf] %vm4863_vm4, %v4825_v62  ;;  %v3699_v27 = vadd.f32 %v3422_v63, %v685_v58 }
 0x33f   : > { %v4150_v7 = vld [vmem:[#allocation2 + $0x5d8] sm:$0xff]  ;;  %4940 = vst.msk [vmem:[%s6836_s23 + $0x130] sm:$0xf] %vm4863_vm4, %v4715_v9  ;;  %v3589_v36 = vadd.f32 %v3147_v33, %v575_v28  ;;  %2616 = vmatmul.bf16.gmra.mxu0 %v5591_v37  ;;  %v3428_v32 = vpop.f32.mrf.mxu3  ;;  %v689_v33 = vld [vmem:[#allocation2 + $0x600] sm:$0xff] }
 0x340   : > { %v4378_v13 = vadd.f32 %v8231_v14, %v4150_v7  ;;  %3924 = vst.msk [vmem:[#allocation2 + $0x5e0] sm:$0xff] %vm272_vm3, %v3699_v27  ;;  %v4040_v39 = vld [vmem:[#allocation2 + $0x268] sm:$0xff] }
 0x341   : > { %v4268_v41 = vadd.f32 %v8231_v14, %v4040_v39  ;;  %3814 = vst.msk [vmem:[#allocation2 + $0x270] sm:$0xff] %vm272_vm3, %v3589_v36  ;;  %v8459_v29 = vpop.f32.mrf.mxu1  ;;  %v578_v39 = vld [vmem:[#allocation2 + $0x288] sm:$0xff] }
 0x342   : > { %v4602_v15 = vmax.f32 %v4378_v13, 0.0 }
 0x343   : > { %v2854_v25 = vpop.f32.mrf.mxu2  ;;  %2896 = vmatmul.bf16.gmra.mxu2 %v6039_v30  ;;  %v4492_v24 = vmax.f32 %v4268_v41, 0.0 }
 0x344   : > { %v4826_v60 = vpack.c.bf16 %v4602_v15, %v4602_v15  ;;  %v3424_v4 = vadd.f32 %v3423_v56, %v2854_v25  ;;  %v2579_v51 = vpop.f32.mrf.mxu0  ;;  %v5608_v56 = vld [vmem:[%s6620_s30 + $0x318] sm:$0xf0]  ;;  %6248 = vmatmul.msk.bf16.gmra.mxu3 %vm2029_vm2, %v6051_v47 }
 0x345   : > { %v4716_v31 = vpack.c.bf16 %v4492_v24, %v4492_v24  ;;  %v3149_v53 = vadd.f32 %v8427_v20, %v2579_v51  ;;  %v5611_v63 = vor.u32 %v6357_v45, %v5608_v56  ;;  %v5598_v20 = vld [vmem:[%s6620_s30 + $0x300] sm:$0xf]  ;;  %v6470_v45 = vld [vmem:[%s6620_s30 + $0x694] sm:$0xf0] }
 0x346   : > { %5051 = vst.msk [vmem:[%s6836_s23 + $0x2ec] sm:$0xf] %vm4863_vm4, %v4826_v60  ;;  %v3700_v26 = vadd.f32 %v3424_v4, %v686_v23  ;;  %v5599_v11 = vor.u32 %v6356_v0, %v5598_v20  ;;  %v6469_v60 = vld [vmem:[%s6620_s30 + $0x694] sm:$0xf]  ;;  %v6056_v4 = vld [vmem:[%s6620_s30 + $0x698] sm:$0xf0] }
 0x347   : > { %v4151_v34 = vld [vmem:[#allocation2 + $0x5e0] sm:$0xff]  ;;  %4941 = vst.msk [vmem:[%s6836_s23 + $0x134] sm:$0xf] %vm4863_vm4, %v4716_v31  ;;  %v3590_v59 = vadd.f32 %v3149_v53, %v576_v50  ;;  %v3431_v27 = vpop.f32.mrf.mxu3  ;;  %v6358_v50 = vld [vmem:[%s6620_s30 + $0x314] sm:$0xf0]  ;;  %v579_v0 = vld [vmem:[#allocation2 + $0x290] sm:$0xff] }
 0x348   : > { %v4379_v38 = vadd.f32 %v8231_v14, %v4151_v34  ;;  %3925 = vst.msk [vmem:[#allocation2 + $0x5e8] sm:$0xff] %vm272_vm3, %v3700_v26  ;;  %v4041_v62 = vld [vmem:[#allocation2 + $0x270] sm:$0xff]  ;;  %6193 = vmatmul.msk.bf16.gmra.mxu1 %vm2029_vm2, %v5611_v63  ;;  %v6059_v34 = vor.u32 %v6469_v60, %v6056_v4 }
 0x349   : > { %v4269_v1 = vadd.f32 %v8231_v14, %v4041_v62  ;;  %3815 = vst.msk [vmem:[#allocation2 + $0x278] sm:$0xff] %vm272_vm3, %v3590_v59  ;;  %v8475_v43 = vpop.f32.mrf.mxu1  ;;  %v6054_v53 = vld [vmem:[%s6620_s30 + $0x690] sm:$0xf]  ;;  %v690_v59 = vld [vmem:[#allocation2 + $0x608] sm:$0xff] }
 0x34a   : > { %v4603_v42 = vmax.f32 %v4379_v38, 0.0 }
 0x34b   : > { %v2857_v46 = vpop.f32.mrf.mxu2  ;;  %v4493_v7 = vmax.f32 %v4269_v1, 0.0  ;;  %v6055_v1 = vor.u32 %v6470_v45, %v6054_v53 }
 0x34c   : > { %v4827_v48 = vpack.c.bf16 %v4603_v42, %v4603_v42  ;;  %v3427_v49 = vadd.f32 %v3426_v2, %v2857_v46  ;;  %v2582_v55 = vpop.f32.mrf.mxu0  ;;  %v6359_v42 = vld [vmem:[%s6620_s30 + $0x324] sm:$0xf] }
 0x34d   : > { %v4717_v52 = vpack.c.bf16 %v4493_v7, %v4493_v7  ;;  %v3152_v15 = vadd.f32 %v8443_v6, %v2582_v55 }
 0x34e   : > { %5052 = vst.msk [vmem:[%s6836_s23 + $0x2f0] sm:$0xf] %vm4863_vm4, %v4827_v48  ;;  %v3701_v57 = vadd.f32 %v3427_v49, %v687_v35 }
 0x34f   : > { %v4152_v58 = vld [vmem:[#allocation2 + $0x5e8] sm:$0xff]  ;;  %4942 = vst.msk [vmem:[%s6836_s23 + $0x138] sm:$0xf] %vm4863_vm4, %v4717_v52  ;;  %v3591_v23 = vadd.f32 %v3152_v15, %v577_v12  ;;  %2621 = vmatmul.bf16.gmra.mxu0 %v5599_v11  ;;  %v3433_v30 = vpop.f32.mrf.mxu3  ;;  %v691_v15 = vld [vmem:[#allocation2 + $0x610] sm:$0xff] }
 0x350   : > { %v4380_v61 = vadd.f32 %v8231_v14, %v4152_v58  ;;  %3926 = vst.msk [vmem:[#allocation2 + $0x5f0] sm:$0xff] %vm272_vm3, %v3701_v57  ;;  %v4042_v37 = vld [vmem:[#allocation2 + $0x278] sm:$0xff] }
 0x351   : > { %v4270_v28 = vadd.f32 %v8231_v14, %v4042_v37  ;;  %3816 = vst.msk [vmem:[#allocation2 + $0x280] sm:$0xff] %vm272_vm3, %v3591_v23  ;;  %v8491_v6 = vpop.f32.mrf.mxu1  ;;  %v580_v37 = vld [vmem:[#allocation2 + $0x298] sm:$0xff] }
 0x352   : > { %v4604_v54 = vmax.f32 %v4380_v61, 0.0 }
 0x353   : > { %v2859_v13 = vpop.f32.mrf.mxu2  ;;  %2901 = vmatmul.bf16.gmra.mxu2 %v6047_v16  ;;  %v4494_v9 = vmax.f32 %v4270_v28, 0.0 }
 0x354   : > { %v4828_v44 = vpack.c.bf16 %v4604_v54, %v4604_v54  ;;  %v3429_v21 = vadd.f32 %v3428_v32, %v2859_v13  ;;  %v2584_v40 = vpop.f32.mrf.mxu0  ;;  %v5616_v32 = vld [vmem:[%s6620_s30 + $0x328] sm:$0xf0]  ;;  %6249 = vmatmul.msk.bf16.gmra.mxu3 %vm2029_vm2, %v6059_v34 }
 0x355   : > { %v4718_v17 = vpack.c.bf16 %v4494_v9, %v4494_v9  ;;  %v3154_v41 = vadd.f32 %v8459_v29, %v2584_v40  ;;  %v5619_v49 = vor.u32 %v6359_v42, %v5616_v32  ;;  %v5606_v29 = vld [vmem:[%s6620_s30 + $0x310] sm:$0xf]  ;;  %v6472_v42 = vld [vmem:[%s6620_s30 + $0x6a4] sm:$0xf0] }
 0x356   : > { %5053 = vst.msk [vmem:[%s6836_s23 + $0x2f4] sm:$0xf] %vm4863_vm4, %v4828_v44  ;;  %v3702_v2 = vadd.f32 %v3429_v21, %v688_v8  ;;  %v5607_v62 = vor.u32 %v6358_v50, %v5606_v29  ;;  %v8520_v8 = vld [vmem:[%s8893_s2] ss:$0 sm:$0xff]  ;;  %v6064_v44 = vld [vmem:[%s6620_s30 + $0x6a8] sm:$0xf0] }
 0x357   : > { %v4153_v22 = vld [vmem:[#allocation2 + $0x5f0] sm:$0xff]  ;;  %4943 = vst.msk [vmem:[%s6836_s23 + $0x13c] sm:$0xf] %vm4863_vm4, %v4718_v17  ;;  %v3592_v46 = vadd.f32 %v3154_v41, %v578_v39  ;;  %v3436_v57 = vpop.f32.mrf.mxu3  ;;  %v6360_v39 = vld [vmem:[%s6620_s30 + $0x324] sm:$0xf0]  ;;  %v581_v50 = vld [vmem:[#allocation2 + $0x2a0] sm:$0xff] }
 0x358   : > { %v4381_v25 = vadd.f32 %v8231_v14, %v4153_v22  ;;  %3927 = vst.msk [vmem:[#allocation2 + $0x5f8] sm:$0xff] %vm272_vm3, %v3702_v2  ;;  %v4043_v48 = vld [vmem:[#allocation2 + $0x280] sm:$0xff]  ;;  %6194 = vmatmul.msk.bf16.gmra.mxu1 %vm2029_vm2, %v5619_v49 }
 0x359   : > { %v4271_v51 = vadd.f32 %v8231_v14, %v4043_v48  ;;  %3817 = vst.msk [vmem:[#allocation2 + $0x288] sm:$0xff] %vm272_vm3, %v3592_v46  ;;  %v8507_v31 = vpop.f32.mrf.mxu1  ;;  %v6062_v41 = vld [vmem:[%s6620_s30 + $0x6a0] sm:$0xf]  ;;  %v692_v46 = vld [vmem:[#allocation2 + $0x618] sm:$0xff] }
 0x35a   : > { %v4605_v19 = vmax.f32 %v4381_v25, 0.0  ;;  %v6063_v53 = vor.u32 %v6472_v42, %v6062_v41 }
 0x35b   : > { %v2862_v26 = vpop.f32.mrf.mxu2  ;;  %v4495_v58 = vmax.f32 %v4271_v51, 0.0 }
 0x35c   : > { %v4829_v36 = vpack.c.bf16 %v4605_v19, %v4605_v19  ;;  %v3432_v38 = vadd.f32 %v3431_v27, %v2862_v26  ;;  %v6361_v19 = vld [vmem:[%s6620_s30 + $0x334] sm:$0xf] }
 0x35d   : > { %v4719_v3 = vpack.c.bf16 %v4495_v58, %v4495_v58 }
 0x35e   : > { %5054 = vst.msk [vmem:[%s6836_s23 + $0x2f8] sm:$0xf] %vm4863_vm4, %v4829_v36  ;;  %v3703_v24 = vadd.f32 %v3432_v38, %v689_v33 }
 0x35f   : > { %v4154_v35 = vld [vmem:[#allocation2 + $0x5f8] sm:$0xff]  ;;  %4944 = vst.msk [vmem:[%s6836_s23 + $0x140] sm:$0xf] %vm4863_vm4, %v4719_v3  ;;  %2626 = vmatmul.bf16.gmra.mxu0 %v5607_v62  ;;  %v3438_v16 = vpop.f32.mrf.mxu3 }
 0x360   : > { %v4382_v47 = vadd.f32 %v8231_v14, %v4154_v35  ;;  %3928 = vst.msk [vmem:[#allocation2 + $0x600] sm:$0xff] %vm272_vm3, %v3703_v24  ;;  %v2587_v14 = vpop.f32.mrf.mxu0  ;;  %v4044_v11 = vld [vmem:[#allocation2 + $0x288] sm:$0xff] }
 0x361   : > { %v3157_v5 = vadd.f32 %v8475_v43, %v2587_v14  ;;  %v6471_v43 = vld [vmem:[%s6620_s30 + $0x6a4] sm:$0xf]  ;;  %v4272_v21 = vadd.f32 %v8520_v8, %v4044_v11  ;;  %v8528_v12 = vpop.f32.mrf.mxu1  ;;  %v582_v11 = vld [vmem:[#allocation2 + $0x2a8] sm:$0xff] }
 0x362   : > { %v4606_v56 = vmax.f32 %v4382_v47, 0.0  ;;  %v6067_v22 = vor.u32 %v6471_v43, %v6064_v44 }
 0x363   : > { %v2864_v61 = vpop.f32.mrf.mxu2  ;;  %v3593_v7 = vadd.f32 %v3157_v5, %v579_v0  ;;  %2906 = vmatmul.bf16.gmra.mxu2 %v6055_v1  ;;  %v4496_v52 = vmax.f32 %v4272_v21, 0.0  ;;  %v693_v5 = vld [vmem:[#allocation2 + $0x620] sm:$0xff] }
 0x364   : > { %v4830_v63 = vpack.c.bf16 %v4606_v56, %v4606_v56  ;;  %v3434_v20 = vadd.f32 %v3433_v30, %v2864_v61  ;;  %v5624_v30 = vld [vmem:[%s6620_s30 + $0x338] sm:$0xf0]  ;;  %6250 = vmatmul.msk.bf16.gmra.mxu3 %vm2029_vm2, %v6067_v22 }
 0x365   : > { %3818 = vst.msk [vmem:[#allocation2 + $0x290] sm:$0xff] %vm272_vm3, %v3593_v7  ;;  %v4720_v4 = vpack.c.bf16 %v4496_v52, %v4496_v52  ;;  %v5627_v38 = vor.u32 %v6361_v19, %v5624_v30  ;;  %v6474_v19 = vld [vmem:[%s6620_s30 + $0x6b4] sm:$0xf0] }
 0x366   : > { %5055 = vst.msk [vmem:[%s6836_s23 + $0x2fc] sm:$0xf] %vm4863_vm4, %v4830_v63  ;;  %v3704_v54 = vadd.f32 %v3434_v20, %v690_v59  ;;  %v6473_v63 = vld [vmem:[%s6620_s30 + $0x6b4] sm:$0xf]  ;;  %v6072_v20 = vld [vmem:[%s6620_s30 + $0x6b8] sm:$0xf0] }
 0x367   : > { %v4155_v27 = vld [vmem:[#allocation2 + $0x600] sm:$0xff]  ;;  %4945 = vst.msk [vmem:[%s6836_s23 + $0x144] sm:$0xf] %vm4863_vm4, %v4720_v4  ;;  %v3441_v24 = vpop.f32.mrf.mxu3 }
 0x368   : > { %v4383_v13 = vadd.f32 %v8520_v8, %v4155_v27  ;;  %3929 = vst.msk [vmem:[#allocation2 + $0x608] sm:$0xff] %vm272_vm3, %v3704_v54  ;;  %v2589_v60 = vpop.f32.mrf.mxu0  ;;  %6195 = vmatmul.msk.bf16.gmra.mxu1 %vm2029_vm2, %v5627_v38  ;;  %v6075_v27 = vor.u32 %v6473_v63, %v6072_v20 }
 0x369   : > { %v3159_v28 = vadd.f32 %v8491_v6, %v2589_v60  ;;  %v5614_v6 = vld [vmem:[%s6620_s30 + $0x320] sm:$0xf]  ;;  %v8544_v17 = vpop.f32.mrf.mxu1 }
 0x36a   : > { %v4607_v55 = vmax.f32 %v4383_v13, 0.0  ;;  %v5615_v48 = vor.u32 %v6360_v39, %v5614_v6  ;;  %v583_v39 = vld [vmem:[#allocation2 + $0x2b0] sm:$0xff] }
 0x36b   : > { %v2867_v2 = vpop.f32.mrf.mxu2  ;;  %v3594_v26 = vadd.f32 %v3159_v28, %v580_v37  ;;  %v6362_v37 = vld [vmem:[%s6620_s30 + $0x334] sm:$0xf0]  ;;  %v6070_v28 = vld [vmem:[%s6620_s30 + $0x6b0] sm:$0xf] }
 0x36c   : > { %v4831_v23 = vpack.c.bf16 %v4607_v55, %v4607_v55  ;;  %v3437_v25 = vadd.f32 %v3436_v57, %v2867_v2  ;;  %v4045_v36 = vld [vmem:[#allocation2 + $0x290] sm:$0xff]  ;;  %v6363_v55 = vld [vmem:[%s6620_s30 + $0x344] sm:$0xf]  ;;  %v6071_v41 = vor.u32 %v6474_v19, %v6070_v28 }
 0x36d   : > { %v4273_v40 = vadd.f32 %v8520_v8, %v4045_v36  ;;  %3819 = vst.msk [vmem:[#allocation2 + $0x298] sm:$0xff] %vm272_vm3, %v3594_v26  ;;  %v694_v26 = vld [vmem:[#allocation2 + $0x628] sm:$0xff] }
 0x36e   : > { %5056 = vst.msk [vmem:[%s6836_s23 + $0x300] sm:$0xf] %vm4863_vm4, %v4831_v23  ;;  %v3705_v9 = vadd.f32 %v3437_v25, %v691_v15 }
 0x36f   : > { %v4156_v33 = vld [vmem:[#allocation2 + $0x608] sm:$0xff]  ;;  %v4497_v35 = vmax.f32 %v4273_v40, 0.0  ;;  %2631 = vmatmul.bf16.gmra.mxu0 %v5615_v48  ;;  %v3443_v1 = vpop.f32.mrf.mxu3 }
 0x370   : > { %v4384_v34 = vadd.f32 %v8520_v8, %v4156_v33  ;;  %3930 = vst.msk [vmem:[#allocation2 + $0x610] sm:$0xff] %vm272_vm3, %v3705_v9  ;;  %v2592_v51 = vpop.f32.mrf.mxu0 }
 0x371   : > { %v4721_v45 = vpack.c.bf16 %v4497_v35, %v4497_v35  ;;  %v3162_v56 = vadd.f32 %v8507_v31, %v2592_v51  ;;  %v8560_v31 = vpop.f32.mrf.mxu1 }
 0x372   : > { %v4608_v32 = vmax.f32 %v4384_v34, 0.0 }
 0x373   : > { %v2869_v47 = vpop.f32.mrf.mxu2  ;;  %4946 = vst.msk [vmem:[%s6836_s23 + $0x148] sm:$0xf] %vm4863_vm4, %v4721_v45  ;;  %v3595_v59 = vadd.f32 %v3162_v56, %v581_v50  ;;  %2911 = vmatmul.bf16.gmra.mxu2 %v6063_v53  ;;  %v695_v56 = vld [vmem:[#allocation2 + $0x630] sm:$0xff] }
 0x374   : > { %v4832_v49 = vpack.c.bf16 %v4608_v32, %v4608_v32  ;;  %v3439_v29 = vadd.f32 %v3438_v16, %v2869_v47  ;;  %v4046_v62 = vld [vmem:[#allocation2 + $0x298] sm:$0xff]  ;;  %v5632_v16 = vld [vmem:[%s6620_s30 + $0x348] sm:$0xf0]  ;;  %6251 = vmatmul.msk.bf16.gmra.mxu3 %vm2029_vm2, %v6075_v27 }
 0x375   : > { %v4274_v0 = vadd.f32 %v8520_v8, %v4046_v62  ;;  %3820 = vst.msk [vmem:[#allocation2 + $0x2a0] sm:$0xff] %vm272_vm3, %v3595_v59  ;;  %v5635_v25 = vor.u32 %v6363_v55, %v5632_v16  ;;  %v584_v62 = vld [vmem:[#allocation2 + $0x2b8] sm:$0xff]  ;;  %v6476_v55 = vld [vmem:[%s6620_s30 + $0x6c4] sm:$0xf0] }
 0x376   : > { %5057 = vst.msk [vmem:[%s6836_s23 + $0x304] sm:$0xf] %vm4863_vm4, %v4832_v49  ;;  %v3706_v57 = vadd.f32 %v3439_v29, %v692_v46  ;;  %v6475_v49 = vld [vmem:[%s6620_s30 + $0x6c4] sm:$0xf]  ;;  %v6080_v29 = vld [vmem:[%s6620_s30 + $0x6c8] sm:$0xf0] }
 0x377   : > { %v4157_v58 = vld [vmem:[#allocation2 + $0x610] sm:$0xff]  ;;  %v4498_v3 = vmax.f32 %v4274_v0, 0.0  ;;  %v3446_v9 = vpop.f32.mrf.mxu3 }
 0x378   : > { %v4385_v61 = vadd.f32 %v8520_v8, %v4157_v58  ;;  %3931 = vst.msk [vmem:[#allocation2 + $0x618] sm:$0xff] %vm272_vm3, %v3706_v57  ;;  %v2594_v43 = vpop.f32.mrf.mxu0  ;;  %6196 = vmatmul.msk.bf16.gmra.mxu1 %vm2029_vm2, %v5635_v25  ;;  %v6083_v58 = vor.u32 %v6475_v49, %v6080_v29 }
 0x379   : > { %v4722_v44 = vpack.c.bf16 %v4498_v3, %v4498_v3  ;;  %v3164_v21 = vadd.f32 %v8528_v12, %v2594_v43  ;;  %v5622_v12 = vld [vmem:[%s6620_s30 + $0x330] sm:$0xf]  ;;  %v8576_v4 = vpop.f32.mrf.mxu1 }
 0x37a   : > { %v4609_v14 = vmax.f32 %v4385_v61, 0.0  ;;  %v5623_v36 = vor.u32 %v6362_v37, %v5622_v12  ;;  %v585_v37 = vld [vmem:[#allocation2 + $0x2c0] sm:$0xff] }
 0x37b   : > { %v2872_v54 = vpop.f32.mrf.mxu2  ;;  %4947 = vst.msk [vmem:[%s6836_s23 + $0x14c] sm:$0xf] %vm4863_vm4, %v4722_v44  ;;  %v3596_v2 = vadd.f32 %v3164_v21, %v582_v11  ;;  %v6364_v11 = vld [vmem:[%s6620_s30 + $0x344] sm:$0xf0]  ;;  %v6078_v21 = vld [vmem:[%s6620_s30 + $0x6c0] sm:$0xf] }
 0x37c   : > { %v4833_v7 = vpack.c.bf16 %v4609_v14, %v4609_v14  ;;  %v3442_v13 = vadd.f32 %v3441_v24, %v2872_v54  ;;  %v4047_v23 = vld [vmem:[#allocation2 + $0x2a0] sm:$0xff]  ;;  %v6365_v14 = vld [vmem:[%s6620_s30 + $0x354] sm:$0xf]  ;;  %v6079_v28 = vor.u32 %v6476_v55, %v6078_v21 }
 0x37d   : > { %v4275_v60 = vadd.f32 %v8520_v8, %v4047_v23  ;;  %3821 = vst.msk [vmem:[#allocation2 + $0x2a8] sm:$0xff] %vm272_vm3, %v3596_v2  ;;  %v696_v2 = vld [vmem:[#allocation2 + $0x638] sm:$0xff] }
 0x37e   : > { %5058 = vst.msk [vmem:[%s6836_s23 + $0x308] sm:$0xf] %vm4863_vm4, %v4833_v7  ;;  %v3707_v52 = vadd.f32 %v3442_v13, %v693_v5 }
 0x37f   : > { %v4158_v15 = vld [vmem:[#allocation2 + $0x618] sm:$0xff]  ;;  %v4499_v33 = vmax.f32 %v4275_v60, 0.0  ;;  %2636 = vmatmul.bf16.gmra.mxu0 %v5623_v36  ;;  %v3448_v53 = vpop.f32.mrf.mxu3 }
 0x380   : > { %v4386_v22 = vadd.f32 %v8520_v8, %v4158_v15  ;;  %3932 = vst.msk [vmem:[#allocation2 + $0x620] sm:$0xff] %vm272_vm3, %v3707_v52  ;;  %v2597_v40 = vpop.f32.mrf.mxu0 }
 0x381   : > { %v4723_v42 = vpack.c.bf16 %v4499_v33, %v4499_v33  ;;  %v3167_v32 = vadd.f32 %v8544_v17, %v2597_v40  ;;  %v8592_v17 = vpop.f32.mrf.mxu1 }
 0x382   : > { %v4610_v30 = vmax.f32 %v4386_v22, 0.0 }
 0x383   : > { %v2874_v34 = vpop.f32.mrf.mxu2  ;;  %4948 = vst.msk [vmem:[%s6836_s23 + $0x150] sm:$0xf] %vm4863_vm4, %v4723_v42  ;;  %v3597_v46 = vadd.f32 %v3167_v32, %v583_v39  ;;  %2916 = vmatmul.bf16.gmra.mxu2 %v6071_v41  ;;  %v697_v32 = vld [vmem:[#allocation2 + $0x640] sm:$0xff] }
 0x384   : > { %v4834_v38 = vpack.c.bf16 %v4610_v30, %v4610_v30  ;;  %v3444_v6 = vadd.f32 %v3443_v1, %v2874_v34  ;;  %v4048_v48 = vld [vmem:[#allocation2 + $0x2a8] sm:$0xff]  ;;  %v5640_v1 = vld [vmem:[%s6620_s30 + $0x358] sm:$0xf0]  ;;  %6252 = vmatmul.msk.bf16.gmra.mxu3 %vm2029_vm2, %v6083_v58 }
 0x385   : > { %v4276_v50 = vadd.f32 %v8520_v8, %v4048_v48  ;;  %3822 = vst.msk [vmem:[#allocation2 + $0x2b0] sm:$0xff] %vm272_vm3, %v3597_v46  ;;  %v5643_v13 = vor.u32 %v6365_v14, %v5640_v1  ;;  %v586_v48 = vld [vmem:[#allocation2 + $0x2c8] sm:$0xff]  ;;  %v6478_v14 = vld [vmem:[%s6620_s30 + $0x6d4] sm:$0xf0] }
 0x386   : > { %5059 = vst.msk [vmem:[%s6836_s23 + $0x30c] sm:$0xf] %vm4863_vm4, %v4834_v38  ;;  %v3708_v24 = vadd.f32 %v3444_v6, %v694_v26  ;;  %v6477_v38 = vld [vmem:[%s6620_s30 + $0x6d4] sm:$0xf]  ;;  %v6088_v6 = vld [vmem:[%s6620_s30 + $0x6d8] sm:$0xf0] }
 0x387   : > { %v4159_v35 = vld [vmem:[#allocation2 + $0x620] sm:$0xff]  ;;  %v4500_v45 = vmax.f32 %v4276_v50, 0.0  ;;  %v3451_v52 = vpop.f32.mrf.mxu3 }
 0x388   : > { %v4387_v47 = vadd.f32 %v8520_v8, %v4159_v35  ;;  %3933 = vst.msk [vmem:[#allocation2 + $0x628] sm:$0xff] %vm272_vm3, %v3708_v24  ;;  %v2599_v63 = vpop.f32.mrf.mxu0  ;;  %6197 = vmatmul.msk.bf16.gmra.mxu1 %vm2029_vm2, %v5643_v13  ;;  %v6091_v35 = vor.u32 %v6477_v38, %v6088_v6 }
 0x389   : > { %v4724_v20 = vpack.c.bf16 %v4500_v45, %v4500_v45  ;;  %v3169_v0 = vadd.f32 %v8560_v31, %v2599_v63  ;;  %v5630_v31 = vld [vmem:[%s6620_s30 + $0x340] sm:$0xf]  ;;  %v8608_v44 = vpop.f32.mrf.mxu1 }
 0x38a   : > { %v4611_v51 = vmax.f32 %v4387_v47, 0.0  ;;  %v5631_v23 = vor.u32 %v6364_v11, %v5630_v31  ;;  %v587_v11 = vld [vmem:[#allocation2 + $0x2d0] sm:$0xff] }
 0x38b   : > { %v2877_v57 = vpop.f32.mrf.mxu2  ;;  %4949 = vst.msk [vmem:[%s6836_s23 + $0x154] sm:$0xf] %vm4863_vm4, %v4724_v20  ;;  %v3598_v54 = vadd.f32 %v3169_v0, %v584_v62  ;;  %v6366_v62 = vld [vmem:[%s6620_s30 + $0x354] sm:$0xf0]  ;;  %v6086_v0 = vld [vmem:[%s6620_s30 + $0x6d0] sm:$0xf] }
 0x38c   : > { %v4835_v59 = vpack.c.bf16 %v4611_v51, %v4611_v51  ;;  %v3447_v61 = vadd.f32 %v3446_v9, %v2877_v57  ;;  %v4049_v7 = vld [vmem:[#allocation2 + $0x2b0] sm:$0xff]  ;;  %v6367_v51 = vld [vmem:[%s6620_s30 + $0x364] sm:$0xf]  ;;  %v6087_v21 = vor.u32 %v6478_v14, %v6086_v0 }
 0x38d   : > { %v4277_v43 = vadd.f32 %v8520_v8, %v4049_v7  ;;  %3823 = vst.msk [vmem:[#allocation2 + $0x2b8] sm:$0xff] %vm272_vm3, %v3598_v54  ;;  %v698_v54 = vld [vmem:[#allocation2 + $0x648] sm:$0xff] }
 0x38e   : > { %5060 = vst.msk [vmem:[%s6836_s23 + $0x310] sm:$0xf] %vm4863_vm4, %v4835_v59  ;;  %v3709_v3 = vadd.f32 %v3447_v61, %v695_v56 }
 0x38f   : > { %v4160_v5 = vld [vmem:[#allocation2 + $0x628] sm:$0xff]  ;;  %v4501_v15 = vmax.f32 %v4277_v43, 0.0  ;;  %2641 = vmatmul.bf16.gmra.mxu0 %v5631_v23  ;;  %v3453_v41 = vpop.f32.mrf.mxu3 }
 0x390   : > { %v4388_v27 = vadd.f32 %v8520_v8, %v4160_v5  ;;  %3934 = vst.msk [vmem:[#allocation2 + $0x630] sm:$0xff] %vm272_vm3, %v3709_v3  ;;  %v2602_v60 = vpop.f32.mrf.mxu0 }
 0x391   : > { %v4725_v19 = vpack.c.bf16 %v4501_v15, %v4501_v15  ;;  %v3172_v30 = vadd.f32 %v8576_v4, %v2602_v60  ;;  %v8624_v4 = vpop.f32.mrf.mxu1 }
 0x392   : > { %v4612_v16 = vmax.f32 %v4388_v27, 0.0 }
 0x393   : > { %v2879_v22 = vpop.f32.mrf.mxu2  ;;  %4950 = vst.msk [vmem:[%s6836_s23 + $0x158] sm:$0xf] %vm4863_vm4, %v4725_v19  ;;  %v3599_v26 = vadd.f32 %v3172_v30, %v585_v37  ;;  %2921 = vmatmul.bf16.gmra.mxu2 %v6079_v28  ;;  %v699_v30 = vld [vmem:[#allocation2 + $0x650] sm:$0xff] }
 0x394   : > { %v4836_v25 = vpack.c.bf16 %v4612_v16, %v4612_v16  ;;  %v3449_v12 = vadd.f32 %v3448_v53, %v2879_v22  ;;  %v4050_v36 = vld [vmem:[#allocation2 + $0x2b8] sm:$0xff]  ;;  %v5648_v53 = vld [vmem:[%s6620_s30 + $0x368] sm:$0xf0]  ;;  %6253 = vmatmul.msk.bf16.gmra.mxu3 %vm2029_vm2, %v6091_v35 }
 0x395   : > { %v4278_v39 = vadd.f32 %v8520_v8, %v4050_v36  ;;  %3824 = vst.msk [vmem:[#allocation2 + $0x2c0] sm:$0xff] %vm272_vm3, %v3599_v26  ;;  %v5651_v61 = vor.u32 %v6367_v51, %v5648_v53  ;;  %v588_v36 = vld [vmem:[#allocation2 + $0x2d8] sm:$0xff]  ;;  %v6480_v51 = vld [vmem:[%s6620_s30 + $0x6e4] sm:$0xf0] }
 0x396   : > { %5061 = vst.msk [vmem:[%s6836_s23 + $0x314] sm:$0xf] %vm4863_vm4, %v4836_v25  ;;  %v3710_v9 = vadd.f32 %v3449_v12, %v696_v2  ;;  %v6479_v25 = vld [vmem:[%s6620_s30 + $0x6e4] sm:$0xf]  ;;  %v6096_v12 = vld [vmem:[%s6620_s30 + $0x6e8] sm:$0xf0] }
 0x397   : > { %v4161_v33 = vld [vmem:[#allocation2 + $0x630] sm:$0xff]  ;;  %v4502_v42 = vmax.f32 %v4278_v39, 0.0  ;;  %v3456_v3 = vpop.f32.mrf.mxu3 }
 0x398   : > { %v4389_v34 = vadd.f32 %v8520_v8, %v4161_v33  ;;  %3935 = vst.msk [vmem:[#allocation2 + $0x638] sm:$0xff] %vm272_vm3, %v3710_v9  ;;  %v2604_v49 = vpop.f32.mrf.mxu0  ;;  %6198 = vmatmul.msk.bf16.gmra.mxu1 %vm2029_vm2, %v5651_v61  ;;  %v6099_v33 = vor.u32 %v6479_v25, %v6096_v12 }
 0x399   : > { %v4726_v29 = vpack.c.bf16 %v4502_v42, %v4502_v42  ;;  %v3174_v50 = vadd.f32 %v8592_v17, %v2604_v49  ;;  %v5638_v17 = vld [vmem:[%s6620_s30 + $0x350] sm:$0xf]  ;;  %v8640_v20 = vpop.f32.mrf.mxu1 }
 0x39a   : > { %v4613_v40 = vmax.f32 %v4389_v34, 0.0  ;;  %v5639_v7 = vor.u32 %v6366_v62, %v5638_v17  ;;  %v589_v62 = vld [vmem:[#allocation2 + $0x2e0] sm:$0xff] }
 0x39b   : > { %v2882_v24 = vpop.f32.mrf.mxu2  ;;  %4951 = vst.msk [vmem:[%s6836_s23 + $0x15c] sm:$0xf] %vm4863_vm4, %v4726_v29  ;;  %v3600_v57 = vadd.f32 %v3174_v50, %v586_v48  ;;  %v6368_v48 = vld [vmem:[%s6620_s30 + $0x364] sm:$0xf0]  ;;  %v6094_v50 = vld [vmem:[%s6620_s30 + $0x6e0] sm:$0xf] }
 0x39c   : > { %v4837_v46 = vpack.c.bf16 %v4613_v40, %v4613_v40  ;;  %v3452_v47 = vadd.f32 %v3451_v52, %v2882_v24  ;;  %v4051_v59 = vld [vmem:[#allocation2 + $0x2c0] sm:$0xff]  ;;  %v6369_v40 = vld [vmem:[%s6620_s30 + $0x374] sm:$0xf]  ;;  %v6095_v0 = vor.u32 %v6480_v51, %v6094_v50 }
 0x39d   : > { %v4279_v63 = vadd.f32 %v8520_v8, %v4051_v59  ;;  %3825 = vst.msk [vmem:[#allocation2 + $0x2c8] sm:$0xff] %vm272_vm3, %v3600_v57  ;;  %v700_v57 = vld [vmem:[#allocation2 + $0x658] sm:$0xff] }
 0x39e   : > { %5062 = vst.msk [vmem:[%s6836_s23 + $0x318] sm:$0xf] %vm4863_vm4, %v4837_v46  ;;  %v3711_v45 = vadd.f32 %v3452_v47, %v697_v32 }
 0x39f   : > { %v4162_v56 = vld [vmem:[#allocation2 + $0x638] sm:$0xff]  ;;  %v4503_v5 = vmax.f32 %v4279_v63, 0.0  ;;  %2646 = vmatmul.bf16.gmra.mxu0 %v5639_v7  ;;  %v3458_v28 = vpop.f32.mrf.mxu3 }
 0x3a0   : > { %v4390_v58 = vadd.f32 %v8520_v8, %v4162_v56  ;;  %3936 = vst.msk [vmem:[#allocation2 + $0x640] sm:$0xff] %vm272_vm3, %v3711_v45  ;;  %v2607_v43 = vpop.f32.mrf.mxu0 }
 0x3a1   : > { %v4727_v55 = vpack.c.bf16 %v4503_v5, %v4503_v5  ;;  %v3177_v16 = vadd.f32 %v8608_v44, %v2607_v43  ;;  %v8656_v44 = vpop.f32.mrf.mxu1 }
 0x3a2   : > { %v4614_v1 = vmax.f32 %v4390_v58, 0.0 }
 0x3a3   : > { %v2884_v27 = vpop.f32.mrf.mxu2  ;;  %4952 = vst.msk [vmem:[%s6836_s23 + $0x160] sm:$0xf] %vm4863_vm4, %v4727_v55  ;;  %v3601_v2 = vadd.f32 %v3177_v16, %v587_v11  ;;  %2926 = vmatmul.bf16.gmra.mxu2 %v6087_v21  ;;  %v701_v16 = vld [vmem:[#allocation2 + $0x660] sm:$0xff] }
 0x3a4   : > { %v4838_v13 = vpack.c.bf16 %v4614_v1, %v4614_v1  ;;  %v3454_v31 = vadd.f32 %v3453_v41, %v2884_v27  ;;  %v4052_v23 = vld [vmem:[#allocation2 + $0x2c8] sm:$0xff]  ;;  %v5656_v41 = vld [vmem:[%s6620_s30 + $0x378] sm:$0xf0]  ;;  %6254 = vmatmul.msk.bf16.gmra.mxu3 %vm2029_vm2, %v6099_v33 }
 0x3a5   : > { %v4280_v37 = vadd.f32 %v8520_v8, %v4052_v23  ;;  %3826 = vst.msk [vmem:[#allocation2 + $0x2d0] sm:$0xff] %vm272_vm3, %v3601_v2  ;;  %v5659_v47 = vor.u32 %v6369_v40, %v5656_v41  ;;  %v590_v23 = vld [vmem:[#allocation2 + $0x2e8] sm:$0xff]  ;;  %v6482_v40 = vld [vmem:[%s6620_s30 + $0x6f4] sm:$0xf0] }
 0x3a6   : > { %5063 = vst.msk [vmem:[%s6836_s23 + $0x31c] sm:$0xf] %vm4863_vm4, %v4838_v13  ;;  %v3712_v52 = vadd.f32 %v3454_v31, %v698_v54  ;;  %v6481_v13 = vld [vmem:[%s6620_s30 + $0x6f4] sm:$0xf]  ;;  %v6104_v31 = vld [vmem:[%s6620_s30 + $0x6f8] sm:$0xf0] }
 0x3a7   : > { %v4163_v15 = vld [vmem:[#allocation2 + $0x640] sm:$0xff]  ;;  %v4504_v19 = vmax.f32 %v4280_v37, 0.0  ;;  %v3461_v45 = vpop.f32.mrf.mxu3 }
 0x3a8   : > { %v4391_v22 = vadd.f32 %v8520_v8, %v4163_v15  ;;  %3937 = vst.msk [vmem:[#allocation2 + $0x648] sm:$0xff] %vm272_vm3, %v3712_v52  ;;  %v2609_v38 = vpop.f32.mrf.mxu0  ;;  %6199 = vmatmul.msk.bf16.gmra.mxu1 %vm2029_vm2, %v5659_v47  ;;  %v6107_v15 = vor.u32 %v6481_v13, %v6104_v31 }
 0x3a9   : > { %v4728_v6 = vpack.c.bf16 %v4504_v19, %v4504_v19  ;;  %v3179_v39 = vadd.f32 %v8624_v4, %v2609_v38  ;;  %v5646_v4 = vld [vmem:[%s6620_s30 + $0x360] sm:$0xf]  ;;  %v8672_v29 = vpop.f32.mrf.mxu1 }
 0x3aa   : > { %v4615_v60 = vmax.f32 %v4391_v22, 0.0  ;;  %v5647_v59 = vor.u32 %v6368_v48, %v5646_v4  ;;  %v591_v48 = vld [vmem:[#allocation2 + $0x2f0] sm:$0xff] }
 0x3ab   : > { %v2887_v9 = vpop.f32.mrf.mxu2  ;;  %4953 = vst.msk [vmem:[%s6836_s23 + $0x164] sm:$0xf] %vm4863_vm4, %v4728_v6  ;;  %v3602_v24 = vadd.f32 %v3179_v39, %v588_v36  ;;  %v6370_v36 = vld [vmem:[%s6620_s30 + $0x374] sm:$0xf0]  ;;  %v6102_v39 = vld [vmem:[%s6620_s30 + $0x6f0] sm:$0xf] }
 0x3ac   : > { %v4839_v26 = vpack.c.bf16 %v4615_v60, %v4615_v60  ;;  %v3457_v34 = vadd.f32 %v3456_v3, %v2887_v9  ;;  %v4053_v46 = vld [vmem:[#allocation2 + $0x2d0] sm:$0xff]  ;;  %v6371_v60 = vld [vmem:[%s6620_s30 + $0x384] sm:$0xf]  ;;  %v6103_v50 = vor.u32 %v6482_v40, %v6102_v39 }
 0x3ad   : > { %v4281_v49 = vadd.f32 %v8520_v8, %v4053_v46  ;;  %3827 = vst.msk [vmem:[#allocation2 + $0x2d8] sm:$0xff] %vm272_vm3, %v3602_v24  ;;  %v702_v24 = vld [vmem:[#allocation2 + $0x668] sm:$0xff]  ;;  %v705_v39 = vld [vmem:[#allocation2 + $0x680] sm:$0xff] }
 0x3ae   : > { %5064 = vst.msk [vmem:[%s6836_s23 + $0x320] sm:$0xf] %vm4863_vm4, %v4839_v26  ;;  %v3713_v42 = vadd.f32 %v3457_v34, %v699_v30 }
 0x3af   : > { %v4164_v32 = vld [vmem:[#allocation2 + $0x648] sm:$0xff]  ;;  %v4505_v56 = vmax.f32 %v4281_v49, 0.0  ;;  %2651 = vmatmul.bf16.gmra.mxu0 %v5647_v59  ;;  %v3463_v21 = vpop.f32.mrf.mxu3 }
 0x3b0   : > { %v4392_v35 = vadd.f32 %v8520_v8, %v4164_v32  ;;  %3938 = vst.msk [vmem:[#allocation2 + $0x650] sm:$0xff] %vm272_vm3, %v3713_v42  ;;  %v2612_v63 = vpop.f32.mrf.mxu0 }
 0x3b1   : > { %v4729_v14 = vpack.c.bf16 %v4505_v56, %v4505_v56  ;;  %v3182_v1 = vadd.f32 %v8640_v20, %v2612_v63  ;;  %v8688_v20 = vpop.f32.mrf.mxu1 }
 0x3b2   : > { %v4616_v53 = vmax.f32 %v4392_v35, 0.0 }
 0x3b3   : > { %v2889_v58 = vpop.f32.mrf.mxu2  ;;  %4954 = vst.msk [vmem:[%s6836_s23 + $0x168] sm:$0xf] %vm4863_vm4, %v4729_v14  ;;  %v3603_v54 = vadd.f32 %v3182_v1, %v589_v62  ;;  %2931 = vmatmul.bf16.gmra.mxu2 %v6095_v0  ;;  %v703_v0 = vld [vmem:[#allocation2 + $0x670] sm:$0xff] }
 0x3b4   : > { %v4840_v61 = vpack.c.bf16 %v4616_v53, %v4616_v53  ;;  %v3459_v17 = vadd.f32 %v3458_v28, %v2889_v58  ;;  %v4054_v7 = vld [vmem:[#allocation2 + $0x2d8] sm:$0xff]  ;;  %v5664_v28 = vld [vmem:[%s6620_s30 + $0x388] sm:$0xf0]  ;;  %6255 = vmatmul.msk.bf16.gmra.mxu3 %vm2029_vm2, %v6107_v15 }
 0x3b5   : > { %v4282_v11 = vadd.f32 %v8520_v8, %v4054_v7  ;;  %3828 = vst.msk [vmem:[#allocation2 + $0x2e0] sm:$0xff] %vm272_vm3, %v3603_v54  ;;  %v5667_v34 = vor.u32 %v6371_v60, %v5664_v28 }
 0x3b6   : > { %5065 = vst.msk [vmem:[%s6836_s23 + $0x324] sm:$0xf] %vm4863_vm4, %v4840_v61  ;;  %v3714_v3 = vadd.f32 %v3459_v17, %v700_v57 }
 0x3b7   : > { %v4165_v5 = vld [vmem:[#allocation2 + $0x650] sm:$0xff]  ;;  %v4506_v55 = vmax.f32 %v4282_v11, 0.0  ;;  %v3466_v42 = vpop.f32.mrf.mxu3 }
 0x3b8   : > { %v4393_v27 = vadd.f32 %v8520_v8, %v4165_v5  ;;  %3939 = vst.msk [vmem:[#allocation2 + $0x658] sm:$0xff] %vm272_vm3, %v3714_v3  ;;  %v2614_v25 = vpop.f32.mrf.mxu0  ;;  %6200 = vmatmul.msk.bf16.gmra.mxu1 %vm2029_vm2, %v5667_v34  ;;  %v592_v5 = vld [vmem:[#allocation2 + $0x2f8] sm:$0xff] }
 0x3b9   : > { %v4730_v12 = vpack.c.bf16 %v4506_v55, %v4506_v55  ;;  %v3184_v37 = vadd.f32 %v8656_v44, %v2614_v25  ;;  %v5654_v44 = vld [vmem:[%s6620_s30 + $0x370] sm:$0xf]  ;;  %v3191_v6 = vpop.f32.mrf.mxu1 }
 0x3ba   : > { %v4617_v43 = vmax.f32 %v4393_v27, 0.0  ;;  %v5655_v46 = vor.u32 %v6370_v36, %v5654_v44 }
 0x3bb   : > { %v2892_v52 = vpop.f32.mrf.mxu2  ;;  %4955 = vst.msk [vmem:[%s6836_s23 + $0x16c] sm:$0xf] %vm4863_vm4, %v4730_v12  ;;  %v3604_v9 = vadd.f32 %v3184_v37, %v590_v23  ;;  %v593_v12 = vld [vmem:[#allocation2 + $0x300] sm:$0xff] }
 0x3bc   : > { %v4841_v2 = vpack.c.bf16 %v4617_v43, %v4617_v43  ;;  %v3462_v22 = vadd.f32 %v3461_v45, %v2892_v52  ;;  %v4055_v26 = vld [vmem:[#allocation2 + $0x2e0] sm:$0xff] }
 0x3bd   : > { %v4283_v38 = vadd.f32 %v8520_v8, %v4055_v26  ;;  %3829 = vst.msk [vmem:[#allocation2 + $0x2e8] sm:$0xff] %vm272_vm3, %v3604_v9 }
 0x3be   : > { %5066 = vst.msk [vmem:[%s6836_s23 + $0x328] sm:$0xf] %vm4863_vm4, %v4841_v2  ;;  %v3715_v19 = vadd.f32 %v3462_v22, %v701_v16  ;;  %v704_v2 = vld [vmem:[#allocation2 + $0x678] sm:$0xff] }
 0x3bf   : > { %v4166_v30 = vld [vmem:[#allocation2 + $0x658] sm:$0xff]  ;;  %v4507_v32 = vmax.f32 %v4283_v38, 0.0  ;;  %2656 = vmatmul.bf16.gmra.mxu0 %v5655_v46  ;;  %v3468_v62 = vpop.f32.mrf.mxu3 }
 0x3c0   : > { %v4394_v33 = vadd.f32 %v8520_v8, %v4166_v30  ;;  %3940 = vst.msk [vmem:[#allocation2 + $0x660] sm:$0xff] %vm272_vm3, %v3715_v19  ;;  %v2617_v49 = vpop.f32.mrf.mxu0 }
 0x3c1   : > { %v4731_v51 = vpack.c.bf16 %v4507_v32, %v4507_v32  ;;  %v3187_v53 = vadd.f32 %v8672_v29, %v2617_v49  ;;  %v3193_v29 = vpop.f32.mrf.mxu1  ;;  %v594_v32 = vld [vmem:[#allocation2 + $0x308] sm:$0xff] }
 0x3c2   : > { %v4618_v41 = vmax.f32 %v4394_v33, 0.0 }
 0x3c3   : > { %v2894_v35 = vpop.f32.mrf.mxu2  ;;  %4956 = vst.msk [vmem:[%s6836_s23 + $0x170] sm:$0xf] %vm4863_vm4, %v4731_v51  ;;  %v3605_v57 = vadd.f32 %v3187_v53, %v591_v48  ;;  %2936 = vmatmul.bf16.gmra.mxu2 %v6103_v50 }
 0x3c4   : > { %v4842_v47 = vpack.c.bf16 %v4618_v41, %v4618_v41  ;;  %v3464_v4 = vadd.f32 %v3463_v21, %v2894_v35  ;;  %v4056_v59 = vld [vmem:[#allocation2 + $0x2e8] sm:$0xff] }
 0x3c5   : > { %v4284_v61 = vadd.f32 %v8520_v8, %v4056_v59  ;;  %3830 = vst.msk [vmem:[#allocation2 + $0x2f0] sm:$0xff] %vm272_vm3, %v3605_v57 }
 0x3c6   : > { %5067 = vst.msk [vmem:[%s6836_s23 + $0x32c] sm:$0xf] %vm4863_vm4, %v4842_v47  ;;  %v3716_v45 = vadd.f32 %v3464_v4, %v702_v24 }
 0x3c7   : > { %v4167_v56 = vld [vmem:[#allocation2 + $0x660] sm:$0xff]  ;;  %v4508_v63 = vmax.f32 %v4284_v61, 0.0  ;;  %v3471_v52 = vpop.f32.mrf.mxu3 }
 0x3c8   : > { %v4395_v58 = vadd.f32 %v8520_v8, %v4167_v56  ;;  %3941 = vst.msk [vmem:[#allocation2 + $0x668] sm:$0xff] %vm272_vm3, %v3716_v45  ;;  %v2619_v54 = vpop.f32.mrf.mxu0 }
 0x3c9   : > { %v4732_v27 = vpack.c.bf16 %v4508_v63, %v4508_v63  ;;  %v3189_v7 = vadd.f32 %v8688_v20, %v2619_v54  ;;  %v3196_v16 = vpop.f32.mrf.mxu1 }
 0x3ca   : > { %v4619_v17 = vmax.f32 %v4395_v58, 0.0  ;;  %v706_v58 = vld [vmem:[#allocation2 + $0x688] sm:$0xff] }
 0x3cb   : > { %v2897_v14 = vpop.f32.mrf.mxu2  ;;  %4957 = vst.msk [vmem:[%s6836_s23 + $0x174] sm:$0xf] %vm4863_vm4, %v4732_v27  ;;  %v3606_v11 = vadd.f32 %v3189_v7, %v592_v5 }
 0x3cc   : > { %v4843_v1 = vpack.c.bf16 %v4619_v17, %v4619_v17  ;;  %v3467_v3 = vadd.f32 %v3466_v42, %v2897_v14  ;;  %v4057_v21 = vld [vmem:[#allocation2 + $0x2f0] sm:$0xff] }
 0x3cd   : > { %v4285_v55 = vadd.f32 %v8520_v8, %v4057_v21  ;;  %3831 = vst.msk [vmem:[#allocation2 + $0x2f8] sm:$0xff] %vm272_vm3, %v3606_v11  ;;  %v595_v17 = vld [vmem:[#allocation2 + $0x310] sm:$0xff] }
 0x3ce   : > { %5068 = vst.msk [vmem:[%s6836_s23 + $0x330] sm:$0xf] %vm4863_vm4, %v4843_v1  ;;  %v3717_v13 = vadd.f32 %v3467_v3, %v703_v0 }
 0x3cf   : > { %v4168_v31 = vld [vmem:[#allocation2 + $0x668] sm:$0xff]  ;;  %v4509_v15 = vmax.f32 %v4285_v55, 0.0  ;;  %v3473_v38 = vpop.f32.mrf.mxu3 }
 0x3d0   : > { %v4396_v43 = vadd.f32 %v8520_v8, %v4168_v31  ;;  %3942 = vst.msk [vmem:[#allocation2 + $0x670] sm:$0xff] %vm272_vm3, %v3717_v13  ;;  %v2622_v37 = vpop.f32.mrf.mxu0 }
 0x3d1   : > { %v4733_v60 = vpack.c.bf16 %v4509_v15, %v4509_v15  ;;  %v3192_v28 = vadd.f32 %v3191_v6, %v2622_v37  ;;  %v3198_v44 = vpop.f32.mrf.mxu1 }
 0x3d2   : > { %v4620_v20 = vmax.f32 %v4396_v43, 0.0  ;;  %v707_v43 = vld [vmem:[#allocation2 + $0x690] sm:$0xff] }
 0x3d3   : > { %v2899_v22 = vpop.f32.mrf.mxu2  ;;  %4958 = vst.msk [vmem:[%s6836_s23 + $0x178] sm:$0xf] %vm4863_vm4, %v4733_v60  ;;  %v3607_v9 = vadd.f32 %v3192_v28, %v593_v12 }
 0x3d4   : > { %v4844_v23 = vpack.c.bf16 %v4620_v20, %v4620_v20  ;;  %v3469_v25 = vadd.f32 %v3468_v62, %v2899_v22  ;;  %v4058_v26 = vld [vmem:[#allocation2 + $0x2f8] sm:$0xff] }
 0x3d5   : > { %v4286_v34 = vadd.f32 %v8520_v8, %v4058_v26  ;;  %3832 = vst.msk [vmem:[#allocation2 + $0x300] sm:$0xff] %vm272_vm3, %v3607_v9  ;;  %v596_v20 = vld [vmem:[#allocation2 + $0x318] sm:$0xff] }
 0x3d6   : > { %5069 = vst.msk [vmem:[%s6836_s23 + $0x334] sm:$0xf] %vm4863_vm4, %v4844_v23  ;;  %v3718_v19 = vadd.f32 %v3469_v25, %v704_v2 }
 0x3d7   : > { %v4169_v30 = vld [vmem:[#allocation2 + $0x670] sm:$0xff]  ;;  %v4510_v6 = vmax.f32 %v4286_v34, 0.0  ;;  %v3476_v56 = vpop.f32.mrf.mxu3 }
 0x3d8   : > { %v4397_v33 = vadd.f32 %v8520_v8, %v4169_v30  ;;  %3943 = vst.msk [vmem:[#allocation2 + $0x678] sm:$0xff] %vm272_vm3, %v3718_v19  ;;  %v2624_v24 = vpop.f32.mrf.mxu0 }
 0x3d9   : > { %v4734_v35 = vpack.c.bf16 %v4510_v6, %v4510_v6  ;;  %v3194_v46 = vadd.f32 %v3193_v29, %v2624_v24  ;;  %v3201_v53 = vpop.f32.mrf.mxu1 }
 0x3da   : > { %v4621_v36 = vmax.f32 %v4397_v33, 0.0  ;;  %v708_v33 = vld [vmem:[#allocation2 + $0x698] sm:$0xff] }
 0x3db   : > { %v2902_v40 = vpop.f32.mrf.mxu2  ;;  %4959 = vst.msk [vmem:[%s6836_s23 + $0x17c] sm:$0xf] %vm4863_vm4, %v4734_v35  ;;  %v3608_v48 = vadd.f32 %v3194_v46, %v594_v32 }
 0x3dc   : > { %v4845_v41 = vpack.c.bf16 %v4621_v36, %v4621_v36  ;;  %v3472_v42 = vadd.f32 %v3471_v52, %v2902_v40  ;;  %v4059_v50 = vld [vmem:[#allocation2 + $0x300] sm:$0xff] }
 0x3dd   : > { %v4287_v51 = vadd.f32 %v8520_v8, %v4059_v50  ;;  %3833 = vst.msk [vmem:[#allocation2 + $0x308] sm:$0xff] %vm272_vm3, %v3608_v48  ;;  %v597_v36 = vld [vmem:[#allocation2 + $0x320] sm:$0xff] }
 0x3de   : > { %5070 = vst.msk [vmem:[%s6836_s23 + $0x338] sm:$0xf] %vm4863_vm4, %v4845_v41  ;;  %v3719_v47 = vadd.f32 %v3472_v42, %v705_v39 }
 0x3df   : > { %v4170_v4 = vld [vmem:[#allocation2 + $0x678] sm:$0xff]  ;;  %v4511_v57 = vmax.f32 %v4287_v51, 0.0  ;;  %v3478_v31 = vpop.f32.mrf.mxu3 }
 0x3e0   : > { %v4398_v49 = vadd.f32 %v8520_v8, %v4170_v4  ;;  %3944 = vst.msk [vmem:[#allocation2 + $0x680] sm:$0xff] %vm272_vm3, %v3719_v47  ;;  %v2627_v62 = vpop.f32.mrf.mxu0 }
 0x3e1   : > { %v4735_v63 = vpack.c.bf16 %v4511_v57, %v4511_v57  ;;  %v3197_v0 = vadd.f32 %v3196_v16, %v2627_v62  ;;  %v3203_v7 = vpop.f32.mrf.mxu1 }
 0x3e2   : > { %v4622_v45 = vmax.f32 %v4398_v49, 0.0  ;;  %v709_v49 = vld [vmem:[#allocation2 + $0x6a0] sm:$0xff] }
 0x3e3   : > { %v2904_v59 = vpop.f32.mrf.mxu2  ;;  %4960 = vst.msk [vmem:[%s6836_s23 + $0x180] sm:$0xf] %vm4863_vm4, %v4735_v63  ;;  %v3609_v3 = vadd.f32 %v3197_v0, %v595_v17 }
 0x3e4   : > { %v4846_v61 = vpack.c.bf16 %v4622_v45, %v4622_v45  ;;  %v3474_v29 = vadd.f32 %v3473_v38, %v2904_v59  ;;  %v4060_v54 = vld [vmem:[#allocation2 + $0x308] sm:$0xff] }
 0x3e5   : > { %v4288_v27 = vadd.f32 %v8520_v8, %v4060_v54  ;;  %3834 = vst.msk [vmem:[#allocation2 + $0x310] sm:$0xff] %vm272_vm3, %v3609_v3  ;;  %v598_v45 = vld [vmem:[#allocation2 + $0x328] sm:$0xff] }
 0x3e6   : > { %5071 = vst.msk [vmem:[%s6836_s23 + $0x33c] sm:$0xf] %vm4863_vm4, %v4846_v61  ;;  %v3720_v14 = vadd.f32 %v3474_v29, %v706_v58  ;;  %v8772_v29 = vld [vmem:[%s8893_s2] ss:$0 sm:$0xff] }
 0x3e7   : > { %v4171_v1 = vld [vmem:[#allocation2 + $0x680] sm:$0xff]  ;;  %v4512_v11 = vmax.f32 %v4288_v27, 0.0  ;;  %v3481_v30 = vpop.f32.mrf.mxu3 }
 0x3e8   : > { %v4399_v5 = vadd.f32 %v8520_v8, %v4171_v1  ;;  %3945 = vst.msk [vmem:[#allocation2 + $0x688] sm:$0xff] %vm272_vm3, %v3720_v14  ;;  %v2629_v52 = vpop.f32.mrf.mxu0 }
 0x3e9   : > { %v4736_v15 = vpack.c.bf16 %v4512_v11, %v4512_v11  ;;  %v3199_v2 = vadd.f32 %v3198_v44, %v2629_v52  ;;  %v3206_v28 = vpop.f32.mrf.mxu1 }
 0x3ea   : > { %v4623_v13 = vmax.f32 %v4399_v5, 0.0  ;;  %v710_v5 = vld [vmem:[#allocation2 + $0x6a8] sm:$0xff] }
 0x3eb   : > { %v2907_v21 = vpop.f32.mrf.mxu2  ;;  %4961 = vst.msk [vmem:[%s6836_s23 + $0x184] sm:$0xf] %vm4863_vm4, %v4736_v15  ;;  %v3610_v25 = vadd.f32 %v3199_v2, %v596_v20 }
 0x3ec   : > { %v4847_v55 = vpack.c.bf16 %v4623_v13, %v4623_v13  ;;  %v3477_v16 = vadd.f32 %v3476_v56, %v2907_v21  ;;  %v4061_v37 = vld [vmem:[#allocation2 + $0x310] sm:$0xff] }
 0x3ed   : > { %v4289_v60 = vadd.f32 %v8520_v8, %v4061_v37  ;;  %3835 = vst.msk [vmem:[#allocation2 + $0x318] sm:$0xff] %vm272_vm3, %v3610_v25  ;;  %v599_v13 = vld [vmem:[#allocation2 + $0x330] sm:$0xff] }
 0x3ee   : > { %5072 = vst.msk [vmem:[%s6836_s23 + $0x340] sm:$0xf] %vm4863_vm4, %v4847_v55  ;;  %v3721_v22 = vadd.f32 %v3477_v16, %v707_v43 }
 0x3ef   : > { %v4172_v23 = vld [vmem:[#allocation2 + $0x688] sm:$0xff]  ;;  %v4513_v9 = vmax.f32 %v4289_v60, 0.0  ;;  %v3483_v4 = vpop.f32.mrf.mxu3 }
 0x3f0   : > { %v4400_v12 = vadd.f32 %v8520_v8, %v4172_v23  ;;  %3946 = vst.msk [vmem:[#allocation2 + $0x690] sm:$0xff] %vm272_vm3, %v3721_v22  ;;  %v2632_v38 = vpop.f32.mrf.mxu0 }
 0x3f1   : > { %v4737_v6 = vpack.c.bf16 %v4513_v9, %v4513_v9  ;;  %v3202_v39 = vadd.f32 %v3201_v53, %v2632_v38  ;;  %v3208_v46 = vpop.f32.mrf.mxu1 }
 0x3f2   : > { %v4624_v19 = vmax.f32 %v4400_v12, 0.0  ;;  %v711_v12 = vld [vmem:[#allocation2 + $0x6b0] sm:$0xff] }
 0x3f3   : > { %v2909_v26 = vpop.f32.mrf.mxu2  ;;  %4962 = vst.msk [vmem:[%s6836_s23 + $0x188] sm:$0xf] %vm4863_vm4, %v4737_v6  ;;  %v3611_v42 = vadd.f32 %v3202_v39, %v597_v36 }
 0x3f4   : > { %v4848_v34 = vpack.c.bf16 %v4624_v19, %v4624_v19  ;;  %v3479_v44 = vadd.f32 %v3478_v31, %v2909_v26  ;;  %v4062_v24 = vld [vmem:[#allocation2 + $0x318] sm:$0xff] }
 0x3f5   : > { %v4290_v35 = vadd.f32 %v8520_v8, %v4062_v24  ;;  %3836 = vst.msk [vmem:[#allocation2 + $0x320] sm:$0xff] %vm272_vm3, %v3611_v42  ;;  %v600_v19 = vld [vmem:[#allocation2 + $0x338] sm:$0xff] }
 0x3f6   : > { %5073 = vst.msk [vmem:[%s6836_s23 + $0x344] sm:$0xf] %vm4863_vm4, %v4848_v34  ;;  %v3722_v40 = vadd.f32 %v3479_v44, %v708_v33 }
 0x3f7   : > { %v4173_v41 = vld [vmem:[#allocation2 + $0x690] sm:$0xff]  ;;  %v4514_v48 = vmax.f32 %v4290_v35, 0.0  ;;  %v3486_v1 = vpop.f32.mrf.mxu3 }
 0x3f8   : > { %v4401_v32 = vadd.f32 %v8520_v8, %v4173_v41  ;;  %3947 = vst.msk [vmem:[#allocation2 + $0x698] sm:$0xff] %vm272_vm3, %v3722_v40  ;;  %v2634_v56 = vpop.f32.mrf.mxu0 }
 0x3f9   : > { %v4738_v57 = vpack.c.bf16 %v4514_v48, %v4514_v48  ;;  %v3204_v58 = vadd.f32 %v3203_v7, %v2634_v56  ;;  %v3211_v0 = vpop.f32.mrf.mxu1 }
 0x3fa   : > { %v4625_v47 = vmax.f32 %v4401_v32, 0.0  ;;  %v712_v32 = vld [vmem:[#allocation2 + $0x6b8] sm:$0xff] }
 0x3fb   : > { %v2912_v50 = vpop.f32.mrf.mxu2  ;;  %4963 = vst.msk [vmem:[%s6836_s23 + $0x18c] sm:$0xf] %vm4863_vm4, %v4738_v57  ;;  %v3612_v61 = vadd.f32 %v3204_v58, %v598_v45 }
 0x3fc   : > { %v4849_v51 = vpack.c.bf16 %v4625_v47, %v4625_v47  ;;  %v3482_v53 = vadd.f32 %v3481_v30, %v2912_v50  ;;  %v4063_v62 = vld [vmem:[#allocation2 + $0x320] sm:$0xff] }
 0x3fd   : > { %v4291_v63 = vadd.f32 %v8772_v29, %v4063_v62  ;;  %3837 = vst.msk [vmem:[#allocation2 + $0x328] sm:$0xff] %vm272_vm3, %v3612_v61  ;;  %v601_v47 = vld [vmem:[#allocation2 + $0x340] sm:$0xff] }
 0x3fe   : > { %5074 = vst.msk [vmem:[%s6836_s23 + $0x348] sm:$0xf] %vm4863_vm4, %v4849_v51  ;;  %v3723_v59 = vadd.f32 %v3482_v53, %v709_v49 }
 0x3ff   : > { %v4174_v8 = vld [vmem:[#allocation2 + $0x698] sm:$0xff]  ;;  %v4515_v3 = vmax.f32 %v4291_v63, 0.0  ;;  %v3488_v23 = vpop.f32.mrf.mxu3 }
 0x400   : > { %v4402_v17 = vadd.f32 %v8772_v29, %v4174_v8  ;;  %3948 = vst.msk [vmem:[#allocation2 + $0x6a0] sm:$0xff] %vm272_vm3, %v3723_v59  ;;  %v2637_v31 = vpop.f32.mrf.mxu0 }
 0x401   : > { %v4739_v11 = vpack.c.bf16 %v4515_v3, %v4515_v3  ;;  %v3207_v43 = vadd.f32 %v3206_v28, %v2637_v31  ;;  %v3213_v2 = vpop.f32.mrf.mxu1 }
 0x402   : > { %v4626_v14 = vmax.f32 %v4402_v17, 0.0  ;;  %v713_v17 = vld [vmem:[#allocation2 + $0x6c0] sm:$0xff] }
 0x403   : > { %v2914_v54 = vpop.f32.mrf.mxu2  ;;  %4964 = vst.msk [vmem:[%s6836_s23 + $0x190] sm:$0xf] %vm4863_vm4, %v4739_v11  ;;  %v3613_v16 = vadd.f32 %v3207_v43, %v599_v13 }
 0x404   : > { %v4850_v27 = vpack.c.bf16 %v4626_v14, %v4626_v14  ;;  %v3484_v7 = vadd.f32 %v3483_v4, %v2914_v54  ;;  %v4064_v52 = vld [vmem:[#allocation2 + $0x328] sm:$0xff] }
 0x405   : > { %v4292_v15 = vadd.f32 %v8772_v29, %v4064_v52  ;;  %3838 = vst.msk [vmem:[#allocation2 + $0x330] sm:$0xff] %vm272_vm3, %v3613_v16  ;;  %v602_v14 = vld [vmem:[#allocation2 + $0x348] sm:$0xff] }
 0x406   : > { %5075 = vst.msk [vmem:[%s6836_s23 + $0x34c] sm:$0xf] %vm4863_vm4, %v4850_v27  ;;  %v3724_v21 = vadd.f32 %v3484_v7, %v710_v5 }
 0x407   : > { %v4175_v55 = vld [vmem:[#allocation2 + $0x6a0] sm:$0xff]  ;;  %v4516_v25 = vmax.f32 %v4292_v15, 0.0  ;;  %v3491_v41 = vpop.f32.mrf.mxu3 }
 0x408   : > { %v4403_v20 = vadd.f32 %v8772_v29, %v4175_v55  ;;  %3949 = vst.msk [vmem:[#allocation2 + $0x6a8] sm:$0xff] %vm272_vm3, %v3724_v21  ;;  %v2639_v30 = vpop.f32.mrf.mxu0 }
 0x409   : > { %v4740_v9 = vpack.c.bf16 %v4516_v25, %v4516_v25  ;;  %v3209_v33 = vadd.f32 %v3208_v46, %v2639_v30  ;;  %v3216_v39 = vpop.f32.mrf.mxu1 }
 0x40a   : > { %v4627_v22 = vmax.f32 %v4403_v20, 0.0  ;;  %v714_v20 = vld [vmem:[#allocation2 + $0x6c8] sm:$0xff] }
 0x40b   : > { %v2917_v37 = vpop.f32.mrf.mxu2  ;;  %4965 = vst.msk [vmem:[%s6836_s23 + $0x194] sm:$0xf] %vm4863_vm4, %v4740_v9  ;;  %v3614_v44 = vadd.f32 %v3209_v33, %v600_v19 }
 0x40c   : > { %v4851_v60 = vpack.c.bf16 %v4627_v22, %v4627_v22  ;;  %v3487_v28 = vadd.f32 %v3486_v1, %v2917_v37  ;;  %v4065_v38 = vld [vmem:[#allocation2 + $0x330] sm:$0xff] }
 0x40d   : > { %v4293_v6 = vadd.f32 %v8772_v29, %v4065_v38  ;;  %3839 = vst.msk [vmem:[#allocation2 + $0x338] sm:$0xff] %vm272_vm3, %v3614_v44  ;;  %v603_v22 = vld [vmem:[#allocation2 + $0x350] sm:$0xff] }
 0x40e   : > { %5076 = vst.msk [vmem:[%s6836_s23 + $0x350] sm:$0xf] %vm4863_vm4, %v4851_v60  ;;  %v3725_v26 = vadd.f32 %v3487_v28, %v711_v12  ;;  %v715_v44 = vld [vmem:[#allocation2 + $0x6d0] sm:$0xff] }
 0x40f   : > { %v4176_v34 = vld [vmem:[#allocation2 + $0x6a8] sm:$0xff]  ;;  %v4517_v42 = vmax.f32 %v4293_v6, 0.0  ;;  %v3493_v8 = vpop.f32.mrf.mxu3 }
 0x410   : > { %v4404_v36 = vadd.f32 %v8772_v29, %v4176_v34  ;;  %3950 = vst.msk [vmem:[#allocation2 + $0x6b0] sm:$0xff] %vm272_vm3, %v3725_v26  ;;  %v2642_v4 = vpop.f32.mrf.mxu0 }
 0x411   : > { %v4741_v48 = vpack.c.bf16 %v4517_v42, %v4517_v42  ;;  %v3212_v49 = vadd.f32 %v3211_v0, %v2642_v4  ;;  %v3218_v58 = vpop.f32.mrf.mxu1 }
 0x412   : > { %v4628_v40 = vmax.f32 %v4404_v36, 0.0 }
 0x413   : > { %v2919_v24 = vpop.f32.mrf.mxu2  ;;  %4966 = vst.msk [vmem:[%s6836_s23 + $0x198] sm:$0xf] %vm4863_vm4, %v4741_v48  ;;  %v3615_v53 = vadd.f32 %v3212_v49, %v601_v47 }
 0x414   : > { %v4852_v35 = vpack.c.bf16 %v4628_v40, %v4628_v40  ;;  %v3489_v46 = vadd.f32 %v3488_v23, %v2919_v24  ;;  %v4066_v56 = vld [vmem:[#allocation2 + $0x338] sm:$0xff] }
 0x415   : > { %v4294_v57 = vadd.f32 %v8772_v29, %v4066_v56  ;;  %3840 = vst.msk [vmem:[#allocation2 + $0x340] sm:$0xff] %vm272_vm3, %v3615_v53  ;;  %v604_v40 = vld [vmem:[#allocation2 + $0x358] sm:$0xff] }
 0x416   : > { %5077 = vst.msk [vmem:[%s6836_s23 + $0x354] sm:$0xf] %vm4863_vm4, %v4852_v35  ;;  %v3726_v50 = vadd.f32 %v3489_v46, %v712_v32  ;;  %v716_v53 = vld [vmem:[#allocation2 + $0x6d8] sm:$0xff] }
 0x417   : > { %v4177_v51 = vld [vmem:[#allocation2 + $0x6b0] sm:$0xff]  ;;  %v4518_v61 = vmax.f32 %v4294_v57, 0.0  ;;  %v3496_v55 = vpop.f32.mrf.mxu3 }
 0x418   : > { %v4405_v45 = vadd.f32 %v8772_v29, %v4177_v51  ;;  %3951 = vst.msk [vmem:[#allocation2 + $0x6b8] sm:$0xff] %vm272_vm3, %v3726_v50  ;;  %v2644_v1 = vpop.f32.mrf.mxu0 }
 0x419   : > { %v4742_v3 = vpack.c.bf16 %v4518_v61, %v4518_v61  ;;  %v3214_v5 = vadd.f32 %v3213_v2, %v2644_v1  ;;  %v3221_v43 = vpop.f32.mrf.mxu1 }
 0x41a   : > { %v4629_v59 = vmax.f32 %v4405_v45, 0.0 }
 0x41b   : > { %v2922_v62 = vpop.f32.mrf.mxu2  ;;  %4967 = vst.msk [vmem:[%s6836_s23 + $0x19c] sm:$0xf] %vm4863_vm4, %v4742_v3  ;;  %v3616_v7 = vadd.f32 %v3214_v5, %v602_v14 }
 0x41c   : > { %v4853_v63 = vpack.c.bf16 %v4629_v59, %v4629_v59  ;;  %v3492_v0 = vadd.f32 %v3491_v41, %v2922_v62  ;;  %v4067_v31 = vld [vmem:[#allocation2 + $0x340] sm:$0xff] }
 0x41d   : > { %v4295_v11 = vadd.f32 %v8772_v29, %v4067_v31  ;;  %3841 = vst.msk [vmem:[#allocation2 + $0x348] sm:$0xff] %vm272_vm3, %v3616_v7  ;;  %v717_v7 = vld [vmem:[#allocation2 + $0x6e0] sm:$0xff] }
 0x41e   : > { %5078 = vst.msk [vmem:[%s6836_s23 + $0x358] sm:$0xf] %vm4863_vm4, %v4853_v63  ;;  %v3727_v54 = vadd.f32 %v3492_v0, %v713_v17 }
 0x41f   : > { %v4178_v27 = vld [vmem:[#allocation2 + $0x6b8] sm:$0xff]  ;;  %v4519_v16 = vmax.f32 %v4295_v11, 0.0  ;;  %v3498_v38 = vpop.f32.mrf.mxu3 }
 0x420   : > { %v4406_v13 = vadd.f32 %v8772_v29, %v4178_v27  ;;  %3952 = vst.msk [vmem:[#allocation2 + $0x6c0] sm:$0xff] %vm272_vm3, %v3727_v54  ;;  %v2647_v23 = vpop.f32.mrf.mxu0 }
 0x421   : > { %v4743_v25 = vpack.c.bf16 %v4519_v16, %v4519_v16  ;;  %v3217_v12 = vadd.f32 %v3216_v39, %v2647_v23  ;;  %v3223_v33 = vpop.f32.mrf.mxu1 }
 0x422   : > { %v4630_v21 = vmax.f32 %v4406_v13, 0.0 }
 0x423   : > { %v2924_v52 = vpop.f32.mrf.mxu2  ;;  %4968 = vst.msk [vmem:[%s6836_s23 + $0x1a0] sm:$0xf] %vm4863_vm4, %v4743_v25  ;;  %v3617_v28 = vadd.f32 %v3217_v12, %v603_v22  ;;  %v609_v12 = vld [vmem:[#allocation2 + $0x380] sm:$0xff] }
 0x424   : > { %v4854_v15 = vpack.c.bf16 %v4630_v21, %v4630_v21  ;;  %v3494_v2 = vadd.f32 %v3493_v8, %v2924_v52  ;;  %v4068_v30 = vld [vmem:[#allocation2 + $0x348] sm:$0xff] }
 0x425   : > { %v4296_v9 = vadd.f32 %v8772_v29, %v4068_v30  ;;  %3842 = vst.msk [vmem:[#allocation2 + $0x350] sm:$0xff] %vm272_vm3, %v3617_v28  ;;  %v718_v30 = vld [vmem:[#allocation2 + $0x6e8] sm:$0xff] }
 0x426   : > { %5079 = vst.msk [vmem:[%s6836_s23 + $0x35c] sm:$0xf] %vm4863_vm4, %v4854_v15  ;;  %v3728_v37 = vadd.f32 %v3494_v2, %v714_v20 }
 0x427   : > { %v4179_v60 = vld [vmem:[#allocation2 + $0x6c0] sm:$0xff]  ;;  %v4520_v34 = vmax.f32 %v4296_v9, 0.0  ;;  %v3501_v61 = vpop.f32.mrf.mxu3 }
 0x428   : > { %v4407_v19 = vadd.f32 %v8772_v29, %v4179_v60  ;;  %3953 = vst.msk [vmem:[#allocation2 + $0x6c8] sm:$0xff] %vm272_vm3, %v3728_v37  ;;  %v2649_v41 = vpop.f32.mrf.mxu0 }
 0x429   : > { %v4744_v42 = vpack.c.bf16 %v4520_v34, %v4520_v34  ;;  %v3219_v32 = vadd.f32 %v3218_v58, %v2649_v41  ;;  %v3226_v49 = vpop.f32.mrf.mxu1  ;;  %v605_v58 = vld [vmem:[#allocation2 + $0x360] sm:$0xff] }
 0x42a   : > { %v4631_v26 = vmax.f32 %v4407_v19, 0.0 }
 0x42b   : > { %v2927_v36 = vpop.f32.mrf.mxu2  ;;  %4969 = vst.msk [vmem:[%s6836_s23 + $0x1a4] sm:$0xf] %vm4863_vm4, %v4744_v42  ;;  %v3618_v46 = vadd.f32 %v3219_v32, %v604_v40 }
 0x42c   : > { %v4855_v6 = vpack.c.bf16 %v4631_v26, %v4631_v26  ;;  %v3497_v39 = vadd.f32 %v3496_v55, %v2927_v36  ;;  %v4069_v4 = vld [vmem:[#allocation2 + $0x350] sm:$0xff] }
 0x42d   : > { %v4297_v48 = vadd.f32 %v8772_v29, %v4069_v4  ;;  %3843 = vst.msk [vmem:[#allocation2 + $0x358] sm:$0xff] %vm272_vm3, %v3618_v46 }
 0x42e   : > { %5080 = vst.msk [vmem:[%s6836_s23 + $0x360] sm:$0xf] %vm4863_vm4, %v4855_v6  ;;  %v3729_v24 = vadd.f32 %v3497_v39, %v715_v44  ;;  %v607_v44 = vld [vmem:[#allocation2 + $0x370] sm:$0xff] }
 0x42f   : > { %v4180_v35 = vld [vmem:[#allocation2 + $0x6c8] sm:$0xff]  ;;  %v4521_v51 = vmax.f32 %v4297_v48, 0.0  ;;  %v3503_v15 = vpop.f32.mrf.mxu3 }
 0x430   : > { %v4408_v47 = vadd.f32 %v8772_v29, %v4180_v35  ;;  %3954 = vst.msk [vmem:[#allocation2 + $0x6d0] sm:$0xff] %vm272_vm3, %v3729_v24  ;;  %v2652_v59 = vpop.f32.mrf.mxu0  ;;  %v610_v35 = vld [vmem:[#allocation2 + $0x388] sm:$0xff] }
 0x431   : > { %v4745_v8 = vpack.c.bf16 %v4521_v51, %v4521_v51  ;;  %v3222_v17 = vadd.f32 %v3221_v43, %v2652_v59  ;;  %v3228_v5 = vpop.f32.mrf.mxu1  ;;  %v606_v43 = vld [vmem:[#allocation2 + $0x368] sm:$0xff] }
 0x432   : > { %v4632_v50 = vmax.f32 %v4408_v47, 0.0 }
 0x433   : > { %v2929_v45 = vpop.f32.mrf.mxu2  ;;  %4970 = vst.msk [vmem:[%s6836_s23 + $0x1a8] sm:$0xf] %vm4863_vm4, %v4745_v8  ;;  %v3619_v0 = vadd.f32 %v3222_v17, %v605_v58 }
 0x434   : > { %v4856_v56 = vpack.c.bf16 %v4632_v50, %v4632_v50  ;;  %v3499_v57 = vadd.f32 %v3498_v38, %v2929_v45  ;;  %v4070_v1 = vld [vmem:[#allocation2 + $0x358] sm:$0xff] }
 0x435   : > { %v4298_v3 = vadd.f32 %v8772_v29, %v4070_v1  ;;  %3844 = vst.msk [vmem:[#allocation2 + $0x360] sm:$0xff] %vm272_vm3, %v3619_v0 }
 0x436   : > { %5081 = vst.msk [vmem:[%s6836_s23 + $0x364] sm:$0xf] %vm4863_vm4, %v4856_v56  ;;  %v3730_v62 = vadd.f32 %v3499_v57, %v716_v53  ;;  %v608_v56 = vld [vmem:[#allocation2 + $0x378] sm:$0xff] }
 0x437   : > { %v4181_v63 = vld [vmem:[#allocation2 + $0x6d0] sm:$0xff]  ;;  %v4522_v27 = vmax.f32 %v4298_v3, 0.0  ;;  %v3506_v24 = vpop.f32.mrf.mxu3 }
 0x438   : > { %v4409_v14 = vadd.f32 %v8772_v29, %v4181_v63  ;;  %3955 = vst.msk [vmem:[#allocation2 + $0x6d8] sm:$0xff] %vm272_vm3, %v3730_v62  ;;  %v2654_v21 = vpop.f32.mrf.mxu0 }
 0x439   : > { %v4746_v55 = vpack.c.bf16 %v4522_v27, %v4522_v27  ;;  %v3224_v16 = vadd.f32 %v3223_v33, %v2654_v21  ;;  %v3231_v37 = vpop.f32.mrf.mxu1 }
 0x43a   : > { %v4633_v54 = vmax.f32 %v4409_v14, 0.0  ;;  %v3232_v28 = vadd.f32 %v3231_v37, %v7116_v10 }
 0x43b   : > { %v2932_v13 = vpop.f32.mrf.mxu2  ;;  %4971 = vst.msk [vmem:[%s6836_s23 + $0x1ac] sm:$0xf] %vm4863_vm4, %v4746_v55  ;;  %v3620_v2 = vadd.f32 %v3224_v16, %v606_v43 }
 0x43c   : > { %v4857_v31 = vpack.c.bf16 %v4633_v54, %v4633_v54  ;;  %v3502_v11 = vadd.f32 %v3501_v61, %v2932_v13  ;;  %v4071_v23 = vld [vmem:[#allocation2 + $0x360] sm:$0xff]  ;;  %v3623_v26 = vadd.f32 %v3232_v28, %v609_v12  ;;  %v720_v54 = vld [vmem:[#allocation2 + $0x6f8] sm:$0xff] }
 0x43d   : > { %v4299_v25 = vadd.f32 %v8772_v29, %v4071_v23  ;;  %3845 = vst.msk [vmem:[#allocation2 + $0x368] sm:$0xff] %vm272_vm3, %v3620_v2 }
 0x43e   : > { %5082 = vst.msk [vmem:[%s6836_s23 + $0x368] sm:$0xf] %vm4863_vm4, %v4857_v31  ;;  %v3731_v20 = vadd.f32 %v3502_v11, %v717_v7 }
 0x43f   : > { %v4182_v52 = vld [vmem:[#allocation2 + $0x6d8] sm:$0xff]  ;;  %v4523_v19 = vmax.f32 %v4299_v25, 0.0  ;;  %3848 = vst.msk [vmem:[#allocation2 + $0x380] sm:$0xff] %vm272_vm3, %v3623_v26 }
 0x440   : > { %v4410_v22 = vadd.f32 %v8772_v29, %v4182_v52  ;;  %3956 = vst.msk [vmem:[#allocation2 + $0x6e0] sm:$0xff] %vm272_vm3, %v3731_v20  ;;  %v2657_v36 = vpop.f32.mrf.mxu0 }
 0x441   : > { %v4747_v38 = vpack.c.bf16 %v4523_v19, %v4523_v19  ;;  %v3227_v6 = vadd.f32 %v3226_v49, %v2657_v36  ;;  %v3233_v46 = vpop.f32.mrf.mxu1  ;;  %v719_v49 = vld [vmem:[#allocation2 + $0x6f0] sm:$0xff] }
 0x442   : > { %v4634_v60 = vmax.f32 %v4410_v22, 0.0  ;;  %v3234_v4 = vadd.f32 %v3233_v46, %v7147_v18 }
 0x443   : > { %v2934_v9 = vpop.f32.mrf.mxu2  ;;  %4972 = vst.msk [vmem:[%s6836_s23 + $0x1b0] sm:$0xf] %vm4863_vm4, %v4747_v38  ;;  %v3621_v41 = vadd.f32 %v3227_v6, %v607_v44 }
 0x444   : > { %v4858_v33 = vpack.c.bf16 %v4634_v60, %v4634_v60  ;;  %v3504_v34 = vadd.f32 %v3503_v15, %v2934_v9  ;;  %v4072_v10 = vld [vmem:[#allocation2 + $0x368] sm:$0xff]  ;;  %v3624_v53 = vadd.f32 %v3234_v4, %v610_v35 }
 0x445   : > { %v4300_v32 = vadd.f32 %v8772_v29, %v4072_v10  ;;  %3846 = vst.msk [vmem:[#allocation2 + $0x370] sm:$0xff] %vm272_vm3, %v3621_v41 }
 0x446   : > { %5083 = vst.msk [vmem:[%s6836_s23 + $0x36c] sm:$0xf] %vm4863_vm4, %v4858_v33  ;;  %v3732_v39 = vadd.f32 %v3504_v34, %v718_v30  ;;  %v4075_v61 = vld [vmem:[#allocation2 + $0x380] sm:$0xff] }
 0x447   : > { %v4183_v40 = vld [vmem:[#allocation2 + $0x6e0] sm:$0xff]  ;;  %v4524_v48 = vmax.f32 %v4300_v32, 0.0  ;;  %v4303_v62 = vadd.f32 %v8772_v29, %v4075_v61  ;;  %3849 = vst.msk [vmem:[#allocation2 + $0x388] sm:$0xff] %vm272_vm3, %v3624_v53 }
 0x448   : > { %v4411_v42 = vadd.f32 %v8772_v29, %v4183_v40  ;;  %3957 = vst.msk [vmem:[#allocation2 + $0x6e8] sm:$0xff] %vm272_vm3, %v3732_v39  ;;  %v2659_v57 = vpop.f32.mrf.mxu0 }
 0x449   : > { %v4748_v58 = vpack.c.bf16 %v4524_v48, %v4524_v48  ;;  %v3229_v59 = vadd.f32 %v3228_v5, %v2659_v57  ;;  %v4527_v14 = vmax.f32 %v4303_v62, 0.0  ;;  %v3508_v5 = vpop.f32.mrf.mxu3 }
 0x44a   : > { %v4635_v47 = vmax.f32 %v4411_v42, 0.0 }
 0x44b   : > { %v2937_v50 = vpop.f32.mrf.mxu2  ;;  %4973 = vst.msk [vmem:[%s6836_s23 + $0x1b4] sm:$0xf] %vm4863_vm4, %v4748_v58  ;;  %v3622_v17 = vadd.f32 %v3229_v59, %v608_v56  ;;  %v4751_v7 = vpack.c.bf16 %v4527_v14, %v4527_v14 }
 0x44c   : > { %v4859_v51 = vpack.c.bf16 %v4635_v47, %v4635_v47  ;;  %v3507_v45 = vadd.f32 %v3506_v24, %v2937_v50  ;;  %v4073_v0 = vld [vmem:[#allocation2 + $0x370] sm:$0xff] }
 0x44d   : > { %v4301_v1 = vadd.f32 %v8772_v29, %v4073_v0  ;;  %3847 = vst.msk [vmem:[#allocation2 + $0x378] sm:$0xff] %vm272_vm3, %v3622_v17 }
 0x44e   : > { %5084 = vst.msk [vmem:[%s6836_s23 + $0x370] sm:$0xf] %vm4863_vm4, %v4859_v51  ;;  %v3733_v8 = vadd.f32 %v3507_v45, %v719_v49  ;;  %v4076_v55 = vld [vmem:[#allocation2 + $0x388] sm:$0xff] }
 0x44f   : > { %v4184_v18 = vld [vmem:[#allocation2 + $0x6e8] sm:$0xff]  ;;  %v4525_v13 = vmax.f32 %v4301_v1, 0.0  ;;  %4976 = vst.msk [vmem:[%s6836_s23 + $0x1c0] sm:$0xf] %vm4863_vm4, %v4751_v7  ;;  %v4304_v16 = vadd.f32 %v8772_v29, %v4076_v55 }
 0x450   : > { %v4412_v63 = vadd.f32 %v8772_v29, %v4184_v18  ;;  %3958 = vst.msk [vmem:[#allocation2 + $0x6f0] sm:$0xff] %vm272_vm3, %v3733_v8 }
 0x451   : > { %v4749_v43 = vpack.c.bf16 %v4525_v13, %v4525_v13  ;;  %v4528_v2 = vmax.f32 %v4304_v16, 0.0 }
 0x452   : > { %v4636_v3 = vmax.f32 %v4412_v63, 0.0 }
 0x453   : > { %v2939_v27 = vpop.f32.mrf.mxu2  ;;  %4974 = vst.msk [vmem:[%s6836_s23 + $0x1b8] sm:$0xf] %vm4863_vm4, %v4749_v43  ;;  %v4752_v25 = vpack.c.bf16 %v4528_v2, %v4528_v2 }
 0x454   : > { %v3509_v31 = vadd.f32 %v3508_v5, %v2939_v27  ;;  %v4860_v11 = vpack.c.bf16 %v4636_v3, %v4636_v3  ;;  %v4074_v15 = vld [vmem:[#allocation2 + $0x378] sm:$0xff] }
 0x455   : > { %v4302_v22 = vadd.f32 %v8772_v29, %v4074_v15  ;;  %4977 = vst.msk [vmem:[%s6836_s23 + $0x1c4] sm:$0xf] %vm4863_vm4, %v4752_v25 }
 0x456   : > { %v3734_v21 = vadd.f32 %v3509_v31, %v720_v54  ;;  %5085 = vst.msk [vmem:[%s6836_s23 + $0x374] sm:$0xf] %vm4863_vm4, %v4860_v11 }
 0x457   : > { %v4185_v20 = vld [vmem:[#allocation2 + $0x6f0] sm:$0xff]  ;;  %v4526_v12 = vmax.f32 %v4302_v22, 0.0 }
 0x458   : > { %v4413_v52 = vadd.f32 %v8772_v29, %v4185_v20  ;;  %3959 = vst.msk [vmem:[#allocation2 + $0x6f8] sm:$0xff] %vm272_vm3, %v3734_v21 }
 0x459   : > { %v4750_v60 = vpack.c.bf16 %v4526_v12, %v4526_v12 }
 0x45a   : > { %v4637_v23 = vmax.f32 %v4413_v52, 0.0 }
 0x45b   : > { %4975 = vst.msk [vmem:[%s6836_s23 + $0x1bc] sm:$0xf] %vm4863_vm4, %v4750_v60 }
 0x45c   : > { %v4861_v37 = vpack.c.bf16 %v4637_v23, %v4637_v23 }
 0x45e   : > { %5086 = vst.msk [vmem:[%s6836_s23 + $0x378] sm:$0xf] %vm4863_vm4, %v4861_v37 }
 0x45f   : > { %v4186_v28 = vld [vmem:[#allocation2 + $0x6f8] sm:$0xff] }
 0x460   : > { %v4414_v19 = vadd.f32 %v8772_v29, %v4186_v28 }
 0x462   : > { %v4638_v30 = vmax.f32 %v4414_v19, 0.0 }
 0x464   : > { %v4862_v9 = vpack.c.bf16 %v4638_v30, %v4638_v30 }
 0x466   : > { %5087 = vst.msk [vmem:[%s6836_s23 + $0x37c] sm:$0xf] %vm4863_vm4, %v4862_v9 }
 0x467 PF: > { %s13_s14 = sadd.s32 1, %s6557_s14   ;;  %s8895_s12 = smov %s6553_s13 }
 0x468   : > { %p10_p5 = scmp.ge.s32.totalorder %s13_s14, 16   ;;  %s8896_s13 = smov %s8898_s15 }
 0x46a   :  { %12 = sbr.rel (!%p10_p5) target bundleno = 2 (0x2), region = 76 }

</bundles_post_ra>
